<compile_context>
chip_gen: v6e
topology: v6e:2x2x1
jax: 0.10.0
libtpu: 0.0.40
codegen_flags: <defaults>
</compile_context>

<pallas_src>
import math

import jax
import jax.numpy as jnp
import numpy as np
from jax import lax
from jax.experimental import pallas as pl
from jax.experimental.pallas import tpu as pltpu


# Abramowitz & Stegun 4.4.46 coefficients for acos on [0, 1]; |err| <= ~6.7e-5 rad.
_ACOS_COEFFS = (1.5707288, -0.2121144, 0.0742610, -0.0187293)


def _acos(x):
    ax = jnp.abs(x)
    poly = jnp.float32(_ACOS_COEFFS[-1])
    for c in _ACOS_COEFFS[-2::-1]:
        poly = poly * ax + jnp.float32(c)
    r = jnp.sqrt(jnp.maximum(1.0 - ax, 0.0)) * poly
    return jnp.where(x < 0, jnp.float32(math.pi) - r, r)


def _feature_kernel(p_ref, out_ref):
    # p_ref: (30, BM, 128)   out_ref: (67, BM, 128) -- batch on (sublane, lane).

    def pt(i):
        # Load point i's components directly from the input buffer at the point
        # of use (no always-live hoisted lists -> fewer live (BM,128) slabs).
        return p_ref[3 * i + 0], p_ref[3 * i + 1], p_ref[3 * i + 2]

    def v12(k):
        ax, ay, az = pt(k)
        bx, by, bz = pt(k + 1)
        return bx - ax, by - ay, bz - az

    # ---- Dist: rows 0..44 (torch.cat order: V12 block, V13, ..., V110) ------
    row = 0
    for j in range(1, 10):
        for i in range(10 - j):
            ax, ay, az = pt(i)
            bx, by, bz = pt(i + j)
            dx, dy, dz = bx - ax, by - ay, bz - az
            out_ref[row] = jnp.sqrt(dx * dx + dy * dy + dz * dz)
            row += 1

    # ---- Fused sliding-window pass over chain edges k = 0..7 ----------------
    # Emits Angles[k] (rows 45..52), COS[m] (rows 53..59), SIN[m] (rows 60..66)
    # keeping only V12_k/V12_{k+1}, C_{k-1}/C_k and their rsqrts live.
    vpx, vpy, vpz = v12(0)                         # V12_0
    rn_p = lax.rsqrt(vpx * vpx + vpy * vpy + vpz * vpz)
    cpx = cpy = cpz = crn_p = None                 # C_{k-1}, 1/|C_{k-1}|
    for k in range(8):
        vcx, vcy, vcz = v12(k + 1)                 # V12_{k+1}
        rn_c = lax.rsqrt(vcx * vcx + vcy * vcy + vcz * vcz)

        # Angles[k] = acos( V12_k . V12_{k+1} / |V12_k| / |V12_{k+1}| )
        dot_vv = vpx * vcx + vpy * vcy + vpz * vcz
        out_ref[45 + k] = _acos(dot_vv * rn_p * rn_c)

        # C_k = V12_k x V12_{k+1}
        ccx = vpy * vcz - vpz * vcy
        ccy = vpz * vcx - vpx * vcz
        ccz = vpx * vcy - vpy * vcx
        crn_c = lax.rsqrt(ccx * ccx + ccy * ccy + ccz * ccz)

        if k >= 1:
            m = k - 1
            # COS[m] = C_m . C_{m+1} / |C_m| / |C_{m+1}|
            dot_cc = cpx * ccx + cpy * ccy + cpz * ccz
            out_ref[53 + m] = dot_cc * crn_p * crn_c
            # N_m = C_{m+1} x V12_{m+1} = C_k x V12_k
            nx = ccy * vpz - ccz * vpy
            ny = ccz * vpx - ccx * vpz
            nz = ccx * vpy - ccy * vpx
            nrn = lax.rsqrt(nx * nx + ny * ny + nz * nz)
            # SIN[m] = C_m . N_m / |C_m| / |N_m|
            dot_cn = cpx * nx + cpy * ny + cpz * nz
            out_ref[60 + m] = dot_cn * crn_p * nrn

        # Slide the window.
        vpx, vpy, vpz, rn_p = vcx, vcy, vcz, rn_c
        cpx, cpy, cpz, crn_p = ccx, ccy, ccz, crn_c


def _round_up(x, m):
    return ((x + m - 1) // m) * m


def _vmem_limit_bytes():
    # ~60% of physical VMEM, capped at 96 MiB: ~76 MiB on v5e/v6e (128 MiB),
    # ~38 MiB on v7x (64 MiB per TC). Safe fallback if the query is unavailable.
    try:
        cap = pltpu.get_tpu_info().vmem_capacity_bytes
    except Exception:
        cap = 64 * 1024 * 1024
    return min(int(0.6 * cap), 96 * 1024 * 1024)


def feature_forward_fmajor(Pc):
    """Feature-major entry: Pc (30, n) float -> (67, n) float32 (no transposes)."""
    assert Pc.shape[0] == 30, Pc.shape
    n = Pc.shape[1]
    lanes = 128

    # Adaptive block size: big tiles for throughput, >= 2 grid blocks whenever
    # the input spans more than one 8x128 tile (so v7x can use both TCs), and
    # only 8 rows of padding for tiny inputs.
    rows = -(-n // lanes)                       # cdiv(n, 128)
    if rows <= 8:
        bm = 8
    else:
        bm = min(128, _round_up(-(-rows // 2), 8))
    num_blocks = -(-rows // bm)
    n_pad = num_blocks * bm * lanes

    P = Pc.astype(jnp.float32)
    if n_pad != n:
        P = jnp.pad(P, ((0, 0), (0, n_pad - n)))   # padded cols computed, then sliced off
    Pb = P.reshape(30, n_pad // lanes, lanes)

    cost = pl.CostEstimate(
        flops=900 * n_pad,
        transcendentals=80 * n_pad,
        bytes_accessed=(30 + 67) * 4 * n_pad,
    )

    out_t = pl.pallas_call(
        _feature_kernel,
        out_shape=jax.ShapeDtypeStruct((67, n_pad // lanes, lanes), jnp.float32),
        grid=(num_blocks,),
        in_specs=[pl.BlockSpec((30, bm, lanes), lambda i: (0, i, 0))],
        out_specs=pl.BlockSpec((67, bm, lanes), lambda i: (0, i, 0)),
        compiler_params=pltpu.CompilerParams(
            dimension_semantics=("parallel",),
            vmem_limit_bytes=_vmem_limit_bytes(),
        ),
        cost_estimate=cost,
    )(Pb)

    return out_t.reshape(67, n_pad)[:, :n]


def feature_forward(U):
    """Module contract: U (n, 30) -> (n, 67) float32.

    The two transposes here are layout plumbing in XLA; use
    feature_forward_fmajor directly when data can be kept feature-major.
    """
    assert U.shape[1] == 30, U.shape
    return feature_forward_fmajor(jnp.asarray(U, jnp.float32).T).T


def feature_ref(U):
    """Pure-JAX mirror of the torch forward (for verification)."""
    n = U.shape[0]
    P = U.reshape(n, 10, 3)
    Vs = [P[:, j:10, :] - P[:, 0:10 - j, :] for j in range(1, 10)]
    V = jnp.concatenate(Vs, axis=1)
    V12 = Vs[0]
    C = jnp.cross(V12[:, 0:8, :], V12[:, 1:9, :])
    N = jnp.cross(C[:, 1:8, :], V12[:, 1:8, :])
    nrm = lambda x: jnp.linalg.norm(x, axis=2)
    COS = jnp.sum(C[:, 0:7] * C[:, 1:8], axis=2) / nrm(C[:, 0:7]) / nrm(C[:, 1:8])
    SIN = jnp.sum(C[:, 0:7] * N[:, 0:7], axis=2) / nrm(C[:, 0:7]) / nrm(N[:, 0:7])
    Angles = jnp.arccos(jnp.sum(V12[:, 0:8] * V12[:, 1:9], axis=2)
                        / nrm(V12[:, 0:8]) / nrm(V12[:, 1:9]))
    Dist = nrm(V)
    return jnp.concatenate([Dist, Angles, COS, SIN], axis=1)


if __name__ == "__main__":
    key = jax.random.PRNGKey(0)
    n = 16
    U = jax.random.normal(key, (n, 30), dtype=jnp.float32)   # n samples of 10 (x,y,z) points

    out = jax.block_until_ready(feature_forward(U))
    ref = feature_ref(U)

    assert out.shape == (n, 67), out.shape
    # 4-term acos approximation contributes |err| <= ~7e-5 rad on the angle rows.
    if not np.allclose(np.asarray(out), np.asarray(ref), atol=3e-4, rtol=3e-4):
        raise AssertionError("Pallas kernel output mismatch vs JAX reference")
    print("KERNEL_OK")
</pallas_src>

<mosaic_0001>
module attributes {stable_mosaic.version = 11 : i64} {
  func.func @_feature_kernel(%arg0: i32, %arg1: memref<30x8x128xf32, #tpu.memory_space<vmem>>, %arg2: memref<67x8x128xf32, #tpu.memory_space<vmem>>) attributes {dimension_semantics = [#tpu.dimension_semantics<parallel>], iteration_bounds = array<i64: 1>, scalar_prefetch = 0 : i64, scratch_operands = 0 : i64, tpu.core_type = #tpu.core_type<tc>, window_params = [{transform_indices = @transform_0, window_bounds = array<i64: 30, 8, 128>}, {transform_indices = @transform_1, window_bounds = array<i64: 67, 8, 128>}]} {
    %c0 = arith.constant 0 : index
    %c0_0 = arith.constant 0 : index
    %c0_1 = arith.constant 0 : index
    %0 = vector.load %arg1[%c0, %c0_0, %c0_1] : memref<30x8x128xf32, #tpu.memory_space<vmem>>, vector<1x8x128xf32>
    %1 = vector.shape_cast %0 : vector<1x8x128xf32> to vector<8x128xf32>
    %c1 = arith.constant 1 : index
    %c0_2 = arith.constant 0 : index
    %c0_3 = arith.constant 0 : index
    %2 = vector.load %arg1[%c1, %c0_2, %c0_3] : memref<30x8x128xf32, #tpu.memory_space<vmem>>, vector<1x8x128xf32>
    %3 = vector.shape_cast %2 : vector<1x8x128xf32> to vector<8x128xf32>
    %c2 = arith.constant 2 : index
    %c0_4 = arith.constant 0 : index
    %c0_5 = arith.constant 0 : index
    %4 = vector.load %arg1[%c2, %c0_4, %c0_5] : memref<30x8x128xf32, #tpu.memory_space<vmem>>, vector<1x8x128xf32>
    %5 = vector.shape_cast %4 : vector<1x8x128xf32> to vector<8x128xf32>
    %c3 = arith.constant 3 : index
    %c0_6 = arith.constant 0 : index
    %c0_7 = arith.constant 0 : index
    %6 = vector.load %arg1[%c3, %c0_6, %c0_7] : memref<30x8x128xf32, #tpu.memory_space<vmem>>, vector<1x8x128xf32>
    %7 = vector.shape_cast %6 : vector<1x8x128xf32> to vector<8x128xf32>
    %c4 = arith.constant 4 : index
    %c0_8 = arith.constant 0 : index
    %c0_9 = arith.constant 0 : index
    %8 = vector.load %arg1[%c4, %c0_8, %c0_9] : memref<30x8x128xf32, #tpu.memory_space<vmem>>, vector<1x8x128xf32>
    %9 = vector.shape_cast %8 : vector<1x8x128xf32> to vector<8x128xf32>
    %c5 = arith.constant 5 : index
    %c0_10 = arith.constant 0 : index
    %c0_11 = arith.constant 0 : index
    %10 = vector.load %arg1[%c5, %c0_10, %c0_11] : memref<30x8x128xf32, #tpu.memory_space<vmem>>, vector<1x8x128xf32>
    %11 = vector.shape_cast %10 : vector<1x8x128xf32> to vector<8x128xf32>
    %12 = arith.subf %7, %1 : vector<8x128xf32>
    %13 = arith.subf %9, %3 : vector<8x128xf32>
    %14 = arith.subf %11, %5 : vector<8x128xf32>
    %15 = arith.mulf %12, %12 : vector<8x128xf32>
    %16 = arith.mulf %13, %13 : vector<8x128xf32>
    %17 = arith.addf %15, %16 : vector<8x128xf32>
    %18 = arith.mulf %14, %14 : vector<8x128xf32>
    %19 = arith.addf %17, %18 : vector<8x128xf32>
    %20 = math.sqrt %19 : vector<8x128xf32>
    %c0_12 = arith.constant 0 : index
    %c0_13 = arith.constant 0 : index
    %c0_14 = arith.constant 0 : index
    %21 = vector.load %arg2[%c0_12, %c0_13, %c0_14] : memref<67x8x128xf32, #tpu.memory_space<vmem>>, vector<1x8x128xf32>
    %22 = vector.shape_cast %21 : vector<1x8x128xf32> to vector<8x128xf32>
    %23 = vector.shape_cast %20 : vector<8x128xf32> to vector<1x8x128xf32>
    tpu.vector_store %arg2[%c0_12, %c0_13, %c0_14], %23 {strides = array<i32>} : memref<67x8x128xf32, #tpu.memory_space<vmem>>, vector<1x8x128xf32>,
    %c3_15 = arith.constant 3 : index
    %c0_16 = arith.constant 0 : index
    %c0_17 = arith.constant 0 : index
    %24 = vector.load %arg1[%c3_15, %c0_16, %c0_17] : memref<30x8x128xf32, #tpu.memory_space<vmem>>, vector<1x8x128xf32>
    %25 = vector.shape_cast %24 : vector<1x8x128xf32> to vector<8x128xf32>
    %c4_18 = arith.constant 4 : index
    %c0_19 = arith.constant 0 : index
    %c0_20 = arith.constant 0 : index
    %26 = vector.load %arg1[%c4_18, %c0_19, %c0_20] : memref<30x8x128xf32, #tpu.memory_space<vmem>>, vector<1x8x128xf32>
    %27 = vector.shape_cast %26 : vector<1x8x128xf32> to vector<8x128xf32>
    %c5_21 = arith.constant 5 : index
    %c0_22 = arith.constant 0 : index
    %c0_23 = arith.constant 0 : index
    %28 = vector.load %arg1[%c5_21, %c0_22, %c0_23] : memref<30x8x128xf32, #tpu.memory_space<vmem>>, vector<1x8x128xf32>
    %29 = vector.shape_cast %28 : vector<1x8x128xf32> to vector<8x128xf32>
    %c6 = arith.constant 6 : index
    %c0_24 = arith.constant 0 : index
    %c0_25 = arith.constant 0 : index
    %30 = vector.load %arg1[%c6, %c0_24, %c0_25] : memref<30x8x128xf32, #tpu.memory_space<vmem>>, vector<1x8x128xf32>
    %31 = vector.shape_cast %30 : vector<1x8x128xf32> to vector<8x128xf32>
    %c7 = arith.constant 7 : index
    %c0_26 = arith.constant 0 : index
    %c0_27 = arith.constant 0 : index
    %32 = vector.load %arg1[%c7, %c0_26, %c0_27] : memref<30x8x128xf32, #tpu.memory_space<vmem>>, vector<1x8x128xf32>
    %33 = vector.shape_cast %32 : vector<1x8x128xf32> to vector<8x128xf32>
    %c8 = arith.constant 8 : index
    %c0_28 = arith.constant 0 : index
    %c0_29 = arith.constant 0 : index
    %34 = vector.load %arg1[%c8, %c0_28, %c0_29] : memref<30x8x128xf32, #tpu.memory_space<vmem>>, vector<1x8x128xf32>
    %35 = vector.shape_cast %34 : vector<1x8x128xf32> to vector<8x128xf32>
    %36 = arith.subf %31, %25 : vector<8x128xf32>
    %37 = arith.subf %33, %27 : vector<8x128xf32>
    %38 = arith.subf %35, %29 : vector<8x128xf32>
    %39 = arith.mulf %36, %36 : vector<8x128xf32>
    %40 = arith.mulf %37, %37 : vector<8x128xf32>
    %41 = arith.addf %39, %40 : vector<8x128xf32>
    %42 = arith.mulf %38, %38 : vector<8x128xf32>
    %43 = arith.addf %41, %42 : vector<8x128xf32>
    %44 = math.sqrt %43 : vector<8x128xf32>
    %c1_30 = arith.constant 1 : index
    %c0_31 = arith.constant 0 : index
    %c0_32 = arith.constant 0 : index
    %45 = vector.load %arg2[%c1_30, %c0_31, %c0_32] : memref<67x8x128xf32, #tpu.memory_space<vmem>>, vector<1x8x128xf32>
    %46 = vector.shape_cast %45 : vector<1x8x128xf32> to vector<8x128xf32>
    %47 = vector.shape_cast %44 : vector<8x128xf32> to vector<1x8x128xf32>
    tpu.vector_store %arg2[%c1_30, %c0_31, %c0_32], %47 {strides = array<i32>} : memref<67x8x128xf32, #tpu.memory_space<vmem>>, vector<1x8x128xf32>,
    %c6_33 = arith.constant 6 : index
    %c0_34 = arith.constant 0 : index
    %c0_35 = arith.constant 0 : index
    %48 = vector.load %arg1[%c6_33, %c0_34, %c0_35] : memref<30x8x128xf32, #tpu.memory_space<vmem>>, vector<1x8x128xf32>
    %49 = vector.shape_cast %48 : vector<1x8x128xf32> to vector<8x128xf32>
    %c7_36 = arith.constant 7 : index
    %c0_37 = arith.constant 0 : index
    %c0_38 = arith.constant 0 : index
    %50 = vector.load %arg1[%c7_36, %c0_37, %c0_38] : memref<30x8x128xf32, #tpu.memory_space<vmem>>, vector<1x8x128xf32>
    %51 = vector.shape_cast %50 : vector<1x8x128xf32> to vector<8x128xf32>
    %c8_39 = arith.constant 8 : index
    %c0_40 = arith.constant 0 : index
    %c0_41 = arith.constant 0 : index
    %52 = vector.load %arg1[%c8_39, %c0_40, %c0_41] : memref<30x8x128xf32, #tpu.memory_space<vmem>>, vector<1x8x128xf32>
    %53 = vector.shape_cast %52 : vector<1x8x128xf32> to vector<8x128xf32>
    %c9 = arith.constant 9 : index
    %c0_42 = arith.constant 0 : index
    %c0_43 = arith.constant 0 : index
    %54 = vector.load %arg1[%c9, %c0_42, %c0_43] : memref<30x8x128xf32, #tpu.memory_space<vmem>>, vector<1x8x128xf32>
    %55 = vector.shape_cast %54 : vector<1x8x128xf32> to vector<8x128xf32>
    %c10 = arith.constant 10 : index
    %c0_44 = arith.constant 0 : index
    %c0_45 = arith.constant 0 : index
    %56 = vector.load %arg1[%c10, %c0_44, %c0_45] : memref<30x8x128xf32, #tpu.memory_space<vmem>>, vector<1x8x128xf32>
    %57 = vector.shape_cast %56 : vector<1x8x128xf32> to vector<8x128xf32>
    %c11 = arith.constant 11 : index
    %c0_46 = arith.constant 0 : index
    %c0_47 = arith.constant 0 : index
    %58 = vector.load %arg1[%c11, %c0_46, %c0_47] : memref<30x8x128xf32, #tpu.memory_space<vmem>>, vector<1x8x128xf32>
    %59 = vector.shape_cast %58 : vector<1x8x128xf32> to vector<8x128xf32>
    %60 = arith.subf %55, %49 : vector<8x128xf32>
    %61 = arith.subf %57, %51 : vector<8x128xf32>
    %62 = arith.subf %59, %53 : vector<8x128xf32>
    %63 = arith.mulf %60, %60 : vector<8x128xf32>
    %64 = arith.mulf %61, %61 : vector<8x128xf32>
    %65 = arith.addf %63, %64 : vector<8x128xf32>
    %66 = arith.mulf %62, %62 : vector<8x128xf32>
    %67 = arith.addf %65, %66 : vector<8x128xf32>
    %68 = math.sqrt %67 : vector<8x128xf32>
    %c2_48 = arith.constant 2 : index
    %c0_49 = arith.constant 0 : index
    %c0_50 = arith.constant 0 : index
    %69 = vector.load %arg2[%c2_48, %c0_49, %c0_50] : memref<67x8x128xf32, #tpu.memory_space<vmem>>, vector<1x8x128xf32>
    %70 = vector.shape_cast %69 : vector<1x8x128xf32> to vector<8x128xf32>
    %71 = vector.shape_cast %68 : vector<8x128xf32> to vector<1x8x128xf32>
    tpu.vector_store %arg2[%c2_48, %c0_49, %c0_50], %71 {strides = array<i32>} : memref<67x8x128xf32, #tpu.memory_space<vmem>>, vector<1x8x128xf32>,
    %c9_51 = arith.constant 9 : index
    %c0_52 = arith.constant 0 : index
    %c0_53 = arith.constant 0 : index
    %72 = vector.load %arg1[%c9_51, %c0_52, %c0_53] : memref<30x8x128xf32, #tpu.memory_space<vmem>>, vector<1x8x128xf32>
    %73 = vector.shape_cast %72 : vector<1x8x128xf32> to vector<8x128xf32>
    %c10_54 = arith.constant 10 : index
    %c0_55 = arith.constant 0 : index
    %c0_56 = arith.constant 0 : index
    %74 = vector.load %arg1[%c10_54, %c0_55, %c0_56] : memref<30x8x128xf32, #tpu.memory_space<vmem>>, vector<1x8x128xf32>
    %75 = vector.shape_cast %74 : vector<1x8x128xf32> to vector<8x128xf32>
    %c11_57 = arith.constant 11 : index
    %c0_58 = arith.constant 0 : index
    %c0_59 = arith.constant 0 : index
    %76 = vector.load %arg1[%c11_57, %c0_58, %c0_59] : memref<30x8x128xf32, #tpu.memory_space<vmem>>, vector<1x8x128xf32>
    %77 = vector.shape_cast %76 : vector<1x8x128xf32> to vector<8x128xf32>
    %c12 = arith.constant 12 : index
    %c0_60 = arith.constant 0 : index
    %c0_61 = arith.constant 0 : index
    %78 = vector.load %arg1[%c12, %c0_60, %c0_61] : memref<30x8x128xf32, #tpu.memory_space<vmem>>, vector<1x8x128xf32>
    %79 = vector.shape_cast %78 : vector<1x8x128xf32> to vector<8x128xf32>
    %c13 = arith.constant 13 : index
    %c0_62 = arith.constant 0 : index
    %c0_63 = arith.constant 0 : index
    %80 = vector.load %arg1[%c13, %c0_62, %c0_63] : memref<30x8x128xf32, #tpu.memory_space<vmem>>, vector<1x8x128xf32>
    %81 = vector.shape_cast %80 : vector<1x8x128xf32> to vector<8x128xf32>
    %c14 = arith.constant 14 : index
    %c0_64 = arith.constant 0 : index
    %c0_65 = arith.constant 0 : index
    %82 = vector.load %arg1[%c14, %c0_64, %c0_65] : memref<30x8x128xf32, #tpu.memory_space<vmem>>, vector<1x8x128xf32>
    %83 = vector.shape_cast %82 : vector<1x8x128xf32> to vector<8x128xf32>
    %84 = arith.subf %79, %73 : vector<8x128xf32>
    %85 = arith.subf %81, %75 : vector<8x128xf32>
    %86 = arith.subf %83, %77 : vector<8x128xf32>
    %87 = arith.mulf %84, %84 : vector<8x128xf32>
    %88 = arith.mulf %85, %85 : vector<8x128xf32>
    %89 = arith.addf %87, %88 : vector<8x128xf32>
    %90 = arith.mulf %86, %86 : vector<8x128xf32>
    %91 = arith.addf %89, %90 : vector<8x128xf32>
    %92 = math.sqrt %91 : vector<8x128xf32>
    %c3_66 = arith.constant 3 : index
    %c0_67 = arith.constant 0 : index
    %c0_68 = arith.constant 0 : index
    %93 = vector.load %arg2[%c3_66, %c0_67, %c0_68] : memref<67x8x128xf32, #tpu.memory_space<vmem>>, vector<1x8x128xf32>
    %94 = vector.shape_cast %93 : vector<1x8x128xf32> to vector<8x128xf32>
    %95 = vector.shape_cast %92 : vector<8x128xf32> to vector<1x8x128xf32>
    tpu.vector_store %arg2[%c3_66, %c0_67, %c0_68], %95 {strides = array<i32>} : memref<67x8x128xf32, #tpu.memory_space<vmem>>, vector<1x8x128xf32>,
    %c12_69 = arith.constant 12 : index
    %c0_70 = arith.constant 0 : index
    %c0_71 = arith.constant 0 : index
    %96 = vector.load %arg1[%c12_69, %c0_70, %c0_71] : memref<30x8x128xf32, #tpu.memory_space<vmem>>, vector<1x8x128xf32>
    %97 = vector.shape_cast %96 : vector<1x8x128xf32> to vector<8x128xf32>
    %c13_72 = arith.constant 13 : index
    %c0_73 = arith.constant 0 : index
    %c0_74 = arith.constant 0 : index
    %98 = vector.load %arg1[%c13_72, %c0_73, %c0_74] : memref<30x8x128xf32, #tpu.memory_space<vmem>>, vector<1x8x128xf32>
    %99 = vector.shape_cast %98 : vector<1x8x128xf32> to vector<8x128xf32>
    %c14_75 = arith.constant 14 : index
    %c0_76 = arith.constant 0 : index
    %c0_77 = arith.constant 0 : index
    %100 = vector.load %arg1[%c14_75, %c0_76, %c0_77] : memref<30x8x128xf32, #tpu.memory_space<vmem>>, vector<1x8x128xf32>
    %101 = vector.shape_cast %100 : vector<1x8x128xf32> to vector<8x128xf32>
    %c15 = arith.constant 15 : index
    %c0_78 = arith.constant 0 : index
    %c0_79 = arith.constant 0 : index
    %102 = vector.load %arg1[%c15, %c0_78, %c0_79] : memref<30x8x128xf32, #tpu.memory_space<vmem>>, vector<1x8x128xf32>
    %103 = vector.shape_cast %102 : vector<1x8x128xf32> to vector<8x128xf32>
    %c16 = arith.constant 16 : index
    %c0_80 = arith.constant 0 : index
    %c0_81 = arith.constant 0 : index
    %104 = vector.load %arg1[%c16, %c0_80, %c0_81] : memref<30x8x128xf32, #tpu.memory_space<vmem>>, vector<1x8x128xf32>
    %105 = vector.shape_cast %104 : vector<1x8x128xf32> to vector<8x128xf32>
    %c17 = arith.constant 17 : index
    %c0_82 = arith.constant 0 : index
    %c0_83 = arith.constant 0 : index
    %106 = vector.load %arg1[%c17, %c0_82, %c0_83] : memref<30x8x128xf32, #tpu.memory_space<vmem>>, vector<1x8x128xf32>
    %107 = vector.shape_cast %106 : vector<1x8x128xf32> to vector<8x128xf32>
    %108 = arith.subf %103, %97 : vector<8x128xf32>
    %109 = arith.subf %105, %99 : vector<8x128xf32>
    %110 = arith.subf %107, %101 : vector<8x128xf32>
    %111 = arith.mulf %108, %108 : vector<8x128xf32>
    %112 = arith.mulf %109, %109 : vector<8x128xf32>
    %113 = arith.addf %111, %112 : vector<8x128xf32>
    %114 = arith.mulf %110, %110 : vector<8x128xf32>
    %115 = arith.addf %113, %114 : vector<8x128xf32>
    %116 = math.sqrt %115 : vector<8x128xf32>
    %c4_84 = arith.constant 4 : index
    %c0_85 = arith.constant 0 : index
    %c0_86 = arith.constant 0 : index
    %117 = vector.load %arg2[%c4_84, %c0_85, %c0_86] : memref<67x8x128xf32, #tpu.memory_space<vmem>>, vector<1x8x128xf32>
    %118 = vector.shape_cast %117 : vector<1x8x128xf32> to vector<8x128xf32>
    %119 = vector.shape_cast %116 : vector<8x128xf32> to vector<1x8x128xf32>
    tpu.vector_store %arg2[%c4_84, %c0_85, %c0_86], %119 {strides = array<i32>} : memref<67x8x128xf32, #tpu.memory_space<vmem>>, vector<1x8x128xf32>,
    %c15_87 = arith.constant 15 : index
    %c0_88 = arith.constant 0 : index
    %c0_89 = arith.constant 0 : index
    %120 = vector.load %arg1[%c15_87, %c0_88, %c0_89] : memref<30x8x128xf32, #tpu.memory_space<vmem>>, vector<1x8x128xf32>
    %121 = vector.shape_cast %120 : vector<1x8x128xf32> to vector<8x128xf32>
    %c16_90 = arith.constant 16 : index
    %c0_91 = arith.constant 0 : index
    %c0_92 = arith.constant 0 : index
    %122 = vector.load %arg1[%c16_90, %c0_91, %c0_92] : memref<30x8x128xf32, #tpu.memory_space<vmem>>, vector<1x8x128xf32>
    %123 = vector.shape_cast %122 : vector<1x8x128xf32> to vector<8x128xf32>
    %c17_93 = arith.constant 17 : index
    %c0_94 = arith.constant 0 : index
    %c0_95 = arith.constant 0 : index
    %124 = vector.load %arg1[%c17_93, %c0_94, %c0_95] : memref<30x8x128xf32, #tpu.memory_space<vmem>>, vector<1x8x128xf32>
    %125 = vector.shape_cast %124 : vector<1x8x128xf32> to vector<8x128xf32>
    %c18 = arith.constant 18 : index
    %c0_96 = arith.constant 0 : index
    %c0_97 = arith.constant 0 : index
    %126 = vector.load %arg1[%c18, %c0_96, %c0_97] : memref<30x8x128xf32, #tpu.memory_space<vmem>>, vector<1x8x128xf32>
    %127 = vector.shape_cast %126 : vector<1x8x128xf32> to vector<8x128xf32>
    %c19 = arith.constant 19 : index
    %c0_98 = arith.constant 0 : index
    %c0_99 = arith.constant 0 : index
    %128 = vector.load %arg1[%c19, %c0_98, %c0_99] : memref<30x8x128xf32, #tpu.memory_space<vmem>>, vector<1x8x128xf32>
    %129 = vector.shape_cast %128 : vector<1x8x128xf32> to vector<8x128xf32>
    %c20 = arith.constant 20 : index
    %c0_100 = arith.constant 0 : index
    %c0_101 = arith.constant 0 : index
    %130 = vector.load %arg1[%c20, %c0_100, %c0_101] : memref<30x8x128xf32, #tpu.memory_space<vmem>>, vector<1x8x128xf32>
    %131 = vector.shape_cast %130 : vector<1x8x128xf32> to vector<8x128xf32>
    %132 = arith.subf %127, %121 : vector<8x128xf32>
    %133 = arith.subf %129, %123 : vector<8x128xf32>
    %134 = arith.subf %131, %125 : vector<8x128xf32>
    %135 = arith.mulf %132, %132 : vector<8x128xf32>
    %136 = arith.mulf %133, %133 : vector<8x128xf32>
    %137 = arith.addf %135, %136 : vector<8x128xf32>
    %138 = arith.mulf %134, %134 : vector<8x128xf32>
    %139 = arith.addf %137, %138 : vector<8x128xf32>
    %140 = math.sqrt %139 : vector<8x128xf32>
    %c5_102 = arith.constant 5 : index
    %c0_103 = arith.constant 0 : index
    %c0_104 = arith.constant 0 : index
    %141 = vector.load %arg2[%c5_102, %c0_103, %c0_104] : memref<67x8x128xf32, #tpu.memory_space<vmem>>, vector<1x8x128xf32>
    %142 = vector.shape_cast %141 : vector<1x8x128xf32> to vector<8x128xf32>
    %143 = vector.shape_cast %140 : vector<8x128xf32> to vector<1x8x128xf32>
    tpu.vector_store %arg2[%c5_102, %c0_103, %c0_104], %143 {strides = array<i32>} : memref<67x8x128xf32, #tpu.memory_space<vmem>>, vector<1x8x128xf32>,
    %c18_105 = arith.constant 18 : index
    %c0_106 = arith.constant 0 : index
    %c0_107 = arith.constant 0 : index
    %144 = vector.load %arg1[%c18_105, %c0_106, %c0_107] : memref<30x8x128xf32, #tpu.memory_space<vmem>>, vector<1x8x128xf32>
    %145 = vector.shape_cast %144 : vector<1x8x128xf32> to vector<8x128xf32>
    %c19_108 = arith.constant 19 : index
    %c0_109 = arith.constant 0 : index
    %c0_110 = arith.constant 0 : index
    %146 = vector.load %arg1[%c19_108, %c0_109, %c0_110] : memref<30x8x128xf32, #tpu.memory_space<vmem>>, vector<1x8x128xf32>
    %147 = vector.shape_cast %146 : vector<1x8x128xf32> to vector<8x128xf32>
    %c20_111 = arith.constant 20 : index
    %c0_112 = arith.constant 0 : index
    %c0_113 = arith.constant 0 : index
    %148 = vector.load %arg1[%c20_111, %c0_112, %c0_113] : memref<30x8x128xf32, #tpu.memory_space<vmem>>, vector<1x8x128xf32>
    %149 = vector.shape_cast %148 : vector<1x8x128xf32> to vector<8x128xf32>
    %c21 = arith.constant 21 : index
    %c0_114 = arith.constant 0 : index
    %c0_115 = arith.constant 0 : index
    %150 = vector.load %arg1[%c21, %c0_114, %c0_115] : memref<30x8x128xf32, #tpu.memory_space<vmem>>, vector<1x8x128xf32>
    %151 = vector.shape_cast %150 : vector<1x8x128xf32> to vector<8x128xf32>
    %c22 = arith.constant 22 : index
    %c0_116 = arith.constant 0 : index
    %c0_117 = arith.constant 0 : index
    %152 = vector.load %arg1[%c22, %c0_116, %c0_117] : memref<30x8x128xf32, #tpu.memory_space<vmem>>, vector<1x8x128xf32>
    %153 = vector.shape_cast %152 : vector<1x8x128xf32> to vector<8x128xf32>
    %c23 = arith.constant 23 : index
    %c0_118 = arith.constant 0 : index
    %c0_119 = arith.constant 0 : index
    %154 = vector.load %arg1[%c23, %c0_118, %c0_119] : memref<30x8x128xf32, #tpu.memory_space<vmem>>, vector<1x8x128xf32>
    %155 = vector.shape_cast %154 : vector<1x8x128xf32> to vector<8x128xf32>
    %156 = arith.subf %151, %145 : vector<8x128xf32>
    %157 = arith.subf %153, %147 : vector<8x128xf32>
    %158 = arith.subf %155, %149 : vector<8x128xf32>
    %159 = arith.mulf %156, %156 : vector<8x128xf32>
    %160 = arith.mulf %157, %157 : vector<8x128xf32>
    %161 = arith.addf %159, %160 : vector<8x128xf32>
    %162 = arith.mulf %158, %158 : vector<8x128xf32>
    %163 = arith.addf %161, %162 : vector<8x128xf32>
    %164 = math.sqrt %163 : vector<8x128xf32>
    %c6_120 = arith.constant 6 : index
    %c0_121 = arith.constant 0 : index
    %c0_122 = arith.constant 0 : index
    %165 = vector.load %arg2[%c6_120, %c0_121, %c0_122] : memref<67x8x128xf32, #tpu.memory_space<vmem>>, vector<1x8x128xf32>
    %166 = vector.shape_cast %165 : vector<1x8x128xf32> to vector<8x128xf32>
    %167 = vector.shape_cast %164 : vector<8x128xf32> to vector<1x8x128xf32>
    tpu.vector_store %arg2[%c6_120, %c0_121, %c0_122], %167 {strides = array<i32>} : memref<67x8x128xf32, #tpu.memory_space<vmem>>, vector<1x8x128xf32>,
    %c21_123 = arith.constant 21 : index
    %c0_124 = arith.constant 0 : index
    %c0_125 = arith.constant 0 : index
    %168 = vector.load %arg1[%c21_123, %c0_124, %c0_125] : memref<30x8x128xf32, #tpu.memory_space<vmem>>, vector<1x8x128xf32>
    %169 = vector.shape_cast %168 : vector<1x8x128xf32> to vector<8x128xf32>
    %c22_126 = arith.constant 22 : index
    %c0_127 = arith.constant 0 : index
    %c0_128 = arith.constant 0 : index
    %170 = vector.load %arg1[%c22_126, %c0_127, %c0_128] : memref<30x8x128xf32, #tpu.memory_space<vmem>>, vector<1x8x128xf32>
    %171 = vector.shape_cast %170 : vector<1x8x128xf32> to vector<8x128xf32>
    %c23_129 = arith.constant 23 : index
    %c0_130 = arith.constant 0 : index
    %c0_131 = arith.constant 0 : index
    %172 = vector.load %arg1[%c23_129, %c0_130, %c0_131] : memref<30x8x128xf32, #tpu.memory_space<vmem>>, vector<1x8x128xf32>
    %173 = vector.shape_cast %172 : vector<1x8x128xf32> to vector<8x128xf32>
    %c24 = arith.constant 24 : index
    %c0_132 = arith.constant 0 : index
    %c0_133 = arith.constant 0 : index
    %174 = vector.load %arg1[%c24, %c0_132, %c0_133] : memref<30x8x128xf32, #tpu.memory_space<vmem>>, vector<1x8x128xf32>
    %175 = vector.shape_cast %174 : vector<1x8x128xf32> to vector<8x128xf32>
    %c25 = arith.constant 25 : index
    %c0_134 = arith.constant 0 : index
    %c0_135 = arith.constant 0 : index
    %176 = vector.load %arg1[%c25, %c0_134, %c0_135] : memref<30x8x128xf32, #tpu.memory_space<vmem>>, vector<1x8x128xf32>
    %177 = vector.shape_cast %176 : vector<1x8x128xf32> to vector<8x128xf32>
    %c26 = arith.constant 26 : index
    %c0_136 = arith.constant 0 : index
    %c0_137 = arith.constant 0 : index
    %178 = vector.load %arg1[%c26, %c0_136, %c0_137] : memref<30x8x128xf32, #tpu.memory_space<vmem>>, vector<1x8x128xf32>
    %179 = vector.shape_cast %178 : vector<1x8x128xf32> to vector<8x128xf32>
    %180 = arith.subf %175, %169 : vector<8x128xf32>
    %181 = arith.subf %177, %171 : vector<8x128xf32>
    %182 = arith.subf %179, %173 : vector<8x128xf32>
    %183 = arith.mulf %180, %180 : vector<8x128xf32>
    %184 = arith.mulf %181, %181 : vector<8x128xf32>
    %185 = arith.addf %183, %184 : vector<8x128xf32>
    %186 = arith.mulf %182, %182 : vector<8x128xf32>
    %187 = arith.addf %185, %186 : vector<8x128xf32>
    %188 = math.sqrt %187 : vector<8x128xf32>
    %c7_138 = arith.constant 7 : index
    %c0_139 = arith.constant 0 : index
    %c0_140 = arith.constant 0 : index
    %189 = vector.load %arg2[%c7_138, %c0_139, %c0_140] : memref<67x8x128xf32, #tpu.memory_space<vmem>>, vector<1x8x128xf32>
    %190 = vector.shape_cast %189 : vector<1x8x128xf32> to vector<8x128xf32>
    %191 = vector.shape_cast %188 : vector<8x128xf32> to vector<1x8x128xf32>
    tpu.vector_store %arg2[%c7_138, %c0_139, %c0_140], %191 {strides = array<i32>} : memref<67x8x128xf32, #tpu.memory_space<vmem>>, vector<1x8x128xf32>,
    %c24_141 = arith.constant 24 : index
    %c0_142 = arith.constant 0 : index
    %c0_143 = arith.constant 0 : index
    %192 = vector.load %arg1[%c24_141, %c0_142, %c0_143] : memref<30x8x128xf32, #tpu.memory_space<vmem>>, vector<1x8x128xf32>
    %193 = vector.shape_cast %192 : vector<1x8x128xf32> to vector<8x128xf32>
    %c25_144 = arith.constant 25 : index
    %c0_145 = arith.constant 0 : index
    %c0_146 = arith.constant 0 : index
    %194 = vector.load %arg1[%c25_144, %c0_145, %c0_146] : memref<30x8x128xf32, #tpu.memory_space<vmem>>, vector<1x8x128xf32>
    %195 = vector.shape_cast %194 : vector<1x8x128xf32> to vector<8x128xf32>
    %c26_147 = arith.constant 26 : index
    %c0_148 = arith.constant 0 : index
    %c0_149 = arith.constant 0 : index
    %196 = vector.load %arg1[%c26_147, %c0_148, %c0_149] : memref<30x8x128xf32, #tpu.memory_space<vmem>>, vector<1x8x128xf32>
    %197 = vector.shape_cast %196 : vector<1x8x128xf32> to vector<8x128xf32>
    %c27 = arith.constant 27 : index
    %c0_150 = arith.constant 0 : index
    %c0_151 = arith.constant 0 : index
    %198 = vector.load %arg1[%c27, %c0_150, %c0_151] : memref<30x8x128xf32, #tpu.memory_space<vmem>>, vector<1x8x128xf32>
    %199 = vector.shape_cast %198 : vector<1x8x128xf32> to vector<8x128xf32>
    %c28 = arith.constant 28 : index
    %c0_152 = arith.constant 0 : index
    %c0_153 = arith.constant 0 : index
    %200 = vector.load %arg1[%c28, %c0_152, %c0_153] : memref<30x8x128xf32, #tpu.memory_space<vmem>>, vector<1x8x128xf32>
    %201 = vector.shape_cast %200 : vector<1x8x128xf32> to vector<8x128xf32>
    %c29 = arith.constant 29 : index
    %c0_154 = arith.constant 0 : index
    %c0_155 = arith.constant 0 : index
    %202 = vector.load %arg1[%c29, %c0_154, %c0_155] : memref<30x8x128xf32, #tpu.memory_space<vmem>>, vector<1x8x128xf32>
    %203 = vector.shape_cast %202 : vector<1x8x128xf32> to vector<8x128xf32>
    %204 = arith.subf %199, %193 : vector<8x128xf32>
    %205 = arith.subf %201, %195 : vector<8x128xf32>
    %206 = arith.subf %203, %197 : vector<8x128xf32>
    %207 = arith.mulf %204, %204 : vector<8x128xf32>
    %208 = arith.mulf %205, %205 : vector<8x128xf32>
    %209 = arith.addf %207, %208 : vector<8x128xf32>
    %210 = arith.mulf %206, %206 : vector<8x128xf32>
    %211 = arith.addf %209, %210 : vector<8x128xf32>
    %212 = math.sqrt %211 : vector<8x128xf32>
    %c8_156 = arith.constant 8 : index
    %c0_157 = arith.constant 0 : index
    %c0_158 = arith.constant 0 : index
    %213 = vector.load %arg2[%c8_156, %c0_157, %c0_158] : memref<67x8x128xf32, #tpu.memory_space<vmem>>, vector<1x8x128xf32>
    %214 = vector.shape_cast %213 : vector<1x8x128xf32> to vector<8x128xf32>
    %215 = vector.shape_cast %212 : vector<8x128xf32> to vector<1x8x128xf32>
    tpu.vector_store %arg2[%c8_156, %c0_157, %c0_158], %215 {strides = array<i32>} : memref<67x8x128xf32, #tpu.memory_space<vmem>>, vector<1x8x128xf32>,
    %c0_159 = arith.constant 0 : index
    %c0_160 = arith.constant 0 : index
    %c0_161 = arith.constant 0 : index
    %216 = vector.load %arg1[%c0_159, %c0_160, %c0_161] : memref<30x8x128xf32, #tpu.memory_space<vmem>>, vector<1x8x128xf32>
    %217 = vector.shape_cast %216 : vector<1x8x128xf32> to vector<8x128xf32>
    %c1_162 = arith.constant 1 : index
    %c0_163 = arith.constant 0 : index
    %c0_164 = arith.constant 0 : index
    %218 = vector.load %arg1[%c1_162, %c0_163, %c0_164] : memref<30x8x128xf32, #tpu.memory_space<vmem>>, vector<1x8x128xf32>
    %219 = vector.shape_cast %218 : vector<1x8x128xf32> to vector<8x128xf32>
    %c2_165 = arith.constant 2 : index
    %c0_166 = arith.constant 0 : index
    %c0_167 = arith.constant 0 : index
    %220 = vector.load %arg1[%c2_165, %c0_166, %c0_167] : memref<30x8x128xf32, #tpu.memory_space<vmem>>, vector<1x8x128xf32>
    %221 = vector.shape_cast %220 : vector<1x8x128xf32> to vector<8x128xf32>
    %c6_168 = arith.constant 6 : index
    %c0_169 = arith.constant 0 : index
    %c0_170 = arith.constant 0 : index
    %222 = vector.load %arg1[%c6_168, %c0_169, %c0_170] : memref<30x8x128xf32, #tpu.memory_space<vmem>>, vector<1x8x128xf32>
    %223 = vector.shape_cast %222 : vector<1x8x128xf32> to vector<8x128xf32>
    %c7_171 = arith.constant 7 : index
    %c0_172 = arith.constant 0 : index
    %c0_173 = arith.constant 0 : index
    %224 = vector.load %arg1[%c7_171, %c0_172, %c0_173] : memref<30x8x128xf32, #tpu.memory_space<vmem>>, vector<1x8x128xf32>
    %225 = vector.shape_cast %224 : vector<1x8x128xf32> to vector<8x128xf32>
    %c8_174 = arith.constant 8 : index
    %c0_175 = arith.constant 0 : index
    %c0_176 = arith.constant 0 : index
    %226 = vector.load %arg1[%c8_174, %c0_175, %c0_176] : memref<30x8x128xf32, #tpu.memory_space<vmem>>, vector<1x8x128xf32>
    %227 = vector.shape_cast %226 : vector<1x8x128xf32> to vector<8x128xf32>
    %228 = arith.subf %223, %217 : vector<8x128xf32>
    %229 = arith.subf %225, %219 : vector<8x128xf32>
    %230 = arith.subf %227, %221 : vector<8x128xf32>
    %231 = arith.mulf %228, %228 : vector<8x128xf32>
    %232 = arith.mulf %229, %229 : vector<8x128xf32>
    %233 = arith.addf %231, %232 : vector<8x128xf32>
    %234 = arith.mulf %230, %230 : vector<8x128xf32>
    %235 = arith.addf %233, %234 : vector<8x128xf32>
    %236 = math.sqrt %235 : vector<8x128xf32>
    %c9_177 = arith.constant 9 : index
    %c0_178 = arith.constant 0 : index
    %c0_179 = arith.constant 0 : index
    %237 = vector.load %arg2[%c9_177, %c0_178, %c0_179] : memref<67x8x128xf32, #tpu.memory_space<vmem>>, vector<1x8x128xf32>
    %238 = vector.shape_cast %237 : vector<1x8x128xf32> to vector<8x128xf32>
    %239 = vector.shape_cast %236 : vector<8x128xf32> to vector<1x8x128xf32>
    tpu.vector_store %arg2[%c9_177, %c0_178, %c0_179], %239 {strides = array<i32>} : memref<67x8x128xf32, #tpu.memory_space<vmem>>, vector<1x8x128xf32>,
    %c3_180 = arith.constant 3 : index
    %c0_181 = arith.constant 0 : index
    %c0_182 = arith.constant 0 : index
    %240 = vector.load %arg1[%c3_180, %c0_181, %c0_182] : memref<30x8x128xf32, #tpu.memory_space<vmem>>, vector<1x8x128xf32>
    %241 = vector.shape_cast %240 : vector<1x8x128xf32> to vector<8x128xf32>
    %c4_183 = arith.constant 4 : index
    %c0_184 = arith.constant 0 : index
    %c0_185 = arith.constant 0 : index
    %242 = vector.load %arg1[%c4_183, %c0_184, %c0_185] : memref<30x8x128xf32, #tpu.memory_space<vmem>>, vector<1x8x128xf32>
    %243 = vector.shape_cast %242 : vector<1x8x128xf32> to vector<8x128xf32>
    %c5_186 = arith.constant 5 : index
    %c0_187 = arith.constant 0 : index
    %c0_188 = arith.constant 0 : index
    %244 = vector.load %arg1[%c5_186, %c0_187, %c0_188] : memref<30x8x128xf32, #tpu.memory_space<vmem>>, vector<1x8x128xf32>
    %245 = vector.shape_cast %244 : vector<1x8x128xf32> to vector<8x128xf32>
    %c9_189 = arith.constant 9 : index
    %c0_190 = arith.constant 0 : index
    %c0_191 = arith.constant 0 : index
    %246 = vector.load %arg1[%c9_189, %c0_190, %c0_191] : memref<30x8x128xf32, #tpu.memory_space<vmem>>, vector<1x8x128xf32>
    %247 = vector.shape_cast %246 : vector<1x8x128xf32> to vector<8x128xf32>
    %c10_192 = arith.constant 10 : index
    %c0_193 = arith.constant 0 : index
    %c0_194 = arith.constant 0 : index
    %248 = vector.load %arg1[%c10_192, %c0_193, %c0_194] : memref<30x8x128xf32, #tpu.memory_space<vmem>>, vector<1x8x128xf32>
    %249 = vector.shape_cast %248 : vector<1x8x128xf32> to vector<8x128xf32>
    %c11_195 = arith.constant 11 : index
    %c0_196 = arith.constant 0 : index
    %c0_197 = arith.constant 0 : index
    %250 = vector.load %arg1[%c11_195, %c0_196, %c0_197] : memref<30x8x128xf32, #tpu.memory_space<vmem>>, vector<1x8x128xf32>
    %251 = vector.shape_cast %250 : vector<1x8x128xf32> to vector<8x128xf32>
    %252 = arith.subf %247, %241 : vector<8x128xf32>
    %253 = arith.subf %249, %243 : vector<8x128xf32>
    %254 = arith.subf %251, %245 : vector<8x128xf32>
    %255 = arith.mulf %252, %252 : vector<8x128xf32>
    %256 = arith.mulf %253, %253 : vector<8x128xf32>
    %257 = arith.addf %255, %256 : vector<8x128xf32>
    %258 = arith.mulf %254, %254 : vector<8x128xf32>
    %259 = arith.addf %257, %258 : vector<8x128xf32>
    %260 = math.sqrt %259 : vector<8x128xf32>
    %c10_198 = arith.constant 10 : index
    %c0_199 = arith.constant 0 : index
    %c0_200 = arith.constant 0 : index
    %261 = vector.load %arg2[%c10_198, %c0_199, %c0_200] : memref<67x8x128xf32, #tpu.memory_space<vmem>>, vector<1x8x128xf32>
    %262 = vector.shape_cast %261 : vector<1x8x128xf32> to vector<8x128xf32>
    %263 = vector.shape_cast %260 : vector<8x128xf32> to vector<1x8x128xf32>
    tpu.vector_store %arg2[%c10_198, %c0_199, %c0_200], %263 {strides = array<i32>} : memref<67x8x128xf32, #tpu.memory_space<vmem>>, vector<1x8x128xf32>,
    %c6_201 = arith.constant 6 : index
    %c0_202 = arith.constant 0 : index
    %c0_203 = arith.constant 0 : index
    %264 = vector.load %arg1[%c6_201, %c0_202, %c0_203] : memref<30x8x128xf32, #tpu.memory_space<vmem>>, vector<1x8x128xf32>
    %265 = vector.shape_cast %264 : vector<1x8x128xf32> to vector<8x128xf32>
    %c7_204 = arith.constant 7 : index
    %c0_205 = arith.constant 0 : index
    %c0_206 = arith.constant 0 : index
    %266 = vector.load %arg1[%c7_204, %c0_205, %c0_206] : memref<30x8x128xf32, #tpu.memory_space<vmem>>, vector<1x8x128xf32>
    %267 = vector.shape_cast %266 : vector<1x8x128xf32> to vector<8x128xf32>
    %c8_207 = arith.constant 8 : index
    %c0_208 = arith.constant 0 : index
    %c0_209 = arith.constant 0 : index
    %268 = vector.load %arg1[%c8_207, %c0_208, %c0_209] : memref<30x8x128xf32, #tpu.memory_space<vmem>>, vector<1x8x128xf32>
    %269 = vector.shape_cast %268 : vector<1x8x128xf32> to vector<8x128xf32>
    %c12_210 = arith.constant 12 : index
    %c0_211 = arith.constant 0 : index
    %c0_212 = arith.constant 0 : index
    %270 = vector.load %arg1[%c12_210, %c0_211, %c0_212] : memref<30x8x128xf32, #tpu.memory_space<vmem>>, vector<1x8x128xf32>
    %271 = vector.shape_cast %270 : vector<1x8x128xf32> to vector<8x128xf32>
    %c13_213 = arith.constant 13 : index
    %c0_214 = arith.constant 0 : index
    %c0_215 = arith.constant 0 : index
    %272 = vector.load %arg1[%c13_213, %c0_214, %c0_215] : memref<30x8x128xf32, #tpu.memory_space<vmem>>, vector<1x8x128xf32>
    %273 = vector.shape_cast %272 : vector<1x8x128xf32> to vector<8x128xf32>
    %c14_216 = arith.constant 14 : index
    %c0_217 = arith.constant 0 : index
    %c0_218 = arith.constant 0 : index
    %274 = vector.load %arg1[%c14_216, %c0_217, %c0_218] : memref<30x8x128xf32, #tpu.memory_space<vmem>>, vector<1x8x128xf32>
    %275 = vector.shape_cast %274 : vector<1x8x128xf32> to vector<8x128xf32>
    %276 = arith.subf %271, %265 : vector<8x128xf32>
    %277 = arith.subf %273, %267 : vector<8x128xf32>
    %278 = arith.subf %275, %269 : vector<8x128xf32>
    %279 = arith.mulf %276, %276 : vector<8x128xf32>
    %280 = arith.mulf %277, %277 : vector<8x128xf32>
    %281 = arith.addf %279, %280 : vector<8x128xf32>
    %282 = arith.mulf %278, %278 : vector<8x128xf32>
    %283 = arith.addf %281, %282 : vector<8x128xf32>
    %284 = math.sqrt %283 : vector<8x128xf32>
    %c11_219 = arith.constant 11 : index
    %c0_220 = arith.constant 0 : index
    %c0_221 = arith.constant 0 : index
    %285 = vector.load %arg2[%c11_219, %c0_220, %c0_221] : memref<67x8x128xf32, #tpu.memory_space<vmem>>, vector<1x8x128xf32>
    %286 = vector.shape_cast %285 : vector<1x8x128xf32> to vector<8x128xf32>
    %287 = vector.shape_cast %284 : vector<8x128xf32> to vector<1x8x128xf32>
    tpu.vector_store %arg2[%c11_219, %c0_220, %c0_221], %287 {strides = array<i32>} : memref<67x8x128xf32, #tpu.memory_space<vmem>>, vector<1x8x128xf32>,
    %c9_222 = arith.constant 9 : index
    %c0_223 = arith.constant 0 : index
    %c0_224 = arith.constant 0 : index
    %288 = vector.load %arg1[%c9_222, %c0_223, %c0_224] : memref<30x8x128xf32, #tpu.memory_space<vmem>>, vector<1x8x128xf32>
    %289 = vector.shape_cast %288 : vector<1x8x128xf32> to vector<8x128xf32>
    %c10_225 = arith.constant 10 : index
    %c0_226 = arith.constant 0 : index
    %c0_227 = arith.constant 0 : index
    %290 = vector.load %arg1[%c10_225, %c0_226, %c0_227] : memref<30x8x128xf32, #tpu.memory_space<vmem>>, vector<1x8x128xf32>
    %291 = vector.shape_cast %290 : vector<1x8x128xf32> to vector<8x128xf32>
    %c11_228 = arith.constant 11 : index
    %c0_229 = arith.constant 0 : index
    %c0_230 = arith.constant 0 : index
    %292 = vector.load %arg1[%c11_228, %c0_229, %c0_230] : memref<30x8x128xf32, #tpu.memory_space<vmem>>, vector<1x8x128xf32>
    %293 = vector.shape_cast %292 : vector<1x8x128xf32> to vector<8x128xf32>
    %c15_231 = arith.constant 15 : index
    %c0_232 = arith.constant 0 : index
    %c0_233 = arith.constant 0 : index
    %294 = vector.load %arg1[%c15_231, %c0_232, %c0_233] : memref<30x8x128xf32, #tpu.memory_space<vmem>>, vector<1x8x128xf32>
    %295 = vector.shape_cast %294 : vector<1x8x128xf32> to vector<8x128xf32>
    %c16_234 = arith.constant 16 : index
    %c0_235 = arith.constant 0 : index
    %c0_236 = arith.constant 0 : index
    %296 = vector.load %arg1[%c16_234, %c0_235, %c0_236] : memref<30x8x128xf32, #tpu.memory_space<vmem>>, vector<1x8x128xf32>
    %297 = vector.shape_cast %296 : vector<1x8x128xf32> to vector<8x128xf32>
    %c17_237 = arith.constant 17 : index
    %c0_238 = arith.constant 0 : index
    %c0_239 = arith.constant 0 : index
    %298 = vector.load %arg1[%c17_237, %c0_238, %c0_239] : memref<30x8x128xf32, #tpu.memory_space<vmem>>, vector<1x8x128xf32>
    %299 = vector.shape_cast %298 : vector<1x8x128xf32> to vector<8x128xf32>
    %300 = arith.subf %295, %289 : vector<8x128xf32>
    %301 = arith.subf %297, %291 : vector<8x128xf32>
    %302 = arith.subf %299, %293 : vector<8x128xf32>
    %303 = arith.mulf %300, %300 : vector<8x128xf32>
    %304 = arith.mulf %301, %301 : vector<8x128xf32>
    %305 = arith.addf %303, %304 : vector<8x128xf32>
    %306 = arith.mulf %302, %302 : vector<8x128xf32>
    %307 = arith.addf %305, %306 : vector<8x128xf32>
    %308 = math.sqrt %307 : vector<8x128xf32>
    %c12_240 = arith.constant 12 : index
    %c0_241 = arith.constant 0 : index
    %c0_242 = arith.constant 0 : index
    %309 = vector.load %arg2[%c12_240, %c0_241, %c0_242] : memref<67x8x128xf32, #tpu.memory_space<vmem>>, vector<1x8x128xf32>
    %310 = vector.shape_cast %309 : vector<1x8x128xf32> to vector<8x128xf32>
    %311 = vector.shape_cast %308 : vector<8x128xf32> to vector<1x8x128xf32>
    tpu.vector_store %arg2[%c12_240, %c0_241, %c0_242], %311 {strides = array<i32>} : memref<67x8x128xf32, #tpu.memory_space<vmem>>, vector<1x8x128xf32>,
    %c12_243 = arith.constant 12 : index
    %c0_244 = arith.constant 0 : index
    %c0_245 = arith.constant 0 : index
    %312 = vector.load %arg1[%c12_243, %c0_244, %c0_245] : memref<30x8x128xf32, #tpu.memory_space<vmem>>, vector<1x8x128xf32>
    %313 = vector.shape_cast %312 : vector<1x8x128xf32> to vector<8x128xf32>
    %c13_246 = arith.constant 13 : index
    %c0_247 = arith.constant 0 : index
    %c0_248 = arith.constant 0 : index
    %314 = vector.load %arg1[%c13_246, %c0_247, %c0_248] : memref<30x8x128xf32, #tpu.memory_space<vmem>>, vector<1x8x128xf32>
    %315 = vector.shape_cast %314 : vector<1x8x128xf32> to vector<8x128xf32>
    %c14_249 = arith.constant 14 : index
    %c0_250 = arith.constant 0 : index
    %c0_251 = arith.constant 0 : index
    %316 = vector.load %arg1[%c14_249, %c0_250, %c0_251] : memref<30x8x128xf32, #tpu.memory_space<vmem>>, vector<1x8x128xf32>
    %317 = vector.shape_cast %316 : vector<1x8x128xf32> to vector<8x128xf32>
    %c18_252 = arith.constant 18 : index
    %c0_253 = arith.constant 0 : index
    %c0_254 = arith.constant 0 : index
    %318 = vector.load %arg1[%c18_252, %c0_253, %c0_254] : memref<30x8x128xf32, #tpu.memory_space<vmem>>, vector<1x8x128xf32>
    %319 = vector.shape_cast %318 : vector<1x8x128xf32> to vector<8x128xf32>
    %c19_255 = arith.constant 19 : index
    %c0_256 = arith.constant 0 : index
    %c0_257 = arith.constant 0 : index
    %320 = vector.load %arg1[%c19_255, %c0_256, %c0_257] : memref<30x8x128xf32, #tpu.memory_space<vmem>>, vector<1x8x128xf32>
    %321 = vector.shape_cast %320 : vector<1x8x128xf32> to vector<8x128xf32>
    %c20_258 = arith.constant 20 : index
    %c0_259 = arith.constant 0 : index
    %c0_260 = arith.constant 0 : index
    %322 = vector.load %arg1[%c20_258, %c0_259, %c0_260] : memref<30x8x128xf32, #tpu.memory_space<vmem>>, vector<1x8x128xf32>
    %323 = vector.shape_cast %322 : vector<1x8x128xf32> to vector<8x128xf32>
    %324 = arith.subf %319, %313 : vector<8x128xf32>
    %325 = arith.subf %321, %315 : vector<8x128xf32>
    %326 = arith.subf %323, %317 : vector<8x128xf32>
    %327 = arith.mulf %324, %324 : vector<8x128xf32>
    %328 = arith.mulf %325, %325 : vector<8x128xf32>
    %329 = arith.addf %327, %328 : vector<8x128xf32>
    %330 = arith.mulf %326, %326 : vector<8x128xf32>
    %331 = arith.addf %329, %330 : vector<8x128xf32>
    %332 = math.sqrt %331 : vector<8x128xf32>
    %c13_261 = arith.constant 13 : index
    %c0_262 = arith.constant 0 : index
    %c0_263 = arith.constant 0 : index
    %333 = vector.load %arg2[%c13_261, %c0_262, %c0_263] : memref<67x8x128xf32, #tpu.memory_space<vmem>>, vector<1x8x128xf32>
    %334 = vector.shape_cast %333 : vector<1x8x128xf32> to vector<8x128xf32>
    %335 = vector.shape_cast %332 : vector<8x128xf32> to vector<1x8x128xf32>
    tpu.vector_store %arg2[%c13_261, %c0_262, %c0_263], %335 {strides = array<i32>} : memref<67x8x128xf32, #tpu.memory_space<vmem>>, vector<1x8x128xf32>,
    %c15_264 = arith.constant 15 : index
    %c0_265 = arith.constant 0 : index
    %c0_266 = arith.constant 0 : index
    %336 = vector.load %arg1[%c15_264, %c0_265, %c0_266] : memref<30x8x128xf32, #tpu.memory_space<vmem>>, vector<1x8x128xf32>
    %337 = vector.shape_cast %336 : vector<1x8x128xf32> to vector<8x128xf32>
    %c16_267 = arith.constant 16 : index
    %c0_268 = arith.constant 0 : index
    %c0_269 = arith.constant 0 : index
    %338 = vector.load %arg1[%c16_267, %c0_268, %c0_269] : memref<30x8x128xf32, #tpu.memory_space<vmem>>, vector<1x8x128xf32>
    %339 = vector.shape_cast %338 : vector<1x8x128xf32> to vector<8x128xf32>
    %c17_270 = arith.constant 17 : index
    %c0_271 = arith.constant 0 : index
    %c0_272 = arith.constant 0 : index
    %340 = vector.load %arg1[%c17_270, %c0_271, %c0_272] : memref<30x8x128xf32, #tpu.memory_space<vmem>>, vector<1x8x128xf32>
    %341 = vector.shape_cast %340 : vector<1x8x128xf32> to vector<8x128xf32>
    %c21_273 = arith.constant 21 : index
    %c0_274 = arith.constant 0 : index
    %c0_275 = arith.constant 0 : index
    %342 = vector.load %arg1[%c21_273, %c0_274, %c0_275] : memref<30x8x128xf32, #tpu.memory_space<vmem>>, vector<1x8x128xf32>
    %343 = vector.shape_cast %342 : vector<1x8x128xf32> to vector<8x128xf32>
    %c22_276 = arith.constant 22 : index
    %c0_277 = arith.constant 0 : index
    %c0_278 = arith.constant 0 : index
    %344 = vector.load %arg1[%c22_276, %c0_277, %c0_278] : memref<30x8x128xf32, #tpu.memory_space<vmem>>, vector<1x8x128xf32>
    %345 = vector.shape_cast %344 : vector<1x8x128xf32> to vector<8x128xf32>
    %c23_279 = arith.constant 23 : index
    %c0_280 = arith.constant 0 : index
    %c0_281 = arith.constant 0 : index
    %346 = vector.load %arg1[%c23_279, %c0_280, %c0_281] : memref<30x8x128xf32, #tpu.memory_space<vmem>>, vector<1x8x128xf32>
    %347 = vector.shape_cast %346 : vector<1x8x128xf32> to vector<8x128xf32>
    %348 = arith.subf %343, %337 : vector<8x128xf32>
    %349 = arith.subf %345, %339 : vector<8x128xf32>
    %350 = arith.subf %347, %341 : vector<8x128xf32>
    %351 = arith.mulf %348, %348 : vector<8x128xf32>
    %352 = arith.mulf %349, %349 : vector<8x128xf32>
    %353 = arith.addf %351, %352 : vector<8x128xf32>
    %354 = arith.mulf %350, %350 : vector<8x128xf32>
    %355 = arith.addf %353, %354 : vector<8x128xf32>
    %356 = math.sqrt %355 : vector<8x128xf32>
    %c14_282 = arith.constant 14 : index
    %c0_283 = arith.constant 0 : index
    %c0_284 = arith.constant 0 : index
    %357 = vector.load %arg2[%c14_282, %c0_283, %c0_284] : memref<67x8x128xf32, #tpu.memory_space<vmem>>, vector<1x8x128xf32>
    %358 = vector.shape_cast %357 : vector<1x8x128xf32> to vector<8x128xf32>
    %359 = vector.shape_cast %356 : vector<8x128xf32> to vector<1x8x128xf32>
    tpu.vector_store %arg2[%c14_282, %c0_283, %c0_284], %359 {strides = array<i32>} : memref<67x8x128xf32, #tpu.memory_space<vmem>>, vector<1x8x128xf32>,
    %c18_285 = arith.constant 18 : index
    %c0_286 = arith.constant 0 : index
    %c0_287 = arith.constant 0 : index
    %360 = vector.load %arg1[%c18_285, %c0_286, %c0_287] : memref<30x8x128xf32, #tpu.memory_space<vmem>>, vector<1x8x128xf32>
    %361 = vector.shape_cast %360 : vector<1x8x128xf32> to vector<8x128xf32>
    %c19_288 = arith.constant 19 : index
    %c0_289 = arith.constant 0 : index
    %c0_290 = arith.constant 0 : index
    %362 = vector.load %arg1[%c19_288, %c0_289, %c0_290] : memref<30x8x128xf32, #tpu.memory_space<vmem>>, vector<1x8x128xf32>
    %363 = vector.shape_cast %362 : vector<1x8x128xf32> to vector<8x128xf32>
    %c20_291 = arith.constant 20 : index
    %c0_292 = arith.constant 0 : index
    %c0_293 = arith.constant 0 : index
    %364 = vector.load %arg1[%c20_291, %c0_292, %c0_293] : memref<30x8x128xf32, #tpu.memory_space<vmem>>, vector<1x8x128xf32>
    %365 = vector.shape_cast %364 : vector<1x8x128xf32> to vector<8x128xf32>
    %c24_294 = arith.constant 24 : index
    %c0_295 = arith.constant 0 : index
    %c0_296 = arith.constant 0 : index
    %366 = vector.load %arg1[%c24_294, %c0_295, %c0_296] : memref<30x8x128xf32, #tpu.memory_space<vmem>>, vector<1x8x128xf32>
    %367 = vector.shape_cast %366 : vector<1x8x128xf32> to vector<8x128xf32>
    %c25_297 = arith.constant 25 : index
    %c0_298 = arith.constant 0 : index
    %c0_299 = arith.constant 0 : index
    %368 = vector.load %arg1[%c25_297, %c0_298, %c0_299] : memref<30x8x128xf32, #tpu.memory_space<vmem>>, vector<1x8x128xf32>
    %369 = vector.shape_cast %368 : vector<1x8x128xf32> to vector<8x128xf32>
    %c26_300 = arith.constant 26 : index
    %c0_301 = arith.constant 0 : index
    %c0_302 = arith.constant 0 : index
    %370 = vector.load %arg1[%c26_300, %c0_301, %c0_302] : memref<30x8x128xf32, #tpu.memory_space<vmem>>, vector<1x8x128xf32>
    %371 = vector.shape_cast %370 : vector<1x8x128xf32> to vector<8x128xf32>
    %372 = arith.subf %367, %361 : vector<8x128xf32>
    %373 = arith.subf %369, %363 : vector<8x128xf32>
    %374 = arith.subf %371, %365 : vector<8x128xf32>
    %375 = arith.mulf %372, %372 : vector<8x128xf32>
    %376 = arith.mulf %373, %373 : vector<8x128xf32>
    %377 = arith.addf %375, %376 : vector<8x128xf32>
    %378 = arith.mulf %374, %374 : vector<8x128xf32>
    %379 = arith.addf %377, %378 : vector<8x128xf32>
    %380 = math.sqrt %379 : vector<8x128xf32>
    %c15_303 = arith.constant 15 : index
    %c0_304 = arith.constant 0 : index
    %c0_305 = arith.constant 0 : index
    %381 = vector.load %arg2[%c15_303, %c0_304, %c0_305] : memref<67x8x128xf32, #tpu.memory_space<vmem>>, vector<1x8x128xf32>
    %382 = vector.shape_cast %381 : vector<1x8x128xf32> to vector<8x128xf32>
    %383 = vector.shape_cast %380 : vector<8x128xf32> to vector<1x8x128xf32>
    tpu.vector_store %arg2[%c15_303, %c0_304, %c0_305], %383 {strides = array<i32>} : memref<67x8x128xf32, #tpu.memory_space<vmem>>, vector<1x8x128xf32>,
    %c21_306 = arith.constant 21 : index
    %c0_307 = arith.constant 0 : index
    %c0_308 = arith.constant 0 : index
    %384 = vector.load %arg1[%c21_306, %c0_307, %c0_308] : memref<30x8x128xf32, #tpu.memory_space<vmem>>, vector<1x8x128xf32>
    %385 = vector.shape_cast %384 : vector<1x8x128xf32> to vector<8x128xf32>
    %c22_309 = arith.constant 22 : index
    %c0_310 = arith.constant 0 : index
    %c0_311 = arith.constant 0 : index
    %386 = vector.load %arg1[%c22_309, %c0_310, %c0_311] : memref<30x8x128xf32, #tpu.memory_space<vmem>>, vector<1x8x128xf32>
    %387 = vector.shape_cast %386 : vector<1x8x128xf32> to vector<8x128xf32>
    %c23_312 = arith.constant 23 : index
    %c0_313 = arith.constant 0 : index
    %c0_314 = arith.constant 0 : index
    %388 = vector.load %arg1[%c23_312, %c0_313, %c0_314] : memref<30x8x128xf32, #tpu.memory_space<vmem>>, vector<1x8x128xf32>
    %389 = vector.shape_cast %388 : vector<1x8x128xf32> to vector<8x128xf32>
    %c27_315 = arith.constant 27 : index
    %c0_316 = arith.constant 0 : index
    %c0_317 = arith.constant 0 : index
    %390 = vector.load %arg1[%c27_315, %c0_316, %c0_317] : memref<30x8x128xf32, #tpu.memory_space<vmem>>, vector<1x8x128xf32>
    %391 = vector.shape_cast %390 : vector<1x8x128xf32> to vector<8x128xf32>
    %c28_318 = arith.constant 28 : index
    %c0_319 = arith.constant 0 : index
    %c0_320 = arith.constant 0 : index
    %392 = vector.load %arg1[%c28_318, %c0_319, %c0_320] : memref<30x8x128xf32, #tpu.memory_space<vmem>>, vector<1x8x128xf32>
    %393 = vector.shape_cast %392 : vector<1x8x128xf32> to vector<8x128xf32>
    %c29_321 = arith.constant 29 : index
    %c0_322 = arith.constant 0 : index
    %c0_323 = arith.constant 0 : index
    %394 = vector.load %arg1[%c29_321, %c0_322, %c0_323] : memref<30x8x128xf32, #tpu.memory_space<vmem>>, vector<1x8x128xf32>
    %395 = vector.shape_cast %394 : vector<1x8x128xf32> to vector<8x128xf32>
    %396 = arith.subf %391, %385 : vector<8x128xf32>
    %397 = arith.subf %393, %387 : vector<8x128xf32>
    %398 = arith.subf %395, %389 : vector<8x128xf32>
    %399 = arith.mulf %396, %396 : vector<8x128xf32>
    %400 = arith.mulf %397, %397 : vector<8x128xf32>
    %401 = arith.addf %399, %400 : vector<8x128xf32>
    %402 = arith.mulf %398, %398 : vector<8x128xf32>
    %403 = arith.addf %401, %402 : vector<8x128xf32>
    %404 = math.sqrt %403 : vector<8x128xf32>
    %c16_324 = arith.constant 16 : index
    %c0_325 = arith.constant 0 : index
    %c0_326 = arith.constant 0 : index
    %405 = vector.load %arg2[%c16_324, %c0_325, %c0_326] : memref<67x8x128xf32, #tpu.memory_space<vmem>>, vector<1x8x128xf32>
    %406 = vector.shape_cast %405 : vector<1x8x128xf32> to vector<8x128xf32>
    %407 = vector.shape_cast %404 : vector<8x128xf32> to vector<1x8x128xf32>
    tpu.vector_store %arg2[%c16_324, %c0_325, %c0_326], %407 {strides = array<i32>} : memref<67x8x128xf32, #tpu.memory_space<vmem>>, vector<1x8x128xf32>,
    %c0_327 = arith.constant 0 : index
    %c0_328 = arith.constant 0 : index
    %c0_329 = arith.constant 0 : index
    %408 = vector.load %arg1[%c0_327, %c0_328, %c0_329] : memref<30x8x128xf32, #tpu.memory_space<vmem>>, vector<1x8x128xf32>
    %409 = vector.shape_cast %408 : vector<1x8x128xf32> to vector<8x128xf32>
    %c1_330 = arith.constant 1 : index
    %c0_331 = arith.constant 0 : index
    %c0_332 = arith.constant 0 : index
    %410 = vector.load %arg1[%c1_330, %c0_331, %c0_332] : memref<30x8x128xf32, #tpu.memory_space<vmem>>, vector<1x8x128xf32>
    %411 = vector.shape_cast %410 : vector<1x8x128xf32> to vector<8x128xf32>
    %c2_333 = arith.constant 2 : index
    %c0_334 = arith.constant 0 : index
    %c0_335 = arith.constant 0 : index
    %412 = vector.load %arg1[%c2_333, %c0_334, %c0_335] : memref<30x8x128xf32, #tpu.memory_space<vmem>>, vector<1x8x128xf32>
    %413 = vector.shape_cast %412 : vector<1x8x128xf32> to vector<8x128xf32>
    %c9_336 = arith.constant 9 : index
    %c0_337 = arith.constant 0 : index
    %c0_338 = arith.constant 0 : index
    %414 = vector.load %arg1[%c9_336, %c0_337, %c0_338] : memref<30x8x128xf32, #tpu.memory_space<vmem>>, vector<1x8x128xf32>
    %415 = vector.shape_cast %414 : vector<1x8x128xf32> to vector<8x128xf32>
    %c10_339 = arith.constant 10 : index
    %c0_340 = arith.constant 0 : index
    %c0_341 = arith.constant 0 : index
    %416 = vector.load %arg1[%c10_339, %c0_340, %c0_341] : memref<30x8x128xf32, #tpu.memory_space<vmem>>, vector<1x8x128xf32>
    %417 = vector.shape_cast %416 : vector<1x8x128xf32> to vector<8x128xf32>
    %c11_342 = arith.constant 11 : index
    %c0_343 = arith.constant 0 : index
    %c0_344 = arith.constant 0 : index
    %418 = vector.load %arg1[%c11_342, %c0_343, %c0_344] : memref<30x8x128xf32, #tpu.memory_space<vmem>>, vector<1x8x128xf32>
    %419 = vector.shape_cast %418 : vector<1x8x128xf32> to vector<8x128xf32>
    %420 = arith.subf %415, %409 : vector<8x128xf32>
    %421 = arith.subf %417, %411 : vector<8x128xf32>
    %422 = arith.subf %419, %413 : vector<8x128xf32>
    %423 = arith.mulf %420, %420 : vector<8x128xf32>
    %424 = arith.mulf %421, %421 : vector<8x128xf32>
    %425 = arith.addf %423, %424 : vector<8x128xf32>
    %426 = arith.mulf %422, %422 : vector<8x128xf32>
    %427 = arith.addf %425, %426 : vector<8x128xf32>
    %428 = math.sqrt %427 : vector<8x128xf32>
    %c17_345 = arith.constant 17 : index
    %c0_346 = arith.constant 0 : index
    %c0_347 = arith.constant 0 : index
    %429 = vector.load %arg2[%c17_345, %c0_346, %c0_347] : memref<67x8x128xf32, #tpu.memory_space<vmem>>, vector<1x8x128xf32>
    %430 = vector.shape_cast %429 : vector<1x8x128xf32> to vector<8x128xf32>
    %431 = vector.shape_cast %428 : vector<8x128xf32> to vector<1x8x128xf32>
    tpu.vector_store %arg2[%c17_345, %c0_346, %c0_347], %431 {strides = array<i32>} : memref<67x8x128xf32, #tpu.memory_space<vmem>>, vector<1x8x128xf32>,
    %c3_348 = arith.constant 3 : index
    %c0_349 = arith.constant 0 : index
    %c0_350 = arith.constant 0 : index
    %432 = vector.load %arg1[%c3_348, %c0_349, %c0_350] : memref<30x8x128xf32, #tpu.memory_space<vmem>>, vector<1x8x128xf32>
    %433 = vector.shape_cast %432 : vector<1x8x128xf32> to vector<8x128xf32>
    %c4_351 = arith.constant 4 : index
    %c0_352 = arith.constant 0 : index
    %c0_353 = arith.constant 0 : index
    %434 = vector.load %arg1[%c4_351, %c0_352, %c0_353] : memref<30x8x128xf32, #tpu.memory_space<vmem>>, vector<1x8x128xf32>
    %435 = vector.shape_cast %434 : vector<1x8x128xf32> to vector<8x128xf32>
    %c5_354 = arith.constant 5 : index
    %c0_355 = arith.constant 0 : index
    %c0_356 = arith.constant 0 : index
    %436 = vector.load %arg1[%c5_354, %c0_355, %c0_356] : memref<30x8x128xf32, #tpu.memory_space<vmem>>, vector<1x8x128xf32>
    %437 = vector.shape_cast %436 : vector<1x8x128xf32> to vector<8x128xf32>
    %c12_357 = arith.constant 12 : index
    %c0_358 = arith.constant 0 : index
    %c0_359 = arith.constant 0 : index
    %438 = vector.load %arg1[%c12_357, %c0_358, %c0_359] : memref<30x8x128xf32, #tpu.memory_space<vmem>>, vector<1x8x128xf32>
    %439 = vector.shape_cast %438 : vector<1x8x128xf32> to vector<8x128xf32>
    %c13_360 = arith.constant 13 : index
    %c0_361 = arith.constant 0 : index
    %c0_362 = arith.constant 0 : index
    %440 = vector.load %arg1[%c13_360, %c0_361, %c0_362] : memref<30x8x128xf32, #tpu.memory_space<vmem>>, vector<1x8x128xf32>
    %441 = vector.shape_cast %440 : vector<1x8x128xf32> to vector<8x128xf32>
    %c14_363 = arith.constant 14 : index
    %c0_364 = arith.constant 0 : index
    %c0_365 = arith.constant 0 : index
    %442 = vector.load %arg1[%c14_363, %c0_364, %c0_365] : memref<30x8x128xf32, #tpu.memory_space<vmem>>, vector<1x8x128xf32>
    %443 = vector.shape_cast %442 : vector<1x8x128xf32> to vector<8x128xf32>
    %444 = arith.subf %439, %433 : vector<8x128xf32>
    %445 = arith.subf %441, %435 : vector<8x128xf32>
    %446 = arith.subf %443, %437 : vector<8x128xf32>
    %447 = arith.mulf %444, %444 : vector<8x128xf32>
    %448 = arith.mulf %445, %445 : vector<8x128xf32>
    %449 = arith.addf %447, %448 : vector<8x128xf32>
    %450 = arith.mulf %446, %446 : vector<8x128xf32>
    %451 = arith.addf %449, %450 : vector<8x128xf32>
    %452 = math.sqrt %451 : vector<8x128xf32>
    %c18_366 = arith.constant 18 : index
    %c0_367 = arith.constant 0 : index
    %c0_368 = arith.constant 0 : index
    %453 = vector.load %arg2[%c18_366, %c0_367, %c0_368] : memref<67x8x128xf32, #tpu.memory_space<vmem>>, vector<1x8x128xf32>
    %454 = vector.shape_cast %453 : vector<1x8x128xf32> to vector<8x128xf32>
    %455 = vector.shape_cast %452 : vector<8x128xf32> to vector<1x8x128xf32>
    tpu.vector_store %arg2[%c18_366, %c0_367, %c0_368], %455 {strides = array<i32>} : memref<67x8x128xf32, #tpu.memory_space<vmem>>, vector<1x8x128xf32>,
    %c6_369 = arith.constant 6 : index
    %c0_370 = arith.constant 0 : index
    %c0_371 = arith.constant 0 : index
    %456 = vector.load %arg1[%c6_369, %c0_370, %c0_371] : memref<30x8x128xf32, #tpu.memory_space<vmem>>, vector<1x8x128xf32>
    %457 = vector.shape_cast %456 : vector<1x8x128xf32> to vector<8x128xf32>
    %c7_372 = arith.constant 7 : index
    %c0_373 = arith.constant 0 : index
    %c0_374 = arith.constant 0 : index
    %458 = vector.load %arg1[%c7_372, %c0_373, %c0_374] : memref<30x8x128xf32, #tpu.memory_space<vmem>>, vector<1x8x128xf32>
    %459 = vector.shape_cast %458 : vector<1x8x128xf32> to vector<8x128xf32>
    %c8_375 = arith.constant 8 : index
    %c0_376 = arith.constant 0 : index
    %c0_377 = arith.constant 0 : index
    %460 = vector.load %arg1[%c8_375, %c0_376, %c0_377] : memref<30x8x128xf32, #tpu.memory_space<vmem>>, vector<1x8x128xf32>
    %461 = vector.shape_cast %460 : vector<1x8x128xf32> to vector<8x128xf32>
    %c15_378 = arith.constant 15 : index
    %c0_379 = arith.constant 0 : index
    %c0_380 = arith.constant 0 : index
    %462 = vector.load %arg1[%c15_378, %c0_379, %c0_380] : memref<30x8x128xf32, #tpu.memory_space<vmem>>, vector<1x8x128xf32>
    %463 = vector.shape_cast %462 : vector<1x8x128xf32> to vector<8x128xf32>
    %c16_381 = arith.constant 16 : index
    %c0_382 = arith.constant 0 : index
    %c0_383 = arith.constant 0 : index
    %464 = vector.load %arg1[%c16_381, %c0_382, %c0_383] : memref<30x8x128xf32, #tpu.memory_space<vmem>>, vector<1x8x128xf32>
    %465 = vector.shape_cast %464 : vector<1x8x128xf32> to vector<8x128xf32>
    %c17_384 = arith.constant 17 : index
    %c0_385 = arith.constant 0 : index
    %c0_386 = arith.constant 0 : index
    %466 = vector.load %arg1[%c17_384, %c0_385, %c0_386] : memref<30x8x128xf32, #tpu.memory_space<vmem>>, vector<1x8x128xf32>
    %467 = vector.shape_cast %466 : vector<1x8x128xf32> to vector<8x128xf32>
    %468 = arith.subf %463, %457 : vector<8x128xf32>
    %469 = arith.subf %465, %459 : vector<8x128xf32>
    %470 = arith.subf %467, %461 : vector<8x128xf32>
    %471 = arith.mulf %468, %468 : vector<8x128xf32>
    %472 = arith.mulf %469, %469 : vector<8x128xf32>
    %473 = arith.addf %471, %472 : vector<8x128xf32>
    %474 = arith.mulf %470, %470 : vector<8x128xf32>
    %475 = arith.addf %473, %474 : vector<8x128xf32>
    %476 = math.sqrt %475 : vector<8x128xf32>
    %c19_387 = arith.constant 19 : index
    %c0_388 = arith.constant 0 : index
    %c0_389 = arith.constant 0 : index
    %477 = vector.load %arg2[%c19_387, %c0_388, %c0_389] : memref<67x8x128xf32, #tpu.memory_space<vmem>>, vector<1x8x128xf32>
    %478 = vector.shape_cast %477 : vector<1x8x128xf32> to vector<8x128xf32>
    %479 = vector.shape_cast %476 : vector<8x128xf32> to vector<1x8x128xf32>
    tpu.vector_store %arg2[%c19_387, %c0_388, %c0_389], %479 {strides = array<i32>} : memref<67x8x128xf32, #tpu.memory_space<vmem>>, vector<1x8x128xf32>,
    %c9_390 = arith.constant 9 : index
    %c0_391 = arith.constant 0 : index
    %c0_392 = arith.constant 0 : index
    %480 = vector.load %arg1[%c9_390, %c0_391, %c0_392] : memref<30x8x128xf32, #tpu.memory_space<vmem>>, vector<1x8x128xf32>
    %481 = vector.shape_cast %480 : vector<1x8x128xf32> to vector<8x128xf32>
    %c10_393 = arith.constant 10 : index
    %c0_394 = arith.constant 0 : index
    %c0_395 = arith.constant 0 : index
    %482 = vector.load %arg1[%c10_393, %c0_394, %c0_395] : memref<30x8x128xf32, #tpu.memory_space<vmem>>, vector<1x8x128xf32>
    %483 = vector.shape_cast %482 : vector<1x8x128xf32> to vector<8x128xf32>
    %c11_396 = arith.constant 11 : index
    %c0_397 = arith.constant 0 : index
    %c0_398 = arith.constant 0 : index
    %484 = vector.load %arg1[%c11_396, %c0_397, %c0_398] : memref<30x8x128xf32, #tpu.memory_space<vmem>>, vector<1x8x128xf32>
    %485 = vector.shape_cast %484 : vector<1x8x128xf32> to vector<8x128xf32>
    %c18_399 = arith.constant 18 : index
    %c0_400 = arith.constant 0 : index
    %c0_401 = arith.constant 0 : index
    %486 = vector.load %arg1[%c18_399, %c0_400, %c0_401] : memref<30x8x128xf32, #tpu.memory_space<vmem>>, vector<1x8x128xf32>
    %487 = vector.shape_cast %486 : vector<1x8x128xf32> to vector<8x128xf32>
    %c19_402 = arith.constant 19 : index
    %c0_403 = arith.constant 0 : index
    %c0_404 = arith.constant 0 : index
    %488 = vector.load %arg1[%c19_402, %c0_403, %c0_404] : memref<30x8x128xf32, #tpu.memory_space<vmem>>, vector<1x8x128xf32>
    %489 = vector.shape_cast %488 : vector<1x8x128xf32> to vector<8x128xf32>
    %c20_405 = arith.constant 20 : index
    %c0_406 = arith.constant 0 : index
    %c0_407 = arith.constant 0 : index
    %490 = vector.load %arg1[%c20_405, %c0_406, %c0_407] : memref<30x8x128xf32, #tpu.memory_space<vmem>>, vector<1x8x128xf32>
    %491 = vector.shape_cast %490 : vector<1x8x128xf32> to vector<8x128xf32>
    %492 = arith.subf %487, %481 : vector<8x128xf32>
    %493 = arith.subf %489, %483 : vector<8x128xf32>
    %494 = arith.subf %491, %485 : vector<8x128xf32>
    %495 = arith.mulf %492, %492 : vector<8x128xf32>
    %496 = arith.mulf %493, %493 : vector<8x128xf32>
    %497 = arith.addf %495, %496 : vector<8x128xf32>
    %498 = arith.mulf %494, %494 : vector<8x128xf32>
    %499 = arith.addf %497, %498 : vector<8x128xf32>
    %500 = math.sqrt %499 : vector<8x128xf32>
    %c20_408 = arith.constant 20 : index
    %c0_409 = arith.constant 0 : index
    %c0_410 = arith.constant 0 : index
    %501 = vector.load %arg2[%c20_408, %c0_409, %c0_410] : memref<67x8x128xf32, #tpu.memory_space<vmem>>, vector<1x8x128xf32>
    %502 = vector.shape_cast %501 : vector<1x8x128xf32> to vector<8x128xf32>
    %503 = vector.shape_cast %500 : vector<8x128xf32> to vector<1x8x128xf32>
    tpu.vector_store %arg2[%c20_408, %c0_409, %c0_410], %503 {strides = array<i32>} : memref<67x8x128xf32, #tpu.memory_space<vmem>>, vector<1x8x128xf32>,
    %c12_411 = arith.constant 12 : index
    %c0_412 = arith.constant 0 : index
    %c0_413 = arith.constant 0 : index
    %504 = vector.load %arg1[%c12_411, %c0_412, %c0_413] : memref<30x8x128xf32, #tpu.memory_space<vmem>>, vector<1x8x128xf32>
    %505 = vector.shape_cast %504 : vector<1x8x128xf32> to vector<8x128xf32>
    %c13_414 = arith.constant 13 : index
    %c0_415 = arith.constant 0 : index
    %c0_416 = arith.constant 0 : index
    %506 = vector.load %arg1[%c13_414, %c0_415, %c0_416] : memref<30x8x128xf32, #tpu.memory_space<vmem>>, vector<1x8x128xf32>
    %507 = vector.shape_cast %506 : vector<1x8x128xf32> to vector<8x128xf32>
    %c14_417 = arith.constant 14 : index
    %c0_418 = arith.constant 0 : index
    %c0_419 = arith.constant 0 : index
    %508 = vector.load %arg1[%c14_417, %c0_418, %c0_419] : memref<30x8x128xf32, #tpu.memory_space<vmem>>, vector<1x8x128xf32>
    %509 = vector.shape_cast %508 : vector<1x8x128xf32> to vector<8x128xf32>
    %c21_420 = arith.constant 21 : index
    %c0_421 = arith.constant 0 : index
    %c0_422 = arith.constant 0 : index
    %510 = vector.load %arg1[%c21_420, %c0_421, %c0_422] : memref<30x8x128xf32, #tpu.memory_space<vmem>>, vector<1x8x128xf32>
    %511 = vector.shape_cast %510 : vector<1x8x128xf32> to vector<8x128xf32>
    %c22_423 = arith.constant 22 : index
    %c0_424 = arith.constant 0 : index
    %c0_425 = arith.constant 0 : index
    %512 = vector.load %arg1[%c22_423, %c0_424, %c0_425] : memref<30x8x128xf32, #tpu.memory_space<vmem>>, vector<1x8x128xf32>
    %513 = vector.shape_cast %512 : vector<1x8x128xf32> to vector<8x128xf32>
    %c23_426 = arith.constant 23 : index
    %c0_427 = arith.constant 0 : index
    %c0_428 = arith.constant 0 : index
    %514 = vector.load %arg1[%c23_426, %c0_427, %c0_428] : memref<30x8x128xf32, #tpu.memory_space<vmem>>, vector<1x8x128xf32>
    %515 = vector.shape_cast %514 : vector<1x8x128xf32> to vector<8x128xf32>
    %516 = arith.subf %511, %505 : vector<8x128xf32>
    %517 = arith.subf %513, %507 : vector<8x128xf32>
    %518 = arith.subf %515, %509 : vector<8x128xf32>
    %519 = arith.mulf %516, %516 : vector<8x128xf32>
    %520 = arith.mulf %517, %517 : vector<8x128xf32>
    %521 = arith.addf %519, %520 : vector<8x128xf32>
    %522 = arith.mulf %518, %518 : vector<8x128xf32>
    %523 = arith.addf %521, %522 : vector<8x128xf32>
    %524 = math.sqrt %523 : vector<8x128xf32>
    %c21_429 = arith.constant 21 : index
    %c0_430 = arith.constant 0 : index
    %c0_431 = arith.constant 0 : index
    %525 = vector.load %arg2[%c21_429, %c0_430, %c0_431] : memref<67x8x128xf32, #tpu.memory_space<vmem>>, vector<1x8x128xf32>
    %526 = vector.shape_cast %525 : vector<1x8x128xf32> to vector<8x128xf32>
    %527 = vector.shape_cast %524 : vector<8x128xf32> to vector<1x8x128xf32>
    tpu.vector_store %arg2[%c21_429, %c0_430, %c0_431], %527 {strides = array<i32>} : memref<67x8x128xf32, #tpu.memory_space<vmem>>, vector<1x8x128xf32>,
    %c15_432 = arith.constant 15 : index
    %c0_433 = arith.constant 0 : index
    %c0_434 = arith.constant 0 : index
    %528 = vector.load %arg1[%c15_432, %c0_433, %c0_434] : memref<30x8x128xf32, #tpu.memory_space<vmem>>, vector<1x8x128xf32>
    %529 = vector.shape_cast %528 : vector<1x8x128xf32> to vector<8x128xf32>
    %c16_435 = arith.constant 16 : index
    %c0_436 = arith.constant 0 : index
    %c0_437 = arith.constant 0 : index
    %530 = vector.load %arg1[%c16_435, %c0_436, %c0_437] : memref<30x8x128xf32, #tpu.memory_space<vmem>>, vector<1x8x128xf32>
    %531 = vector.shape_cast %530 : vector<1x8x128xf32> to vector<8x128xf32>
    %c17_438 = arith.constant 17 : index
    %c0_439 = arith.constant 0 : index
    %c0_440 = arith.constant 0 : index
    %532 = vector.load %arg1[%c17_438, %c0_439, %c0_440] : memref<30x8x128xf32, #tpu.memory_space<vmem>>, vector<1x8x128xf32>
    %533 = vector.shape_cast %532 : vector<1x8x128xf32> to vector<8x128xf32>
    %c24_441 = arith.constant 24 : index
    %c0_442 = arith.constant 0 : index
    %c0_443 = arith.constant 0 : index
    %534 = vector.load %arg1[%c24_441, %c0_442, %c0_443] : memref<30x8x128xf32, #tpu.memory_space<vmem>>, vector<1x8x128xf32>
    %535 = vector.shape_cast %534 : vector<1x8x128xf32> to vector<8x128xf32>
    %c25_444 = arith.constant 25 : index
    %c0_445 = arith.constant 0 : index
    %c0_446 = arith.constant 0 : index
    %536 = vector.load %arg1[%c25_444, %c0_445, %c0_446] : memref<30x8x128xf32, #tpu.memory_space<vmem>>, vector<1x8x128xf32>
    %537 = vector.shape_cast %536 : vector<1x8x128xf32> to vector<8x128xf32>
    %c26_447 = arith.constant 26 : index
    %c0_448 = arith.constant 0 : index
    %c0_449 = arith.constant 0 : index
    %538 = vector.load %arg1[%c26_447, %c0_448, %c0_449] : memref<30x8x128xf32, #tpu.memory_space<vmem>>, vector<1x8x128xf32>
    %539 = vector.shape_cast %538 : vector<1x8x128xf32> to vector<8x128xf32>
    %540 = arith.subf %535, %529 : vector<8x128xf32>
    %541 = arith.subf %537, %531 : vector<8x128xf32>
    %542 = arith.subf %539, %533 : vector<8x128xf32>
    %543 = arith.mulf %540, %540 : vector<8x128xf32>
    %544 = arith.mulf %541, %541 : vector<8x128xf32>
    %545 = arith.addf %543, %544 : vector<8x128xf32>
    %546 = arith.mulf %542, %542 : vector<8x128xf32>
    %547 = arith.addf %545, %546 : vector<8x128xf32>
    %548 = math.sqrt %547 : vector<8x128xf32>
    %c22_450 = arith.constant 22 : index
    %c0_451 = arith.constant 0 : index
    %c0_452 = arith.constant 0 : index
    %549 = vector.load %arg2[%c22_450, %c0_451, %c0_452] : memref<67x8x128xf32, #tpu.memory_space<vmem>>, vector<1x8x128xf32>
    %550 = vector.shape_cast %549 : vector<1x8x128xf32> to vector<8x128xf32>
    %551 = vector.shape_cast %548 : vector<8x128xf32> to vector<1x8x128xf32>
    tpu.vector_store %arg2[%c22_450, %c0_451, %c0_452], %551 {strides = array<i32>} : memref<67x8x128xf32, #tpu.memory_space<vmem>>, vector<1x8x128xf32>,
    %c18_453 = arith.constant 18 : index
    %c0_454 = arith.constant 0 : index
    %c0_455 = arith.constant 0 : index
    %552 = vector.load %arg1[%c18_453, %c0_454, %c0_455] : memref<30x8x128xf32, #tpu.memory_space<vmem>>, vector<1x8x128xf32>
    %553 = vector.shape_cast %552 : vector<1x8x128xf32> to vector<8x128xf32>
    %c19_456 = arith.constant 19 : index
    %c0_457 = arith.constant 0 : index
    %c0_458 = arith.constant 0 : index
    %554 = vector.load %arg1[%c19_456, %c0_457, %c0_458] : memref<30x8x128xf32, #tpu.memory_space<vmem>>, vector<1x8x128xf32>
    %555 = vector.shape_cast %554 : vector<1x8x128xf32> to vector<8x128xf32>
    %c20_459 = arith.constant 20 : index
    %c0_460 = arith.constant 0 : index
    %c0_461 = arith.constant 0 : index
    %556 = vector.load %arg1[%c20_459, %c0_460, %c0_461] : memref<30x8x128xf32, #tpu.memory_space<vmem>>, vector<1x8x128xf32>
    %557 = vector.shape_cast %556 : vector<1x8x128xf32> to vector<8x128xf32>
    %c27_462 = arith.constant 27 : index
    %c0_463 = arith.constant 0 : index
    %c0_464 = arith.constant 0 : index
    %558 = vector.load %arg1[%c27_462, %c0_463, %c0_464] : memref<30x8x128xf32, #tpu.memory_space<vmem>>, vector<1x8x128xf32>
    %559 = vector.shape_cast %558 : vector<1x8x128xf32> to vector<8x128xf32>
    %c28_465 = arith.constant 28 : index
    %c0_466 = arith.constant 0 : index
    %c0_467 = arith.constant 0 : index
    %560 = vector.load %arg1[%c28_465, %c0_466, %c0_467] : memref<30x8x128xf32, #tpu.memory_space<vmem>>, vector<1x8x128xf32>
    %561 = vector.shape_cast %560 : vector<1x8x128xf32> to vector<8x128xf32>
    %c29_468 = arith.constant 29 : index
    %c0_469 = arith.constant 0 : index
    %c0_470 = arith.constant 0 : index
    %562 = vector.load %arg1[%c29_468, %c0_469, %c0_470] : memref<30x8x128xf32, #tpu.memory_space<vmem>>, vector<1x8x128xf32>
    %563 = vector.shape_cast %562 : vector<1x8x128xf32> to vector<8x128xf32>
    %564 = arith.subf %559, %553 : vector<8x128xf32>
    %565 = arith.subf %561, %555 : vector<8x128xf32>
    %566 = arith.subf %563, %557 : vector<8x128xf32>
    %567 = arith.mulf %564, %564 : vector<8x128xf32>
    %568 = arith.mulf %565, %565 : vector<8x128xf32>
    %569 = arith.addf %567, %568 : vector<8x128xf32>
    %570 = arith.mulf %566, %566 : vector<8x128xf32>
    %571 = arith.addf %569, %570 : vector<8x128xf32>
    %572 = math.sqrt %571 : vector<8x128xf32>
    %c23_471 = arith.constant 23 : index
    %c0_472 = arith.constant 0 : index
    %c0_473 = arith.constant 0 : index
    %573 = vector.load %arg2[%c23_471, %c0_472, %c0_473] : memref<67x8x128xf32, #tpu.memory_space<vmem>>, vector<1x8x128xf32>
    %574 = vector.shape_cast %573 : vector<1x8x128xf32> to vector<8x128xf32>
    %575 = vector.shape_cast %572 : vector<8x128xf32> to vector<1x8x128xf32>
    tpu.vector_store %arg2[%c23_471, %c0_472, %c0_473], %575 {strides = array<i32>} : memref<67x8x128xf32, #tpu.memory_space<vmem>>, vector<1x8x128xf32>,
    %c0_474 = arith.constant 0 : index
    %c0_475 = arith.constant 0 : index
    %c0_476 = arith.constant 0 : index
    %576 = vector.load %arg1[%c0_474, %c0_475, %c0_476] : memref<30x8x128xf32, #tpu.memory_space<vmem>>, vector<1x8x128xf32>
    %577 = vector.shape_cast %576 : vector<1x8x128xf32> to vector<8x128xf32>
    %c1_477 = arith.constant 1 : index
    %c0_478 = arith.constant 0 : index
    %c0_479 = arith.constant 0 : index
    %578 = vector.load %arg1[%c1_477, %c0_478, %c0_479] : memref<30x8x128xf32, #tpu.memory_space<vmem>>, vector<1x8x128xf32>
    %579 = vector.shape_cast %578 : vector<1x8x128xf32> to vector<8x128xf32>
    %c2_480 = arith.constant 2 : index
    %c0_481 = arith.constant 0 : index
    %c0_482 = arith.constant 0 : index
    %580 = vector.load %arg1[%c2_480, %c0_481, %c0_482] : memref<30x8x128xf32, #tpu.memory_space<vmem>>, vector<1x8x128xf32>
    %581 = vector.shape_cast %580 : vector<1x8x128xf32> to vector<8x128xf32>
    %c12_483 = arith.constant 12 : index
    %c0_484 = arith.constant 0 : index
    %c0_485 = arith.constant 0 : index
    %582 = vector.load %arg1[%c12_483, %c0_484, %c0_485] : memref<30x8x128xf32, #tpu.memory_space<vmem>>, vector<1x8x128xf32>
    %583 = vector.shape_cast %582 : vector<1x8x128xf32> to vector<8x128xf32>
    %c13_486 = arith.constant 13 : index
    %c0_487 = arith.constant 0 : index
    %c0_488 = arith.constant 0 : index
    %584 = vector.load %arg1[%c13_486, %c0_487, %c0_488] : memref<30x8x128xf32, #tpu.memory_space<vmem>>, vector<1x8x128xf32>
    %585 = vector.shape_cast %584 : vector<1x8x128xf32> to vector<8x128xf32>
    %c14_489 = arith.constant 14 : index
    %c0_490 = arith.constant 0 : index
    %c0_491 = arith.constant 0 : index
    %586 = vector.load %arg1[%c14_489, %c0_490, %c0_491] : memref<30x8x128xf32, #tpu.memory_space<vmem>>, vector<1x8x128xf32>
    %587 = vector.shape_cast %586 : vector<1x8x128xf32> to vector<8x128xf32>
    %588 = arith.subf %583, %577 : vector<8x128xf32>
    %589 = arith.subf %585, %579 : vector<8x128xf32>
    %590 = arith.subf %587, %581 : vector<8x128xf32>
    %591 = arith.mulf %588, %588 : vector<8x128xf32>
    %592 = arith.mulf %589, %589 : vector<8x128xf32>
    %593 = arith.addf %591, %592 : vector<8x128xf32>
    %594 = arith.mulf %590, %590 : vector<8x128xf32>
    %595 = arith.addf %593, %594 : vector<8x128xf32>
    %596 = math.sqrt %595 : vector<8x128xf32>
    %c24_492 = arith.constant 24 : index
    %c0_493 = arith.constant 0 : index
    %c0_494 = arith.constant 0 : index
    %597 = vector.load %arg2[%c24_492, %c0_493, %c0_494] : memref<67x8x128xf32, #tpu.memory_space<vmem>>, vector<1x8x128xf32>
    %598 = vector.shape_cast %597 : vector<1x8x128xf32> to vector<8x128xf32>
    %599 = vector.shape_cast %596 : vector<8x128xf32> to vector<1x8x128xf32>
    tpu.vector_store %arg2[%c24_492, %c0_493, %c0_494], %599 {strides = array<i32>} : memref<67x8x128xf32, #tpu.memory_space<vmem>>, vector<1x8x128xf32>,
    %c3_495 = arith.constant 3 : index
    %c0_496 = arith.constant 0 : index
    %c0_497 = arith.constant 0 : index
    %600 = vector.load %arg1[%c3_495, %c0_496, %c0_497] : memref<30x8x128xf32, #tpu.memory_space<vmem>>, vector<1x8x128xf32>
    %601 = vector.shape_cast %600 : vector<1x8x128xf32> to vector<8x128xf32>
    %c4_498 = arith.constant 4 : index
    %c0_499 = arith.constant 0 : index
    %c0_500 = arith.constant 0 : index
    %602 = vector.load %arg1[%c4_498, %c0_499, %c0_500] : memref<30x8x128xf32, #tpu.memory_space<vmem>>, vector<1x8x128xf32>
    %603 = vector.shape_cast %602 : vector<1x8x128xf32> to vector<8x128xf32>
    %c5_501 = arith.constant 5 : index
    %c0_502 = arith.constant 0 : index
    %c0_503 = arith.constant 0 : index
    %604 = vector.load %arg1[%c5_501, %c0_502, %c0_503] : memref<30x8x128xf32, #tpu.memory_space<vmem>>, vector<1x8x128xf32>
    %605 = vector.shape_cast %604 : vector<1x8x128xf32> to vector<8x128xf32>
    %c15_504 = arith.constant 15 : index
    %c0_505 = arith.constant 0 : index
    %c0_506 = arith.constant 0 : index
    %606 = vector.load %arg1[%c15_504, %c0_505, %c0_506] : memref<30x8x128xf32, #tpu.memory_space<vmem>>, vector<1x8x128xf32>
    %607 = vector.shape_cast %606 : vector<1x8x128xf32> to vector<8x128xf32>
    %c16_507 = arith.constant 16 : index
    %c0_508 = arith.constant 0 : index
    %c0_509 = arith.constant 0 : index
    %608 = vector.load %arg1[%c16_507, %c0_508, %c0_509] : memref<30x8x128xf32, #tpu.memory_space<vmem>>, vector<1x8x128xf32>
    %609 = vector.shape_cast %608 : vector<1x8x128xf32> to vector<8x128xf32>
    %c17_510 = arith.constant 17 : index
    %c0_511 = arith.constant 0 : index
    %c0_512 = arith.constant 0 : index
    %610 = vector.load %arg1[%c17_510, %c0_511, %c0_512] : memref<30x8x128xf32, #tpu.memory_space<vmem>>, vector<1x8x128xf32>
    %611 = vector.shape_cast %610 : vector<1x8x128xf32> to vector<8x128xf32>
    %612 = arith.subf %607, %601 : vector<8x128xf32>
    %613 = arith.subf %609, %603 : vector<8x128xf32>
    %614 = arith.subf %611, %605 : vector<8x128xf32>
    %615 = arith.mulf %612, %612 : vector<8x128xf32>
    %616 = arith.mulf %613, %613 : vector<8x128xf32>
    %617 = arith.addf %615, %616 : vector<8x128xf32>
    %618 = arith.mulf %614, %614 : vector<8x128xf32>
    %619 = arith.addf %617, %618 : vector<8x128xf32>
    %620 = math.sqrt %619 : vector<8x128xf32>
    %c25_513 = arith.constant 25 : index
    %c0_514 = arith.constant 0 : index
    %c0_515 = arith.constant 0 : index
    %621 = vector.load %arg2[%c25_513, %c0_514, %c0_515] : memref<67x8x128xf32, #tpu.memory_space<vmem>>, vector<1x8x128xf32>
    %622 = vector.shape_cast %621 : vector<1x8x128xf32> to vector<8x128xf32>
    %623 = vector.shape_cast %620 : vector<8x128xf32> to vector<1x8x128xf32>
    tpu.vector_store %arg2[%c25_513, %c0_514, %c0_515], %623 {strides = array<i32>} : memref<67x8x128xf32, #tpu.memory_space<vmem>>, vector<1x8x128xf32>,
    %c6_516 = arith.constant 6 : index
    %c0_517 = arith.constant 0 : index
    %c0_518 = arith.constant 0 : index
    %624 = vector.load %arg1[%c6_516, %c0_517, %c0_518] : memref<30x8x128xf32, #tpu.memory_space<vmem>>, vector<1x8x128xf32>
    %625 = vector.shape_cast %624 : vector<1x8x128xf32> to vector<8x128xf32>
    %c7_519 = arith.constant 7 : index
    %c0_520 = arith.constant 0 : index
    %c0_521 = arith.constant 0 : index
    %626 = vector.load %arg1[%c7_519, %c0_520, %c0_521] : memref<30x8x128xf32, #tpu.memory_space<vmem>>, vector<1x8x128xf32>
    %627 = vector.shape_cast %626 : vector<1x8x128xf32> to vector<8x128xf32>
    %c8_522 = arith.constant 8 : index
    %c0_523 = arith.constant 0 : index
    %c0_524 = arith.constant 0 : index
    %628 = vector.load %arg1[%c8_522, %c0_523, %c0_524] : memref<30x8x128xf32, #tpu.memory_space<vmem>>, vector<1x8x128xf32>
    %629 = vector.shape_cast %628 : vector<1x8x128xf32> to vector<8x128xf32>
    %c18_525 = arith.constant 18 : index
    %c0_526 = arith.constant 0 : index
    %c0_527 = arith.constant 0 : index
    %630 = vector.load %arg1[%c18_525, %c0_526, %c0_527] : memref<30x8x128xf32, #tpu.memory_space<vmem>>, vector<1x8x128xf32>
    %631 = vector.shape_cast %630 : vector<1x8x128xf32> to vector<8x128xf32>
    %c19_528 = arith.constant 19 : index
    %c0_529 = arith.constant 0 : index
    %c0_530 = arith.constant 0 : index
    %632 = vector.load %arg1[%c19_528, %c0_529, %c0_530] : memref<30x8x128xf32, #tpu.memory_space<vmem>>, vector<1x8x128xf32>
    %633 = vector.shape_cast %632 : vector<1x8x128xf32> to vector<8x128xf32>
    %c20_531 = arith.constant 20 : index
    %c0_532 = arith.constant 0 : index
    %c0_533 = arith.constant 0 : index
    %634 = vector.load %arg1[%c20_531, %c0_532, %c0_533] : memref<30x8x128xf32, #tpu.memory_space<vmem>>, vector<1x8x128xf32>
    %635 = vector.shape_cast %634 : vector<1x8x128xf32> to vector<8x128xf32>
    %636 = arith.subf %631, %625 : vector<8x128xf32>
    %637 = arith.subf %633, %627 : vector<8x128xf32>
    %638 = arith.subf %635, %629 : vector<8x128xf32>
    %639 = arith.mulf %636, %636 : vector<8x128xf32>
    %640 = arith.mulf %637, %637 : vector<8x128xf32>
    %641 = arith.addf %639, %640 : vector<8x128xf32>
    %642 = arith.mulf %638, %638 : vector<8x128xf32>
    %643 = arith.addf %641, %642 : vector<8x128xf32>
    %644 = math.sqrt %643 : vector<8x128xf32>
    %c26_534 = arith.constant 26 : index
    %c0_535 = arith.constant 0 : index
    %c0_536 = arith.constant 0 : index
    %645 = vector.load %arg2[%c26_534, %c0_535, %c0_536] : memref<67x8x128xf32, #tpu.memory_space<vmem>>, vector<1x8x128xf32>
    %646 = vector.shape_cast %645 : vector<1x8x128xf32> to vector<8x128xf32>
    %647 = vector.shape_cast %644 : vector<8x128xf32> to vector<1x8x128xf32>
    tpu.vector_store %arg2[%c26_534, %c0_535, %c0_536], %647 {strides = array<i32>} : memref<67x8x128xf32, #tpu.memory_space<vmem>>, vector<1x8x128xf32>,
    %c9_537 = arith.constant 9 : index
    %c0_538 = arith.constant 0 : index
    %c0_539 = arith.constant 0 : index
    %648 = vector.load %arg1[%c9_537, %c0_538, %c0_539] : memref<30x8x128xf32, #tpu.memory_space<vmem>>, vector<1x8x128xf32>
    %649 = vector.shape_cast %648 : vector<1x8x128xf32> to vector<8x128xf32>
    %c10_540 = arith.constant 10 : index
    %c0_541 = arith.constant 0 : index
    %c0_542 = arith.constant 0 : index
    %650 = vector.load %arg1[%c10_540, %c0_541, %c0_542] : memref<30x8x128xf32, #tpu.memory_space<vmem>>, vector<1x8x128xf32>
    %651 = vector.shape_cast %650 : vector<1x8x128xf32> to vector<8x128xf32>
    %c11_543 = arith.constant 11 : index
    %c0_544 = arith.constant 0 : index
    %c0_545 = arith.constant 0 : index
    %652 = vector.load %arg1[%c11_543, %c0_544, %c0_545] : memref<30x8x128xf32, #tpu.memory_space<vmem>>, vector<1x8x128xf32>
    %653 = vector.shape_cast %652 : vector<1x8x128xf32> to vector<8x128xf32>
    %c21_546 = arith.constant 21 : index
    %c0_547 = arith.constant 0 : index
    %c0_548 = arith.constant 0 : index
    %654 = vector.load %arg1[%c21_546, %c0_547, %c0_548] : memref<30x8x128xf32, #tpu.memory_space<vmem>>, vector<1x8x128xf32>
    %655 = vector.shape_cast %654 : vector<1x8x128xf32> to vector<8x128xf32>
    %c22_549 = arith.constant 22 : index
    %c0_550 = arith.constant 0 : index
    %c0_551 = arith.constant 0 : index
    %656 = vector.load %arg1[%c22_549, %c0_550, %c0_551] : memref<30x8x128xf32, #tpu.memory_space<vmem>>, vector<1x8x128xf32>
    %657 = vector.shape_cast %656 : vector<1x8x128xf32> to vector<8x128xf32>
    %c23_552 = arith.constant 23 : index
    %c0_553 = arith.constant 0 : index
    %c0_554 = arith.constant 0 : index
    %658 = vector.load %arg1[%c23_552, %c0_553, %c0_554] : memref<30x8x128xf32, #tpu.memory_space<vmem>>, vector<1x8x128xf32>
    %659 = vector.shape_cast %658 : vector<1x8x128xf32> to vector<8x128xf32>
    %660 = arith.subf %655, %649 : vector<8x128xf32>
    %661 = arith.subf %657, %651 : vector<8x128xf32>
    %662 = arith.subf %659, %653 : vector<8x128xf32>
    %663 = arith.mulf %660, %660 : vector<8x128xf32>
    %664 = arith.mulf %661, %661 : vector<8x128xf32>
    %665 = arith.addf %663, %664 : vector<8x128xf32>
    %666 = arith.mulf %662, %662 : vector<8x128xf32>
    %667 = arith.addf %665, %666 : vector<8x128xf32>
    %668 = math.sqrt %667 : vector<8x128xf32>
    %c27_555 = arith.constant 27 : index
    %c0_556 = arith.constant 0 : index
    %c0_557 = arith.constant 0 : index
    %669 = vector.load %arg2[%c27_555, %c0_556, %c0_557] : memref<67x8x128xf32, #tpu.memory_space<vmem>>, vector<1x8x128xf32>
    %670 = vector.shape_cast %669 : vector<1x8x128xf32> to vector<8x128xf32>
    %671 = vector.shape_cast %668 : vector<8x128xf32> to vector<1x8x128xf32>
    tpu.vector_store %arg2[%c27_555, %c0_556, %c0_557], %671 {strides = array<i32>} : memref<67x8x128xf32, #tpu.memory_space<vmem>>, vector<1x8x128xf32>,
    %c12_558 = arith.constant 12 : index
    %c0_559 = arith.constant 0 : index
    %c0_560 = arith.constant 0 : index
    %672 = vector.load %arg1[%c12_558, %c0_559, %c0_560] : memref<30x8x128xf32, #tpu.memory_space<vmem>>, vector<1x8x128xf32>
    %673 = vector.shape_cast %672 : vector<1x8x128xf32> to vector<8x128xf32>
    %c13_561 = arith.constant 13 : index
    %c0_562 = arith.constant 0 : index
    %c0_563 = arith.constant 0 : index
    %674 = vector.load %arg1[%c13_561, %c0_562, %c0_563] : memref<30x8x128xf32, #tpu.memory_space<vmem>>, vector<1x8x128xf32>
    %675 = vector.shape_cast %674 : vector<1x8x128xf32> to vector<8x128xf32>
    %c14_564 = arith.constant 14 : index
    %c0_565 = arith.constant 0 : index
    %c0_566 = arith.constant 0 : index
    %676 = vector.load %arg1[%c14_564, %c0_565, %c0_566] : memref<30x8x128xf32, #tpu.memory_space<vmem>>, vector<1x8x128xf32>
    %677 = vector.shape_cast %676 : vector<1x8x128xf32> to vector<8x128xf32>
    %c24_567 = arith.constant 24 : index
    %c0_568 = arith.constant 0 : index
    %c0_569 = arith.constant 0 : index
    %678 = vector.load %arg1[%c24_567, %c0_568, %c0_569] : memref<30x8x128xf32, #tpu.memory_space<vmem>>, vector<1x8x128xf32>
    %679 = vector.shape_cast %678 : vector<1x8x128xf32> to vector<8x128xf32>
    %c25_570 = arith.constant 25 : index
    %c0_571 = arith.constant 0 : index
    %c0_572 = arith.constant 0 : index
    %680 = vector.load %arg1[%c25_570, %c0_571, %c0_572] : memref<30x8x128xf32, #tpu.memory_space<vmem>>, vector<1x8x128xf32>
    %681 = vector.shape_cast %680 : vector<1x8x128xf32> to vector<8x128xf32>
    %c26_573 = arith.constant 26 : index
    %c0_574 = arith.constant 0 : index
    %c0_575 = arith.constant 0 : index
    %682 = vector.load %arg1[%c26_573, %c0_574, %c0_575] : memref<30x8x128xf32, #tpu.memory_space<vmem>>, vector<1x8x128xf32>
    %683 = vector.shape_cast %682 : vector<1x8x128xf32> to vector<8x128xf32>
    %684 = arith.subf %679, %673 : vector<8x128xf32>
    %685 = arith.subf %681, %675 : vector<8x128xf32>
    %686 = arith.subf %683, %677 : vector<8x128xf32>
    %687 = arith.mulf %684, %684 : vector<8x128xf32>
    %688 = arith.mulf %685, %685 : vector<8x128xf32>
    %689 = arith.addf %687, %688 : vector<8x128xf32>
    %690 = arith.mulf %686, %686 : vector<8x128xf32>
    %691 = arith.addf %689, %690 : vector<8x128xf32>
    %692 = math.sqrt %691 : vector<8x128xf32>
    %c28_576 = arith.constant 28 : index
    %c0_577 = arith.constant 0 : index
    %c0_578 = arith.constant 0 : index
    %693 = vector.load %arg2[%c28_576, %c0_577, %c0_578] : memref<67x8x128xf32, #tpu.memory_space<vmem>>, vector<1x8x128xf32>
    %694 = vector.shape_cast %693 : vector<1x8x128xf32> to vector<8x128xf32>
    %695 = vector.shape_cast %692 : vector<8x128xf32> to vector<1x8x128xf32>
    tpu.vector_store %arg2[%c28_576, %c0_577, %c0_578], %695 {strides = array<i32>} : memref<67x8x128xf32, #tpu.memory_space<vmem>>, vector<1x8x128xf32>,
    %c15_579 = arith.constant 15 : index
    %c0_580 = arith.constant 0 : index
    %c0_581 = arith.constant 0 : index
    %696 = vector.load %arg1[%c15_579, %c0_580, %c0_581] : memref<30x8x128xf32, #tpu.memory_space<vmem>>, vector<1x8x128xf32>
    %697 = vector.shape_cast %696 : vector<1x8x128xf32> to vector<8x128xf32>
    %c16_582 = arith.constant 16 : index
    %c0_583 = arith.constant 0 : index
    %c0_584 = arith.constant 0 : index
    %698 = vector.load %arg1[%c16_582, %c0_583, %c0_584] : memref<30x8x128xf32, #tpu.memory_space<vmem>>, vector<1x8x128xf32>
    %699 = vector.shape_cast %698 : vector<1x8x128xf32> to vector<8x128xf32>
    %c17_585 = arith.constant 17 : index
    %c0_586 = arith.constant 0 : index
    %c0_587 = arith.constant 0 : index
    %700 = vector.load %arg1[%c17_585, %c0_586, %c0_587] : memref<30x8x128xf32, #tpu.memory_space<vmem>>, vector<1x8x128xf32>
    %701 = vector.shape_cast %700 : vector<1x8x128xf32> to vector<8x128xf32>
    %c27_588 = arith.constant 27 : index
    %c0_589 = arith.constant 0 : index
    %c0_590 = arith.constant 0 : index
    %702 = vector.load %arg1[%c27_588, %c0_589, %c0_590] : memref<30x8x128xf32, #tpu.memory_space<vmem>>, vector<1x8x128xf32>
    %703 = vector.shape_cast %702 : vector<1x8x128xf32> to vector<8x128xf32>
    %c28_591 = arith.constant 28 : index
    %c0_592 = arith.constant 0 : index
    %c0_593 = arith.constant 0 : index
    %704 = vector.load %arg1[%c28_591, %c0_592, %c0_593] : memref<30x8x128xf32, #tpu.memory_space<vmem>>, vector<1x8x128xf32>
    %705 = vector.shape_cast %704 : vector<1x8x128xf32> to vector<8x128xf32>
    %c29_594 = arith.constant 29 : index
    %c0_595 = arith.constant 0 : index
    %c0_596 = arith.constant 0 : index
    %706 = vector.load %arg1[%c29_594, %c0_595, %c0_596] : memref<30x8x128xf32, #tpu.memory_space<vmem>>, vector<1x8x128xf32>
    %707 = vector.shape_cast %706 : vector<1x8x128xf32> to vector<8x128xf32>
    %708 = arith.subf %703, %697 : vector<8x128xf32>
    %709 = arith.subf %705, %699 : vector<8x128xf32>
    %710 = arith.subf %707, %701 : vector<8x128xf32>
    %711 = arith.mulf %708, %708 : vector<8x128xf32>
    %712 = arith.mulf %709, %709 : vector<8x128xf32>
    %713 = arith.addf %711, %712 : vector<8x128xf32>
    %714 = arith.mulf %710, %710 : vector<8x128xf32>
    %715 = arith.addf %713, %714 : vector<8x128xf32>
    %716 = math.sqrt %715 : vector<8x128xf32>
    %c29_597 = arith.constant 29 : index
    %c0_598 = arith.constant 0 : index
    %c0_599 = arith.constant 0 : index
    %717 = vector.load %arg2[%c29_597, %c0_598, %c0_599] : memref<67x8x128xf32, #tpu.memory_space<vmem>>, vector<1x8x128xf32>
    %718 = vector.shape_cast %717 : vector<1x8x128xf32> to vector<8x128xf32>
    %719 = vector.shape_cast %716 : vector<8x128xf32> to vector<1x8x128xf32>
    tpu.vector_store %arg2[%c29_597, %c0_598, %c0_599], %719 {strides = array<i32>} : memref<67x8x128xf32, #tpu.memory_space<vmem>>, vector<1x8x128xf32>,
    %c0_600 = arith.constant 0 : index
    %c0_601 = arith.constant 0 : index
    %c0_602 = arith.constant 0 : index
    %720 = vector.load %arg1[%c0_600, %c0_601, %c0_602] : memref<30x8x128xf32, #tpu.memory_space<vmem>>, vector<1x8x128xf32>
    %721 = vector.shape_cast %720 : vector<1x8x128xf32> to vector<8x128xf32>
    %c1_603 = arith.constant 1 : index
    %c0_604 = arith.constant 0 : index
    %c0_605 = arith.constant 0 : index
    %722 = vector.load %arg1[%c1_603, %c0_604, %c0_605] : memref<30x8x128xf32, #tpu.memory_space<vmem>>, vector<1x8x128xf32>
    %723 = vector.shape_cast %722 : vector<1x8x128xf32> to vector<8x128xf32>
    %c2_606 = arith.constant 2 : index
    %c0_607 = arith.constant 0 : index
    %c0_608 = arith.constant 0 : index
    %724 = vector.load %arg1[%c2_606, %c0_607, %c0_608] : memref<30x8x128xf32, #tpu.memory_space<vmem>>, vector<1x8x128xf32>
    %725 = vector.shape_cast %724 : vector<1x8x128xf32> to vector<8x128xf32>
    %c15_609 = arith.constant 15 : index
    %c0_610 = arith.constant 0 : index
    %c0_611 = arith.constant 0 : index
    %726 = vector.load %arg1[%c15_609, %c0_610, %c0_611] : memref<30x8x128xf32, #tpu.memory_space<vmem>>, vector<1x8x128xf32>
    %727 = vector.shape_cast %726 : vector<1x8x128xf32> to vector<8x128xf32>
    %c16_612 = arith.constant 16 : index
    %c0_613 = arith.constant 0 : index
    %c0_614 = arith.constant 0 : index
    %728 = vector.load %arg1[%c16_612, %c0_613, %c0_614] : memref<30x8x128xf32, #tpu.memory_space<vmem>>, vector<1x8x128xf32>
    %729 = vector.shape_cast %728 : vector<1x8x128xf32> to vector<8x128xf32>
    %c17_615 = arith.constant 17 : index
    %c0_616 = arith.constant 0 : index
    %c0_617 = arith.constant 0 : index
    %730 = vector.load %arg1[%c17_615, %c0_616, %c0_617] : memref<30x8x128xf32, #tpu.memory_space<vmem>>, vector<1x8x128xf32>
    %731 = vector.shape_cast %730 : vector<1x8x128xf32> to vector<8x128xf32>
    %732 = arith.subf %727, %721 : vector<8x128xf32>
    %733 = arith.subf %729, %723 : vector<8x128xf32>
    %734 = arith.subf %731, %725 : vector<8x128xf32>
    %735 = arith.mulf %732, %732 : vector<8x128xf32>
    %736 = arith.mulf %733, %733 : vector<8x128xf32>
    %737 = arith.addf %735, %736 : vector<8x128xf32>
    %738 = arith.mulf %734, %734 : vector<8x128xf32>
    %739 = arith.addf %737, %738 : vector<8x128xf32>
    %740 = math.sqrt %739 : vector<8x128xf32>
    %c30 = arith.constant 30 : index
    %c0_618 = arith.constant 0 : index
    %c0_619 = arith.constant 0 : index
    %741 = vector.load %arg2[%c30, %c0_618, %c0_619] : memref<67x8x128xf32, #tpu.memory_space<vmem>>, vector<1x8x128xf32>
    %742 = vector.shape_cast %741 : vector<1x8x128xf32> to vector<8x128xf32>
    %743 = vector.shape_cast %740 : vector<8x128xf32> to vector<1x8x128xf32>
    tpu.vector_store %arg2[%c30, %c0_618, %c0_619], %743 {strides = array<i32>} : memref<67x8x128xf32, #tpu.memory_space<vmem>>, vector<1x8x128xf32>,
    %c3_620 = arith.constant 3 : index
    %c0_621 = arith.constant 0 : index
    %c0_622 = arith.constant 0 : index
    %744 = vector.load %arg1[%c3_620, %c0_621, %c0_622] : memref<30x8x128xf32, #tpu.memory_space<vmem>>, vector<1x8x128xf32>
    %745 = vector.shape_cast %744 : vector<1x8x128xf32> to vector<8x128xf32>
    %c4_623 = arith.constant 4 : index
    %c0_624 = arith.constant 0 : index
    %c0_625 = arith.constant 0 : index
    %746 = vector.load %arg1[%c4_623, %c0_624, %c0_625] : memref<30x8x128xf32, #tpu.memory_space<vmem>>, vector<1x8x128xf32>
    %747 = vector.shape_cast %746 : vector<1x8x128xf32> to vector<8x128xf32>
    %c5_626 = arith.constant 5 : index
    %c0_627 = arith.constant 0 : index
    %c0_628 = arith.constant 0 : index
    %748 = vector.load %arg1[%c5_626, %c0_627, %c0_628] : memref<30x8x128xf32, #tpu.memory_space<vmem>>, vector<1x8x128xf32>
    %749 = vector.shape_cast %748 : vector<1x8x128xf32> to vector<8x128xf32>
    %c18_629 = arith.constant 18 : index
    %c0_630 = arith.constant 0 : index
    %c0_631 = arith.constant 0 : index
    %750 = vector.load %arg1[%c18_629, %c0_630, %c0_631] : memref<30x8x128xf32, #tpu.memory_space<vmem>>, vector<1x8x128xf32>
    %751 = vector.shape_cast %750 : vector<1x8x128xf32> to vector<8x128xf32>
    %c19_632 = arith.constant 19 : index
    %c0_633 = arith.constant 0 : index
    %c0_634 = arith.constant 0 : index
    %752 = vector.load %arg1[%c19_632, %c0_633, %c0_634] : memref<30x8x128xf32, #tpu.memory_space<vmem>>, vector<1x8x128xf32>
    %753 = vector.shape_cast %752 : vector<1x8x128xf32> to vector<8x128xf32>
    %c20_635 = arith.constant 20 : index
    %c0_636 = arith.constant 0 : index
    %c0_637 = arith.constant 0 : index
    %754 = vector.load %arg1[%c20_635, %c0_636, %c0_637] : memref<30x8x128xf32, #tpu.memory_space<vmem>>, vector<1x8x128xf32>
    %755 = vector.shape_cast %754 : vector<1x8x128xf32> to vector<8x128xf32>
    %756 = arith.subf %751, %745 : vector<8x128xf32>
    %757 = arith.subf %753, %747 : vector<8x128xf32>
    %758 = arith.subf %755, %749 : vector<8x128xf32>
    %759 = arith.mulf %756, %756 : vector<8x128xf32>
    %760 = arith.mulf %757, %757 : vector<8x128xf32>
    %761 = arith.addf %759, %760 : vector<8x128xf32>
    %762 = arith.mulf %758, %758 : vector<8x128xf32>
    %763 = arith.addf %761, %762 : vector<8x128xf32>
    %764 = math.sqrt %763 : vector<8x128xf32>
    %c31 = arith.constant 31 : index
    %c0_638 = arith.constant 0 : index
    %c0_639 = arith.constant 0 : index
    %765 = vector.load %arg2[%c31, %c0_638, %c0_639] : memref<67x8x128xf32, #tpu.memory_space<vmem>>, vector<1x8x128xf32>
    %766 = vector.shape_cast %765 : vector<1x8x128xf32> to vector<8x128xf32>
    %767 = vector.shape_cast %764 : vector<8x128xf32> to vector<1x8x128xf32>
    tpu.vector_store %arg2[%c31, %c0_638, %c0_639], %767 {strides = array<i32>} : memref<67x8x128xf32, #tpu.memory_space<vmem>>, vector<1x8x128xf32>,
    %c6_640 = arith.constant 6 : index
    %c0_641 = arith.constant 0 : index
    %c0_642 = arith.constant 0 : index
    %768 = vector.load %arg1[%c6_640, %c0_641, %c0_642] : memref<30x8x128xf32, #tpu.memory_space<vmem>>, vector<1x8x128xf32>
    %769 = vector.shape_cast %768 : vector<1x8x128xf32> to vector<8x128xf32>
    %c7_643 = arith.constant 7 : index
    %c0_644 = arith.constant 0 : index
    %c0_645 = arith.constant 0 : index
    %770 = vector.load %arg1[%c7_643, %c0_644, %c0_645] : memref<30x8x128xf32, #tpu.memory_space<vmem>>, vector<1x8x128xf32>
    %771 = vector.shape_cast %770 : vector<1x8x128xf32> to vector<8x128xf32>
    %c8_646 = arith.constant 8 : index
    %c0_647 = arith.constant 0 : index
    %c0_648 = arith.constant 0 : index
    %772 = vector.load %arg1[%c8_646, %c0_647, %c0_648] : memref<30x8x128xf32, #tpu.memory_space<vmem>>, vector<1x8x128xf32>
    %773 = vector.shape_cast %772 : vector<1x8x128xf32> to vector<8x128xf32>
    %c21_649 = arith.constant 21 : index
    %c0_650 = arith.constant 0 : index
    %c0_651 = arith.constant 0 : index
    %774 = vector.load %arg1[%c21_649, %c0_650, %c0_651] : memref<30x8x128xf32, #tpu.memory_space<vmem>>, vector<1x8x128xf32>
    %775 = vector.shape_cast %774 : vector<1x8x128xf32> to vector<8x128xf32>
    %c22_652 = arith.constant 22 : index
    %c0_653 = arith.constant 0 : index
    %c0_654 = arith.constant 0 : index
    %776 = vector.load %arg1[%c22_652, %c0_653, %c0_654] : memref<30x8x128xf32, #tpu.memory_space<vmem>>, vector<1x8x128xf32>
    %777 = vector.shape_cast %776 : vector<1x8x128xf32> to vector<8x128xf32>
    %c23_655 = arith.constant 23 : index
    %c0_656 = arith.constant 0 : index
    %c0_657 = arith.constant 0 : index
    %778 = vector.load %arg1[%c23_655, %c0_656, %c0_657] : memref<30x8x128xf32, #tpu.memory_space<vmem>>, vector<1x8x128xf32>
    %779 = vector.shape_cast %778 : vector<1x8x128xf32> to vector<8x128xf32>
    %780 = arith.subf %775, %769 : vector<8x128xf32>
    %781 = arith.subf %777, %771 : vector<8x128xf32>
    %782 = arith.subf %779, %773 : vector<8x128xf32>
    %783 = arith.mulf %780, %780 : vector<8x128xf32>
    %784 = arith.mulf %781, %781 : vector<8x128xf32>
    %785 = arith.addf %783, %784 : vector<8x128xf32>
    %786 = arith.mulf %782, %782 : vector<8x128xf32>
    %787 = arith.addf %785, %786 : vector<8x128xf32>
    %788 = math.sqrt %787 : vector<8x128xf32>
    %c32 = arith.constant 32 : index
    %c0_658 = arith.constant 0 : index
    %c0_659 = arith.constant 0 : index
    %789 = vector.load %arg2[%c32, %c0_658, %c0_659] : memref<67x8x128xf32, #tpu.memory_space<vmem>>, vector<1x8x128xf32>
    %790 = vector.shape_cast %789 : vector<1x8x128xf32> to vector<8x128xf32>
    %791 = vector.shape_cast %788 : vector<8x128xf32> to vector<1x8x128xf32>
    tpu.vector_store %arg2[%c32, %c0_658, %c0_659], %791 {strides = array<i32>} : memref<67x8x128xf32, #tpu.memory_space<vmem>>, vector<1x8x128xf32>,
    %c9_660 = arith.constant 9 : index
    %c0_661 = arith.constant 0 : index
    %c0_662 = arith.constant 0 : index
    %792 = vector.load %arg1[%c9_660, %c0_661, %c0_662] : memref<30x8x128xf32, #tpu.memory_space<vmem>>, vector<1x8x128xf32>
    %793 = vector.shape_cast %792 : vector<1x8x128xf32> to vector<8x128xf32>
    %c10_663 = arith.constant 10 : index
    %c0_664 = arith.constant 0 : index
    %c0_665 = arith.constant 0 : index
    %794 = vector.load %arg1[%c10_663, %c0_664, %c0_665] : memref<30x8x128xf32, #tpu.memory_space<vmem>>, vector<1x8x128xf32>
    %795 = vector.shape_cast %794 : vector<1x8x128xf32> to vector<8x128xf32>
    %c11_666 = arith.constant 11 : index
    %c0_667 = arith.constant 0 : index
    %c0_668 = arith.constant 0 : index
    %796 = vector.load %arg1[%c11_666, %c0_667, %c0_668] : memref<30x8x128xf32, #tpu.memory_space<vmem>>, vector<1x8x128xf32>
    %797 = vector.shape_cast %796 : vector<1x8x128xf32> to vector<8x128xf32>
    %c24_669 = arith.constant 24 : index
    %c0_670 = arith.constant 0 : index
    %c0_671 = arith.constant 0 : index
    %798 = vector.load %arg1[%c24_669, %c0_670, %c0_671] : memref<30x8x128xf32, #tpu.memory_space<vmem>>, vector<1x8x128xf32>
    %799 = vector.shape_cast %798 : vector<1x8x128xf32> to vector<8x128xf32>
    %c25_672 = arith.constant 25 : index
    %c0_673 = arith.constant 0 : index
    %c0_674 = arith.constant 0 : index
    %800 = vector.load %arg1[%c25_672, %c0_673, %c0_674] : memref<30x8x128xf32, #tpu.memory_space<vmem>>, vector<1x8x128xf32>
    %801 = vector.shape_cast %800 : vector<1x8x128xf32> to vector<8x128xf32>
    %c26_675 = arith.constant 26 : index
    %c0_676 = arith.constant 0 : index
    %c0_677 = arith.constant 0 : index
    %802 = vector.load %arg1[%c26_675, %c0_676, %c0_677] : memref<30x8x128xf32, #tpu.memory_space<vmem>>, vector<1x8x128xf32>
    %803 = vector.shape_cast %802 : vector<1x8x128xf32> to vector<8x128xf32>
    %804 = arith.subf %799, %793 : vector<8x128xf32>
    %805 = arith.subf %801, %795 : vector<8x128xf32>
    %806 = arith.subf %803, %797 : vector<8x128xf32>
    %807 = arith.mulf %804, %804 : vector<8x128xf32>
    %808 = arith.mulf %805, %805 : vector<8x128xf32>
    %809 = arith.addf %807, %808 : vector<8x128xf32>
    %810 = arith.mulf %806, %806 : vector<8x128xf32>
    %811 = arith.addf %809, %810 : vector<8x128xf32>
    %812 = math.sqrt %811 : vector<8x128xf32>
    %c33 = arith.constant 33 : index
    %c0_678 = arith.constant 0 : index
    %c0_679 = arith.constant 0 : index
    %813 = vector.load %arg2[%c33, %c0_678, %c0_679] : memref<67x8x128xf32, #tpu.memory_space<vmem>>, vector<1x8x128xf32>
    %814 = vector.shape_cast %813 : vector<1x8x128xf32> to vector<8x128xf32>
    %815 = vector.shape_cast %812 : vector<8x128xf32> to vector<1x8x128xf32>
    tpu.vector_store %arg2[%c33, %c0_678, %c0_679], %815 {strides = array<i32>} : memref<67x8x128xf32, #tpu.memory_space<vmem>>, vector<1x8x128xf32>,
    %c12_680 = arith.constant 12 : index
    %c0_681 = arith.constant 0 : index
    %c0_682 = arith.constant 0 : index
    %816 = vector.load %arg1[%c12_680, %c0_681, %c0_682] : memref<30x8x128xf32, #tpu.memory_space<vmem>>, vector<1x8x128xf32>
    %817 = vector.shape_cast %816 : vector<1x8x128xf32> to vector<8x128xf32>
    %c13_683 = arith.constant 13 : index
    %c0_684 = arith.constant 0 : index
    %c0_685 = arith.constant 0 : index
    %818 = vector.load %arg1[%c13_683, %c0_684, %c0_685] : memref<30x8x128xf32, #tpu.memory_space<vmem>>, vector<1x8x128xf32>
    %819 = vector.shape_cast %818 : vector<1x8x128xf32> to vector<8x128xf32>
    %c14_686 = arith.constant 14 : index
    %c0_687 = arith.constant 0 : index
    %c0_688 = arith.constant 0 : index
    %820 = vector.load %arg1[%c14_686, %c0_687, %c0_688] : memref<30x8x128xf32, #tpu.memory_space<vmem>>, vector<1x8x128xf32>
    %821 = vector.shape_cast %820 : vector<1x8x128xf32> to vector<8x128xf32>
    %c27_689 = arith.constant 27 : index
    %c0_690 = arith.constant 0 : index
    %c0_691 = arith.constant 0 : index
    %822 = vector.load %arg1[%c27_689, %c0_690, %c0_691] : memref<30x8x128xf32, #tpu.memory_space<vmem>>, vector<1x8x128xf32>
    %823 = vector.shape_cast %822 : vector<1x8x128xf32> to vector<8x128xf32>
    %c28_692 = arith.constant 28 : index
    %c0_693 = arith.constant 0 : index
    %c0_694 = arith.constant 0 : index
    %824 = vector.load %arg1[%c28_692, %c0_693, %c0_694] : memref<30x8x128xf32, #tpu.memory_space<vmem>>, vector<1x8x128xf32>
    %825 = vector.shape_cast %824 : vector<1x8x128xf32> to vector<8x128xf32>
    %c29_695 = arith.constant 29 : index
    %c0_696 = arith.constant 0 : index
    %c0_697 = arith.constant 0 : index
    %826 = vector.load %arg1[%c29_695, %c0_696, %c0_697] : memref<30x8x128xf32, #tpu.memory_space<vmem>>, vector<1x8x128xf32>
    %827 = vector.shape_cast %826 : vector<1x8x128xf32> to vector<8x128xf32>
    %828 = arith.subf %823, %817 : vector<8x128xf32>
    %829 = arith.subf %825, %819 : vector<8x128xf32>
    %830 = arith.subf %827, %821 : vector<8x128xf32>
    %831 = arith.mulf %828, %828 : vector<8x128xf32>
    %832 = arith.mulf %829, %829 : vector<8x128xf32>
    %833 = arith.addf %831, %832 : vector<8x128xf32>
    %834 = arith.mulf %830, %830 : vector<8x128xf32>
    %835 = arith.addf %833, %834 : vector<8x128xf32>
    %836 = math.sqrt %835 : vector<8x128xf32>
    %c34 = arith.constant 34 : index
    %c0_698 = arith.constant 0 : index
    %c0_699 = arith.constant 0 : index
    %837 = vector.load %arg2[%c34, %c0_698, %c0_699] : memref<67x8x128xf32, #tpu.memory_space<vmem>>, vector<1x8x128xf32>
    %838 = vector.shape_cast %837 : vector<1x8x128xf32> to vector<8x128xf32>
    %839 = vector.shape_cast %836 : vector<8x128xf32> to vector<1x8x128xf32>
    tpu.vector_store %arg2[%c34, %c0_698, %c0_699], %839 {strides = array<i32>} : memref<67x8x128xf32, #tpu.memory_space<vmem>>, vector<1x8x128xf32>,
    %c0_700 = arith.constant 0 : index
    %c0_701 = arith.constant 0 : index
    %c0_702 = arith.constant 0 : index
    %840 = vector.load %arg1[%c0_700, %c0_701, %c0_702] : memref<30x8x128xf32, #tpu.memory_space<vmem>>, vector<1x8x128xf32>
    %841 = vector.shape_cast %840 : vector<1x8x128xf32> to vector<8x128xf32>
    %c1_703 = arith.constant 1 : index
    %c0_704 = arith.constant 0 : index
    %c0_705 = arith.constant 0 : index
    %842 = vector.load %arg1[%c1_703, %c0_704, %c0_705] : memref<30x8x128xf32, #tpu.memory_space<vmem>>, vector<1x8x128xf32>
    %843 = vector.shape_cast %842 : vector<1x8x128xf32> to vector<8x128xf32>
    %c2_706 = arith.constant 2 : index
    %c0_707 = arith.constant 0 : index
    %c0_708 = arith.constant 0 : index
    %844 = vector.load %arg1[%c2_706, %c0_707, %c0_708] : memref<30x8x128xf32, #tpu.memory_space<vmem>>, vector<1x8x128xf32>
    %845 = vector.shape_cast %844 : vector<1x8x128xf32> to vector<8x128xf32>
    %c18_709 = arith.constant 18 : index
    %c0_710 = arith.constant 0 : index
    %c0_711 = arith.constant 0 : index
    %846 = vector.load %arg1[%c18_709, %c0_710, %c0_711] : memref<30x8x128xf32, #tpu.memory_space<vmem>>, vector<1x8x128xf32>
    %847 = vector.shape_cast %846 : vector<1x8x128xf32> to vector<8x128xf32>
    %c19_712 = arith.constant 19 : index
    %c0_713 = arith.constant 0 : index
    %c0_714 = arith.constant 0 : index
    %848 = vector.load %arg1[%c19_712, %c0_713, %c0_714] : memref<30x8x128xf32, #tpu.memory_space<vmem>>, vector<1x8x128xf32>
    %849 = vector.shape_cast %848 : vector<1x8x128xf32> to vector<8x128xf32>
    %c20_715 = arith.constant 20 : index
    %c0_716 = arith.constant 0 : index
    %c0_717 = arith.constant 0 : index
    %850 = vector.load %arg1[%c20_715, %c0_716, %c0_717] : memref<30x8x128xf32, #tpu.memory_space<vmem>>, vector<1x8x128xf32>
    %851 = vector.shape_cast %850 : vector<1x8x128xf32> to vector<8x128xf32>
    %852 = arith.subf %847, %841 : vector<8x128xf32>
    %853 = arith.subf %849, %843 : vector<8x128xf32>
    %854 = arith.subf %851, %845 : vector<8x128xf32>
    %855 = arith.mulf %852, %852 : vector<8x128xf32>
    %856 = arith.mulf %853, %853 : vector<8x128xf32>
    %857 = arith.addf %855, %856 : vector<8x128xf32>
    %858 = arith.mulf %854, %854 : vector<8x128xf32>
    %859 = arith.addf %857, %858 : vector<8x128xf32>
    %860 = math.sqrt %859 : vector<8x128xf32>
    %c35 = arith.constant 35 : index
    %c0_718 = arith.constant 0 : index
    %c0_719 = arith.constant 0 : index
    %861 = vector.load %arg2[%c35, %c0_718, %c0_719] : memref<67x8x128xf32, #tpu.memory_space<vmem>>, vector<1x8x128xf32>
    %862 = vector.shape_cast %861 : vector<1x8x128xf32> to vector<8x128xf32>
    %863 = vector.shape_cast %860 : vector<8x128xf32> to vector<1x8x128xf32>
    tpu.vector_store %arg2[%c35, %c0_718, %c0_719], %863 {strides = array<i32>} : memref<67x8x128xf32, #tpu.memory_space<vmem>>, vector<1x8x128xf32>,
    %c3_720 = arith.constant 3 : index
    %c0_721 = arith.constant 0 : index
    %c0_722 = arith.constant 0 : index
    %864 = vector.load %arg1[%c3_720, %c0_721, %c0_722] : memref<30x8x128xf32, #tpu.memory_space<vmem>>, vector<1x8x128xf32>
    %865 = vector.shape_cast %864 : vector<1x8x128xf32> to vector<8x128xf32>
    %c4_723 = arith.constant 4 : index
    %c0_724 = arith.constant 0 : index
    %c0_725 = arith.constant 0 : index
    %866 = vector.load %arg1[%c4_723, %c0_724, %c0_725] : memref<30x8x128xf32, #tpu.memory_space<vmem>>, vector<1x8x128xf32>
    %867 = vector.shape_cast %866 : vector<1x8x128xf32> to vector<8x128xf32>
    %c5_726 = arith.constant 5 : index
    %c0_727 = arith.constant 0 : index
    %c0_728 = arith.constant 0 : index
    %868 = vector.load %arg1[%c5_726, %c0_727, %c0_728] : memref<30x8x128xf32, #tpu.memory_space<vmem>>, vector<1x8x128xf32>
    %869 = vector.shape_cast %868 : vector<1x8x128xf32> to vector<8x128xf32>
    %c21_729 = arith.constant 21 : index
    %c0_730 = arith.constant 0 : index
    %c0_731 = arith.constant 0 : index
    %870 = vector.load %arg1[%c21_729, %c0_730, %c0_731] : memref<30x8x128xf32, #tpu.memory_space<vmem>>, vector<1x8x128xf32>
    %871 = vector.shape_cast %870 : vector<1x8x128xf32> to vector<8x128xf32>
    %c22_732 = arith.constant 22 : index
    %c0_733 = arith.constant 0 : index
    %c0_734 = arith.constant 0 : index
    %872 = vector.load %arg1[%c22_732, %c0_733, %c0_734] : memref<30x8x128xf32, #tpu.memory_space<vmem>>, vector<1x8x128xf32>
    %873 = vector.shape_cast %872 : vector<1x8x128xf32> to vector<8x128xf32>
    %c23_735 = arith.constant 23 : index
    %c0_736 = arith.constant 0 : index
    %c0_737 = arith.constant 0 : index
    %874 = vector.load %arg1[%c23_735, %c0_736, %c0_737] : memref<30x8x128xf32, #tpu.memory_space<vmem>>, vector<1x8x128xf32>
    %875 = vector.shape_cast %874 : vector<1x8x128xf32> to vector<8x128xf32>
    %876 = arith.subf %871, %865 : vector<8x128xf32>
    %877 = arith.subf %873, %867 : vector<8x128xf32>
    %878 = arith.subf %875, %869 : vector<8x128xf32>
    %879 = arith.mulf %876, %876 : vector<8x128xf32>
    %880 = arith.mulf %877, %877 : vector<8x128xf32>
    %881 = arith.addf %879, %880 : vector<8x128xf32>
    %882 = arith.mulf %878, %878 : vector<8x128xf32>
    %883 = arith.addf %881, %882 : vector<8x128xf32>
    %884 = math.sqrt %883 : vector<8x128xf32>
    %c36 = arith.constant 36 : index
    %c0_738 = arith.constant 0 : index
    %c0_739 = arith.constant 0 : index
    %885 = vector.load %arg2[%c36, %c0_738, %c0_739] : memref<67x8x128xf32, #tpu.memory_space<vmem>>, vector<1x8x128xf32>
    %886 = vector.shape_cast %885 : vector<1x8x128xf32> to vector<8x128xf32>
    %887 = vector.shape_cast %884 : vector<8x128xf32> to vector<1x8x128xf32>
    tpu.vector_store %arg2[%c36, %c0_738, %c0_739], %887 {strides = array<i32>} : memref<67x8x128xf32, #tpu.memory_space<vmem>>, vector<1x8x128xf32>,
    %c6_740 = arith.constant 6 : index
    %c0_741 = arith.constant 0 : index
    %c0_742 = arith.constant 0 : index
    %888 = vector.load %arg1[%c6_740, %c0_741, %c0_742] : memref<30x8x128xf32, #tpu.memory_space<vmem>>, vector<1x8x128xf32>
    %889 = vector.shape_cast %888 : vector<1x8x128xf32> to vector<8x128xf32>
    %c7_743 = arith.constant 7 : index
    %c0_744 = arith.constant 0 : index
    %c0_745 = arith.constant 0 : index
    %890 = vector.load %arg1[%c7_743, %c0_744, %c0_745] : memref<30x8x128xf32, #tpu.memory_space<vmem>>, vector<1x8x128xf32>
    %891 = vector.shape_cast %890 : vector<1x8x128xf32> to vector<8x128xf32>
    %c8_746 = arith.constant 8 : index
    %c0_747 = arith.constant 0 : index
    %c0_748 = arith.constant 0 : index
    %892 = vector.load %arg1[%c8_746, %c0_747, %c0_748] : memref<30x8x128xf32, #tpu.memory_space<vmem>>, vector<1x8x128xf32>
    %893 = vector.shape_cast %892 : vector<1x8x128xf32> to vector<8x128xf32>
    %c24_749 = arith.constant 24 : index
    %c0_750 = arith.constant 0 : index
    %c0_751 = arith.constant 0 : index
    %894 = vector.load %arg1[%c24_749, %c0_750, %c0_751] : memref<30x8x128xf32, #tpu.memory_space<vmem>>, vector<1x8x128xf32>
    %895 = vector.shape_cast %894 : vector<1x8x128xf32> to vector<8x128xf32>
    %c25_752 = arith.constant 25 : index
    %c0_753 = arith.constant 0 : index
    %c0_754 = arith.constant 0 : index
    %896 = vector.load %arg1[%c25_752, %c0_753, %c0_754] : memref<30x8x128xf32, #tpu.memory_space<vmem>>, vector<1x8x128xf32>
    %897 = vector.shape_cast %896 : vector<1x8x128xf32> to vector<8x128xf32>
    %c26_755 = arith.constant 26 : index
    %c0_756 = arith.constant 0 : index
    %c0_757 = arith.constant 0 : index
    %898 = vector.load %arg1[%c26_755, %c0_756, %c0_757] : memref<30x8x128xf32, #tpu.memory_space<vmem>>, vector<1x8x128xf32>
    %899 = vector.shape_cast %898 : vector<1x8x128xf32> to vector<8x128xf32>
    %900 = arith.subf %895, %889 : vector<8x128xf32>
    %901 = arith.subf %897, %891 : vector<8x128xf32>
    %902 = arith.subf %899, %893 : vector<8x128xf32>
    %903 = arith.mulf %900, %900 : vector<8x128xf32>
    %904 = arith.mulf %901, %901 : vector<8x128xf32>
    %905 = arith.addf %903, %904 : vector<8x128xf32>
    %906 = arith.mulf %902, %902 : vector<8x128xf32>
    %907 = arith.addf %905, %906 : vector<8x128xf32>
    %908 = math.sqrt %907 : vector<8x128xf32>
    %c37 = arith.constant 37 : index
    %c0_758 = arith.constant 0 : index
    %c0_759 = arith.constant 0 : index
    %909 = vector.load %arg2[%c37, %c0_758, %c0_759] : memref<67x8x128xf32, #tpu.memory_space<vmem>>, vector<1x8x128xf32>
    %910 = vector.shape_cast %909 : vector<1x8x128xf32> to vector<8x128xf32>
    %911 = vector.shape_cast %908 : vector<8x128xf32> to vector<1x8x128xf32>
    tpu.vector_store %arg2[%c37, %c0_758, %c0_759], %911 {strides = array<i32>} : memref<67x8x128xf32, #tpu.memory_space<vmem>>, vector<1x8x128xf32>,
    %c9_760 = arith.constant 9 : index
    %c0_761 = arith.constant 0 : index
    %c0_762 = arith.constant 0 : index
    %912 = vector.load %arg1[%c9_760, %c0_761, %c0_762] : memref<30x8x128xf32, #tpu.memory_space<vmem>>, vector<1x8x128xf32>
    %913 = vector.shape_cast %912 : vector<1x8x128xf32> to vector<8x128xf32>
    %c10_763 = arith.constant 10 : index
    %c0_764 = arith.constant 0 : index
    %c0_765 = arith.constant 0 : index
    %914 = vector.load %arg1[%c10_763, %c0_764, %c0_765] : memref<30x8x128xf32, #tpu.memory_space<vmem>>, vector<1x8x128xf32>
    %915 = vector.shape_cast %914 : vector<1x8x128xf32> to vector<8x128xf32>
    %c11_766 = arith.constant 11 : index
    %c0_767 = arith.constant 0 : index
    %c0_768 = arith.constant 0 : index
    %916 = vector.load %arg1[%c11_766, %c0_767, %c0_768] : memref<30x8x128xf32, #tpu.memory_space<vmem>>, vector<1x8x128xf32>
    %917 = vector.shape_cast %916 : vector<1x8x128xf32> to vector<8x128xf32>
    %c27_769 = arith.constant 27 : index
    %c0_770 = arith.constant 0 : index
    %c0_771 = arith.constant 0 : index
    %918 = vector.load %arg1[%c27_769, %c0_770, %c0_771] : memref<30x8x128xf32, #tpu.memory_space<vmem>>, vector<1x8x128xf32>
    %919 = vector.shape_cast %918 : vector<1x8x128xf32> to vector<8x128xf32>
    %c28_772 = arith.constant 28 : index
    %c0_773 = arith.constant 0 : index
    %c0_774 = arith.constant 0 : index
    %920 = vector.load %arg1[%c28_772, %c0_773, %c0_774] : memref<30x8x128xf32, #tpu.memory_space<vmem>>, vector<1x8x128xf32>
    %921 = vector.shape_cast %920 : vector<1x8x128xf32> to vector<8x128xf32>
    %c29_775 = arith.constant 29 : index
    %c0_776 = arith.constant 0 : index
    %c0_777 = arith.constant 0 : index
    %922 = vector.load %arg1[%c29_775, %c0_776, %c0_777] : memref<30x8x128xf32, #tpu.memory_space<vmem>>, vector<1x8x128xf32>
    %923 = vector.shape_cast %922 : vector<1x8x128xf32> to vector<8x128xf32>
    %924 = arith.subf %919, %913 : vector<8x128xf32>
    %925 = arith.subf %921, %915 : vector<8x128xf32>
    %926 = arith.subf %923, %917 : vector<8x128xf32>
    %927 = arith.mulf %924, %924 : vector<8x128xf32>
    %928 = arith.mulf %925, %925 : vector<8x128xf32>
    %929 = arith.addf %927, %928 : vector<8x128xf32>
    %930 = arith.mulf %926, %926 : vector<8x128xf32>
    %931 = arith.addf %929, %930 : vector<8x128xf32>
    %932 = math.sqrt %931 : vector<8x128xf32>
    %c38 = arith.constant 38 : index
    %c0_778 = arith.constant 0 : index
    %c0_779 = arith.constant 0 : index
    %933 = vector.load %arg2[%c38, %c0_778, %c0_779] : memref<67x8x128xf32, #tpu.memory_space<vmem>>, vector<1x8x128xf32>
    %934 = vector.shape_cast %933 : vector<1x8x128xf32> to vector<8x128xf32>
    %935 = vector.shape_cast %932 : vector<8x128xf32> to vector<1x8x128xf32>
    tpu.vector_store %arg2[%c38, %c0_778, %c0_779], %935 {strides = array<i32>} : memref<67x8x128xf32, #tpu.memory_space<vmem>>, vector<1x8x128xf32>,
    %c0_780 = arith.constant 0 : index
    %c0_781 = arith.constant 0 : index
    %c0_782 = arith.constant 0 : index
    %936 = vector.load %arg1[%c0_780, %c0_781, %c0_782] : memref<30x8x128xf32, #tpu.memory_space<vmem>>, vector<1x8x128xf32>
    %937 = vector.shape_cast %936 : vector<1x8x128xf32> to vector<8x128xf32>
    %c1_783 = arith.constant 1 : index
    %c0_784 = arith.constant 0 : index
    %c0_785 = arith.constant 0 : index
    %938 = vector.load %arg1[%c1_783, %c0_784, %c0_785] : memref<30x8x128xf32, #tpu.memory_space<vmem>>, vector<1x8x128xf32>
    %939 = vector.shape_cast %938 : vector<1x8x128xf32> to vector<8x128xf32>
    %c2_786 = arith.constant 2 : index
    %c0_787 = arith.constant 0 : index
    %c0_788 = arith.constant 0 : index
    %940 = vector.load %arg1[%c2_786, %c0_787, %c0_788] : memref<30x8x128xf32, #tpu.memory_space<vmem>>, vector<1x8x128xf32>
    %941 = vector.shape_cast %940 : vector<1x8x128xf32> to vector<8x128xf32>
    %c21_789 = arith.constant 21 : index
    %c0_790 = arith.constant 0 : index
    %c0_791 = arith.constant 0 : index
    %942 = vector.load %arg1[%c21_789, %c0_790, %c0_791] : memref<30x8x128xf32, #tpu.memory_space<vmem>>, vector<1x8x128xf32>
    %943 = vector.shape_cast %942 : vector<1x8x128xf32> to vector<8x128xf32>
    %c22_792 = arith.constant 22 : index
    %c0_793 = arith.constant 0 : index
    %c0_794 = arith.constant 0 : index
    %944 = vector.load %arg1[%c22_792, %c0_793, %c0_794] : memref<30x8x128xf32, #tpu.memory_space<vmem>>, vector<1x8x128xf32>
    %945 = vector.shape_cast %944 : vector<1x8x128xf32> to vector<8x128xf32>
    %c23_795 = arith.constant 23 : index
    %c0_796 = arith.constant 0 : index
    %c0_797 = arith.constant 0 : index
    %946 = vector.load %arg1[%c23_795, %c0_796, %c0_797] : memref<30x8x128xf32, #tpu.memory_space<vmem>>, vector<1x8x128xf32>
    %947 = vector.shape_cast %946 : vector<1x8x128xf32> to vector<8x128xf32>
    %948 = arith.subf %943, %937 : vector<8x128xf32>
    %949 = arith.subf %945, %939 : vector<8x128xf32>
    %950 = arith.subf %947, %941 : vector<8x128xf32>
    %951 = arith.mulf %948, %948 : vector<8x128xf32>
    %952 = arith.mulf %949, %949 : vector<8x128xf32>
    %953 = arith.addf %951, %952 : vector<8x128xf32>
    %954 = arith.mulf %950, %950 : vector<8x128xf32>
    %955 = arith.addf %953, %954 : vector<8x128xf32>
    %956 = math.sqrt %955 : vector<8x128xf32>
    %c39 = arith.constant 39 : index
    %c0_798 = arith.constant 0 : index
    %c0_799 = arith.constant 0 : index
    %957 = vector.load %arg2[%c39, %c0_798, %c0_799] : memref<67x8x128xf32, #tpu.memory_space<vmem>>, vector<1x8x128xf32>
    %958 = vector.shape_cast %957 : vector<1x8x128xf32> to vector<8x128xf32>
    %959 = vector.shape_cast %956 : vector<8x128xf32> to vector<1x8x128xf32>
    tpu.vector_store %arg2[%c39, %c0_798, %c0_799], %959 {strides = array<i32>} : memref<67x8x128xf32, #tpu.memory_space<vmem>>, vector<1x8x128xf32>,
    %c3_800 = arith.constant 3 : index
    %c0_801 = arith.constant 0 : index
    %c0_802 = arith.constant 0 : index
    %960 = vector.load %arg1[%c3_800, %c0_801, %c0_802] : memref<30x8x128xf32, #tpu.memory_space<vmem>>, vector<1x8x128xf32>
    %961 = vector.shape_cast %960 : vector<1x8x128xf32> to vector<8x128xf32>
    %c4_803 = arith.constant 4 : index
    %c0_804 = arith.constant 0 : index
    %c0_805 = arith.constant 0 : index
    %962 = vector.load %arg1[%c4_803, %c0_804, %c0_805] : memref<30x8x128xf32, #tpu.memory_space<vmem>>, vector<1x8x128xf32>
    %963 = vector.shape_cast %962 : vector<1x8x128xf32> to vector<8x128xf32>
    %c5_806 = arith.constant 5 : index
    %c0_807 = arith.constant 0 : index
    %c0_808 = arith.constant 0 : index
    %964 = vector.load %arg1[%c5_806, %c0_807, %c0_808] : memref<30x8x128xf32, #tpu.memory_space<vmem>>, vector<1x8x128xf32>
    %965 = vector.shape_cast %964 : vector<1x8x128xf32> to vector<8x128xf32>
    %c24_809 = arith.constant 24 : index
    %c0_810 = arith.constant 0 : index
    %c0_811 = arith.constant 0 : index
    %966 = vector.load %arg1[%c24_809, %c0_810, %c0_811] : memref<30x8x128xf32, #tpu.memory_space<vmem>>, vector<1x8x128xf32>
    %967 = vector.shape_cast %966 : vector<1x8x128xf32> to vector<8x128xf32>
    %c25_812 = arith.constant 25 : index
    %c0_813 = arith.constant 0 : index
    %c0_814 = arith.constant 0 : index
    %968 = vector.load %arg1[%c25_812, %c0_813, %c0_814] : memref<30x8x128xf32, #tpu.memory_space<vmem>>, vector<1x8x128xf32>
    %969 = vector.shape_cast %968 : vector<1x8x128xf32> to vector<8x128xf32>
    %c26_815 = arith.constant 26 : index
    %c0_816 = arith.constant 0 : index
    %c0_817 = arith.constant 0 : index
    %970 = vector.load %arg1[%c26_815, %c0_816, %c0_817] : memref<30x8x128xf32, #tpu.memory_space<vmem>>, vector<1x8x128xf32>
    %971 = vector.shape_cast %970 : vector<1x8x128xf32> to vector<8x128xf32>
    %972 = arith.subf %967, %961 : vector<8x128xf32>
    %973 = arith.subf %969, %963 : vector<8x128xf32>
    %974 = arith.subf %971, %965 : vector<8x128xf32>
    %975 = arith.mulf %972, %972 : vector<8x128xf32>
    %976 = arith.mulf %973, %973 : vector<8x128xf32>
    %977 = arith.addf %975, %976 : vector<8x128xf32>
    %978 = arith.mulf %974, %974 : vector<8x128xf32>
    %979 = arith.addf %977, %978 : vector<8x128xf32>
    %980 = math.sqrt %979 : vector<8x128xf32>
    %c40 = arith.constant 40 : index
    %c0_818 = arith.constant 0 : index
    %c0_819 = arith.constant 0 : index
    %981 = vector.load %arg2[%c40, %c0_818, %c0_819] : memref<67x8x128xf32, #tpu.memory_space<vmem>>, vector<1x8x128xf32>
    %982 = vector.shape_cast %981 : vector<1x8x128xf32> to vector<8x128xf32>
    %983 = vector.shape_cast %980 : vector<8x128xf32> to vector<1x8x128xf32>
    tpu.vector_store %arg2[%c40, %c0_818, %c0_819], %983 {strides = array<i32>} : memref<67x8x128xf32, #tpu.memory_space<vmem>>, vector<1x8x128xf32>,
    %c6_820 = arith.constant 6 : index
    %c0_821 = arith.constant 0 : index
    %c0_822 = arith.constant 0 : index
    %984 = vector.load %arg1[%c6_820, %c0_821, %c0_822] : memref<30x8x128xf32, #tpu.memory_space<vmem>>, vector<1x8x128xf32>
    %985 = vector.shape_cast %984 : vector<1x8x128xf32> to vector<8x128xf32>
    %c7_823 = arith.constant 7 : index
    %c0_824 = arith.constant 0 : index
    %c0_825 = arith.constant 0 : index
    %986 = vector.load %arg1[%c7_823, %c0_824, %c0_825] : memref<30x8x128xf32, #tpu.memory_space<vmem>>, vector<1x8x128xf32>
    %987 = vector.shape_cast %986 : vector<1x8x128xf32> to vector<8x128xf32>
    %c8_826 = arith.constant 8 : index
    %c0_827 = arith.constant 0 : index
    %c0_828 = arith.constant 0 : index
    %988 = vector.load %arg1[%c8_826, %c0_827, %c0_828] : memref<30x8x128xf32, #tpu.memory_space<vmem>>, vector<1x8x128xf32>
    %989 = vector.shape_cast %988 : vector<1x8x128xf32> to vector<8x128xf32>
    %c27_829 = arith.constant 27 : index
    %c0_830 = arith.constant 0 : index
    %c0_831 = arith.constant 0 : index
    %990 = vector.load %arg1[%c27_829, %c0_830, %c0_831] : memref<30x8x128xf32, #tpu.memory_space<vmem>>, vector<1x8x128xf32>
    %991 = vector.shape_cast %990 : vector<1x8x128xf32> to vector<8x128xf32>
    %c28_832 = arith.constant 28 : index
    %c0_833 = arith.constant 0 : index
    %c0_834 = arith.constant 0 : index
    %992 = vector.load %arg1[%c28_832, %c0_833, %c0_834] : memref<30x8x128xf32, #tpu.memory_space<vmem>>, vector<1x8x128xf32>
    %993 = vector.shape_cast %992 : vector<1x8x128xf32> to vector<8x128xf32>
    %c29_835 = arith.constant 29 : index
    %c0_836 = arith.constant 0 : index
    %c0_837 = arith.constant 0 : index
    %994 = vector.load %arg1[%c29_835, %c0_836, %c0_837] : memref<30x8x128xf32, #tpu.memory_space<vmem>>, vector<1x8x128xf32>
    %995 = vector.shape_cast %994 : vector<1x8x128xf32> to vector<8x128xf32>
    %996 = arith.subf %991, %985 : vector<8x128xf32>
    %997 = arith.subf %993, %987 : vector<8x128xf32>
    %998 = arith.subf %995, %989 : vector<8x128xf32>
    %999 = arith.mulf %996, %996 : vector<8x128xf32>
    %1000 = arith.mulf %997, %997 : vector<8x128xf32>
    %1001 = arith.addf %999, %1000 : vector<8x128xf32>
    %1002 = arith.mulf %998, %998 : vector<8x128xf32>
    %1003 = arith.addf %1001, %1002 : vector<8x128xf32>
    %1004 = math.sqrt %1003 : vector<8x128xf32>
    %c41 = arith.constant 41 : index
    %c0_838 = arith.constant 0 : index
    %c0_839 = arith.constant 0 : index
    %1005 = vector.load %arg2[%c41, %c0_838, %c0_839] : memref<67x8x128xf32, #tpu.memory_space<vmem>>, vector<1x8x128xf32>
    %1006 = vector.shape_cast %1005 : vector<1x8x128xf32> to vector<8x128xf32>
    %1007 = vector.shape_cast %1004 : vector<8x128xf32> to vector<1x8x128xf32>
    tpu.vector_store %arg2[%c41, %c0_838, %c0_839], %1007 {strides = array<i32>} : memref<67x8x128xf32, #tpu.memory_space<vmem>>, vector<1x8x128xf32>,
    %c0_840 = arith.constant 0 : index
    %c0_841 = arith.constant 0 : index
    %c0_842 = arith.constant 0 : index
    %1008 = vector.load %arg1[%c0_840, %c0_841, %c0_842] : memref<30x8x128xf32, #tpu.memory_space<vmem>>, vector<1x8x128xf32>
    %1009 = vector.shape_cast %1008 : vector<1x8x128xf32> to vector<8x128xf32>
    %c1_843 = arith.constant 1 : index
    %c0_844 = arith.constant 0 : index
    %c0_845 = arith.constant 0 : index
    %1010 = vector.load %arg1[%c1_843, %c0_844, %c0_845] : memref<30x8x128xf32, #tpu.memory_space<vmem>>, vector<1x8x128xf32>
    %1011 = vector.shape_cast %1010 : vector<1x8x128xf32> to vector<8x128xf32>
    %c2_846 = arith.constant 2 : index
    %c0_847 = arith.constant 0 : index
    %c0_848 = arith.constant 0 : index
    %1012 = vector.load %arg1[%c2_846, %c0_847, %c0_848] : memref<30x8x128xf32, #tpu.memory_space<vmem>>, vector<1x8x128xf32>
    %1013 = vector.shape_cast %1012 : vector<1x8x128xf32> to vector<8x128xf32>
    %c24_849 = arith.constant 24 : index
    %c0_850 = arith.constant 0 : index
    %c0_851 = arith.constant 0 : index
    %1014 = vector.load %arg1[%c24_849, %c0_850, %c0_851] : memref<30x8x128xf32, #tpu.memory_space<vmem>>, vector<1x8x128xf32>
    %1015 = vector.shape_cast %1014 : vector<1x8x128xf32> to vector<8x128xf32>
    %c25_852 = arith.constant 25 : index
    %c0_853 = arith.constant 0 : index
    %c0_854 = arith.constant 0 : index
    %1016 = vector.load %arg1[%c25_852, %c0_853, %c0_854] : memref<30x8x128xf32, #tpu.memory_space<vmem>>, vector<1x8x128xf32>
    %1017 = vector.shape_cast %1016 : vector<1x8x128xf32> to vector<8x128xf32>
    %c26_855 = arith.constant 26 : index
    %c0_856 = arith.constant 0 : index
    %c0_857 = arith.constant 0 : index
    %1018 = vector.load %arg1[%c26_855, %c0_856, %c0_857] : memref<30x8x128xf32, #tpu.memory_space<vmem>>, vector<1x8x128xf32>
    %1019 = vector.shape_cast %1018 : vector<1x8x128xf32> to vector<8x128xf32>
    %1020 = arith.subf %1015, %1009 : vector<8x128xf32>
    %1021 = arith.subf %1017, %1011 : vector<8x128xf32>
    %1022 = arith.subf %1019, %1013 : vector<8x128xf32>
    %1023 = arith.mulf %1020, %1020 : vector<8x128xf32>
    %1024 = arith.mulf %1021, %1021 : vector<8x128xf32>
    %1025 = arith.addf %1023, %1024 : vector<8x128xf32>
    %1026 = arith.mulf %1022, %1022 : vector<8x128xf32>
    %1027 = arith.addf %1025, %1026 : vector<8x128xf32>
    %1028 = math.sqrt %1027 : vector<8x128xf32>
    %c42 = arith.constant 42 : index
    %c0_858 = arith.constant 0 : index
    %c0_859 = arith.constant 0 : index
    %1029 = vector.load %arg2[%c42, %c0_858, %c0_859] : memref<67x8x128xf32, #tpu.memory_space<vmem>>, vector<1x8x128xf32>
    %1030 = vector.shape_cast %1029 : vector<1x8x128xf32> to vector<8x128xf32>
    %1031 = vector.shape_cast %1028 : vector<8x128xf32> to vector<1x8x128xf32>
    tpu.vector_store %arg2[%c42, %c0_858, %c0_859], %1031 {strides = array<i32>} : memref<67x8x128xf32, #tpu.memory_space<vmem>>, vector<1x8x128xf32>,
    %c3_860 = arith.constant 3 : index
    %c0_861 = arith.constant 0 : index
    %c0_862 = arith.constant 0 : index
    %1032 = vector.load %arg1[%c3_860, %c0_861, %c0_862] : memref<30x8x128xf32, #tpu.memory_space<vmem>>, vector<1x8x128xf32>
    %1033 = vector.shape_cast %1032 : vector<1x8x128xf32> to vector<8x128xf32>
    %c4_863 = arith.constant 4 : index
    %c0_864 = arith.constant 0 : index
    %c0_865 = arith.constant 0 : index
    %1034 = vector.load %arg1[%c4_863, %c0_864, %c0_865] : memref<30x8x128xf32, #tpu.memory_space<vmem>>, vector<1x8x128xf32>
    %1035 = vector.shape_cast %1034 : vector<1x8x128xf32> to vector<8x128xf32>
    %c5_866 = arith.constant 5 : index
    %c0_867 = arith.constant 0 : index
    %c0_868 = arith.constant 0 : index
    %1036 = vector.load %arg1[%c5_866, %c0_867, %c0_868] : memref<30x8x128xf32, #tpu.memory_space<vmem>>, vector<1x8x128xf32>
    %1037 = vector.shape_cast %1036 : vector<1x8x128xf32> to vector<8x128xf32>
    %c27_869 = arith.constant 27 : index
    %c0_870 = arith.constant 0 : index
    %c0_871 = arith.constant 0 : index
    %1038 = vector.load %arg1[%c27_869, %c0_870, %c0_871] : memref<30x8x128xf32, #tpu.memory_space<vmem>>, vector<1x8x128xf32>
    %1039 = vector.shape_cast %1038 : vector<1x8x128xf32> to vector<8x128xf32>
    %c28_872 = arith.constant 28 : index
    %c0_873 = arith.constant 0 : index
    %c0_874 = arith.constant 0 : index
    %1040 = vector.load %arg1[%c28_872, %c0_873, %c0_874] : memref<30x8x128xf32, #tpu.memory_space<vmem>>, vector<1x8x128xf32>
    %1041 = vector.shape_cast %1040 : vector<1x8x128xf32> to vector<8x128xf32>
    %c29_875 = arith.constant 29 : index
    %c0_876 = arith.constant 0 : index
    %c0_877 = arith.constant 0 : index
    %1042 = vector.load %arg1[%c29_875, %c0_876, %c0_877] : memref<30x8x128xf32, #tpu.memory_space<vmem>>, vector<1x8x128xf32>
    %1043 = vector.shape_cast %1042 : vector<1x8x128xf32> to vector<8x128xf32>
    %1044 = arith.subf %1039, %1033 : vector<8x128xf32>
    %1045 = arith.subf %1041, %1035 : vector<8x128xf32>
    %1046 = arith.subf %1043, %1037 : vector<8x128xf32>
    %1047 = arith.mulf %1044, %1044 : vector<8x128xf32>
    %1048 = arith.mulf %1045, %1045 : vector<8x128xf32>
    %1049 = arith.addf %1047, %1048 : vector<8x128xf32>
    %1050 = arith.mulf %1046, %1046 : vector<8x128xf32>
    %1051 = arith.addf %1049, %1050 : vector<8x128xf32>
    %1052 = math.sqrt %1051 : vector<8x128xf32>
    %c43 = arith.constant 43 : index
    %c0_878 = arith.constant 0 : index
    %c0_879 = arith.constant 0 : index
    %1053 = vector.load %arg2[%c43, %c0_878, %c0_879] : memref<67x8x128xf32, #tpu.memory_space<vmem>>, vector<1x8x128xf32>
    %1054 = vector.shape_cast %1053 : vector<1x8x128xf32> to vector<8x128xf32>
    %1055 = vector.shape_cast %1052 : vector<8x128xf32> to vector<1x8x128xf32>
    tpu.vector_store %arg2[%c43, %c0_878, %c0_879], %1055 {strides = array<i32>} : memref<67x8x128xf32, #tpu.memory_space<vmem>>, vector<1x8x128xf32>,
    %c0_880 = arith.constant 0 : index
    %c0_881 = arith.constant 0 : index
    %c0_882 = arith.constant 0 : index
    %1056 = vector.load %arg1[%c0_880, %c0_881, %c0_882] : memref<30x8x128xf32, #tpu.memory_space<vmem>>, vector<1x8x128xf32>
    %1057 = vector.shape_cast %1056 : vector<1x8x128xf32> to vector<8x128xf32>
    %c1_883 = arith.constant 1 : index
    %c0_884 = arith.constant 0 : index
    %c0_885 = arith.constant 0 : index
    %1058 = vector.load %arg1[%c1_883, %c0_884, %c0_885] : memref<30x8x128xf32, #tpu.memory_space<vmem>>, vector<1x8x128xf32>
    %1059 = vector.shape_cast %1058 : vector<1x8x128xf32> to vector<8x128xf32>
    %c2_886 = arith.constant 2 : index
    %c0_887 = arith.constant 0 : index
    %c0_888 = arith.constant 0 : index
    %1060 = vector.load %arg1[%c2_886, %c0_887, %c0_888] : memref<30x8x128xf32, #tpu.memory_space<vmem>>, vector<1x8x128xf32>
    %1061 = vector.shape_cast %1060 : vector<1x8x128xf32> to vector<8x128xf32>
    %c27_889 = arith.constant 27 : index
    %c0_890 = arith.constant 0 : index
    %c0_891 = arith.constant 0 : index
    %1062 = vector.load %arg1[%c27_889, %c0_890, %c0_891] : memref<30x8x128xf32, #tpu.memory_space<vmem>>, vector<1x8x128xf32>
    %1063 = vector.shape_cast %1062 : vector<1x8x128xf32> to vector<8x128xf32>
    %c28_892 = arith.constant 28 : index
    %c0_893 = arith.constant 0 : index
    %c0_894 = arith.constant 0 : index
    %1064 = vector.load %arg1[%c28_892, %c0_893, %c0_894] : memref<30x8x128xf32, #tpu.memory_space<vmem>>, vector<1x8x128xf32>
    %1065 = vector.shape_cast %1064 : vector<1x8x128xf32> to vector<8x128xf32>
    %c29_895 = arith.constant 29 : index
    %c0_896 = arith.constant 0 : index
    %c0_897 = arith.constant 0 : index
    %1066 = vector.load %arg1[%c29_895, %c0_896, %c0_897] : memref<30x8x128xf32, #tpu.memory_space<vmem>>, vector<1x8x128xf32>
    %1067 = vector.shape_cast %1066 : vector<1x8x128xf32> to vector<8x128xf32>
    %1068 = arith.subf %1063, %1057 : vector<8x128xf32>
    %1069 = arith.subf %1065, %1059 : vector<8x128xf32>
    %1070 = arith.subf %1067, %1061 : vector<8x128xf32>
    %1071 = arith.mulf %1068, %1068 : vector<8x128xf32>
    %1072 = arith.mulf %1069, %1069 : vector<8x128xf32>
    %1073 = arith.addf %1071, %1072 : vector<8x128xf32>
    %1074 = arith.mulf %1070, %1070 : vector<8x128xf32>
    %1075 = arith.addf %1073, %1074 : vector<8x128xf32>
    %1076 = math.sqrt %1075 : vector<8x128xf32>
    %c44 = arith.constant 44 : index
    %c0_898 = arith.constant 0 : index
    %c0_899 = arith.constant 0 : index
    %1077 = vector.load %arg2[%c44, %c0_898, %c0_899] : memref<67x8x128xf32, #tpu.memory_space<vmem>>, vector<1x8x128xf32>
    %1078 = vector.shape_cast %1077 : vector<1x8x128xf32> to vector<8x128xf32>
    %1079 = vector.shape_cast %1076 : vector<8x128xf32> to vector<1x8x128xf32>
    tpu.vector_store %arg2[%c44, %c0_898, %c0_899], %1079 {strides = array<i32>} : memref<67x8x128xf32, #tpu.memory_space<vmem>>, vector<1x8x128xf32>,
    %c0_900 = arith.constant 0 : index
    %c0_901 = arith.constant 0 : index
    %c0_902 = arith.constant 0 : index
    %1080 = vector.load %arg1[%c0_900, %c0_901, %c0_902] : memref<30x8x128xf32, #tpu.memory_space<vmem>>, vector<1x8x128xf32>
    %1081 = vector.shape_cast %1080 : vector<1x8x128xf32> to vector<8x128xf32>
    %c1_903 = arith.constant 1 : index
    %c0_904 = arith.constant 0 : index
    %c0_905 = arith.constant 0 : index
    %1082 = vector.load %arg1[%c1_903, %c0_904, %c0_905] : memref<30x8x128xf32, #tpu.memory_space<vmem>>, vector<1x8x128xf32>
    %1083 = vector.shape_cast %1082 : vector<1x8x128xf32> to vector<8x128xf32>
    %c2_906 = arith.constant 2 : index
    %c0_907 = arith.constant 0 : index
    %c0_908 = arith.constant 0 : index
    %1084 = vector.load %arg1[%c2_906, %c0_907, %c0_908] : memref<30x8x128xf32, #tpu.memory_space<vmem>>, vector<1x8x128xf32>
    %1085 = vector.shape_cast %1084 : vector<1x8x128xf32> to vector<8x128xf32>
    %c3_909 = arith.constant 3 : index
    %c0_910 = arith.constant 0 : index
    %c0_911 = arith.constant 0 : index
    %1086 = vector.load %arg1[%c3_909, %c0_910, %c0_911] : memref<30x8x128xf32, #tpu.memory_space<vmem>>, vector<1x8x128xf32>
    %1087 = vector.shape_cast %1086 : vector<1x8x128xf32> to vector<8x128xf32>
    %c4_912 = arith.constant 4 : index
    %c0_913 = arith.constant 0 : index
    %c0_914 = arith.constant 0 : index
    %1088 = vector.load %arg1[%c4_912, %c0_913, %c0_914] : memref<30x8x128xf32, #tpu.memory_space<vmem>>, vector<1x8x128xf32>
    %1089 = vector.shape_cast %1088 : vector<1x8x128xf32> to vector<8x128xf32>
    %c5_915 = arith.constant 5 : index
    %c0_916 = arith.constant 0 : index
    %c0_917 = arith.constant 0 : index
    %1090 = vector.load %arg1[%c5_915, %c0_916, %c0_917] : memref<30x8x128xf32, #tpu.memory_space<vmem>>, vector<1x8x128xf32>
    %1091 = vector.shape_cast %1090 : vector<1x8x128xf32> to vector<8x128xf32>
    %1092 = arith.subf %1087, %1081 : vector<8x128xf32>
    %1093 = arith.subf %1089, %1083 : vector<8x128xf32>
    %1094 = arith.subf %1091, %1085 : vector<8x128xf32>
    %1095 = arith.mulf %1092, %1092 : vector<8x128xf32>
    %1096 = arith.mulf %1093, %1093 : vector<8x128xf32>
    %1097 = arith.addf %1095, %1096 : vector<8x128xf32>
    %1098 = arith.mulf %1094, %1094 : vector<8x128xf32>
    %1099 = arith.addf %1097, %1098 : vector<8x128xf32>
    %1100 = math.rsqrt %1099 : vector<8x128xf32>
    %c3_918 = arith.constant 3 : index
    %c0_919 = arith.constant 0 : index
    %c0_920 = arith.constant 0 : index
    %1101 = vector.load %arg1[%c3_918, %c0_919, %c0_920] : memref<30x8x128xf32, #tpu.memory_space<vmem>>, vector<1x8x128xf32>
    %1102 = vector.shape_cast %1101 : vector<1x8x128xf32> to vector<8x128xf32>
    %c4_921 = arith.constant 4 : index
    %c0_922 = arith.constant 0 : index
    %c0_923 = arith.constant 0 : index
    %1103 = vector.load %arg1[%c4_921, %c0_922, %c0_923] : memref<30x8x128xf32, #tpu.memory_space<vmem>>, vector<1x8x128xf32>
    %1104 = vector.shape_cast %1103 : vector<1x8x128xf32> to vector<8x128xf32>
    %c5_924 = arith.constant 5 : index
    %c0_925 = arith.constant 0 : index
    %c0_926 = arith.constant 0 : index
    %1105 = vector.load %arg1[%c5_924, %c0_925, %c0_926] : memref<30x8x128xf32, #tpu.memory_space<vmem>>, vector<1x8x128xf32>
    %1106 = vector.shape_cast %1105 : vector<1x8x128xf32> to vector<8x128xf32>
    %c6_927 = arith.constant 6 : index
    %c0_928 = arith.constant 0 : index
    %c0_929 = arith.constant 0 : index
    %1107 = vector.load %arg1[%c6_927, %c0_928, %c0_929] : memref<30x8x128xf32, #tpu.memory_space<vmem>>, vector<1x8x128xf32>
    %1108 = vector.shape_cast %1107 : vector<1x8x128xf32> to vector<8x128xf32>
    %c7_930 = arith.constant 7 : index
    %c0_931 = arith.constant 0 : index
    %c0_932 = arith.constant 0 : index
    %1109 = vector.load %arg1[%c7_930, %c0_931, %c0_932] : memref<30x8x128xf32, #tpu.memory_space<vmem>>, vector<1x8x128xf32>
    %1110 = vector.shape_cast %1109 : vector<1x8x128xf32> to vector<8x128xf32>
    %c8_933 = arith.constant 8 : index
    %c0_934 = arith.constant 0 : index
    %c0_935 = arith.constant 0 : index
    %1111 = vector.load %arg1[%c8_933, %c0_934, %c0_935] : memref<30x8x128xf32, #tpu.memory_space<vmem>>, vector<1x8x128xf32>
    %1112 = vector.shape_cast %1111 : vector<1x8x128xf32> to vector<8x128xf32>
    %1113 = arith.subf %1108, %1102 : vector<8x128xf32>
    %1114 = arith.subf %1110, %1104 : vector<8x128xf32>
    %1115 = arith.subf %1112, %1106 : vector<8x128xf32>
    %1116 = arith.mulf %1113, %1113 : vector<8x128xf32>
    %1117 = arith.mulf %1114, %1114 : vector<8x128xf32>
    %1118 = arith.addf %1116, %1117 : vector<8x128xf32>
    %1119 = arith.mulf %1115, %1115 : vector<8x128xf32>
    %1120 = arith.addf %1118, %1119 : vector<8x128xf32>
    %1121 = math.rsqrt %1120 : vector<8x128xf32>
    %1122 = arith.mulf %1092, %1113 : vector<8x128xf32>
    %1123 = arith.mulf %1093, %1114 : vector<8x128xf32>
    %1124 = arith.addf %1122, %1123 : vector<8x128xf32>
    %1125 = arith.mulf %1094, %1115 : vector<8x128xf32>
    %1126 = arith.addf %1124, %1125 : vector<8x128xf32>
    %1127 = arith.mulf %1126, %1100 : vector<8x128xf32>
    %1128 = arith.mulf %1127, %1121 : vector<8x128xf32>
    %1129 = math.absf %1128 : vector<8x128xf32>
    %cst = arith.constant -1.872930e-02 : f32
    %1130 = vector.broadcast %cst : f32 to vector<8x128xf32>
    %1131 = arith.mulf %1130, %1129 : vector<8x128xf32>
    %cst_936 = arith.constant 7.426100e-02 : f32
    %1132 = vector.broadcast %cst_936 : f32 to vector<8x128xf32>
    %1133 = arith.addf %1131, %1132 : vector<8x128xf32>
    %1134 = arith.mulf %1133, %1129 : vector<8x128xf32>
    %cst_937 = arith.constant -0.212114394 : f32
    %1135 = vector.broadcast %cst_937 : f32 to vector<8x128xf32>
    %1136 = arith.addf %1134, %1135 : vector<8x128xf32>
    %1137 = arith.mulf %1136, %1129 : vector<8x128xf32>
    %cst_938 = arith.constant 1.57072878 : f32
    %1138 = vector.broadcast %cst_938 : f32 to vector<8x128xf32>
    %1139 = arith.addf %1137, %1138 : vector<8x128xf32>
    %cst_939 = arith.constant 1.000000e+00 : f32
    %1140 = vector.broadcast %cst_939 : f32 to vector<8x128xf32>
    %1141 = arith.subf %1140, %1129 : vector<8x128xf32>
    %cst_940 = arith.constant 0.000000e+00 : f32
    %1142 = vector.broadcast %cst_940 : f32 to vector<8x128xf32>
    %1143 = arith.maximumf %1141, %1142 : vector<8x128xf32>
    %1144 = math.sqrt %1143 : vector<8x128xf32>
    %1145 = arith.mulf %1144, %1139 : vector<8x128xf32>
    %cst_941 = arith.constant 0.000000e+00 : f32
    %1146 = vector.broadcast %cst_941 : f32 to vector<8x128xf32>
    %1147 = arith.cmpf olt, %1128, %1146 : vector<8x128xf32>
    %cst_942 = arith.constant 3.14159274 : f32
    %1148 = vector.broadcast %cst_942 : f32 to vector<8x128xf32>
    %1149 = arith.subf %1148, %1145 : vector<8x128xf32>
    %1150 = arith.select %1147, %1149, %1145 : vector<8x128xi1>, vector<8x128xf32>
    %c45 = arith.constant 45 : index
    %c0_943 = arith.constant 0 : index
    %c0_944 = arith.constant 0 : index
    %1151 = vector.load %arg2[%c45, %c0_943, %c0_944] : memref<67x8x128xf32, #tpu.memory_space<vmem>>, vector<1x8x128xf32>
    %1152 = vector.shape_cast %1151 : vector<1x8x128xf32> to vector<8x128xf32>
    %1153 = vector.shape_cast %1150 : vector<8x128xf32> to vector<1x8x128xf32>
    tpu.vector_store %arg2[%c45, %c0_943, %c0_944], %1153 {strides = array<i32>} : memref<67x8x128xf32, #tpu.memory_space<vmem>>, vector<1x8x128xf32>,
    %1154 = arith.mulf %1093, %1115 : vector<8x128xf32>
    %1155 = arith.mulf %1094, %1114 : vector<8x128xf32>
    %1156 = arith.subf %1154, %1155 : vector<8x128xf32>
    %1157 = arith.mulf %1094, %1113 : vector<8x128xf32>
    %1158 = arith.mulf %1092, %1115 : vector<8x128xf32>
    %1159 = arith.subf %1157, %1158 : vector<8x128xf32>
    %1160 = arith.mulf %1092, %1114 : vector<8x128xf32>
    %1161 = arith.mulf %1093, %1113 : vector<8x128xf32>
    %1162 = arith.subf %1160, %1161 : vector<8x128xf32>
    %1163 = arith.mulf %1156, %1156 : vector<8x128xf32>
    %1164 = arith.mulf %1159, %1159 : vector<8x128xf32>
    %1165 = arith.addf %1163, %1164 : vector<8x128xf32>
    %1166 = arith.mulf %1162, %1162 : vector<8x128xf32>
    %1167 = arith.addf %1165, %1166 : vector<8x128xf32>
    %1168 = math.rsqrt %1167 : vector<8x128xf32>
    %c6_945 = arith.constant 6 : index
    %c0_946 = arith.constant 0 : index
    %c0_947 = arith.constant 0 : index
    %1169 = vector.load %arg1[%c6_945, %c0_946, %c0_947] : memref<30x8x128xf32, #tpu.memory_space<vmem>>, vector<1x8x128xf32>
    %1170 = vector.shape_cast %1169 : vector<1x8x128xf32> to vector<8x128xf32>
    %c7_948 = arith.constant 7 : index
    %c0_949 = arith.constant 0 : index
    %c0_950 = arith.constant 0 : index
    %1171 = vector.load %arg1[%c7_948, %c0_949, %c0_950] : memref<30x8x128xf32, #tpu.memory_space<vmem>>, vector<1x8x128xf32>
    %1172 = vector.shape_cast %1171 : vector<1x8x128xf32> to vector<8x128xf32>
    %c8_951 = arith.constant 8 : index
    %c0_952 = arith.constant 0 : index
    %c0_953 = arith.constant 0 : index
    %1173 = vector.load %arg1[%c8_951, %c0_952, %c0_953] : memref<30x8x128xf32, #tpu.memory_space<vmem>>, vector<1x8x128xf32>
    %1174 = vector.shape_cast %1173 : vector<1x8x128xf32> to vector<8x128xf32>
    %c9_954 = arith.constant 9 : index
    %c0_955 = arith.constant 0 : index
    %c0_956 = arith.constant 0 : index
    %1175 = vector.load %arg1[%c9_954, %c0_955, %c0_956] : memref<30x8x128xf32, #tpu.memory_space<vmem>>, vector<1x8x128xf32>
    %1176 = vector.shape_cast %1175 : vector<1x8x128xf32> to vector<8x128xf32>
    %c10_957 = arith.constant 10 : index
    %c0_958 = arith.constant 0 : index
    %c0_959 = arith.constant 0 : index
    %1177 = vector.load %arg1[%c10_957, %c0_958, %c0_959] : memref<30x8x128xf32, #tpu.memory_space<vmem>>, vector<1x8x128xf32>
    %1178 = vector.shape_cast %1177 : vector<1x8x128xf32> to vector<8x128xf32>
    %c11_960 = arith.constant 11 : index
    %c0_961 = arith.constant 0 : index
    %c0_962 = arith.constant 0 : index
    %1179 = vector.load %arg1[%c11_960, %c0_961, %c0_962] : memref<30x8x128xf32, #tpu.memory_space<vmem>>, vector<1x8x128xf32>
    %1180 = vector.shape_cast %1179 : vector<1x8x128xf32> to vector<8x128xf32>
    %1181 = arith.subf %1176, %1170 : vector<8x128xf32>
    %1182 = arith.subf %1178, %1172 : vector<8x128xf32>
    %1183 = arith.subf %1180, %1174 : vector<8x128xf32>
    %1184 = arith.mulf %1181, %1181 : vector<8x128xf32>
    %1185 = arith.mulf %1182, %1182 : vector<8x128xf32>
    %1186 = arith.addf %1184, %1185 : vector<8x128xf32>
    %1187 = arith.mulf %1183, %1183 : vector<8x128xf32>
    %1188 = arith.addf %1186, %1187 : vector<8x128xf32>
    %1189 = math.rsqrt %1188 : vector<8x128xf32>
    %1190 = arith.mulf %1113, %1181 : vector<8x128xf32>
    %1191 = arith.mulf %1114, %1182 : vector<8x128xf32>
    %1192 = arith.addf %1190, %1191 : vector<8x128xf32>
    %1193 = arith.mulf %1115, %1183 : vector<8x128xf32>
    %1194 = arith.addf %1192, %1193 : vector<8x128xf32>
    %1195 = arith.mulf %1194, %1121 : vector<8x128xf32>
    %1196 = arith.mulf %1195, %1189 : vector<8x128xf32>
    %1197 = math.absf %1196 : vector<8x128xf32>
    %cst_963 = arith.constant -1.872930e-02 : f32
    %1198 = vector.broadcast %cst_963 : f32 to vector<8x128xf32>
    %1199 = arith.mulf %1198, %1197 : vector<8x128xf32>
    %cst_964 = arith.constant 7.426100e-02 : f32
    %1200 = vector.broadcast %cst_964 : f32 to vector<8x128xf32>
    %1201 = arith.addf %1199, %1200 : vector<8x128xf32>
    %1202 = arith.mulf %1201, %1197 : vector<8x128xf32>
    %cst_965 = arith.constant -0.212114394 : f32
    %1203 = vector.broadcast %cst_965 : f32 to vector<8x128xf32>
    %1204 = arith.addf %1202, %1203 : vector<8x128xf32>
    %1205 = arith.mulf %1204, %1197 : vector<8x128xf32>
    %cst_966 = arith.constant 1.57072878 : f32
    %1206 = vector.broadcast %cst_966 : f32 to vector<8x128xf32>
    %1207 = arith.addf %1205, %1206 : vector<8x128xf32>
    %cst_967 = arith.constant 1.000000e+00 : f32
    %1208 = vector.broadcast %cst_967 : f32 to vector<8x128xf32>
    %1209 = arith.subf %1208, %1197 : vector<8x128xf32>
    %cst_968 = arith.constant 0.000000e+00 : f32
    %1210 = vector.broadcast %cst_968 : f32 to vector<8x128xf32>
    %1211 = arith.maximumf %1209, %1210 : vector<8x128xf32>
    %1212 = math.sqrt %1211 : vector<8x128xf32>
    %1213 = arith.mulf %1212, %1207 : vector<8x128xf32>
    %cst_969 = arith.constant 0.000000e+00 : f32
    %1214 = vector.broadcast %cst_969 : f32 to vector<8x128xf32>
    %1215 = arith.cmpf olt, %1196, %1214 : vector<8x128xf32>
    %cst_970 = arith.constant 3.14159274 : f32
    %1216 = vector.broadcast %cst_970 : f32 to vector<8x128xf32>
    %1217 = arith.subf %1216, %1213 : vector<8x128xf32>
    %1218 = arith.select %1215, %1217, %1213 : vector<8x128xi1>, vector<8x128xf32>
    %c46 = arith.constant 46 : index
    %c0_971 = arith.constant 0 : index
    %c0_972 = arith.constant 0 : index
    %1219 = vector.load %arg2[%c46, %c0_971, %c0_972] : memref<67x8x128xf32, #tpu.memory_space<vmem>>, vector<1x8x128xf32>
    %1220 = vector.shape_cast %1219 : vector<1x8x128xf32> to vector<8x128xf32>
    %1221 = vector.shape_cast %1218 : vector<8x128xf32> to vector<1x8x128xf32>
    tpu.vector_store %arg2[%c46, %c0_971, %c0_972], %1221 {strides = array<i32>} : memref<67x8x128xf32, #tpu.memory_space<vmem>>, vector<1x8x128xf32>,
    %1222 = arith.mulf %1114, %1183 : vector<8x128xf32>
    %1223 = arith.mulf %1115, %1182 : vector<8x128xf32>
    %1224 = arith.subf %1222, %1223 : vector<8x128xf32>
    %1225 = arith.mulf %1115, %1181 : vector<8x128xf32>
    %1226 = arith.mulf %1113, %1183 : vector<8x128xf32>
    %1227 = arith.subf %1225, %1226 : vector<8x128xf32>
    %1228 = arith.mulf %1113, %1182 : vector<8x128xf32>
    %1229 = arith.mulf %1114, %1181 : vector<8x128xf32>
    %1230 = arith.subf %1228, %1229 : vector<8x128xf32>
    %1231 = arith.mulf %1224, %1224 : vector<8x128xf32>
    %1232 = arith.mulf %1227, %1227 : vector<8x128xf32>
    %1233 = arith.addf %1231, %1232 : vector<8x128xf32>
    %1234 = arith.mulf %1230, %1230 : vector<8x128xf32>
    %1235 = arith.addf %1233, %1234 : vector<8x128xf32>
    %1236 = math.rsqrt %1235 : vector<8x128xf32>
    %1237 = arith.mulf %1156, %1224 : vector<8x128xf32>
    %1238 = arith.mulf %1159, %1227 : vector<8x128xf32>
    %1239 = arith.addf %1237, %1238 : vector<8x128xf32>
    %1240 = arith.mulf %1162, %1230 : vector<8x128xf32>
    %1241 = arith.addf %1239, %1240 : vector<8x128xf32>
    %1242 = arith.mulf %1241, %1168 : vector<8x128xf32>
    %1243 = arith.mulf %1242, %1236 : vector<8x128xf32>
    %c53 = arith.constant 53 : index
    %c0_973 = arith.constant 0 : index
    %c0_974 = arith.constant 0 : index
    %1244 = vector.load %arg2[%c53, %c0_973, %c0_974] : memref<67x8x128xf32, #tpu.memory_space<vmem>>, vector<1x8x128xf32>
    %1245 = vector.shape_cast %1244 : vector<1x8x128xf32> to vector<8x128xf32>
    %1246 = vector.shape_cast %1243 : vector<8x128xf32> to vector<1x8x128xf32>
    tpu.vector_store %arg2[%c53, %c0_973, %c0_974], %1246 {strides = array<i32>} : memref<67x8x128xf32, #tpu.memory_space<vmem>>, vector<1x8x128xf32>,
    %1247 = arith.mulf %1227, %1115 : vector<8x128xf32>
    %1248 = arith.mulf %1230, %1114 : vector<8x128xf32>
    %1249 = arith.subf %1247, %1248 : vector<8x128xf32>
    %1250 = arith.mulf %1230, %1113 : vector<8x128xf32>
    %1251 = arith.mulf %1224, %1115 : vector<8x128xf32>
    %1252 = arith.subf %1250, %1251 : vector<8x128xf32>
    %1253 = arith.mulf %1224, %1114 : vector<8x128xf32>
    %1254 = arith.mulf %1227, %1113 : vector<8x128xf32>
    %1255 = arith.subf %1253, %1254 : vector<8x128xf32>
    %1256 = arith.mulf %1249, %1249 : vector<8x128xf32>
    %1257 = arith.mulf %1252, %1252 : vector<8x128xf32>
    %1258 = arith.addf %1256, %1257 : vector<8x128xf32>
    %1259 = arith.mulf %1255, %1255 : vector<8x128xf32>
    %1260 = arith.addf %1258, %1259 : vector<8x128xf32>
    %1261 = math.rsqrt %1260 : vector<8x128xf32>
    %1262 = arith.mulf %1156, %1249 : vector<8x128xf32>
    %1263 = arith.mulf %1159, %1252 : vector<8x128xf32>
    %1264 = arith.addf %1262, %1263 : vector<8x128xf32>
    %1265 = arith.mulf %1162, %1255 : vector<8x128xf32>
    %1266 = arith.addf %1264, %1265 : vector<8x128xf32>
    %1267 = arith.mulf %1266, %1168 : vector<8x128xf32>
    %1268 = arith.mulf %1267, %1261 : vector<8x128xf32>
    %c60 = arith.constant 60 : index
    %c0_975 = arith.constant 0 : index
    %c0_976 = arith.constant 0 : index
    %1269 = vector.load %arg2[%c60, %c0_975, %c0_976] : memref<67x8x128xf32, #tpu.memory_space<vmem>>, vector<1x8x128xf32>
    %1270 = vector.shape_cast %1269 : vector<1x8x128xf32> to vector<8x128xf32>
    %1271 = vector.shape_cast %1268 : vector<8x128xf32> to vector<1x8x128xf32>
    tpu.vector_store %arg2[%c60, %c0_975, %c0_976], %1271 {strides = array<i32>} : memref<67x8x128xf32, #tpu.memory_space<vmem>>, vector<1x8x128xf32>,
    %c9_977 = arith.constant 9 : index
    %c0_978 = arith.constant 0 : index
    %c0_979 = arith.constant 0 : index
    %1272 = vector.load %arg1[%c9_977, %c0_978, %c0_979] : memref<30x8x128xf32, #tpu.memory_space<vmem>>, vector<1x8x128xf32>
    %1273 = vector.shape_cast %1272 : vector<1x8x128xf32> to vector<8x128xf32>
    %c10_980 = arith.constant 10 : index
    %c0_981 = arith.constant 0 : index
    %c0_982 = arith.constant 0 : index
    %1274 = vector.load %arg1[%c10_980, %c0_981, %c0_982] : memref<30x8x128xf32, #tpu.memory_space<vmem>>, vector<1x8x128xf32>
    %1275 = vector.shape_cast %1274 : vector<1x8x128xf32> to vector<8x128xf32>
    %c11_983 = arith.constant 11 : index
    %c0_984 = arith.constant 0 : index
    %c0_985 = arith.constant 0 : index
    %1276 = vector.load %arg1[%c11_983, %c0_984, %c0_985] : memref<30x8x128xf32, #tpu.memory_space<vmem>>, vector<1x8x128xf32>
    %1277 = vector.shape_cast %1276 : vector<1x8x128xf32> to vector<8x128xf32>
    %c12_986 = arith.constant 12 : index
    %c0_987 = arith.constant 0 : index
    %c0_988 = arith.constant 0 : index
    %1278 = vector.load %arg1[%c12_986, %c0_987, %c0_988] : memref<30x8x128xf32, #tpu.memory_space<vmem>>, vector<1x8x128xf32>
    %1279 = vector.shape_cast %1278 : vector<1x8x128xf32> to vector<8x128xf32>
    %c13_989 = arith.constant 13 : index
    %c0_990 = arith.constant 0 : index
    %c0_991 = arith.constant 0 : index
    %1280 = vector.load %arg1[%c13_989, %c0_990, %c0_991] : memref<30x8x128xf32, #tpu.memory_space<vmem>>, vector<1x8x128xf32>
    %1281 = vector.shape_cast %1280 : vector<1x8x128xf32> to vector<8x128xf32>
    %c14_992 = arith.constant 14 : index
    %c0_993 = arith.constant 0 : index
    %c0_994 = arith.constant 0 : index
    %1282 = vector.load %arg1[%c14_992, %c0_993, %c0_994] : memref<30x8x128xf32, #tpu.memory_space<vmem>>, vector<1x8x128xf32>
    %1283 = vector.shape_cast %1282 : vector<1x8x128xf32> to vector<8x128xf32>
    %1284 = arith.subf %1279, %1273 : vector<8x128xf32>
    %1285 = arith.subf %1281, %1275 : vector<8x128xf32>
    %1286 = arith.subf %1283, %1277 : vector<8x128xf32>
    %1287 = arith.mulf %1284, %1284 : vector<8x128xf32>
    %1288 = arith.mulf %1285, %1285 : vector<8x128xf32>
    %1289 = arith.addf %1287, %1288 : vector<8x128xf32>
    %1290 = arith.mulf %1286, %1286 : vector<8x128xf32>
    %1291 = arith.addf %1289, %1290 : vector<8x128xf32>
    %1292 = math.rsqrt %1291 : vector<8x128xf32>
    %1293 = arith.mulf %1181, %1284 : vector<8x128xf32>
    %1294 = arith.mulf %1182, %1285 : vector<8x128xf32>
    %1295 = arith.addf %1293, %1294 : vector<8x128xf32>
    %1296 = arith.mulf %1183, %1286 : vector<8x128xf32>
    %1297 = arith.addf %1295, %1296 : vector<8x128xf32>
    %1298 = arith.mulf %1297, %1189 : vector<8x128xf32>
    %1299 = arith.mulf %1298, %1292 : vector<8x128xf32>
    %1300 = math.absf %1299 : vector<8x128xf32>
    %cst_995 = arith.constant -1.872930e-02 : f32
    %1301 = vector.broadcast %cst_995 : f32 to vector<8x128xf32>
    %1302 = arith.mulf %1301, %1300 : vector<8x128xf32>
    %cst_996 = arith.constant 7.426100e-02 : f32
    %1303 = vector.broadcast %cst_996 : f32 to vector<8x128xf32>
    %1304 = arith.addf %1302, %1303 : vector<8x128xf32>
    %1305 = arith.mulf %1304, %1300 : vector<8x128xf32>
    %cst_997 = arith.constant -0.212114394 : f32
    %1306 = vector.broadcast %cst_997 : f32 to vector<8x128xf32>
    %1307 = arith.addf %1305, %1306 : vector<8x128xf32>
    %1308 = arith.mulf %1307, %1300 : vector<8x128xf32>
    %cst_998 = arith.constant 1.57072878 : f32
    %1309 = vector.broadcast %cst_998 : f32 to vector<8x128xf32>
    %1310 = arith.addf %1308, %1309 : vector<8x128xf32>
    %cst_999 = arith.constant 1.000000e+00 : f32
    %1311 = vector.broadcast %cst_999 : f32 to vector<8x128xf32>
    %1312 = arith.subf %1311, %1300 : vector<8x128xf32>
    %cst_1000 = arith.constant 0.000000e+00 : f32
    %1313 = vector.broadcast %cst_1000 : f32 to vector<8x128xf32>
    %1314 = arith.maximumf %1312, %1313 : vector<8x128xf32>
    %1315 = math.sqrt %1314 : vector<8x128xf32>
    %1316 = arith.mulf %1315, %1310 : vector<8x128xf32>
    %cst_1001 = arith.constant 0.000000e+00 : f32
    %1317 = vector.broadcast %cst_1001 : f32 to vector<8x128xf32>
    %1318 = arith.cmpf olt, %1299, %1317 : vector<8x128xf32>
    %cst_1002 = arith.constant 3.14159274 : f32
    %1319 = vector.broadcast %cst_1002 : f32 to vector<8x128xf32>
    %1320 = arith.subf %1319, %1316 : vector<8x128xf32>
    %1321 = arith.select %1318, %1320, %1316 : vector<8x128xi1>, vector<8x128xf32>
    %c47 = arith.constant 47 : index
    %c0_1003 = arith.constant 0 : index
    %c0_1004 = arith.constant 0 : index
    %1322 = vector.load %arg2[%c47, %c0_1003, %c0_1004] : memref<67x8x128xf32, #tpu.memory_space<vmem>>, vector<1x8x128xf32>
    %1323 = vector.shape_cast %1322 : vector<1x8x128xf32> to vector<8x128xf32>
    %1324 = vector.shape_cast %1321 : vector<8x128xf32> to vector<1x8x128xf32>
    tpu.vector_store %arg2[%c47, %c0_1003, %c0_1004], %1324 {strides = array<i32>} : memref<67x8x128xf32, #tpu.memory_space<vmem>>, vector<1x8x128xf32>,
    %1325 = arith.mulf %1182, %1286 : vector<8x128xf32>
    %1326 = arith.mulf %1183, %1285 : vector<8x128xf32>
    %1327 = arith.subf %1325, %1326 : vector<8x128xf32>
    %1328 = arith.mulf %1183, %1284 : vector<8x128xf32>
    %1329 = arith.mulf %1181, %1286 : vector<8x128xf32>
    %1330 = arith.subf %1328, %1329 : vector<8x128xf32>
    %1331 = arith.mulf %1181, %1285 : vector<8x128xf32>
    %1332 = arith.mulf %1182, %1284 : vector<8x128xf32>
    %1333 = arith.subf %1331, %1332 : vector<8x128xf32>
    %1334 = arith.mulf %1327, %1327 : vector<8x128xf32>
    %1335 = arith.mulf %1330, %1330 : vector<8x128xf32>
    %1336 = arith.addf %1334, %1335 : vector<8x128xf32>
    %1337 = arith.mulf %1333, %1333 : vector<8x128xf32>
    %1338 = arith.addf %1336, %1337 : vector<8x128xf32>
    %1339 = math.rsqrt %1338 : vector<8x128xf32>
    %1340 = arith.mulf %1224, %1327 : vector<8x128xf32>
    %1341 = arith.mulf %1227, %1330 : vector<8x128xf32>
    %1342 = arith.addf %1340, %1341 : vector<8x128xf32>
    %1343 = arith.mulf %1230, %1333 : vector<8x128xf32>
    %1344 = arith.addf %1342, %1343 : vector<8x128xf32>
    %1345 = arith.mulf %1344, %1236 : vector<8x128xf32>
    %1346 = arith.mulf %1345, %1339 : vector<8x128xf32>
    %c54 = arith.constant 54 : index
    %c0_1005 = arith.constant 0 : index
    %c0_1006 = arith.constant 0 : index
    %1347 = vector.load %arg2[%c54, %c0_1005, %c0_1006] : memref<67x8x128xf32, #tpu.memory_space<vmem>>, vector<1x8x128xf32>
    %1348 = vector.shape_cast %1347 : vector<1x8x128xf32> to vector<8x128xf32>
    %1349 = vector.shape_cast %1346 : vector<8x128xf32> to vector<1x8x128xf32>
    tpu.vector_store %arg2[%c54, %c0_1005, %c0_1006], %1349 {strides = array<i32>} : memref<67x8x128xf32, #tpu.memory_space<vmem>>, vector<1x8x128xf32>,
    %1350 = arith.mulf %1330, %1183 : vector<8x128xf32>
    %1351 = arith.mulf %1333, %1182 : vector<8x128xf32>
    %1352 = arith.subf %1350, %1351 : vector<8x128xf32>
    %1353 = arith.mulf %1333, %1181 : vector<8x128xf32>
    %1354 = arith.mulf %1327, %1183 : vector<8x128xf32>
    %1355 = arith.subf %1353, %1354 : vector<8x128xf32>
    %1356 = arith.mulf %1327, %1182 : vector<8x128xf32>
    %1357 = arith.mulf %1330, %1181 : vector<8x128xf32>
    %1358 = arith.subf %1356, %1357 : vector<8x128xf32>
    %1359 = arith.mulf %1352, %1352 : vector<8x128xf32>
    %1360 = arith.mulf %1355, %1355 : vector<8x128xf32>
    %1361 = arith.addf %1359, %1360 : vector<8x128xf32>
    %1362 = arith.mulf %1358, %1358 : vector<8x128xf32>
    %1363 = arith.addf %1361, %1362 : vector<8x128xf32>
    %1364 = math.rsqrt %1363 : vector<8x128xf32>
    %1365 = arith.mulf %1224, %1352 : vector<8x128xf32>
    %1366 = arith.mulf %1227, %1355 : vector<8x128xf32>
    %1367 = arith.addf %1365, %1366 : vector<8x128xf32>
    %1368 = arith.mulf %1230, %1358 : vector<8x128xf32>
    %1369 = arith.addf %1367, %1368 : vector<8x128xf32>
    %1370 = arith.mulf %1369, %1236 : vector<8x128xf32>
    %1371 = arith.mulf %1370, %1364 : vector<8x128xf32>
    %c61 = arith.constant 61 : index
    %c0_1007 = arith.constant 0 : index
    %c0_1008 = arith.constant 0 : index
    %1372 = vector.load %arg2[%c61, %c0_1007, %c0_1008] : memref<67x8x128xf32, #tpu.memory_space<vmem>>, vector<1x8x128xf32>
    %1373 = vector.shape_cast %1372 : vector<1x8x128xf32> to vector<8x128xf32>
    %1374 = vector.shape_cast %1371 : vector<8x128xf32> to vector<1x8x128xf32>
    tpu.vector_store %arg2[%c61, %c0_1007, %c0_1008], %1374 {strides = array<i32>} : memref<67x8x128xf32, #tpu.memory_space<vmem>>, vector<1x8x128xf32>,
    %c12_1009 = arith.constant 12 : index
    %c0_1010 = arith.constant 0 : index
    %c0_1011 = arith.constant 0 : index
    %1375 = vector.load %arg1[%c12_1009, %c0_1010, %c0_1011] : memref<30x8x128xf32, #tpu.memory_space<vmem>>, vector<1x8x128xf32>
    %1376 = vector.shape_cast %1375 : vector<1x8x128xf32> to vector<8x128xf32>
    %c13_1012 = arith.constant 13 : index
    %c0_1013 = arith.constant 0 : index
    %c0_1014 = arith.constant 0 : index
    %1377 = vector.load %arg1[%c13_1012, %c0_1013, %c0_1014] : memref<30x8x128xf32, #tpu.memory_space<vmem>>, vector<1x8x128xf32>
    %1378 = vector.shape_cast %1377 : vector<1x8x128xf32> to vector<8x128xf32>
    %c14_1015 = arith.constant 14 : index
    %c0_1016 = arith.constant 0 : index
    %c0_1017 = arith.constant 0 : index
    %1379 = vector.load %arg1[%c14_1015, %c0_1016, %c0_1017] : memref<30x8x128xf32, #tpu.memory_space<vmem>>, vector<1x8x128xf32>
    %1380 = vector.shape_cast %1379 : vector<1x8x128xf32> to vector<8x128xf32>
    %c15_1018 = arith.constant 15 : index
    %c0_1019 = arith.constant 0 : index
    %c0_1020 = arith.constant 0 : index
    %1381 = vector.load %arg1[%c15_1018, %c0_1019, %c0_1020] : memref<30x8x128xf32, #tpu.memory_space<vmem>>, vector<1x8x128xf32>
    %1382 = vector.shape_cast %1381 : vector<1x8x128xf32> to vector<8x128xf32>
    %c16_1021 = arith.constant 16 : index
    %c0_1022 = arith.constant 0 : index
    %c0_1023 = arith.constant 0 : index
    %1383 = vector.load %arg1[%c16_1021, %c0_1022, %c0_1023] : memref<30x8x128xf32, #tpu.memory_space<vmem>>, vector<1x8x128xf32>
    %1384 = vector.shape_cast %1383 : vector<1x8x128xf32> to vector<8x128xf32>
    %c17_1024 = arith.constant 17 : index
    %c0_1025 = arith.constant 0 : index
    %c0_1026 = arith.constant 0 : index
    %1385 = vector.load %arg1[%c17_1024, %c0_1025, %c0_1026] : memref<30x8x128xf32, #tpu.memory_space<vmem>>, vector<1x8x128xf32>
    %1386 = vector.shape_cast %1385 : vector<1x8x128xf32> to vector<8x128xf32>
    %1387 = arith.subf %1382, %1376 : vector<8x128xf32>
    %1388 = arith.subf %1384, %1378 : vector<8x128xf32>
    %1389 = arith.subf %1386, %1380 : vector<8x128xf32>
    %1390 = arith.mulf %1387, %1387 : vector<8x128xf32>
    %1391 = arith.mulf %1388, %1388 : vector<8x128xf32>
    %1392 = arith.addf %1390, %1391 : vector<8x128xf32>
    %1393 = arith.mulf %1389, %1389 : vector<8x128xf32>
    %1394 = arith.addf %1392, %1393 : vector<8x128xf32>
    %1395 = math.rsqrt %1394 : vector<8x128xf32>
    %1396 = arith.mulf %1284, %1387 : vector<8x128xf32>
    %1397 = arith.mulf %1285, %1388 : vector<8x128xf32>
    %1398 = arith.addf %1396, %1397 : vector<8x128xf32>
    %1399 = arith.mulf %1286, %1389 : vector<8x128xf32>
    %1400 = arith.addf %1398, %1399 : vector<8x128xf32>
    %1401 = arith.mulf %1400, %1292 : vector<8x128xf32>
    %1402 = arith.mulf %1401, %1395 : vector<8x128xf32>
    %1403 = math.absf %1402 : vector<8x128xf32>
    %cst_1027 = arith.constant -1.872930e-02 : f32
    %1404 = vector.broadcast %cst_1027 : f32 to vector<8x128xf32>
    %1405 = arith.mulf %1404, %1403 : vector<8x128xf32>
    %cst_1028 = arith.constant 7.426100e-02 : f32
    %1406 = vector.broadcast %cst_1028 : f32 to vector<8x128xf32>
    %1407 = arith.addf %1405, %1406 : vector<8x128xf32>
    %1408 = arith.mulf %1407, %1403 : vector<8x128xf32>
    %cst_1029 = arith.constant -0.212114394 : f32
    %1409 = vector.broadcast %cst_1029 : f32 to vector<8x128xf32>
    %1410 = arith.addf %1408, %1409 : vector<8x128xf32>
    %1411 = arith.mulf %1410, %1403 : vector<8x128xf32>
    %cst_1030 = arith.constant 1.57072878 : f32
    %1412 = vector.broadcast %cst_1030 : f32 to vector<8x128xf32>
    %1413 = arith.addf %1411, %1412 : vector<8x128xf32>
    %cst_1031 = arith.constant 1.000000e+00 : f32
    %1414 = vector.broadcast %cst_1031 : f32 to vector<8x128xf32>
    %1415 = arith.subf %1414, %1403 : vector<8x128xf32>
    %cst_1032 = arith.constant 0.000000e+00 : f32
    %1416 = vector.broadcast %cst_1032 : f32 to vector<8x128xf32>
    %1417 = arith.maximumf %1415, %1416 : vector<8x128xf32>
    %1418 = math.sqrt %1417 : vector<8x128xf32>
    %1419 = arith.mulf %1418, %1413 : vector<8x128xf32>
    %cst_1033 = arith.constant 0.000000e+00 : f32
    %1420 = vector.broadcast %cst_1033 : f32 to vector<8x128xf32>
    %1421 = arith.cmpf olt, %1402, %1420 : vector<8x128xf32>
    %cst_1034 = arith.constant 3.14159274 : f32
    %1422 = vector.broadcast %cst_1034 : f32 to vector<8x128xf32>
    %1423 = arith.subf %1422, %1419 : vector<8x128xf32>
    %1424 = arith.select %1421, %1423, %1419 : vector<8x128xi1>, vector<8x128xf32>
    %c48 = arith.constant 48 : index
    %c0_1035 = arith.constant 0 : index
    %c0_1036 = arith.constant 0 : index
    %1425 = vector.load %arg2[%c48, %c0_1035, %c0_1036] : memref<67x8x128xf32, #tpu.memory_space<vmem>>, vector<1x8x128xf32>
    %1426 = vector.shape_cast %1425 : vector<1x8x128xf32> to vector<8x128xf32>
    %1427 = vector.shape_cast %1424 : vector<8x128xf32> to vector<1x8x128xf32>
    tpu.vector_store %arg2[%c48, %c0_1035, %c0_1036], %1427 {strides = array<i32>} : memref<67x8x128xf32, #tpu.memory_space<vmem>>, vector<1x8x128xf32>,
    %1428 = arith.mulf %1285, %1389 : vector<8x128xf32>
    %1429 = arith.mulf %1286, %1388 : vector<8x128xf32>
    %1430 = arith.subf %1428, %1429 : vector<8x128xf32>
    %1431 = arith.mulf %1286, %1387 : vector<8x128xf32>
    %1432 = arith.mulf %1284, %1389 : vector<8x128xf32>
    %1433 = arith.subf %1431, %1432 : vector<8x128xf32>
    %1434 = arith.mulf %1284, %1388 : vector<8x128xf32>
    %1435 = arith.mulf %1285, %1387 : vector<8x128xf32>
    %1436 = arith.subf %1434, %1435 : vector<8x128xf32>
    %1437 = arith.mulf %1430, %1430 : vector<8x128xf32>
    %1438 = arith.mulf %1433, %1433 : vector<8x128xf32>
    %1439 = arith.addf %1437, %1438 : vector<8x128xf32>
    %1440 = arith.mulf %1436, %1436 : vector<8x128xf32>
    %1441 = arith.addf %1439, %1440 : vector<8x128xf32>
    %1442 = math.rsqrt %1441 : vector<8x128xf32>
    %1443 = arith.mulf %1327, %1430 : vector<8x128xf32>
    %1444 = arith.mulf %1330, %1433 : vector<8x128xf32>
    %1445 = arith.addf %1443, %1444 : vector<8x128xf32>
    %1446 = arith.mulf %1333, %1436 : vector<8x128xf32>
    %1447 = arith.addf %1445, %1446 : vector<8x128xf32>
    %1448 = arith.mulf %1447, %1339 : vector<8x128xf32>
    %1449 = arith.mulf %1448, %1442 : vector<8x128xf32>
    %c55 = arith.constant 55 : index
    %c0_1037 = arith.constant 0 : index
    %c0_1038 = arith.constant 0 : index
    %1450 = vector.load %arg2[%c55, %c0_1037, %c0_1038] : memref<67x8x128xf32, #tpu.memory_space<vmem>>, vector<1x8x128xf32>
    %1451 = vector.shape_cast %1450 : vector<1x8x128xf32> to vector<8x128xf32>
    %1452 = vector.shape_cast %1449 : vector<8x128xf32> to vector<1x8x128xf32>
    tpu.vector_store %arg2[%c55, %c0_1037, %c0_1038], %1452 {strides = array<i32>} : memref<67x8x128xf32, #tpu.memory_space<vmem>>, vector<1x8x128xf32>,
    %1453 = arith.mulf %1433, %1286 : vector<8x128xf32>
    %1454 = arith.mulf %1436, %1285 : vector<8x128xf32>
    %1455 = arith.subf %1453, %1454 : vector<8x128xf32>
    %1456 = arith.mulf %1436, %1284 : vector<8x128xf32>
    %1457 = arith.mulf %1430, %1286 : vector<8x128xf32>
    %1458 = arith.subf %1456, %1457 : vector<8x128xf32>
    %1459 = arith.mulf %1430, %1285 : vector<8x128xf32>
    %1460 = arith.mulf %1433, %1284 : vector<8x128xf32>
    %1461 = arith.subf %1459, %1460 : vector<8x128xf32>
    %1462 = arith.mulf %1455, %1455 : vector<8x128xf32>
    %1463 = arith.mulf %1458, %1458 : vector<8x128xf32>
    %1464 = arith.addf %1462, %1463 : vector<8x128xf32>
    %1465 = arith.mulf %1461, %1461 : vector<8x128xf32>
    %1466 = arith.addf %1464, %1465 : vector<8x128xf32>
    %1467 = math.rsqrt %1466 : vector<8x128xf32>
    %1468 = arith.mulf %1327, %1455 : vector<8x128xf32>
    %1469 = arith.mulf %1330, %1458 : vector<8x128xf32>
    %1470 = arith.addf %1468, %1469 : vector<8x128xf32>
    %1471 = arith.mulf %1333, %1461 : vector<8x128xf32>
    %1472 = arith.addf %1470, %1471 : vector<8x128xf32>
    %1473 = arith.mulf %1472, %1339 : vector<8x128xf32>
    %1474 = arith.mulf %1473, %1467 : vector<8x128xf32>
    %c62 = arith.constant 62 : index
    %c0_1039 = arith.constant 0 : index
    %c0_1040 = arith.constant 0 : index
    %1475 = vector.load %arg2[%c62, %c0_1039, %c0_1040] : memref<67x8x128xf32, #tpu.memory_space<vmem>>, vector<1x8x128xf32>
    %1476 = vector.shape_cast %1475 : vector<1x8x128xf32> to vector<8x128xf32>
    %1477 = vector.shape_cast %1474 : vector<8x128xf32> to vector<1x8x128xf32>
    tpu.vector_store %arg2[%c62, %c0_1039, %c0_1040], %1477 {strides = array<i32>} : memref<67x8x128xf32, #tpu.memory_space<vmem>>, vector<1x8x128xf32>,
    %c15_1041 = arith.constant 15 : index
    %c0_1042 = arith.constant 0 : index
    %c0_1043 = arith.constant 0 : index
    %1478 = vector.load %arg1[%c15_1041, %c0_1042, %c0_1043] : memref<30x8x128xf32, #tpu.memory_space<vmem>>, vector<1x8x128xf32>
    %1479 = vector.shape_cast %1478 : vector<1x8x128xf32> to vector<8x128xf32>
    %c16_1044 = arith.constant 16 : index
    %c0_1045 = arith.constant 0 : index
    %c0_1046 = arith.constant 0 : index
    %1480 = vector.load %arg1[%c16_1044, %c0_1045, %c0_1046] : memref<30x8x128xf32, #tpu.memory_space<vmem>>, vector<1x8x128xf32>
    %1481 = vector.shape_cast %1480 : vector<1x8x128xf32> to vector<8x128xf32>
    %c17_1047 = arith.constant 17 : index
    %c0_1048 = arith.constant 0 : index
    %c0_1049 = arith.constant 0 : index
    %1482 = vector.load %arg1[%c17_1047, %c0_1048, %c0_1049] : memref<30x8x128xf32, #tpu.memory_space<vmem>>, vector<1x8x128xf32>
    %1483 = vector.shape_cast %1482 : vector<1x8x128xf32> to vector<8x128xf32>
    %c18_1050 = arith.constant 18 : index
    %c0_1051 = arith.constant 0 : index
    %c0_1052 = arith.constant 0 : index
    %1484 = vector.load %arg1[%c18_1050, %c0_1051, %c0_1052] : memref<30x8x128xf32, #tpu.memory_space<vmem>>, vector<1x8x128xf32>
    %1485 = vector.shape_cast %1484 : vector<1x8x128xf32> to vector<8x128xf32>
    %c19_1053 = arith.constant 19 : index
    %c0_1054 = arith.constant 0 : index
    %c0_1055 = arith.constant 0 : index
    %1486 = vector.load %arg1[%c19_1053, %c0_1054, %c0_1055] : memref<30x8x128xf32, #tpu.memory_space<vmem>>, vector<1x8x128xf32>
    %1487 = vector.shape_cast %1486 : vector<1x8x128xf32> to vector<8x128xf32>
    %c20_1056 = arith.constant 20 : index
    %c0_1057 = arith.constant 0 : index
    %c0_1058 = arith.constant 0 : index
    %1488 = vector.load %arg1[%c20_1056, %c0_1057, %c0_1058] : memref<30x8x128xf32, #tpu.memory_space<vmem>>, vector<1x8x128xf32>
    %1489 = vector.shape_cast %1488 : vector<1x8x128xf32> to vector<8x128xf32>
    %1490 = arith.subf %1485, %1479 : vector<8x128xf32>
    %1491 = arith.subf %1487, %1481 : vector<8x128xf32>
    %1492 = arith.subf %1489, %1483 : vector<8x128xf32>
    %1493 = arith.mulf %1490, %1490 : vector<8x128xf32>
    %1494 = arith.mulf %1491, %1491 : vector<8x128xf32>
    %1495 = arith.addf %1493, %1494 : vector<8x128xf32>
    %1496 = arith.mulf %1492, %1492 : vector<8x128xf32>
    %1497 = arith.addf %1495, %1496 : vector<8x128xf32>
    %1498 = math.rsqrt %1497 : vector<8x128xf32>
    %1499 = arith.mulf %1387, %1490 : vector<8x128xf32>
    %1500 = arith.mulf %1388, %1491 : vector<8x128xf32>
    %1501 = arith.addf %1499, %1500 : vector<8x128xf32>
    %1502 = arith.mulf %1389, %1492 : vector<8x128xf32>
    %1503 = arith.addf %1501, %1502 : vector<8x128xf32>
    %1504 = arith.mulf %1503, %1395 : vector<8x128xf32>
    %1505 = arith.mulf %1504, %1498 : vector<8x128xf32>
    %1506 = math.absf %1505 : vector<8x128xf32>
    %cst_1059 = arith.constant -1.872930e-02 : f32
    %1507 = vector.broadcast %cst_1059 : f32 to vector<8x128xf32>
    %1508 = arith.mulf %1507, %1506 : vector<8x128xf32>
    %cst_1060 = arith.constant 7.426100e-02 : f32
    %1509 = vector.broadcast %cst_1060 : f32 to vector<8x128xf32>
    %1510 = arith.addf %1508, %1509 : vector<8x128xf32>
    %1511 = arith.mulf %1510, %1506 : vector<8x128xf32>
    %cst_1061 = arith.constant -0.212114394 : f32
    %1512 = vector.broadcast %cst_1061 : f32 to vector<8x128xf32>
    %1513 = arith.addf %1511, %1512 : vector<8x128xf32>
    %1514 = arith.mulf %1513, %1506 : vector<8x128xf32>
    %cst_1062 = arith.constant 1.57072878 : f32
    %1515 = vector.broadcast %cst_1062 : f32 to vector<8x128xf32>
    %1516 = arith.addf %1514, %1515 : vector<8x128xf32>
    %cst_1063 = arith.constant 1.000000e+00 : f32
    %1517 = vector.broadcast %cst_1063 : f32 to vector<8x128xf32>
    %1518 = arith.subf %1517, %1506 : vector<8x128xf32>
    %cst_1064 = arith.constant 0.000000e+00 : f32
    %1519 = vector.broadcast %cst_1064 : f32 to vector<8x128xf32>
    %1520 = arith.maximumf %1518, %1519 : vector<8x128xf32>
    %1521 = math.sqrt %1520 : vector<8x128xf32>
    %1522 = arith.mulf %1521, %1516 : vector<8x128xf32>
    %cst_1065 = arith.constant 0.000000e+00 : f32
    %1523 = vector.broadcast %cst_1065 : f32 to vector<8x128xf32>
    %1524 = arith.cmpf olt, %1505, %1523 : vector<8x128xf32>
    %cst_1066 = arith.constant 3.14159274 : f32
    %1525 = vector.broadcast %cst_1066 : f32 to vector<8x128xf32>
    %1526 = arith.subf %1525, %1522 : vector<8x128xf32>
    %1527 = arith.select %1524, %1526, %1522 : vector<8x128xi1>, vector<8x128xf32>
    %c49 = arith.constant 49 : index
    %c0_1067 = arith.constant 0 : index
    %c0_1068 = arith.constant 0 : index
    %1528 = vector.load %arg2[%c49, %c0_1067, %c0_1068] : memref<67x8x128xf32, #tpu.memory_space<vmem>>, vector<1x8x128xf32>
    %1529 = vector.shape_cast %1528 : vector<1x8x128xf32> to vector<8x128xf32>
    %1530 = vector.shape_cast %1527 : vector<8x128xf32> to vector<1x8x128xf32>
    tpu.vector_store %arg2[%c49, %c0_1067, %c0_1068], %1530 {strides = array<i32>} : memref<67x8x128xf32, #tpu.memory_space<vmem>>, vector<1x8x128xf32>,
    %1531 = arith.mulf %1388, %1492 : vector<8x128xf32>
    %1532 = arith.mulf %1389, %1491 : vector<8x128xf32>
    %1533 = arith.subf %1531, %1532 : vector<8x128xf32>
    %1534 = arith.mulf %1389, %1490 : vector<8x128xf32>
    %1535 = arith.mulf %1387, %1492 : vector<8x128xf32>
    %1536 = arith.subf %1534, %1535 : vector<8x128xf32>
    %1537 = arith.mulf %1387, %1491 : vector<8x128xf32>
    %1538 = arith.mulf %1388, %1490 : vector<8x128xf32>
    %1539 = arith.subf %1537, %1538 : vector<8x128xf32>
    %1540 = arith.mulf %1533, %1533 : vector<8x128xf32>
    %1541 = arith.mulf %1536, %1536 : vector<8x128xf32>
    %1542 = arith.addf %1540, %1541 : vector<8x128xf32>
    %1543 = arith.mulf %1539, %1539 : vector<8x128xf32>
    %1544 = arith.addf %1542, %1543 : vector<8x128xf32>
    %1545 = math.rsqrt %1544 : vector<8x128xf32>
    %1546 = arith.mulf %1430, %1533 : vector<8x128xf32>
    %1547 = arith.mulf %1433, %1536 : vector<8x128xf32>
    %1548 = arith.addf %1546, %1547 : vector<8x128xf32>
    %1549 = arith.mulf %1436, %1539 : vector<8x128xf32>
    %1550 = arith.addf %1548, %1549 : vector<8x128xf32>
    %1551 = arith.mulf %1550, %1442 : vector<8x128xf32>
    %1552 = arith.mulf %1551, %1545 : vector<8x128xf32>
    %c56 = arith.constant 56 : index
    %c0_1069 = arith.constant 0 : index
    %c0_1070 = arith.constant 0 : index
    %1553 = vector.load %arg2[%c56, %c0_1069, %c0_1070] : memref<67x8x128xf32, #tpu.memory_space<vmem>>, vector<1x8x128xf32>
    %1554 = vector.shape_cast %1553 : vector<1x8x128xf32> to vector<8x128xf32>
    %1555 = vector.shape_cast %1552 : vector<8x128xf32> to vector<1x8x128xf32>
    tpu.vector_store %arg2[%c56, %c0_1069, %c0_1070], %1555 {strides = array<i32>} : memref<67x8x128xf32, #tpu.memory_space<vmem>>, vector<1x8x128xf32>,
    %1556 = arith.mulf %1536, %1389 : vector<8x128xf32>
    %1557 = arith.mulf %1539, %1388 : vector<8x128xf32>
    %1558 = arith.subf %1556, %1557 : vector<8x128xf32>
    %1559 = arith.mulf %1539, %1387 : vector<8x128xf32>
    %1560 = arith.mulf %1533, %1389 : vector<8x128xf32>
    %1561 = arith.subf %1559, %1560 : vector<8x128xf32>
    %1562 = arith.mulf %1533, %1388 : vector<8x128xf32>
    %1563 = arith.mulf %1536, %1387 : vector<8x128xf32>
    %1564 = arith.subf %1562, %1563 : vector<8x128xf32>
    %1565 = arith.mulf %1558, %1558 : vector<8x128xf32>
    %1566 = arith.mulf %1561, %1561 : vector<8x128xf32>
    %1567 = arith.addf %1565, %1566 : vector<8x128xf32>
    %1568 = arith.mulf %1564, %1564 : vector<8x128xf32>
    %1569 = arith.addf %1567, %1568 : vector<8x128xf32>
    %1570 = math.rsqrt %1569 : vector<8x128xf32>
    %1571 = arith.mulf %1430, %1558 : vector<8x128xf32>
    %1572 = arith.mulf %1433, %1561 : vector<8x128xf32>
    %1573 = arith.addf %1571, %1572 : vector<8x128xf32>
    %1574 = arith.mulf %1436, %1564 : vector<8x128xf32>
    %1575 = arith.addf %1573, %1574 : vector<8x128xf32>
    %1576 = arith.mulf %1575, %1442 : vector<8x128xf32>
    %1577 = arith.mulf %1576, %1570 : vector<8x128xf32>
    %c63 = arith.constant 63 : index
    %c0_1071 = arith.constant 0 : index
    %c0_1072 = arith.constant 0 : index
    %1578 = vector.load %arg2[%c63, %c0_1071, %c0_1072] : memref<67x8x128xf32, #tpu.memory_space<vmem>>, vector<1x8x128xf32>
    %1579 = vector.shape_cast %1578 : vector<1x8x128xf32> to vector<8x128xf32>
    %1580 = vector.shape_cast %1577 : vector<8x128xf32> to vector<1x8x128xf32>
    tpu.vector_store %arg2[%c63, %c0_1071, %c0_1072], %1580 {strides = array<i32>} : memref<67x8x128xf32, #tpu.memory_space<vmem>>, vector<1x8x128xf32>,
    %c18_1073 = arith.constant 18 : index
    %c0_1074 = arith.constant 0 : index
    %c0_1075 = arith.constant 0 : index
    %1581 = vector.load %arg1[%c18_1073, %c0_1074, %c0_1075] : memref<30x8x128xf32, #tpu.memory_space<vmem>>, vector<1x8x128xf32>
    %1582 = vector.shape_cast %1581 : vector<1x8x128xf32> to vector<8x128xf32>
    %c19_1076 = arith.constant 19 : index
    %c0_1077 = arith.constant 0 : index
    %c0_1078 = arith.constant 0 : index
    %1583 = vector.load %arg1[%c19_1076, %c0_1077, %c0_1078] : memref<30x8x128xf32, #tpu.memory_space<vmem>>, vector<1x8x128xf32>
    %1584 = vector.shape_cast %1583 : vector<1x8x128xf32> to vector<8x128xf32>
    %c20_1079 = arith.constant 20 : index
    %c0_1080 = arith.constant 0 : index
    %c0_1081 = arith.constant 0 : index
    %1585 = vector.load %arg1[%c20_1079, %c0_1080, %c0_1081] : memref<30x8x128xf32, #tpu.memory_space<vmem>>, vector<1x8x128xf32>
    %1586 = vector.shape_cast %1585 : vector<1x8x128xf32> to vector<8x128xf32>
    %c21_1082 = arith.constant 21 : index
    %c0_1083 = arith.constant 0 : index
    %c0_1084 = arith.constant 0 : index
    %1587 = vector.load %arg1[%c21_1082, %c0_1083, %c0_1084] : memref<30x8x128xf32, #tpu.memory_space<vmem>>, vector<1x8x128xf32>
    %1588 = vector.shape_cast %1587 : vector<1x8x128xf32> to vector<8x128xf32>
    %c22_1085 = arith.constant 22 : index
    %c0_1086 = arith.constant 0 : index
    %c0_1087 = arith.constant 0 : index
    %1589 = vector.load %arg1[%c22_1085, %c0_1086, %c0_1087] : memref<30x8x128xf32, #tpu.memory_space<vmem>>, vector<1x8x128xf32>
    %1590 = vector.shape_cast %1589 : vector<1x8x128xf32> to vector<8x128xf32>
    %c23_1088 = arith.constant 23 : index
    %c0_1089 = arith.constant 0 : index
    %c0_1090 = arith.constant 0 : index
    %1591 = vector.load %arg1[%c23_1088, %c0_1089, %c0_1090] : memref<30x8x128xf32, #tpu.memory_space<vmem>>, vector<1x8x128xf32>
    %1592 = vector.shape_cast %1591 : vector<1x8x128xf32> to vector<8x128xf32>
    %1593 = arith.subf %1588, %1582 : vector<8x128xf32>
    %1594 = arith.subf %1590, %1584 : vector<8x128xf32>
    %1595 = arith.subf %1592, %1586 : vector<8x128xf32>
    %1596 = arith.mulf %1593, %1593 : vector<8x128xf32>
    %1597 = arith.mulf %1594, %1594 : vector<8x128xf32>
    %1598 = arith.addf %1596, %1597 : vector<8x128xf32>
    %1599 = arith.mulf %1595, %1595 : vector<8x128xf32>
    %1600 = arith.addf %1598, %1599 : vector<8x128xf32>
    %1601 = math.rsqrt %1600 : vector<8x128xf32>
    %1602 = arith.mulf %1490, %1593 : vector<8x128xf32>
    %1603 = arith.mulf %1491, %1594 : vector<8x128xf32>
    %1604 = arith.addf %1602, %1603 : vector<8x128xf32>
    %1605 = arith.mulf %1492, %1595 : vector<8x128xf32>
    %1606 = arith.addf %1604, %1605 : vector<8x128xf32>
    %1607 = arith.mulf %1606, %1498 : vector<8x128xf32>
    %1608 = arith.mulf %1607, %1601 : vector<8x128xf32>
    %1609 = math.absf %1608 : vector<8x128xf32>
    %cst_1091 = arith.constant -1.872930e-02 : f32
    %1610 = vector.broadcast %cst_1091 : f32 to vector<8x128xf32>
    %1611 = arith.mulf %1610, %1609 : vector<8x128xf32>
    %cst_1092 = arith.constant 7.426100e-02 : f32
    %1612 = vector.broadcast %cst_1092 : f32 to vector<8x128xf32>
    %1613 = arith.addf %1611, %1612 : vector<8x128xf32>
    %1614 = arith.mulf %1613, %1609 : vector<8x128xf32>
    %cst_1093 = arith.constant -0.212114394 : f32
    %1615 = vector.broadcast %cst_1093 : f32 to vector<8x128xf32>
    %1616 = arith.addf %1614, %1615 : vector<8x128xf32>
    %1617 = arith.mulf %1616, %1609 : vector<8x128xf32>
    %cst_1094 = arith.constant 1.57072878 : f32
    %1618 = vector.broadcast %cst_1094 : f32 to vector<8x128xf32>
    %1619 = arith.addf %1617, %1618 : vector<8x128xf32>
    %cst_1095 = arith.constant 1.000000e+00 : f32
    %1620 = vector.broadcast %cst_1095 : f32 to vector<8x128xf32>
    %1621 = arith.subf %1620, %1609 : vector<8x128xf32>
    %cst_1096 = arith.constant 0.000000e+00 : f32
    %1622 = vector.broadcast %cst_1096 : f32 to vector<8x128xf32>
    %1623 = arith.maximumf %1621, %1622 : vector<8x128xf32>
    %1624 = math.sqrt %1623 : vector<8x128xf32>
    %1625 = arith.mulf %1624, %1619 : vector<8x128xf32>
    %cst_1097 = arith.constant 0.000000e+00 : f32
    %1626 = vector.broadcast %cst_1097 : f32 to vector<8x128xf32>
    %1627 = arith.cmpf olt, %1608, %1626 : vector<8x128xf32>
    %cst_1098 = arith.constant 3.14159274 : f32
    %1628 = vector.broadcast %cst_1098 : f32 to vector<8x128xf32>
    %1629 = arith.subf %1628, %1625 : vector<8x128xf32>
    %1630 = arith.select %1627, %1629, %1625 : vector<8x128xi1>, vector<8x128xf32>
    %c50 = arith.constant 50 : index
    %c0_1099 = arith.constant 0 : index
    %c0_1100 = arith.constant 0 : index
    %1631 = vector.load %arg2[%c50, %c0_1099, %c0_1100] : memref<67x8x128xf32, #tpu.memory_space<vmem>>, vector<1x8x128xf32>
    %1632 = vector.shape_cast %1631 : vector<1x8x128xf32> to vector<8x128xf32>
    %1633 = vector.shape_cast %1630 : vector<8x128xf32> to vector<1x8x128xf32>
    tpu.vector_store %arg2[%c50, %c0_1099, %c0_1100], %1633 {strides = array<i32>} : memref<67x8x128xf32, #tpu.memory_space<vmem>>, vector<1x8x128xf32>,
    %1634 = arith.mulf %1491, %1595 : vector<8x128xf32>
    %1635 = arith.mulf %1492, %1594 : vector<8x128xf32>
    %1636 = arith.subf %1634, %1635 : vector<8x128xf32>
    %1637 = arith.mulf %1492, %1593 : vector<8x128xf32>
    %1638 = arith.mulf %1490, %1595 : vector<8x128xf32>
    %1639 = arith.subf %1637, %1638 : vector<8x128xf32>
    %1640 = arith.mulf %1490, %1594 : vector<8x128xf32>
    %1641 = arith.mulf %1491, %1593 : vector<8x128xf32>
    %1642 = arith.subf %1640, %1641 : vector<8x128xf32>
    %1643 = arith.mulf %1636, %1636 : vector<8x128xf32>
    %1644 = arith.mulf %1639, %1639 : vector<8x128xf32>
    %1645 = arith.addf %1643, %1644 : vector<8x128xf32>
    %1646 = arith.mulf %1642, %1642 : vector<8x128xf32>
    %1647 = arith.addf %1645, %1646 : vector<8x128xf32>
    %1648 = math.rsqrt %1647 : vector<8x128xf32>
    %1649 = arith.mulf %1533, %1636 : vector<8x128xf32>
    %1650 = arith.mulf %1536, %1639 : vector<8x128xf32>
    %1651 = arith.addf %1649, %1650 : vector<8x128xf32>
    %1652 = arith.mulf %1539, %1642 : vector<8x128xf32>
    %1653 = arith.addf %1651, %1652 : vector<8x128xf32>
    %1654 = arith.mulf %1653, %1545 : vector<8x128xf32>
    %1655 = arith.mulf %1654, %1648 : vector<8x128xf32>
    %c57 = arith.constant 57 : index
    %c0_1101 = arith.constant 0 : index
    %c0_1102 = arith.constant 0 : index
    %1656 = vector.load %arg2[%c57, %c0_1101, %c0_1102] : memref<67x8x128xf32, #tpu.memory_space<vmem>>, vector<1x8x128xf32>
    %1657 = vector.shape_cast %1656 : vector<1x8x128xf32> to vector<8x128xf32>
    %1658 = vector.shape_cast %1655 : vector<8x128xf32> to vector<1x8x128xf32>
    tpu.vector_store %arg2[%c57, %c0_1101, %c0_1102], %1658 {strides = array<i32>} : memref<67x8x128xf32, #tpu.memory_space<vmem>>, vector<1x8x128xf32>,
    %1659 = arith.mulf %1639, %1492 : vector<8x128xf32>
    %1660 = arith.mulf %1642, %1491 : vector<8x128xf32>
    %1661 = arith.subf %1659, %1660 : vector<8x128xf32>
    %1662 = arith.mulf %1642, %1490 : vector<8x128xf32>
    %1663 = arith.mulf %1636, %1492 : vector<8x128xf32>
    %1664 = arith.subf %1662, %1663 : vector<8x128xf32>
    %1665 = arith.mulf %1636, %1491 : vector<8x128xf32>
    %1666 = arith.mulf %1639, %1490 : vector<8x128xf32>
    %1667 = arith.subf %1665, %1666 : vector<8x128xf32>
    %1668 = arith.mulf %1661, %1661 : vector<8x128xf32>
    %1669 = arith.mulf %1664, %1664 : vector<8x128xf32>
    %1670 = arith.addf %1668, %1669 : vector<8x128xf32>
    %1671 = arith.mulf %1667, %1667 : vector<8x128xf32>
    %1672 = arith.addf %1670, %1671 : vector<8x128xf32>
    %1673 = math.rsqrt %1672 : vector<8x128xf32>
    %1674 = arith.mulf %1533, %1661 : vector<8x128xf32>
    %1675 = arith.mulf %1536, %1664 : vector<8x128xf32>
    %1676 = arith.addf %1674, %1675 : vector<8x128xf32>
    %1677 = arith.mulf %1539, %1667 : vector<8x128xf32>
    %1678 = arith.addf %1676, %1677 : vector<8x128xf32>
    %1679 = arith.mulf %1678, %1545 : vector<8x128xf32>
    %1680 = arith.mulf %1679, %1673 : vector<8x128xf32>
    %c64 = arith.constant 64 : index
    %c0_1103 = arith.constant 0 : index
    %c0_1104 = arith.constant 0 : index
    %1681 = vector.load %arg2[%c64, %c0_1103, %c0_1104] : memref<67x8x128xf32, #tpu.memory_space<vmem>>, vector<1x8x128xf32>
    %1682 = vector.shape_cast %1681 : vector<1x8x128xf32> to vector<8x128xf32>
    %1683 = vector.shape_cast %1680 : vector<8x128xf32> to vector<1x8x128xf32>
    tpu.vector_store %arg2[%c64, %c0_1103, %c0_1104], %1683 {strides = array<i32>} : memref<67x8x128xf32, #tpu.memory_space<vmem>>, vector<1x8x128xf32>,
    %c21_1105 = arith.constant 21 : index
    %c0_1106 = arith.constant 0 : index
    %c0_1107 = arith.constant 0 : index
    %1684 = vector.load %arg1[%c21_1105, %c0_1106, %c0_1107] : memref<30x8x128xf32, #tpu.memory_space<vmem>>, vector<1x8x128xf32>
    %1685 = vector.shape_cast %1684 : vector<1x8x128xf32> to vector<8x128xf32>
    %c22_1108 = arith.constant 22 : index
    %c0_1109 = arith.constant 0 : index
    %c0_1110 = arith.constant 0 : index
    %1686 = vector.load %arg1[%c22_1108, %c0_1109, %c0_1110] : memref<30x8x128xf32, #tpu.memory_space<vmem>>, vector<1x8x128xf32>
    %1687 = vector.shape_cast %1686 : vector<1x8x128xf32> to vector<8x128xf32>
    %c23_1111 = arith.constant 23 : index
    %c0_1112 = arith.constant 0 : index
    %c0_1113 = arith.constant 0 : index
    %1688 = vector.load %arg1[%c23_1111, %c0_1112, %c0_1113] : memref<30x8x128xf32, #tpu.memory_space<vmem>>, vector<1x8x128xf32>
    %1689 = vector.shape_cast %1688 : vector<1x8x128xf32> to vector<8x128xf32>
    %c24_1114 = arith.constant 24 : index
    %c0_1115 = arith.constant 0 : index
    %c0_1116 = arith.constant 0 : index
    %1690 = vector.load %arg1[%c24_1114, %c0_1115, %c0_1116] : memref<30x8x128xf32, #tpu.memory_space<vmem>>, vector<1x8x128xf32>
    %1691 = vector.shape_cast %1690 : vector<1x8x128xf32> to vector<8x128xf32>
    %c25_1117 = arith.constant 25 : index
    %c0_1118 = arith.constant 0 : index
    %c0_1119 = arith.constant 0 : index
    %1692 = vector.load %arg1[%c25_1117, %c0_1118, %c0_1119] : memref<30x8x128xf32, #tpu.memory_space<vmem>>, vector<1x8x128xf32>
    %1693 = vector.shape_cast %1692 : vector<1x8x128xf32> to vector<8x128xf32>
    %c26_1120 = arith.constant 26 : index
    %c0_1121 = arith.constant 0 : index
    %c0_1122 = arith.constant 0 : index
    %1694 = vector.load %arg1[%c26_1120, %c0_1121, %c0_1122] : memref<30x8x128xf32, #tpu.memory_space<vmem>>, vector<1x8x128xf32>
    %1695 = vector.shape_cast %1694 : vector<1x8x128xf32> to vector<8x128xf32>
    %1696 = arith.subf %1691, %1685 : vector<8x128xf32>
    %1697 = arith.subf %1693, %1687 : vector<8x128xf32>
    %1698 = arith.subf %1695, %1689 : vector<8x128xf32>
    %1699 = arith.mulf %1696, %1696 : vector<8x128xf32>
    %1700 = arith.mulf %1697, %1697 : vector<8x128xf32>
    %1701 = arith.addf %1699, %1700 : vector<8x128xf32>
    %1702 = arith.mulf %1698, %1698 : vector<8x128xf32>
    %1703 = arith.addf %1701, %1702 : vector<8x128xf32>
    %1704 = math.rsqrt %1703 : vector<8x128xf32>
    %1705 = arith.mulf %1593, %1696 : vector<8x128xf32>
    %1706 = arith.mulf %1594, %1697 : vector<8x128xf32>
    %1707 = arith.addf %1705, %1706 : vector<8x128xf32>
    %1708 = arith.mulf %1595, %1698 : vector<8x128xf32>
    %1709 = arith.addf %1707, %1708 : vector<8x128xf32>
    %1710 = arith.mulf %1709, %1601 : vector<8x128xf32>
    %1711 = arith.mulf %1710, %1704 : vector<8x128xf32>
    %1712 = math.absf %1711 : vector<8x128xf32>
    %cst_1123 = arith.constant -1.872930e-02 : f32
    %1713 = vector.broadcast %cst_1123 : f32 to vector<8x128xf32>
    %1714 = arith.mulf %1713, %1712 : vector<8x128xf32>
    %cst_1124 = arith.constant 7.426100e-02 : f32
    %1715 = vector.broadcast %cst_1124 : f32 to vector<8x128xf32>
    %1716 = arith.addf %1714, %1715 : vector<8x128xf32>
    %1717 = arith.mulf %1716, %1712 : vector<8x128xf32>
    %cst_1125 = arith.constant -0.212114394 : f32
    %1718 = vector.broadcast %cst_1125 : f32 to vector<8x128xf32>
    %1719 = arith.addf %1717, %1718 : vector<8x128xf32>
    %1720 = arith.mulf %1719, %1712 : vector<8x128xf32>
    %cst_1126 = arith.constant 1.57072878 : f32
    %1721 = vector.broadcast %cst_1126 : f32 to vector<8x128xf32>
    %1722 = arith.addf %1720, %1721 : vector<8x128xf32>
    %cst_1127 = arith.constant 1.000000e+00 : f32
    %1723 = vector.broadcast %cst_1127 : f32 to vector<8x128xf32>
    %1724 = arith.subf %1723, %1712 : vector<8x128xf32>
    %cst_1128 = arith.constant 0.000000e+00 : f32
    %1725 = vector.broadcast %cst_1128 : f32 to vector<8x128xf32>
    %1726 = arith.maximumf %1724, %1725 : vector<8x128xf32>
    %1727 = math.sqrt %1726 : vector<8x128xf32>
    %1728 = arith.mulf %1727, %1722 : vector<8x128xf32>
    %cst_1129 = arith.constant 0.000000e+00 : f32
    %1729 = vector.broadcast %cst_1129 : f32 to vector<8x128xf32>
    %1730 = arith.cmpf olt, %1711, %1729 : vector<8x128xf32>
    %cst_1130 = arith.constant 3.14159274 : f32
    %1731 = vector.broadcast %cst_1130 : f32 to vector<8x128xf32>
    %1732 = arith.subf %1731, %1728 : vector<8x128xf32>
    %1733 = arith.select %1730, %1732, %1728 : vector<8x128xi1>, vector<8x128xf32>
    %c51 = arith.constant 51 : index
    %c0_1131 = arith.constant 0 : index
    %c0_1132 = arith.constant 0 : index
    %1734 = vector.load %arg2[%c51, %c0_1131, %c0_1132] : memref<67x8x128xf32, #tpu.memory_space<vmem>>, vector<1x8x128xf32>
    %1735 = vector.shape_cast %1734 : vector<1x8x128xf32> to vector<8x128xf32>
    %1736 = vector.shape_cast %1733 : vector<8x128xf32> to vector<1x8x128xf32>
    tpu.vector_store %arg2[%c51, %c0_1131, %c0_1132], %1736 {strides = array<i32>} : memref<67x8x128xf32, #tpu.memory_space<vmem>>, vector<1x8x128xf32>,
    %1737 = arith.mulf %1594, %1698 : vector<8x128xf32>
    %1738 = arith.mulf %1595, %1697 : vector<8x128xf32>
    %1739 = arith.subf %1737, %1738 : vector<8x128xf32>
    %1740 = arith.mulf %1595, %1696 : vector<8x128xf32>
    %1741 = arith.mulf %1593, %1698 : vector<8x128xf32>
    %1742 = arith.subf %1740, %1741 : vector<8x128xf32>
    %1743 = arith.mulf %1593, %1697 : vector<8x128xf32>
    %1744 = arith.mulf %1594, %1696 : vector<8x128xf32>
    %1745 = arith.subf %1743, %1744 : vector<8x128xf32>
    %1746 = arith.mulf %1739, %1739 : vector<8x128xf32>
    %1747 = arith.mulf %1742, %1742 : vector<8x128xf32>
    %1748 = arith.addf %1746, %1747 : vector<8x128xf32>
    %1749 = arith.mulf %1745, %1745 : vector<8x128xf32>
    %1750 = arith.addf %1748, %1749 : vector<8x128xf32>
    %1751 = math.rsqrt %1750 : vector<8x128xf32>
    %1752 = arith.mulf %1636, %1739 : vector<8x128xf32>
    %1753 = arith.mulf %1639, %1742 : vector<8x128xf32>
    %1754 = arith.addf %1752, %1753 : vector<8x128xf32>
    %1755 = arith.mulf %1642, %1745 : vector<8x128xf32>
    %1756 = arith.addf %1754, %1755 : vector<8x128xf32>
    %1757 = arith.mulf %1756, %1648 : vector<8x128xf32>
    %1758 = arith.mulf %1757, %1751 : vector<8x128xf32>
    %c58 = arith.constant 58 : index
    %c0_1133 = arith.constant 0 : index
    %c0_1134 = arith.constant 0 : index
    %1759 = vector.load %arg2[%c58, %c0_1133, %c0_1134] : memref<67x8x128xf32, #tpu.memory_space<vmem>>, vector<1x8x128xf32>
    %1760 = vector.shape_cast %1759 : vector<1x8x128xf32> to vector<8x128xf32>
    %1761 = vector.shape_cast %1758 : vector<8x128xf32> to vector<1x8x128xf32>
    tpu.vector_store %arg2[%c58, %c0_1133, %c0_1134], %1761 {strides = array<i32>} : memref<67x8x128xf32, #tpu.memory_space<vmem>>, vector<1x8x128xf32>,
    %1762 = arith.mulf %1742, %1595 : vector<8x128xf32>
    %1763 = arith.mulf %1745, %1594 : vector<8x128xf32>
    %1764 = arith.subf %1762, %1763 : vector<8x128xf32>
    %1765 = arith.mulf %1745, %1593 : vector<8x128xf32>
    %1766 = arith.mulf %1739, %1595 : vector<8x128xf32>
    %1767 = arith.subf %1765, %1766 : vector<8x128xf32>
    %1768 = arith.mulf %1739, %1594 : vector<8x128xf32>
    %1769 = arith.mulf %1742, %1593 : vector<8x128xf32>
    %1770 = arith.subf %1768, %1769 : vector<8x128xf32>
    %1771 = arith.mulf %1764, %1764 : vector<8x128xf32>
    %1772 = arith.mulf %1767, %1767 : vector<8x128xf32>
    %1773 = arith.addf %1771, %1772 : vector<8x128xf32>
    %1774 = arith.mulf %1770, %1770 : vector<8x128xf32>
    %1775 = arith.addf %1773, %1774 : vector<8x128xf32>
    %1776 = math.rsqrt %1775 : vector<8x128xf32>
    %1777 = arith.mulf %1636, %1764 : vector<8x128xf32>
    %1778 = arith.mulf %1639, %1767 : vector<8x128xf32>
    %1779 = arith.addf %1777, %1778 : vector<8x128xf32>
    %1780 = arith.mulf %1642, %1770 : vector<8x128xf32>
    %1781 = arith.addf %1779, %1780 : vector<8x128xf32>
    %1782 = arith.mulf %1781, %1648 : vector<8x128xf32>
    %1783 = arith.mulf %1782, %1776 : vector<8x128xf32>
    %c65 = arith.constant 65 : index
    %c0_1135 = arith.constant 0 : index
    %c0_1136 = arith.constant 0 : index
    %1784 = vector.load %arg2[%c65, %c0_1135, %c0_1136] : memref<67x8x128xf32, #tpu.memory_space<vmem>>, vector<1x8x128xf32>
    %1785 = vector.shape_cast %1784 : vector<1x8x128xf32> to vector<8x128xf32>
    %1786 = vector.shape_cast %1783 : vector<8x128xf32> to vector<1x8x128xf32>
    tpu.vector_store %arg2[%c65, %c0_1135, %c0_1136], %1786 {strides = array<i32>} : memref<67x8x128xf32, #tpu.memory_space<vmem>>, vector<1x8x128xf32>,
    %c24_1137 = arith.constant 24 : index
    %c0_1138 = arith.constant 0 : index
    %c0_1139 = arith.constant 0 : index
    %1787 = vector.load %arg1[%c24_1137, %c0_1138, %c0_1139] : memref<30x8x128xf32, #tpu.memory_space<vmem>>, vector<1x8x128xf32>
    %1788 = vector.shape_cast %1787 : vector<1x8x128xf32> to vector<8x128xf32>
    %c25_1140 = arith.constant 25 : index
    %c0_1141 = arith.constant 0 : index
    %c0_1142 = arith.constant 0 : index
    %1789 = vector.load %arg1[%c25_1140, %c0_1141, %c0_1142] : memref<30x8x128xf32, #tpu.memory_space<vmem>>, vector<1x8x128xf32>
    %1790 = vector.shape_cast %1789 : vector<1x8x128xf32> to vector<8x128xf32>
    %c26_1143 = arith.constant 26 : index
    %c0_1144 = arith.constant 0 : index
    %c0_1145 = arith.constant 0 : index
    %1791 = vector.load %arg1[%c26_1143, %c0_1144, %c0_1145] : memref<30x8x128xf32, #tpu.memory_space<vmem>>, vector<1x8x128xf32>
    %1792 = vector.shape_cast %1791 : vector<1x8x128xf32> to vector<8x128xf32>
    %c27_1146 = arith.constant 27 : index
    %c0_1147 = arith.constant 0 : index
    %c0_1148 = arith.constant 0 : index
    %1793 = vector.load %arg1[%c27_1146, %c0_1147, %c0_1148] : memref<30x8x128xf32, #tpu.memory_space<vmem>>, vector<1x8x128xf32>
    %1794 = vector.shape_cast %1793 : vector<1x8x128xf32> to vector<8x128xf32>
    %c28_1149 = arith.constant 28 : index
    %c0_1150 = arith.constant 0 : index
    %c0_1151 = arith.constant 0 : index
    %1795 = vector.load %arg1[%c28_1149, %c0_1150, %c0_1151] : memref<30x8x128xf32, #tpu.memory_space<vmem>>, vector<1x8x128xf32>
    %1796 = vector.shape_cast %1795 : vector<1x8x128xf32> to vector<8x128xf32>
    %c29_1152 = arith.constant 29 : index
    %c0_1153 = arith.constant 0 : index
    %c0_1154 = arith.constant 0 : index
    %1797 = vector.load %arg1[%c29_1152, %c0_1153, %c0_1154] : memref<30x8x128xf32, #tpu.memory_space<vmem>>, vector<1x8x128xf32>
    %1798 = vector.shape_cast %1797 : vector<1x8x128xf32> to vector<8x128xf32>
    %1799 = arith.subf %1794, %1788 : vector<8x128xf32>
    %1800 = arith.subf %1796, %1790 : vector<8x128xf32>
    %1801 = arith.subf %1798, %1792 : vector<8x128xf32>
    %1802 = arith.mulf %1799, %1799 : vector<8x128xf32>
    %1803 = arith.mulf %1800, %1800 : vector<8x128xf32>
    %1804 = arith.addf %1802, %1803 : vector<8x128xf32>
    %1805 = arith.mulf %1801, %1801 : vector<8x128xf32>
    %1806 = arith.addf %1804, %1805 : vector<8x128xf32>
    %1807 = math.rsqrt %1806 : vector<8x128xf32>
    %1808 = arith.mulf %1696, %1799 : vector<8x128xf32>
    %1809 = arith.mulf %1697, %1800 : vector<8x128xf32>
    %1810 = arith.addf %1808, %1809 : vector<8x128xf32>
    %1811 = arith.mulf %1698, %1801 : vector<8x128xf32>
    %1812 = arith.addf %1810, %1811 : vector<8x128xf32>
    %1813 = arith.mulf %1812, %1704 : vector<8x128xf32>
    %1814 = arith.mulf %1813, %1807 : vector<8x128xf32>
    %1815 = math.absf %1814 : vector<8x128xf32>
    %cst_1155 = arith.constant -1.872930e-02 : f32
    %1816 = vector.broadcast %cst_1155 : f32 to vector<8x128xf32>
    %1817 = arith.mulf %1816, %1815 : vector<8x128xf32>
    %cst_1156 = arith.constant 7.426100e-02 : f32
    %1818 = vector.broadcast %cst_1156 : f32 to vector<8x128xf32>
    %1819 = arith.addf %1817, %1818 : vector<8x128xf32>
    %1820 = arith.mulf %1819, %1815 : vector<8x128xf32>
    %cst_1157 = arith.constant -0.212114394 : f32
    %1821 = vector.broadcast %cst_1157 : f32 to vector<8x128xf32>
    %1822 = arith.addf %1820, %1821 : vector<8x128xf32>
    %1823 = arith.mulf %1822, %1815 : vector<8x128xf32>
    %cst_1158 = arith.constant 1.57072878 : f32
    %1824 = vector.broadcast %cst_1158 : f32 to vector<8x128xf32>
    %1825 = arith.addf %1823, %1824 : vector<8x128xf32>
    %cst_1159 = arith.constant 1.000000e+00 : f32
    %1826 = vector.broadcast %cst_1159 : f32 to vector<8x128xf32>
    %1827 = arith.subf %1826, %1815 : vector<8x128xf32>
    %cst_1160 = arith.constant 0.000000e+00 : f32
    %1828 = vector.broadcast %cst_1160 : f32 to vector<8x128xf32>
    %1829 = arith.maximumf %1827, %1828 : vector<8x128xf32>
    %1830 = math.sqrt %1829 : vector<8x128xf32>
    %1831 = arith.mulf %1830, %1825 : vector<8x128xf32>
    %cst_1161 = arith.constant 0.000000e+00 : f32
    %1832 = vector.broadcast %cst_1161 : f32 to vector<8x128xf32>
    %1833 = arith.cmpf olt, %1814, %1832 : vector<8x128xf32>
    %cst_1162 = arith.constant 3.14159274 : f32
    %1834 = vector.broadcast %cst_1162 : f32 to vector<8x128xf32>
    %1835 = arith.subf %1834, %1831 : vector<8x128xf32>
    %1836 = arith.select %1833, %1835, %1831 : vector<8x128xi1>, vector<8x128xf32>
    %c52 = arith.constant 52 : index
    %c0_1163 = arith.constant 0 : index
    %c0_1164 = arith.constant 0 : index
    %1837 = vector.load %arg2[%c52, %c0_1163, %c0_1164] : memref<67x8x128xf32, #tpu.memory_space<vmem>>, vector<1x8x128xf32>
    %1838 = vector.shape_cast %1837 : vector<1x8x128xf32> to vector<8x128xf32>
    %1839 = vector.shape_cast %1836 : vector<8x128xf32> to vector<1x8x128xf32>
    tpu.vector_store %arg2[%c52, %c0_1163, %c0_1164], %1839 {strides = array<i32>} : memref<67x8x128xf32, #tpu.memory_space<vmem>>, vector<1x8x128xf32>,
    %1840 = arith.mulf %1697, %1801 : vector<8x128xf32>
    %1841 = arith.mulf %1698, %1800 : vector<8x128xf32>
    %1842 = arith.subf %1840, %1841 : vector<8x128xf32>
    %1843 = arith.mulf %1698, %1799 : vector<8x128xf32>
    %1844 = arith.mulf %1696, %1801 : vector<8x128xf32>
    %1845 = arith.subf %1843, %1844 : vector<8x128xf32>
    %1846 = arith.mulf %1696, %1800 : vector<8x128xf32>
    %1847 = arith.mulf %1697, %1799 : vector<8x128xf32>
    %1848 = arith.subf %1846, %1847 : vector<8x128xf32>
    %1849 = arith.mulf %1842, %1842 : vector<8x128xf32>
    %1850 = arith.mulf %1845, %1845 : vector<8x128xf32>
    %1851 = arith.addf %1849, %1850 : vector<8x128xf32>
    %1852 = arith.mulf %1848, %1848 : vector<8x128xf32>
    %1853 = arith.addf %1851, %1852 : vector<8x128xf32>
    %1854 = math.rsqrt %1853 : vector<8x128xf32>
    %1855 = arith.mulf %1739, %1842 : vector<8x128xf32>
    %1856 = arith.mulf %1742, %1845 : vector<8x128xf32>
    %1857 = arith.addf %1855, %1856 : vector<8x128xf32>
    %1858 = arith.mulf %1745, %1848 : vector<8x128xf32>
    %1859 = arith.addf %1857, %1858 : vector<8x128xf32>
    %1860 = arith.mulf %1859, %1751 : vector<8x128xf32>
    %1861 = arith.mulf %1860, %1854 : vector<8x128xf32>
    %c59 = arith.constant 59 : index
    %c0_1165 = arith.constant 0 : index
    %c0_1166 = arith.constant 0 : index
    %1862 = vector.load %arg2[%c59, %c0_1165, %c0_1166] : memref<67x8x128xf32, #tpu.memory_space<vmem>>, vector<1x8x128xf32>
    %1863 = vector.shape_cast %1862 : vector<1x8x128xf32> to vector<8x128xf32>
    %1864 = vector.shape_cast %1861 : vector<8x128xf32> to vector<1x8x128xf32>
    tpu.vector_store %arg2[%c59, %c0_1165, %c0_1166], %1864 {strides = array<i32>} : memref<67x8x128xf32, #tpu.memory_space<vmem>>, vector<1x8x128xf32>,
    %1865 = arith.mulf %1845, %1698 : vector<8x128xf32>
    %1866 = arith.mulf %1848, %1697 : vector<8x128xf32>
    %1867 = arith.subf %1865, %1866 : vector<8x128xf32>
    %1868 = arith.mulf %1848, %1696 : vector<8x128xf32>
    %1869 = arith.mulf %1842, %1698 : vector<8x128xf32>
    %1870 = arith.subf %1868, %1869 : vector<8x128xf32>
    %1871 = arith.mulf %1842, %1697 : vector<8x128xf32>
    %1872 = arith.mulf %1845, %1696 : vector<8x128xf32>
    %1873 = arith.subf %1871, %1872 : vector<8x128xf32>
    %1874 = arith.mulf %1867, %1867 : vector<8x128xf32>
    %1875 = arith.mulf %1870, %1870 : vector<8x128xf32>
    %1876 = arith.addf %1874, %1875 : vector<8x128xf32>
    %1877 = arith.mulf %1873, %1873 : vector<8x128xf32>
    %1878 = arith.addf %1876, %1877 : vector<8x128xf32>
    %1879 = math.rsqrt %1878 : vector<8x128xf32>
    %1880 = arith.mulf %1739, %1867 : vector<8x128xf32>
    %1881 = arith.mulf %1742, %1870 : vector<8x128xf32>
    %1882 = arith.addf %1880, %1881 : vector<8x128xf32>
    %1883 = arith.mulf %1745, %1873 : vector<8x128xf32>
    %1884 = arith.addf %1882, %1883 : vector<8x128xf32>
    %1885 = arith.mulf %1884, %1751 : vector<8x128xf32>
    %1886 = arith.mulf %1885, %1879 : vector<8x128xf32>
    %c66 = arith.constant 66 : index
    %c0_1167 = arith.constant 0 : index
    %c0_1168 = arith.constant 0 : index
    %1887 = vector.load %arg2[%c66, %c0_1167, %c0_1168] : memref<67x8x128xf32, #tpu.memory_space<vmem>>, vector<1x8x128xf32>
    %1888 = vector.shape_cast %1887 : vector<1x8x128xf32> to vector<8x128xf32>
    %1889 = vector.shape_cast %1886 : vector<8x128xf32> to vector<1x8x128xf32>
    tpu.vector_store %arg2[%c66, %c0_1167, %c0_1168], %1889 {strides = array<i32>} : memref<67x8x128xf32, #tpu.memory_space<vmem>>, vector<1x8x128xf32>,
    return
  }
  func.func @transform_0(%arg0: i32) -> (i32, i32, i32) {
    %c0_i32 = arith.constant 0 : i32
    %c0_i32_0 = arith.constant 0 : i32
    %c0_i32_1 = arith.constant 0 : i32
    return %c0_i32, %arg0, %c0_i32_0 : i32, i32, i32
  }
  func.func @transform_1(%arg0: i32) -> (i32, i32, i32) {
    %c0_i32 = arith.constant 0 : i32
    %c0_i32_0 = arith.constant 0 : i32
    %c0_i32_1 = arith.constant 0 : i32
    return %c0_i32, %arg0, %c0_i32_0 : i32, i32, i32
  }
}

</mosaic_0001>

<bundles_post_ra>
// kernel: tpu_custom_call.1
= control target key start
LH: loop header
LB: loop body
LE: loop exit
PB: predicated region body
PF: predicated region fallthrough
CT: control target
= control target key end

     0   :  { %6 = vsyncpa [#allocation3], 0  ;;  %s3672_s0 = inlined_call_operand.hbm [shape: f32[30,8,128], index: 0, kind: input, shape index: {}]   ;;  %s3673_s1 = inlined_call_operand.hbm [shape: f32[67,8,128], index: 1, kind: output, shape index: {}]  }
   0x1   :  { %7 = vsyncpa [#allocation4], 0  ;;  %s2020_s6 = smov [#allocation2]  }
   0x2   :  { %s13_s7 = sshll.u32 %s2020_s6, 4  ;;  %s14_s7 = int_to_ptr.vmem [resolvable:$true] %s13_s7 }
   0x3   :  { %s1984_s8 = scalar_lea.vmem %s14_s7, 3840  ;;  %p1989_p1 = scmp.lt.s32.totalorder %s14_s7, %s14_s7 }
   0x4   :  { %p1985_p0 = scmp.ne.s32.totalorder %s14_s7, %s1984_s8  ;;  %p1990_p2 = scmp.lt.s32.totalorder %s1984_s8, %s1984_s8 }
   0x6   :  { %p1991_p3 = por %p1990_p2, %p1989_p1 }
   0x8   :  { %p1992_p4 = pnand %p1991_p3, %p1985_p0 }
   0xa   :  { %1995 = shalt.err (!%p1992_p4)
}
   0xb   :  { %s2021_s9 = smov 128   ;;  %s2022_s10 = smov 8  }
   0xc   :  { %19 = dma.hbm_to_vmem [thread:$0]  %s3672_s0, 3840, %s14_s7, [#allocation3], %s2021_s9, %s2021_s9, %s2022_s10  }
   0xd   :  { %2016 = dma.done.wait [#allocation3], 3840  }
   0xe   :  { %2017 = vsyncadd [#allocation3], 4294963456  ;;  %v2040_v0 = vld [vmem:[#allocation2] sm:$0xff]  ;;  %v2042_v1 = vld [vmem:[#allocation2 + $0x8] sm:$0xff]  ;;  %s2023_s0 = smov [#allocation5]  }
   0xf   :  { %v2044_v2 = vld [vmem:[#allocation2 + $0x10] sm:$0xff]  ;;  %v2046_v3 = vld [vmem:[#allocation2 + $0x18] sm:$0xff]  ;;  %v2048_v4 = vld [vmem:[#allocation2 + $0x20] sm:$0xff]  ;;  %s1806_s13 = sshll.u32 %s2023_s0, 4  ;;  %s1807_s13 = int_to_ptr.vmem [resolvable:$true] %s1806_s13 }
  0x10   :  { %v2050_v5 = vld [vmem:[#allocation2 + $0x28] sm:$0xff]  ;;  %v34_v6 = vsub.f32 %v2046_v3, %v2040_v0  ;;  %v35_v7 = vsub.f32 %v2048_v4, %v2042_v1  ;;  %v2058_v9 = vld [vmem:[#allocation2 + $0x30] sm:$0xff]  ;;  %v2060_v10 = vld [vmem:[#allocation2 + $0x38] sm:$0xff]  ;;  %s1996_s14 = scalar_lea.vmem %s1807_s13, 8576  ;;  %p2001_p6 = scmp.lt.s32.totalorder %s1807_s13, %s1807_s13 }
  0x11   :  { %v36_v8 = vsub.f32 %v2050_v5, %v2044_v2  ;;  %v2062_v11 = vld [vmem:[#allocation2 + $0x40] sm:$0xff]  ;;  %v59_v12 = vsub.f32 %v2058_v9, %v2046_v3  ;;  %v60_v13 = vsub.f32 %v2060_v10, %v2048_v4  ;;  %v2070_v15 = vld [vmem:[#allocation2 + $0x48] sm:$0xff]  ;;  %v2072_v16 = vld [vmem:[#allocation2 + $0x50] sm:$0xff]  ;;  %v2133_v61 = vsub.f32 %v2058_v9, %v2040_v0  ;;  %p1997_p5 = scmp.ne.s32.totalorder %s1807_s13, %s1996_s14  ;;  %p2002_p7 = scmp.lt.s32.totalorder %s1996_s14, %s1996_s14 }
  0x12   :  { %v61_v14 = vsub.f32 %v2062_v11, %v2050_v5  ;;  %v2074_v17 = vld [vmem:[#allocation2 + $0x58] sm:$0xff]  ;;  %v37_v18 = vmul.f32 %v34_v6, %v34_v6  ;;  %v38_v19 = vmul.f32 %v35_v7, %v35_v7  ;;  %v85_v21 = vsub.f32 %v2070_v15, %v2058_v9  ;;  %v2078_v22 = vld [vmem:[#allocation2 + $0x60] sm:$0xff]  ;;  %v2080_v23 = vld [vmem:[#allocation2 + $0x68] sm:$0xff] }
  0x13   :  { %v40_v20 = vmul.f32 %v36_v8, %v36_v8  ;;  %v2082_v24 = vld [vmem:[#allocation2 + $0x70] sm:$0xff]  ;;  %v62_v25 = vmul.f32 %v59_v12, %v59_v12  ;;  %v63_v26 = vmul.f32 %v60_v13, %v60_v13  ;;  %v86_v28 = vsub.f32 %v2072_v16, %v2060_v10  ;;  %v2094_v37 = vld [vmem:[#allocation2 + $0x78] sm:$0xff]  ;;  %v2100_v44 = vld [vmem:[#allocation2 + $0x80] sm:$0xff]  ;;  %p2003_p8 = por %p2002_p7, %p2001_p6 }
  0x14   :  { %v65_v27 = vmul.f32 %v61_v14, %v61_v14  ;;  %v39_v29 = vadd.f32 %v38_v19, %v37_v18  ;;  %v87_v30 = vsub.f32 %v2074_v17, %v2062_v11  ;;  %v88_v31 = vmul.f32 %v85_v21, %v85_v21  ;;  %v2102_v45 = vld [vmem:[#allocation2 + $0x88] sm:$0xff]  ;;  %v2107_v47 = vld [vmem:[#allocation2 + $0x90] sm:$0xff]  ;;  %v2109_v48 = vld [vmem:[#allocation2 + $0x98] sm:$0xff] }
  0x15   :  { %v111_v32 = vsub.f32 %v2078_v22, %v2070_v15  ;;  %v64_v33 = vadd.f32 %v63_v26, %v62_v25  ;;  %v89_v34 = vmul.f32 %v86_v28, %v86_v28  ;;  %v112_v35 = vsub.f32 %v2080_v23, %v2072_v16  ;;  %v2111_v49 = vld [vmem:[#allocation2 + $0xa0] sm:$0xff]  ;;  %v2126_v58 = vld [vmem:[#allocation2 + $0xa8] sm:$0xff]  ;;  %v2128_v59 = vld [vmem:[#allocation2 + $0xb0] sm:$0xff]  ;;  %p2004_p9 = pnand %p2003_p8, %p1997_p5 }
  0x16   :  { %v113_v36 = vsub.f32 %v2082_v24, %v2074_v17  ;;  %v2096_v38 = vadd.f32 %v40_v20, %v39_v29  ;;  %v91_v39 = vmul.f32 %v87_v30, %v87_v30  ;;  %v137_v46 = vsub.f32 %v2094_v37, %v2078_v22  ;;  %v2138_v8 = vld [vmem:[#allocation2 + $0xb8] sm:$0xff]  ;;  %v2144_v19 = vld [vmem:[#allocation2 + $0xc0] sm:$0xff]  ;;  %v2146_v20 = vld [vmem:[#allocation2 + $0xc8] sm:$0xff] }
  0x17   :  { %v114_v40 = vmul.f32 %v111_v32, %v111_v32  ;;  %v2098_v41 = vadd.f32 %v65_v27, %v64_v33  ;;  %v90_v42 = vadd.f32 %v89_v34, %v88_v31  ;;  %v115_v43 = vmul.f32 %v112_v35, %v112_v35  ;;  %v2148_v21 = vld [vmem:[#allocation2 + $0xd0] sm:$0xff]  ;;  %v2162_v34 = vld [vmem:[#allocation2 + $0xd8] sm:$0xff] }
  0x18   :  { %1822 = vrsqrt.f32 %v2096_v38  ;;  %v117_v50 = vmul.f32 %v113_v36, %v113_v36  ;;  %v138_v53 = vsub.f32 %v2100_v44, %v2080_v23  ;;  %v139_v54 = vsub.f32 %v2102_v45, %v2082_v24 }
  0x19   :  { %1824 = vrsqrt.f32 %v2098_v41  ;;  %v2114_v51 = vadd.f32 %v91_v39, %v90_v42  ;;  %v116_v52 = vadd.f32 %v115_v43, %v114_v40  ;;  %v163_v55 = vsub.f32 %v2107_v47, %v2094_v37 }
  0x1a   :  { %v164_v56 = vsub.f32 %v2109_v48, %v2100_v44  ;;  %v165_v57 = vsub.f32 %v2111_v49, %v2102_v45  ;;  %v140_v60 = vmul.f32 %v137_v46, %v137_v46  ;;  %vm44_vm0 = vcmp.eq.f32.partialorder %v2096_v38, inf }
  0x1b   :  { %1826 = vrsqrt.f32 %v2114_v51  ;;  %v2136_v62 = vadd.f32 %v117_v50, %v116_v52  ;;  %v141_v63 = vmul.f32 %v138_v53, %v138_v53  ;;  %v143_v6 = vmul.f32 %v139_v54, %v139_v54  ;;  %v2170_v50 = vld [vmem:[#allocation2 + $0xe0] sm:$0xff]  ;;  %v2175_v52 = vld [vmem:[#allocation2 + $0xe8] sm:$0xff] }
  0x1c   :  { %v166_v7 = vmul.f32 %v163_v55, %v163_v55  ;;  %v167_v12 = vmul.f32 %v164_v56, %v164_v56  ;;  %v169_v13 = vmul.f32 %v165_v57, %v165_v57  ;;  %v189_v14 = vsub.f32 %v2126_v58, %v2107_v47 }
  0x1d   :  { %v190_v18 = vsub.f32 %v2128_v59, %v2109_v48  ;;  %vm46_vm1 = vcmp.eq.f32.partialorder %v2096_v38, 0.0  ;;  %v47_v25 = vand.u32 2147483648, %v2096_v38  ;;  %vm69_vm2 = vcmp.eq.f32.partialorder %v2098_v41, inf }
  0x1e   :  { %1828 = vrsqrt.f32 %v2136_v62  ;;  %v142_v26 = vadd.f32 %v141_v63, %v140_v60  ;;  %v168_v27 = vadd.f32 %v167_v12, %v166_v7  ;;  %v191_v28 = vsub.f32 %v2138_v8, %v2111_v49 }
  0x1f   :  { %v192_v29 = vmul.f32 %v189_v14, %v189_v14  ;;  %v193_v30 = vmul.f32 %v190_v18, %v190_v18  ;;  %v215_v31 = vsub.f32 %v2144_v19, %v2126_v58  ;;  %v216_v32 = vsub.f32 %v2146_v20, %v2128_v59 }
  0x20   :  { %v217_v33 = vsub.f32 %v2148_v21, %v2138_v8  ;;  %vm71_vm3 = vcmp.eq.f32.partialorder %v2098_v41, 0.0  ;;  %v2165_v35 = vadd.f32 %v143_v6, %v142_v26  ;;  %v2167_v36 = vadd.f32 %v169_v13, %v168_v27 }
  0x21   :  { %v195_v39 = vmul.f32 %v191_v28, %v191_v28  ;;  %v72_v40 = vand.u32 2147483648, %v2098_v41  ;;  %v194_v42 = vadd.f32 %v193_v30, %v192_v29  ;;  %v218_v43 = vmul.f32 %v215_v31, %v215_v31 }
  0x22   :  { %v219_v46 = vmul.f32 %v216_v32, %v216_v32  ;;  %vm95_vm4 = vcmp.eq.f32.partialorder %v2114_v51, inf  ;;  %vm97_vm5 = vcmp.eq.f32.partialorder %v2114_v51, 0.0  ;;  %1830 = vrsqrt.f32 %v2165_v35 }
  0x23   :  { %v241_v53 = vsub.f32 %v2162_v34, %v2144_v19  ;;  %v98_v55 = vand.u32 2147483648, %v2114_v51  ;;  %vm121_vm6 = vcmp.eq.f32.partialorder %v2136_v62, inf  ;;  %1832 = vrsqrt.f32 %v2167_v36 }
  0x24   :  { %v221_v56 = vmul.f32 %v217_v33, %v217_v33  ;;  %v2183_v63 = vadd.f32 %v195_v39, %v194_v42  ;;  %v220_v6 = vadd.f32 %v219_v46, %v218_v43  ;;  %v242_v7 = vsub.f32 %v2170_v50, %v2146_v20 }
  0x25   :  { %v1823_v54 = vpop.eup %1822  ;;  %vm123_vm7 = vcmp.eq.f32.partialorder %v2136_v62, 0.0  ;;  %v124_v13 = vand.u32 2147483648, %v2136_v62  ;;  %v243_v14 = vsub.f32 %v2175_v52, %v2148_v21  ;;  %v150_v26 = vand.u32 2147483648, %v2165_v35 }
  0x26   :  { %v1825_v57 = vpop.eup %1824  ;;  %v43_v60 = vmul.f32 %v1823_v54, %v2096_v38  ;;  %1834 = vrsqrt.f32 %v2183_v63  ;;  %v244_v27 = vmul.f32 %v241_v53, %v241_v53  ;;  %vm147_vm8 = vcmp.eq.f32.partialorder %v2165_v35, inf }
  0x27   :  { %v68_v12 = vmul.f32 %v1825_v57, %v2098_v41  ;;  %v2203_v31 = vadd.f32 %v221_v56, %v220_v6  ;;  %v265_v32 = vsub.f32 %v2060_v10, %v2042_v1  ;;  %vm149_vm9 = vcmp.eq.f32.partialorder %v2165_v35, 0.0 }
  0x28   :  { %v45_v18 = vsel %vm44_vm0, %v2096_v38, %v43_v60  ;;  %v1827_v28 = vpop.eup %1826  ;;  %v245_v38 = vmul.f32 %v242_v7, %v242_v7  ;;  %vm173_vm10 = vcmp.eq.f32.partialorder %v2167_v36, inf  ;;  %vm175_vm11 = vcmp.eq.f32.partialorder %v2167_v36, 0.0 }
  0x29   :  { %v48_v29 = vsel %vm46_vm1, %v47_v25, %v45_v18  ;;  %v70_v30 = vsel %vm69_vm2, %v2098_v41, %v68_v12  ;;  %v94_v39 = vmul.f32 %v1827_v28, %v2114_v51  ;;  %v247_v25 = vmul.f32 %v243_v14, %v243_v14 }
  0x2a   :  { %49 = vst [vmem:[#allocation5] sm:$0xff] %v48_v29  ;;  %v73_v33 = vsel %vm71_vm3, %v72_v40, %v70_v30  ;;  %v176_v42 = vand.u32 2147483648, %v2167_v36  ;;  %1836 = vrsqrt.f32 %v2203_v31  ;;  %v246_v40 = vadd.f32 %v245_v38, %v244_v27 }
  0x2b   :  { %75 = vst [vmem:[#allocation5 + $0x8] sm:$0xff] %v73_v33  ;;  %v1829_v43 = vpop.eup %1828  ;;  %v96_v41 = vsel %vm95_vm4, %v2114_v51, %v94_v39  ;;  %v266_v46 = vsub.f32 %v2062_v11, %v2044_v2  ;;  %v267_v53 = vmul.f32 %v2133_v61, %v2133_v61  ;;  %v268_v57 = vmul.f32 %v265_v32, %v265_v32 }
  0x2c   :  { %v99_v54 = vsel %vm97_vm5, %v98_v55, %v96_v41  ;;  %v120_v56 = vmul.f32 %v1829_v43, %v2136_v62  ;;  %v287_v60 = vsub.f32 %v2070_v15, %v2046_v3  ;;  %v2227_v6 = vadd.f32 %v247_v25, %v246_v40 }
  0x2d   :  { %101 = vst [vmem:[#allocation5 + $0x10] sm:$0xff] %v99_v54  ;;  %v270_v7 = vmul.f32 %v266_v46, %v266_v46  ;;  %v288_v12 = vsub.f32 %v2072_v16, %v2048_v4  ;;  %v289_v14 = vsub.f32 %v2074_v17, %v2050_v5  ;;  %vm199_vm12 = vcmp.eq.f32.partialorder %v2183_v63, inf }
  0x2e   :  { %v122_v51 = vsel %vm121_vm6, %v2136_v62, %v120_v56  ;;  %v269_v61 = vadd.f32 %v268_v57, %v267_v53  ;;  %v310_v55 = vsub.f32 %v2078_v22, %v2058_v9  ;;  %vm201_vm13 = vcmp.eq.f32.partialorder %v2183_v63, 0.0 }
  0x2f   :  { %v125_v18 = vsel %vm123_vm7, %v124_v13, %v122_v51  ;;  %1838 = vrsqrt.f32 %v2227_v6  ;;  %v290_v27 = vmul.f32 %v287_v60, %v287_v60  ;;  %v1831_v28 = vpop.eup %1830  ;;  %v202_v29 = vand.u32 2147483648, %v2183_v63 }
  0x30   :  { %127 = vst [vmem:[#allocation5 + $0x18] sm:$0xff] %v125_v18  ;;  %v2244_v30 = vadd.f32 %v270_v7, %v269_v61  ;;  %v291_v32 = vmul.f32 %v288_v12, %v288_v12  ;;  %v293_v33 = vmul.f32 %v289_v14, %v289_v14  ;;  %v1833_v39 = vpop.eup %1832  ;;  %v146_v38 = vmul.f32 %v1831_v28, %v2165_v35 }
  0x31   :  { %v311_v62 = vsub.f32 %v2080_v23, %v2060_v10  ;;  %v312_v13 = vsub.f32 %v2082_v24, %v2062_v11  ;;  %v313_v25 = vmul.f32 %v310_v55, %v310_v55  ;;  %v172_v43 = vmul.f32 %v1833_v39, %v2167_v36 }
  0x32   :  { %vm225_vm14 = vcmp.eq.f32.partialorder %v2203_v31, inf  ;;  %vm227_vm15 = vcmp.eq.f32.partialorder %v2203_v31, 0.0  ;;  %1840 = vrsqrt.f32 %v2244_v30  ;;  %v148_v41 = vsel %vm147_vm8, %v2165_v35, %v146_v38 }
  0x33   :  { %v228_v40 = vand.u32 2147483648, %v2203_v31  ;;  %v292_v46 = vadd.f32 %v291_v32, %v290_v27  ;;  %v314_v53 = vmul.f32 %v311_v62, %v311_v62  ;;  %v1835_v54 = vpop.eup %1834  ;;  %v151_v56 = vsel %vm149_vm9, %v150_v26, %v148_v41 }
  0x34   :  { %v174_v57 = vsel %vm173_vm10, %v2167_v36, %v172_v43  ;;  %v316_v60 = vmul.f32 %v312_v13, %v312_v13  ;;  %v333_v7 = vsub.f32 %v2094_v37, %v2070_v15  ;;  %153 = vst [vmem:[#allocation5 + $0x20] sm:$0xff] %v151_v56  ;;  %v198_v14 = vmul.f32 %v1835_v54, %v2183_v63 }
  0x35   :  { %v177_v12 = vsel %vm175_vm11, %v176_v42, %v174_v57  ;;  %v2271_v51 = vadd.f32 %v293_v33, %v292_v46  ;;  %v315_v61 = vadd.f32 %v314_v53, %v313_v25  ;;  %vm251_vm0 = vcmp.eq.f32.partialorder %v2227_v6, inf }
  0x36   :  { %179 = vst [vmem:[#allocation5 + $0x28] sm:$0xff] %v177_v12  ;;  %vm253_vm1 = vcmp.eq.f32.partialorder %v2227_v6, 0.0  ;;  %v334_v35 = vsub.f32 %v2100_v44, %v2072_v16  ;;  %v335_v26 = vsub.f32 %v2102_v45, %v2074_v17  ;;  %v200_v36 = vsel %vm199_vm12, %v2183_v63, %v198_v14 }
  0x37   :  { %v1837_v55 = vpop.eup %1836  ;;  %1842 = vrsqrt.f32 %v2271_v51  ;;  %v336_v42 = vmul.f32 %v333_v7, %v333_v7  ;;  %v356_v18 = vsub.f32 %v2107_v47, %v2078_v22  ;;  %v203_v27 = vsel %vm201_vm13, %v202_v29, %v200_v36 }
  0x38   :  { %v224_v28 = vmul.f32 %v1837_v55, %v2203_v31  ;;  %v254_v32 = vand.u32 2147483648, %v2227_v6  ;;  %v2289_v33 = vadd.f32 %v316_v60, %v315_v61  ;;  %205 = vst [vmem:[#allocation5 + $0x30] sm:$0xff] %v203_v27  ;;  %v337_v39 = vmul.f32 %v334_v35, %v334_v35 }
  0x39   :  { %v339_v38 = vmul.f32 %v335_v26, %v335_v26  ;;  %v357_v62 = vsub.f32 %v2109_v48, %v2080_v23  ;;  %v358_v13 = vsub.f32 %v2111_v49, %v2082_v24  ;;  %vm274_vm2 = vcmp.eq.f32.partialorder %v2244_v30, inf }
  0x3a   :  { %v226_v63 = vsel %vm225_vm14, %v2203_v31, %v224_v28  ;;  %vm276_vm3 = vcmp.eq.f32.partialorder %v2244_v30, 0.0  ;;  %1844 = vrsqrt.f32 %v2289_v33  ;;  %v277_v25 = vand.u32 2147483648, %v2244_v30 }
  0x3b   :  { %v229_v29 = vsel %vm227_vm15, %v228_v40, %v226_v63  ;;  %v338_v43 = vadd.f32 %v337_v39, %v336_v42  ;;  %v359_v41 = vmul.f32 %v356_v18, %v356_v18  ;;  %v360_v53 = vmul.f32 %v357_v62, %v357_v62 }
  0x3c   :  { %v1839_v46 = vpop.eup %1838  ;;  %231 = vst [vmem:[#allocation5 + $0x38] sm:$0xff] %v229_v29  ;;  %v362_v54 = vmul.f32 %v358_v13, %v358_v13  ;;  %v379_v56 = vsub.f32 %v2126_v58, %v2094_v37  ;;  %v380_v57 = vsub.f32 %v2128_v59, %v2100_v44  ;;  %vm297_vm4 = vcmp.eq.f32.partialorder %v2271_v51, inf }
  0x3d   :  { %v250_v60 = vmul.f32 %v1839_v46, %v2227_v6  ;;  %v2310_v31 = vadd.f32 %v339_v38, %v338_v43  ;;  %v381_v40 = vsub.f32 %v2138_v8, %v2102_v45  ;;  %v361_v7 = vadd.f32 %v360_v53, %v359_v41 }
  0x3e   :  { %v382_v12 = vmul.f32 %v379_v56, %v379_v56  ;;  %v383_v14 = vmul.f32 %v380_v57, %v380_v57  ;;  %v402_v61 = vsub.f32 %v2144_v19, %v2107_v47  ;;  %vm299_vm5 = vcmp.eq.f32.partialorder %v2271_v51, 0.0 }
  0x3f   :  { %v1841_v35 = vpop.eup %1840  ;;  %v252_v26 = vsel %vm251_vm0, %v2227_v6, %v250_v60  ;;  %1846 = vrsqrt.f32 %v2310_v31  ;;  %v403_v55 = vsub.f32 %v2146_v20, %v2109_v48  ;;  %v300_v18 = vand.u32 2147483648, %v2271_v51 }
  0x40   :  { %v255_v36 = vsel %vm253_vm1, %v254_v32, %v252_v26  ;;  %v273_v42 = vmul.f32 %v1841_v35, %v2244_v30  ;;  %v2327_v27 = vadd.f32 %v362_v54, %v361_v7  ;;  %vm320_vm6 = vcmp.eq.f32.partialorder %v2289_v33, inf }
  0x41   :  { %257 = vst [vmem:[#allocation5 + $0x40] sm:$0xff] %v255_v36  ;;  %v384_v28 = vadd.f32 %v383_v14, %v382_v12  ;;  %v385_v39 = vmul.f32 %v381_v40, %v381_v40  ;;  %v404_v38 = vsub.f32 %v2148_v21, %v2111_v49  ;;  %vm322_vm7 = vcmp.eq.f32.partialorder %v2289_v33, 0.0 }
  0x42   :  { %v275_v62 = vsel %vm274_vm2, %v2244_v30, %v273_v42  ;;  %1848 = vrsqrt.f32 %v2327_v27  ;;  %v405_v6 = vmul.f32 %v402_v61, %v402_v61  ;;  %v323_v13 = vand.u32 2147483648, %v2289_v33 }
  0x43   :  { %v278_v32 = vsel %vm276_vm3, %v277_v25, %v275_v62  ;;  %v2340_v63 = vadd.f32 %v385_v39, %v384_v28  ;;  %v406_v29 = vmul.f32 %v403_v55, %v403_v55  ;;  %v408_v41 = vmul.f32 %v404_v38, %v404_v38 }
  0x44   :  { %v1843_v43 = vpop.eup %1842  ;;  %280 = vst [vmem:[#allocation5 + $0x48] sm:$0xff] %v278_v32  ;;  %v425_v46 = vsub.f32 %v2162_v34, %v2126_v58  ;;  %v426_v53 = vsub.f32 %v2170_v50, %v2128_v59  ;;  %v427_v54 = vsub.f32 %v2175_v52, %v2138_v8  ;;  %vm343_vm8 = vcmp.eq.f32.partialorder %v2310_v31, inf }
  0x45   :  { %v296_v30 = vmul.f32 %v1843_v43, %v2271_v51  ;;  %vm345_vm9 = vcmp.eq.f32.partialorder %v2310_v31, 0.0  ;;  %1850 = vrsqrt.f32 %v2340_v63  ;;  %v346_v25 = vand.u32 2147483648, %v2310_v31 }
  0x46   :  { %v407_v56 = vadd.f32 %v406_v29, %v405_v6  ;;  %v428_v57 = vmul.f32 %v425_v46, %v425_v46  ;;  %v429_v60 = vmul.f32 %v426_v53, %v426_v53  ;;  %v431_v12 = vmul.f32 %v427_v54, %v427_v54 }
  0x47   :  { %v1845_v40 = vpop.eup %1844  ;;  %v298_v7 = vsel %vm297_vm4, %v2271_v51, %v296_v30  ;;  %v448_v14 = vsub.f32 %v2070_v15, %v2040_v0  ;;  %v449_v61 = vsub.f32 %v2072_v16, %v2042_v1  ;;  %v450_v42 = vsub.f32 %v2074_v17, %v2044_v2 }
  0x48   :  { %v301_v35 = vsel %vm299_vm5, %v300_v18, %v298_v7  ;;  %v319_v26 = vmul.f32 %v1845_v40, %v2289_v33  ;;  %v2363_v55 = vadd.f32 %v408_v41, %v407_v56  ;;  %v430_v36 = vadd.f32 %v429_v60, %v428_v57 }
  0x49   :  { %303 = vst [vmem:[#allocation5 + $0x50] sm:$0xff] %v301_v35  ;;  %v451_v28 = vmul.f32 %v448_v14, %v448_v14  ;;  %v452_v39 = vmul.f32 %v449_v61, %v449_v61  ;;  %v471_v0 = vsub.f32 %v2078_v22, %v2046_v3  ;;  %vm366_vm10 = vcmp.eq.f32.partialorder %v2327_v27, inf }
  0x4a   :  { %v321_v1 = vsel %vm320_vm6, %v2289_v33, %v319_v26  ;;  %vm368_vm11 = vcmp.eq.f32.partialorder %v2327_v27, 0.0  ;;  %1852 = vrsqrt.f32 %v2363_v55  ;;  %v369_v2 = vand.u32 2147483648, %v2327_v27 }
  0x4b   :  { %v324_v51 = vsel %vm322_vm7, %v323_v13, %v321_v1  ;;  %v2378_v18 = vadd.f32 %v431_v12, %v430_v36  ;;  %v453_v38 = vadd.f32 %v452_v39, %v451_v28  ;;  %vm389_vm12 = vcmp.eq.f32.partialorder %v2340_v63, inf }
  0x4c   :  { %v1847_v62 = vpop.eup %1846  ;;  %326 = vst [vmem:[#allocation5 + $0x58] sm:$0xff] %v324_v51  ;;  %v454_v3 = vmul.f32 %v450_v42, %v450_v42  ;;  %v472_v6 = vsub.f32 %v2080_v23, %v2048_v4  ;;  %v473_v32 = vsub.f32 %v2082_v24, %v2050_v5  ;;  %vm391_vm13 = vcmp.eq.f32.partialorder %v2340_v63, 0.0 }
  0x4d   :  { %v342_v29 = vmul.f32 %v1847_v62, %v2310_v31  ;;  %1854 = vrsqrt.f32 %v2378_v18  ;;  %v474_v33 = vmul.f32 %v471_v0, %v471_v0  ;;  %v392_v13 = vand.u32 2147483648, %v2340_v63 }
  0x4e   :  { %v2389_v43 = vadd.f32 %v454_v3, %v453_v38  ;;  %v475_v41 = vmul.f32 %v472_v6, %v472_v6  ;;  %v477_v46 = vmul.f32 %v473_v32, %v473_v32  ;;  %v494_v5 = vsub.f32 %v2094_v37, %v2058_v9 }
  0x4f   :  { %v1849_v53 = vpop.eup %1848  ;;  %v344_v4 = vsel %vm343_vm8, %v2310_v31, %v342_v29  ;;  %v495_v54 = vsub.f32 %v2100_v44, %v2060_v10  ;;  %v496_v30 = vsub.f32 %v2102_v45, %v2062_v11  ;;  %vm412_vm14 = vcmp.eq.f32.partialorder %v2363_v55, inf }
  0x50   :  { %v347_v56 = vsel %vm345_vm9, %v346_v25, %v344_v4  ;;  %v365_v57 = vmul.f32 %v1849_v53, %v2327_v27  ;;  %1856 = vrsqrt.f32 %v2389_v43  ;;  %vm414_vm15 = vcmp.eq.f32.partialorder %v2363_v55, 0.0 }
  0x51   :  { %349 = vst [vmem:[#allocation5 + $0x60] sm:$0xff] %v347_v56  ;;  %v415_v9 = vand.u32 2147483648, %v2363_v55  ;;  %v476_v60 = vadd.f32 %v475_v41, %v474_v33  ;;  %v497_v40 = vmul.f32 %v494_v5, %v494_v5  ;;  %v498_v31 = vmul.f32 %v495_v54, %v495_v54 }
  0x52   :  { %v1851_v10 = vpop.eup %1850  ;;  %v367_v11 = vsel %vm366_vm10, %v2327_v27, %v365_v57  ;;  %v500_v25 = vmul.f32 %v496_v30, %v496_v30  ;;  %v517_v7 = vsub.f32 %v2107_v47, %v2070_v15  ;;  %v518_v35 = vsub.f32 %v2109_v48, %v2072_v16 }
  0x53   :  { %v370_v12 = vsel %vm368_vm11, %v369_v2, %v367_v11  ;;  %v388_v14 = vmul.f32 %v1851_v10, %v2340_v63  ;;  %v2415_v61 = vadd.f32 %v477_v46, %v476_v60  ;;  %vm435_vm0 = vcmp.eq.f32.partialorder %v2378_v18, inf }
  0x54   :  { %372 = vst [vmem:[#allocation5 + $0x68] sm:$0xff] %v370_v12  ;;  %v499_v26 = vadd.f32 %v498_v31, %v497_v40  ;;  %v519_v36 = vsub.f32 %v2111_v49, %v2074_v17  ;;  %v540_v15 = vsub.f32 %v2126_v58, %v2078_v22  ;;  %vm437_vm1 = vcmp.eq.f32.partialorder %v2378_v18, 0.0 }
  0x55   :  { %v390_v27 = vsel %vm389_vm12, %v2340_v63, %v388_v14  ;;  %1858 = vrsqrt.f32 %v2415_v61  ;;  %v520_v42 = vmul.f32 %v517_v7, %v517_v7  ;;  %v438_v28 = vand.u32 2147483648, %v2378_v18 }
  0x56   :  { %v393_v16 = vsel %vm391_vm13, %v392_v13, %v390_v27  ;;  %v2432_v39 = vadd.f32 %v500_v25, %v499_v26  ;;  %v521_v17 = vmul.f32 %v518_v35, %v518_v35  ;;  %v523_v1 = vmul.f32 %v519_v36, %v519_v36  ;;  %v2486_v27 = vld [vmem:[#allocation2] sm:$0xff] }
  0x57   :  { %v1853_v0 = vpop.eup %1852  ;;  %395 = vst [vmem:[#allocation5 + $0x70] sm:$0xff] %v393_v16  ;;  %v541_v51 = vsub.f32 %v2128_v59, %v2080_v23  ;;  %v542_v2 = vsub.f32 %v2138_v8, %v2082_v24  ;;  %v543_v38 = vmul.f32 %v540_v15, %v540_v15  ;;  %vm458_vm2 = vcmp.eq.f32.partialorder %v2389_v43, inf  ;;  %v2490_v16 = vld [vmem:[#allocation2 + $0x10] sm:$0xff] }
  0x58   :  { %v411_v62 = vmul.f32 %v1853_v0, %v2363_v55  ;;  %vm460_vm3 = vcmp.eq.f32.partialorder %v2389_v43, 0.0  ;;  %1860 = vrsqrt.f32 %v2432_v39  ;;  %v461_v63 = vand.u32 2147483648, %v2389_v43 }
  0x59   :  { %v522_v3 = vadd.f32 %v521_v17, %v520_v42  ;;  %v544_v6 = vmul.f32 %v541_v51, %v541_v51  ;;  %v546_v32 = vmul.f32 %v542_v2, %v542_v2  ;;  %v563_v13 = vsub.f32 %v2144_v19, %v2094_v37  ;;  %v2488_v42 = vld [vmem:[#allocation2 + $0x8] sm:$0xff] }
  0x5a   :  { %v1855_v29 = vpop.eup %1854  ;;  %v413_v33 = vsel %vm412_vm14, %v2363_v55, %v411_v62  ;;  %v564_v41 = vsub.f32 %v2146_v20, %v2100_v44  ;;  %v565_v46 = vsub.f32 %v2148_v21, %v2102_v45  ;;  %vm481_vm4 = vcmp.eq.f32.partialorder %v2415_v61, inf }
  0x5b   :  { %v416_v53 = vsel %vm414_vm15, %v415_v9, %v413_v33  ;;  %v434_v4 = vmul.f32 %v1855_v29, %v2378_v18  ;;  %v2455_v5 = vadd.f32 %v523_v1, %v522_v3  ;;  %v545_v54 = vadd.f32 %v544_v6, %v543_v38  ;;  %v2505_v3 = vld [vmem:[#allocation2 + $0x20] sm:$0xff] }
  0x5c   :  { %418 = vst [vmem:[#allocation5 + $0x78] sm:$0xff] %v416_v53  ;;  %v566_v30 = vmul.f32 %v563_v13, %v563_v13  ;;  %v567_v56 = vmul.f32 %v564_v41, %v564_v41  ;;  %v586_v57 = vsub.f32 %v2162_v34, %v2107_v47  ;;  %vm483_vm5 = vcmp.eq.f32.partialorder %v2415_v61, 0.0  ;;  %v2519_v53 = vld [vmem:[#allocation2 + $0x28] sm:$0xff] }
  0x5d   :  { %v1857_v60 = vpop.eup %1856  ;;  %v436_v40 = vsel %vm435_vm0, %v2378_v18, %v434_v4  ;;  %1862 = vrsqrt.f32 %v2455_v5  ;;  %v569_v55 = vmul.f32 %v565_v46, %v565_v46  ;;  %v484_v11 = vand.u32 2147483648, %v2415_v61  ;;  %v2521_v4 = vld [vmem:[#allocation2 + $0x30] sm:$0xff] }
  0x5e   :  { %v439_v9 = vsel %vm437_vm1, %v438_v28, %v436_v40  ;;  %v457_v10 = vmul.f32 %v1857_v60, %v2389_v43  ;;  %v2469_v31 = vadd.f32 %v546_v32, %v545_v54  ;;  %vm504_vm6 = vcmp.eq.f32.partialorder %v2432_v39, inf  ;;  %v2538_v40 = vld [vmem:[#allocation2 + $0x38] sm:$0xff] }
  0x5f   :  { %441 = vst [vmem:[#allocation5 + $0x80] sm:$0xff] %v439_v9  ;;  %v568_v25 = vadd.f32 %v567_v56, %v566_v30  ;;  %v587_v7 = vsub.f32 %v2170_v50, %v2109_v48  ;;  %v588_v12 = vsub.f32 %v2175_v52, %v2111_v49  ;;  %vm506_vm7 = vcmp.eq.f32.partialorder %v2432_v39, 0.0 }
  0x60   :  { %v459_v18 = vsel %vm458_vm2, %v2389_v43, %v457_v10  ;;  %1864 = vrsqrt.f32 %v2469_v31  ;;  %v589_v14 = vmul.f32 %v586_v57, %v586_v57  ;;  %v507_v26 = vand.u32 2147483648, %v2432_v39 }
  0x61   :  { %v462_v35 = vsel %vm460_vm3, %v461_v63, %v459_v18  ;;  %v2484_v36 = vadd.f32 %v569_v55, %v568_v25  ;;  %v590_v15 = vmul.f32 %v587_v7, %v587_v7  ;;  %v592_v17 = vmul.f32 %v588_v12, %v588_v12 }
  0x62   :  { %v1859_v28 = vpop.eup %1858  ;;  %464 = vst [vmem:[#allocation5 + $0x88] sm:$0xff] %v462_v35  ;;  %v609_v0 = vsub.f32 %v2078_v22, %v2486_v27  ;;  %v610_v43 = vsub.f32 %v2080_v23, %v2488_v42  ;;  %v611_v1 = vsub.f32 %v2082_v24, %v2490_v16  ;;  %vm527_vm8 = vcmp.eq.f32.partialorder %v2455_v5, inf  ;;  %v2503_v22 = vld [vmem:[#allocation2 + $0x18] sm:$0xff]  ;;  %v2553_v35 = vld [vmem:[#allocation2 + $0x48] sm:$0xff] }
  0x63   :  { %v480_v51 = vmul.f32 %v1859_v28, %v2415_v61  ;;  %vm529_vm9 = vcmp.eq.f32.partialorder %v2455_v5, 0.0  ;;  %1866 = vrsqrt.f32 %v2484_v36  ;;  %v530_v2 = vand.u32 2147483648, %v2455_v5 }
  0x64   :  { %v591_v38 = vadd.f32 %v590_v15, %v589_v14  ;;  %v612_v62 = vmul.f32 %v609_v0, %v609_v0  ;;  %v613_v63 = vmul.f32 %v610_v43, %v610_v43  ;;  %v615_v6 = vmul.f32 %v611_v1, %v611_v1  ;;  %v2568_v43 = vld [vmem:[#allocation2 + $0x60] sm:$0xff] }
  0x65   :  { %v1861_v23 = vpop.eup %1860  ;;  %v482_v24 = vsel %vm481_vm4, %v2415_v61, %v480_v51  ;;  %v632_v32 = vsub.f32 %v2094_v37, %v2503_v22  ;;  %v633_v29 = vsub.f32 %v2100_v44, %v2505_v3  ;;  %v634_v54 = vsub.f32 %v2102_v45, %v2519_v53 }
  0x66   :  { %v485_v33 = vsel %vm483_vm5, %v484_v11, %v482_v24  ;;  %v503_v13 = vmul.f32 %v1861_v23, %v2432_v39  ;;  %v2517_v41 = vadd.f32 %v592_v17, %v591_v38  ;;  %v614_v46 = vadd.f32 %v613_v63, %v612_v62  ;;  %v2575_v38 = vld [vmem:[#allocation2 + $0x68] sm:$0xff]  ;;  %v2579_v62 = vld [vmem:[#allocation2 + $0x70] sm:$0xff]  ;;  %v718_v63 = vld [vmem:[#allocation2 + $0x78] sm:$0xff] }
  0x67   :  { %487 = vst [vmem:[#allocation5 + $0x90] sm:$0xff] %v485_v33  ;;  %v635_v37 = vmul.f32 %v632_v32, %v632_v32  ;;  %v636_v30 = vmul.f32 %v633_v29, %v633_v29  ;;  %v655_v44 = vsub.f32 %v2107_v47, %v2521_v4  ;;  %vm550_vm10 = vcmp.eq.f32.partialorder %v2469_v31, inf  ;;  %v2540_v47 = vld [vmem:[#allocation2 + $0x40] sm:$0xff] }
  0x68   :  { %v505_v61 = vsel %vm504_vm6, %v2432_v39, %v503_v13  ;;  %vm552_vm11 = vcmp.eq.f32.partialorder %v2469_v31, 0.0  ;;  %1868 = vrsqrt.f32 %v2517_v41  ;;  %v553_v45 = vand.u32 2147483648, %v2469_v31 }
  0x69   :  { %v508_v56 = vsel %vm506_vm7, %v507_v26, %v505_v61  ;;  %v2536_v57 = vadd.f32 %v615_v6, %v614_v46  ;;  %v637_v60 = vadd.f32 %v636_v30, %v635_v37  ;;  %vm573_vm12 = vcmp.eq.f32.partialorder %v2484_v36, inf  ;;  %v2555_v26 = vld [vmem:[#allocation2 + $0x50] sm:$0xff]  ;;  %v719_v37 = vld [vmem:[#allocation2 + $0x80] sm:$0xff]  ;;  %v720_v30 = vld [vmem:[#allocation2 + $0x88] sm:$0xff] }
  0x6a   :  { %v1863_v55 = vpop.eup %1862  ;;  %510 = vst [vmem:[#allocation5 + $0x98] sm:$0xff] %v508_v56  ;;  %v638_v9 = vmul.f32 %v634_v54, %v634_v54  ;;  %v656_v10 = vsub.f32 %v2109_v48, %v2538_v40  ;;  %v657_v39 = vsub.f32 %v2111_v49, %v2540_v47  ;;  %vm575_vm13 = vcmp.eq.f32.partialorder %v2484_v36, 0.0  ;;  %v2557_v48 = vld [vmem:[#allocation2 + $0x58] sm:$0xff] }
  0x6b   :  { %v526_v11 = vmul.f32 %v1863_v55, %v2455_v5  ;;  %1870 = vrsqrt.f32 %v2536_v57  ;;  %v658_v25 = vmul.f32 %v655_v44, %v655_v44  ;;  %v576_v7 = vand.u32 2147483648, %v2484_v36 }
  0x6c   :  { %v2551_v12 = vadd.f32 %v638_v9, %v637_v60  ;;  %v659_v18 = vmul.f32 %v656_v10, %v656_v10  ;;  %v661_v14 = vmul.f32 %v657_v39, %v657_v39  ;;  %v678_v28 = vsub.f32 %v2126_v58, %v2553_v35 }
  0x6d   :  { %v1865_v49 = vpop.eup %1864  ;;  %v528_v15 = vsel %vm527_vm8, %v2455_v5, %v526_v11  ;;  %v679_v17 = vsub.f32 %v2128_v59, %v2555_v26  ;;  %v680_v0 = vsub.f32 %v2138_v8, %v2557_v48  ;;  %vm596_vm14 = vcmp.eq.f32.partialorder %v2517_v41, inf }
  0x6e   :  { %v531_v1 = vsel %vm529_vm9, %v530_v2, %v528_v15  ;;  %v549_v51 = vmul.f32 %v1865_v49, %v2469_v31  ;;  %1872 = vrsqrt.f32 %v2551_v12  ;;  %vm598_vm15 = vcmp.eq.f32.partialorder %v2517_v41, 0.0 }
  0x6f   :  { %533 = vst [vmem:[#allocation5 + $0xa0] sm:$0xff] %v531_v1  ;;  %v599_v58 = vand.u32 2147483648, %v2517_v41  ;;  %v660_v59 = vadd.f32 %v659_v18, %v658_v25  ;;  %v681_v8 = vmul.f32 %v678_v28, %v678_v28  ;;  %v682_v23 = vmul.f32 %v679_v17, %v679_v17 }
  0x70   :  { %v1867_v5 = vpop.eup %1866  ;;  %v551_v2 = vsel %vm550_vm10, %v2469_v31, %v549_v51  ;;  %v684_v24 = vmul.f32 %v680_v0, %v680_v0  ;;  %v701_v6 = vsub.f32 %v2144_v19, %v2568_v43  ;;  %v702_v13 = vsub.f32 %v2146_v20, %v2575_v38 }
  0x71   :  { %v554_v32 = vsel %vm552_vm11, %v553_v45, %v551_v2  ;;  %v572_v29 = vmul.f32 %v1867_v5, %v2484_v36  ;;  %v2589_v33 = vadd.f32 %v661_v14, %v660_v59  ;;  %vm619_vm0 = vcmp.eq.f32.partialorder %v2536_v57, inf  ;;  %v2628_v59 = vld [vmem:[#allocation2 + $0x98] sm:$0xff] }
  0x72   :  { %556 = vst [vmem:[#allocation5 + $0xa8] sm:$0xff] %v554_v32  ;;  %v683_v46 = vadd.f32 %v682_v23, %v681_v8  ;;  %v703_v54 = vsub.f32 %v2148_v21, %v2579_v62  ;;  %v724_v19 = vsub.f32 %v2162_v34, %v718_v63  ;;  %vm621_vm1 = vcmp.eq.f32.partialorder %v2536_v57, 0.0  ;;  %v2630_v8 = vld [vmem:[#allocation2 + $0xa0] sm:$0xff] }
  0x73   :  { %v574_v31 = vsel %vm573_vm12, %v2484_v36, %v572_v29  ;;  %1874 = vrsqrt.f32 %v2589_v33  ;;  %v704_v20 = vmul.f32 %v701_v6, %v701_v6  ;;  %v622_v61 = vand.u32 2147483648, %v2536_v57 }
  0x74   :  { %v577_v44 = vsel %vm575_vm13, %v576_v7, %v574_v31  ;;  %v2605_v56 = vadd.f32 %v684_v24, %v683_v46  ;;  %v705_v21 = vmul.f32 %v702_v13, %v702_v13  ;;  %v707_v34 = vmul.f32 %v703_v54, %v703_v54  ;;  %v2614_v7 = vld [vmem:[#allocation2 + $0x90] sm:$0xff]  ;;  %v2650_v46 = vld [vmem:[#allocation2 + $0xa8] sm:$0xff]  ;;  %v2654_v54 = vld [vmem:[#allocation2 + $0xb8] sm:$0xff] }
  0x75   :  { %v1869_v45 = vpop.eup %1868  ;;  %579 = vst [vmem:[#allocation5 + $0xb0] sm:$0xff] %v577_v44  ;;  %v725_v60 = vsub.f32 %v2170_v50, %v719_v37  ;;  %v726_v55 = vsub.f32 %v2175_v52, %v720_v30  ;;  %v727_v9 = vmul.f32 %v724_v19, %v724_v19  ;;  %vm642_vm2 = vcmp.eq.f32.partialorder %v2551_v12, inf }
  0x76   :  { %v595_v10 = vmul.f32 %v1869_v45, %v2517_v41  ;;  %vm644_vm3 = vcmp.eq.f32.partialorder %v2551_v12, 0.0  ;;  %1876 = vrsqrt.f32 %v2605_v56  ;;  %v645_v36 = vand.u32 2147483648, %v2551_v12 }
  0x77   :  { %v706_v39 = vadd.f32 %v705_v21, %v704_v20  ;;  %v728_v11 = vmul.f32 %v725_v60, %v725_v60  ;;  %v730_v25 = vmul.f32 %v726_v55, %v726_v55  ;;  %v747_v52 = vsub.f32 %v718_v63, %v2486_v27  ;;  %v2672_v55 = vld [vmem:[#allocation2 + $0xc0] sm:$0xff] }
  0x78   :  { %v1871_v18 = vpop.eup %1870  ;;  %v597_v50 = vsel %vm596_vm14, %v2517_v41, %v595_v10  ;;  %v748_v14 = vsub.f32 %v719_v37, %v2488_v42  ;;  %v749_v49 = vsub.f32 %v720_v30, %v2490_v16  ;;  %vm665_vm4 = vcmp.eq.f32.partialorder %v2589_v33, inf }
  0x79   :  { %v600_v15 = vsel %vm598_vm15, %v599_v58, %v597_v50  ;;  %v618_v28 = vmul.f32 %v1871_v18, %v2536_v57  ;;  %v2625_v17 = vadd.f32 %v707_v34, %v706_v39  ;;  %v729_v0 = vadd.f32 %v728_v11, %v727_v9  ;;  %v2683_v18 = vld [vmem:[#allocation2 + $0xd8] sm:$0xff] }
  0x7a   :  { %602 = vst [vmem:[#allocation5 + $0xb8] sm:$0xff] %v600_v15  ;;  %v750_v1 = vmul.f32 %v747_v52, %v747_v52  ;;  %v751_v51 = vmul.f32 %v748_v14, %v748_v14  ;;  %v770_v63 = vsub.f32 %v2614_v7, %v2503_v22  ;;  %vm667_vm5 = vcmp.eq.f32.partialorder %v2589_v33, 0.0 }
  0x7b   :  { %v1873_v5 = vpop.eup %1872  ;;  %v620_v41 = vsel %vm619_vm0, %v2536_v57, %v618_v28  ;;  %1878 = vrsqrt.f32 %v2625_v17  ;;  %v753_v58 = vmul.f32 %v749_v49, %v749_v49  ;;  %v668_v24 = vand.u32 2147483648, %v2589_v33  ;;  %v2652_v57 = vld [vmem:[#allocation2 + $0xb0] sm:$0xff] }
  0x7c   :  { %v623_v2 = vsel %vm621_vm1, %v622_v61, %v620_v41  ;;  %v641_v23 = vmul.f32 %v1873_v5, %v2551_v12  ;;  %v2643_v6 = vadd.f32 %v730_v25, %v729_v0  ;;  %vm688_vm6 = vcmp.eq.f32.partialorder %v2605_v56, inf  ;;  %v2681_v25 = vld [vmem:[#allocation2 + $0xd0] sm:$0xff] }
  0x7d   :  { %625 = vst [vmem:[#allocation5 + $0xc0] sm:$0xff] %v623_v2  ;;  %v752_v32 = vadd.f32 %v751_v51, %v750_v1  ;;  %v771_v29 = vsub.f32 %v2628_v59, %v2505_v3  ;;  %v772_v13 = vsub.f32 %v2630_v8, %v2519_v53  ;;  %vm690_vm7 = vcmp.eq.f32.partialorder %v2605_v56, 0.0  ;;  %v2701_v2 = vld [vmem:[#allocation2 + $0xe8] sm:$0xff] }
  0x7e   :  { %v643_v37 = vsel %vm642_vm2, %v2551_v12, %v641_v23  ;;  %1880 = vrsqrt.f32 %v2643_v6  ;;  %v773_v30 = vmul.f32 %v770_v63, %v770_v63  ;;  %v691_v31 = vand.u32 2147483648, %v2605_v56  ;;  %v2674_v12 = vld [vmem:[#allocation2 + $0xc8] sm:$0xff] }
  0x7f   :  { %v646_v19 = vsel %vm644_vm3, %v645_v36, %v643_v37  ;;  %v2664_v20 = vadd.f32 %v753_v58, %v752_v32  ;;  %v774_v44 = vmul.f32 %v771_v29, %v771_v29  ;;  %v776_v21 = vmul.f32 %v772_v13, %v772_v13  ;;  %v2699_v58 = vld [vmem:[#allocation2 + $0xe0] sm:$0xff] }
  0x80   :  { %v1875_v61 = vpop.eup %1874  ;;  %648 = vst [vmem:[#allocation5 + $0xc8] sm:$0xff] %v646_v19  ;;  %v793_v45 = vsub.f32 %v2650_v46, %v2521_v4  ;;  %v794_v34 = vsub.f32 %v2652_v57, %v2538_v40  ;;  %v795_v60 = vsub.f32 %v2654_v54, %v2540_v47  ;;  %vm711_vm8 = vcmp.eq.f32.partialorder %v2625_v17, inf }
  0x81   :  { %v664_v9 = vmul.f32 %v1875_v61, %v2589_v33  ;;  %vm713_vm9 = vcmp.eq.f32.partialorder %v2625_v17, 0.0  ;;  %1882 = vrsqrt.f32 %v2664_v20  ;;  %v714_v10 = vand.u32 2147483648, %v2625_v17 }
  0x82   :  { %v775_v36 = vadd.f32 %v774_v44, %v773_v30  ;;  %v796_v39 = vmul.f32 %v793_v45, %v793_v45  ;;  %v797_v11 = vmul.f32 %v794_v34, %v794_v34  ;;  %v799_v14 = vmul.f32 %v795_v60, %v795_v60 }
  0x83   :  { %v1877_v50 = vpop.eup %1876  ;;  %v666_v52 = vsel %vm665_vm4, %v2589_v33, %v664_v9  ;;  %v816_v49 = vsub.f32 %v2672_v55, %v2553_v35  ;;  %v817_v15 = vsub.f32 %v2674_v12, %v2555_v26  ;;  %v818_v63 = vsub.f32 %v2681_v25, %v2557_v48 }
  0x84   :  { %v669_v28 = vsel %vm667_vm5, %v668_v24, %v666_v52  ;;  %v687_v0 = vmul.f32 %v1877_v50, %v2605_v56  ;;  %v2695_v1 = vadd.f32 %v776_v21, %v775_v36  ;;  %v798_v51 = vadd.f32 %v797_v11, %v796_v39 }
  0x85   :  { %671 = vst [vmem:[#allocation5 + $0xd0] sm:$0xff] %v669_v28  ;;  %v819_v5 = vmul.f32 %v816_v49, %v816_v49  ;;  %v820_v41 = vmul.f32 %v817_v15, %v817_v15  ;;  %v839_v23 = vsub.f32 %v2683_v18, %v2568_v43  ;;  %vm734_vm10 = vcmp.eq.f32.partialorder %v2643_v6, inf }
  0x86   :  { %v689_v33 = vsel %vm688_vm6, %v2605_v56, %v687_v0  ;;  %vm736_vm11 = vcmp.eq.f32.partialorder %v2643_v6, 0.0  ;;  %1884 = vrsqrt.f32 %v2695_v1  ;;  %v737_v32 = vand.u32 2147483648, %v2643_v6 }
  0x87   :  { %v692_v24 = vsel %vm690_vm7, %v691_v31, %v689_v33  ;;  %v2714_v29 = vadd.f32 %v799_v14, %v798_v51  ;;  %v821_v13 = vadd.f32 %v820_v41, %v819_v5  ;;  %vm757_vm12 = vcmp.eq.f32.partialorder %v2664_v20, inf }
  0x88   :  { %v1879_v37 = vpop.eup %1878  ;;  %694 = vst [vmem:[#allocation5 + $0xd8] sm:$0xff] %v692_v24  ;;  %v822_v43 = vmul.f32 %v818_v63, %v818_v63  ;;  %v840_v30 = vsub.f32 %v2699_v58, %v2575_v38  ;;  %v841_v19 = vsub.f32 %v2701_v2, %v2579_v62  ;;  %vm759_vm13 = vcmp.eq.f32.partialorder %v2664_v20, 0.0 }
  0x89   :  { %v710_v44 = vmul.f32 %v1879_v37, %v2625_v17  ;;  %1886 = vrsqrt.f32 %v2714_v29  ;;  %v842_v56 = vmul.f32 %v839_v23, %v839_v23  ;;  %v760_v31 = vand.u32 2147483648, %v2664_v20 }
  0x8a   :  { %v2725_v61 = vadd.f32 %v822_v43, %v821_v13  ;;  %v843_v21 = vmul.f32 %v840_v30, %v840_v30  ;;  %v845_v45 = vmul.f32 %v841_v19, %v841_v19  ;;  %v862_v62 = vsub.f32 %v2614_v7, %v2486_v27 }
  0x8b   :  { %v1881_v34 = vpop.eup %1880  ;;  %v712_v38 = vsel %vm711_vm8, %v2625_v17, %v710_v44  ;;  %v863_v60 = vsub.f32 %v2628_v59, %v2488_v42  ;;  %v864_v9 = vsub.f32 %v2630_v8, %v2490_v16  ;;  %vm780_vm14 = vcmp.eq.f32.partialorder %v2695_v1, inf }
  0x8c   :  { %v715_v36 = vsel %vm713_vm9, %v714_v10, %v712_v38  ;;  %v733_v39 = vmul.f32 %v1881_v34, %v2643_v6  ;;  %1888 = vrsqrt.f32 %v2725_v61  ;;  %vm782_vm15 = vcmp.eq.f32.partialorder %v2695_v1, 0.0 }
  0x8d   :  { %717 = vst [vmem:[#allocation5 + $0xe0] sm:$0xff] %v715_v36  ;;  %v783_v7 = vand.u32 2147483648, %v2695_v1  ;;  %v844_v11 = vadd.f32 %v843_v21, %v842_v56  ;;  %v865_v50 = vmul.f32 %v862_v62, %v862_v62  ;;  %v866_v17 = vmul.f32 %v863_v60, %v863_v60 }
  0x8e   :  { %v1883_v59 = vpop.eup %1882  ;;  %v735_v8 = vsel %vm734_vm10, %v2643_v6, %v733_v39  ;;  %v868_v10 = vmul.f32 %v864_v9, %v864_v9  ;;  %v885_v52 = vsub.f32 %v2650_v46, %v2503_v22  ;;  %v886_v28 = vsub.f32 %v2652_v57, %v2505_v3 }
  0x8f   :  { %v738_v14 = vsel %vm736_vm11, %v737_v32, %v735_v8  ;;  %v756_v49 = vmul.f32 %v1883_v59, %v2664_v20  ;;  %v2751_v15 = vadd.f32 %v845_v45, %v844_v11  ;;  %vm803_vm0 = vcmp.eq.f32.partialorder %v2714_v29, inf }
  0x90   :  { %740 = vst [vmem:[#allocation5 + $0xe8] sm:$0xff] %v738_v14  ;;  %v867_v0 = vadd.f32 %v866_v17, %v865_v50  ;;  %v887_v51 = vsub.f32 %v2654_v54, %v2519_v53  ;;  %v908_v63 = vsub.f32 %v2672_v55, %v2521_v4  ;;  %vm805_vm1 = vcmp.eq.f32.partialorder %v2714_v29, 0.0 }
  0x91   :  { %v758_v6 = vsel %vm757_vm12, %v2664_v20, %v756_v49  ;;  %1890 = vrsqrt.f32 %v2751_v15  ;;  %v888_v5 = vmul.f32 %v885_v52, %v885_v52  ;;  %v806_v23 = vand.u32 2147483648, %v2714_v29 }
  0x92   :  { %v761_v41 = vsel %vm759_vm13, %v760_v31, %v758_v6  ;;  %v2768_v33 = vadd.f32 %v868_v10, %v867_v0  ;;  %v889_v24 = vmul.f32 %v886_v28, %v886_v28  ;;  %v891_v13 = vmul.f32 %v887_v51, %v887_v51 }
  0x93   :  { %v1885_v32 = vpop.eup %1884  ;;  %763 = vst [vmem:[#allocation5 + $0xf0] sm:$0xff] %v761_v41  ;;  %v909_v37 = vsub.f32 %v2674_v12, %v2538_v40  ;;  %v910_v43 = vsub.f32 %v2681_v25, %v2540_v47  ;;  %v911_v30 = vmul.f32 %v908_v63, %v908_v63  ;;  %vm826_vm2 = vcmp.eq.f32.partialorder %v2725_v61, inf }
  0x94   :  { %v779_v19 = vmul.f32 %v1885_v32, %v2695_v1  ;;  %vm828_vm3 = vcmp.eq.f32.partialorder %v2725_v61, 0.0  ;;  %1892 = vrsqrt.f32 %v2768_v33  ;;  %v829_v20 = vand.u32 2147483648, %v2725_v61 }
  0x95   :  { %v890_v44 = vadd.f32 %v889_v24, %v888_v5  ;;  %v912_v56 = vmul.f32 %v909_v37, %v909_v37  ;;  %v914_v31 = vmul.f32 %v910_v43, %v910_v43  ;;  %v931_v34 = vsub.f32 %v2683_v18, %v2553_v35 }
  0x96   :  { %v1887_v21 = vpop.eup %1886  ;;  %v781_v45 = vsel %vm780_vm14, %v2695_v1, %v779_v19  ;;  %v932_v38 = vsub.f32 %v2699_v58, %v2555_v26  ;;  %v933_v62 = vsub.f32 %v2701_v2, %v2557_v48  ;;  %vm849_vm4 = vcmp.eq.f32.partialorder %v2751_v15, inf }
  0x97   :  { %v784_v60 = vsel %vm782_vm15, %v783_v7, %v781_v45  ;;  %v802_v9 = vmul.f32 %v1887_v21, %v2714_v29  ;;  %v2791_v36 = vadd.f32 %v891_v13, %v890_v44  ;;  %v913_v39 = vadd.f32 %v912_v56, %v911_v30 }
  0x98   :  { %786 = vst [vmem:[#allocation5 + $0xf8] sm:$0xff] %v784_v60  ;;  %v934_v11 = vmul.f32 %v931_v34, %v931_v34  ;;  %v935_v50 = vmul.f32 %v932_v38, %v932_v38  ;;  %v954_v59 = vsub.f32 %v2650_v46, %v2486_v27  ;;  %vm851_vm5 = vcmp.eq.f32.partialorder %v2751_v15, 0.0 }
  0x99   :  { %v1889_v8 = vpop.eup %1888  ;;  %v804_v17 = vsel %vm803_vm0, %v2714_v29, %v802_v9  ;;  %1894 = vrsqrt.f32 %v2791_v36  ;;  %v937_v1 = vmul.f32 %v933_v62, %v933_v62  ;;  %v852_v52 = vand.u32 2147483648, %v2751_v15 }
  0x9a   :  { %v807_v7 = vsel %vm805_vm1, %v806_v23, %v804_v17  ;;  %v825_v10 = vmul.f32 %v1889_v8, %v2725_v61  ;;  %v2805_v14 = vadd.f32 %v914_v31, %v913_v39  ;;  %vm872_vm6 = vcmp.eq.f32.partialorder %v2768_v33, inf }
  0x9b   :  { %809 = vst [vmem:[#allocation5 + $0x100] sm:$0xff] %v807_v7  ;;  %v936_v46 = vadd.f32 %v935_v50, %v934_v11  ;;  %v955_v49 = vsub.f32 %v2652_v57, %v2488_v42  ;;  %v956_v28 = vsub.f32 %v2654_v54, %v2490_v16  ;;  %vm874_vm7 = vcmp.eq.f32.partialorder %v2768_v33, 0.0 }
  0x9c   :  { %v827_v29 = vsel %vm826_vm2, %v2725_v61, %v825_v10  ;;  %1896 = vrsqrt.f32 %v2805_v14  ;;  %v957_v0 = vmul.f32 %v954_v59, %v954_v59  ;;  %v875_v63 = vand.u32 2147483648, %v2768_v33 }
  0x9d   :  { %v830_v51 = vsel %vm828_vm3, %v829_v20, %v827_v29  ;;  %v2820_v6 = vadd.f32 %v937_v1, %v936_v46  ;;  %v958_v57 = vmul.f32 %v955_v49, %v955_v49  ;;  %v960_v54 = vmul.f32 %v956_v28, %v956_v28 }
  0x9e   :  { %v1891_v5 = vpop.eup %1890  ;;  %832 = vst [vmem:[#allocation5 + $0x108] sm:$0xff] %v830_v51  ;;  %v977_v41 = vsub.f32 %v2672_v55, %v2503_v22  ;;  %v978_v23 = vsub.f32 %v2674_v12, %v2505_v3  ;;  %v979_v24 = vsub.f32 %v2681_v25, %v2519_v53  ;;  %vm895_vm8 = vcmp.eq.f32.partialorder %v2791_v36, inf }
  0x9f   :  { %v848_v61 = vmul.f32 %v1891_v5, %v2751_v15  ;;  %vm897_vm9 = vcmp.eq.f32.partialorder %v2791_v36, 0.0  ;;  %1898 = vrsqrt.f32 %v2820_v6  ;;  %v898_v32 = vand.u32 2147483648, %v2791_v36 }
  0xa0   :  { %v959_v13 = vadd.f32 %v958_v57, %v957_v0  ;;  %v980_v37 = vmul.f32 %v977_v41, %v977_v41  ;;  %v981_v43 = vmul.f32 %v978_v23, %v978_v23  ;;  %v983_v20 = vmul.f32 %v979_v24, %v979_v24 }
  0xa1   :  { %v1893_v30 = vpop.eup %1892  ;;  %v850_v19 = vsel %vm849_vm4, %v2751_v15, %v848_v61  ;;  %v1000_v44 = vsub.f32 %v2683_v18, %v2521_v4  ;;  %v1001_v56 = vsub.f32 %v2699_v58, %v2538_v40  ;;  %v1002_v38 = vsub.f32 %v2701_v2, %v2540_v47 }
  0xa2   :  { %v853_v31 = vsel %vm851_vm5, %v852_v52, %v850_v19  ;;  %v871_v21 = vmul.f32 %v1893_v30, %v2768_v33  ;;  %v2843_v45 = vadd.f32 %v960_v54, %v959_v13  ;;  %v982_v34 = vadd.f32 %v981_v43, %v980_v37 }
  0xa3   :  { %855 = vst [vmem:[#allocation5 + $0x110] sm:$0xff] %v853_v31  ;;  %v1003_v62 = vmul.f32 %v1000_v44, %v1000_v44  ;;  %v1004_v60 = vmul.f32 %v1001_v56, %v1001_v56  ;;  %v1023_v9 = vsub.f32 %v2672_v55, %v2486_v27  ;;  %vm918_vm10 = vcmp.eq.f32.partialorder %v2805_v14, inf }
  0xa4   :  { %v873_v39 = vsel %vm872_vm6, %v2768_v33, %v871_v21  ;;  %vm920_vm11 = vcmp.eq.f32.partialorder %v2805_v14, 0.0  ;;  %1900 = vrsqrt.f32 %v2843_v45  ;;  %v921_v11 = vand.u32 2147483648, %v2805_v14 }
  0xa5   :  { %v876_v15 = vsel %vm874_vm7, %v875_v63, %v873_v39  ;;  %v2858_v50 = vadd.f32 %v983_v20, %v982_v34  ;;  %v1005_v59 = vadd.f32 %v1004_v60, %v1003_v62  ;;  %vm941_vm12 = vcmp.eq.f32.partialorder %v2820_v6, inf }
  0xa6   :  { %v1895_v8 = vpop.eup %1894  ;;  %878 = vst [vmem:[#allocation5 + $0x118] sm:$0xff] %v876_v15  ;;  %v1006_v55 = vmul.f32 %v1002_v38, %v1002_v38  ;;  %v1024_v17 = vsub.f32 %v2674_v12, %v2488_v42  ;;  %v1025_v1 = vsub.f32 %v2681_v25, %v2490_v16  ;;  %vm943_vm13 = vcmp.eq.f32.partialorder %v2820_v6, 0.0 }
  0xa7   :  { %v894_v7 = vmul.f32 %v1895_v8, %v2791_v36  ;;  %1902 = vrsqrt.f32 %v2858_v50  ;;  %v1026_v33 = vmul.f32 %v1023_v9, %v1023_v9  ;;  %v944_v10 = vand.u32 2147483648, %v2820_v6 }
  0xa8   :  { %v2869_v52 = vadd.f32 %v1006_v55, %v1005_v59  ;;  %v1027_v46 = vmul.f32 %v1024_v17, %v1024_v17  ;;  %v1029_v49 = vmul.f32 %v1025_v1, %v1025_v1  ;;  %v1046_v25 = vsub.f32 %v2683_v18, %v2503_v22 }
  0xa9   :  { %v1897_v28 = vpop.eup %1896  ;;  %v896_v12 = vsel %vm895_vm8, %v2791_v36, %v894_v7  ;;  %v1047_v29 = vsub.f32 %v2699_v58, %v2505_v3  ;;  %v1048_v0 = vsub.f32 %v2701_v2, %v2519_v53  ;;  %vm964_vm14 = vcmp.eq.f32.partialorder %v2843_v45, inf }
  0xaa   :  { %v899_v51 = vsel %vm897_vm9, %v898_v32, %v896_v12  ;;  %v917_v63 = vmul.f32 %v1897_v28, %v2805_v14  ;;  %1904 = vrsqrt.f32 %v2869_v52  ;;  %vm966_vm15 = vcmp.eq.f32.partialorder %v2843_v45, 0.0 }
  0xab   :  { %901 = vst [vmem:[#allocation5 + $0x120] sm:$0xff] %v899_v51  ;;  %v967_v57 = vand.u32 2147483648, %v2843_v45  ;;  %v1028_v5 = vadd.f32 %v1027_v46, %v1026_v33  ;;  %v1049_v54 = vmul.f32 %v1046_v25, %v1046_v25  ;;  %v1050_v36 = vmul.f32 %v1047_v29, %v1047_v29 }
  0xac   :  { %v1899_v41 = vpop.eup %1898  ;;  %v919_v23 = vsel %vm918_vm10, %v2805_v14, %v917_v63  ;;  %v1052_v24 = vmul.f32 %v1048_v0, %v1048_v0  ;;  %v1069_v61 = vsub.f32 %v2683_v18, %v2486_v27  ;;  %v1070_v43 = vsub.f32 %v2699_v58, %v2488_v42 }
  0xad   :  { %v922_v32 = vsel %vm920_vm11, %v921_v11, %v919_v23  ;;  %v940_v13 = vmul.f32 %v1899_v41, %v2820_v6  ;;  %v2895_v37 = vadd.f32 %v1029_v49, %v1028_v5  ;;  %vm987_vm0 = vcmp.eq.f32.partialorder %v2858_v50, inf }
  0xae   :  { %924 = vst [vmem:[#allocation5 + $0x128] sm:$0xff] %v922_v32  ;;  %v1051_v30 = vadd.f32 %v1050_v36, %v1049_v54  ;;  %v1071_v19 = vsub.f32 %v2701_v2, %v2490_v16  ;;  %v2904_v18 = vsub.f32 %v2503_v22, %v2486_v27  ;;  %vm989_vm1 = vcmp.eq.f32.partialorder %v2858_v50, 0.0 }
  0xaf   :  { %v942_v14 = vsel %vm941_vm12, %v2820_v6, %v940_v13  ;;  %1906 = vrsqrt.f32 %v2895_v37  ;;  %v1072_v58 = vmul.f32 %v1069_v61, %v1069_v61  ;;  %v990_v44 = vand.u32 2147483648, %v2858_v50 }
  0xb0   :  { %v945_v20 = vsel %vm943_vm13, %v944_v10, %v942_v14  ;;  %v2914_v56 = vadd.f32 %v1052_v24, %v1051_v30  ;;  %v1073_v2 = vmul.f32 %v1070_v43, %v1070_v43  ;;  %v1075_v27 = vmul.f32 %v1071_v19, %v1071_v19 }
  0xb1   :  { %v1901_v31 = vpop.eup %1900  ;;  %947 = vst [vmem:[#allocation5 + $0x130] sm:$0xff] %v945_v20  ;;  %v2918_v21 = vsub.f32 %v2505_v3, %v2488_v42  ;;  %v2922_v34 = vsub.f32 %v2519_v53, %v2490_v16  ;;  %v1095_v6 = vmul.f32 %v2904_v18, %v2904_v18  ;;  %vm1010_vm2 = vcmp.eq.f32.partialorder %v2869_v52, inf }
  0xb2   :  { %v963_v38 = vmul.f32 %v1901_v31, %v2843_v45  ;;  %vm1012_vm3 = vcmp.eq.f32.partialorder %v2869_v52, 0.0  ;;  %1908 = vrsqrt.f32 %v2914_v56  ;;  %v1013_v62 = vand.u32 2147483648, %v2869_v52 }
  0xb3   :  { %v1074_v60 = vadd.f32 %v1073_v2, %v1072_v58  ;;  %v1096_v42 = vmul.f32 %v2918_v21, %v2918_v21  ;;  %v1098_v16 = vmul.f32 %v2922_v34, %v2922_v34  ;;  %vm1033_vm4 = vcmp.eq.f32.partialorder %v2895_v37, inf }
  0xb4   :  { %v1903_v9 = vpop.eup %1902  ;;  %v965_v39 = vsel %vm964_vm14, %v2843_v45, %v963_v38  ;;  %v2941_v15 = vsub.f32 %v2521_v4, %v2503_v22  ;;  %v2945_v11 = vsub.f32 %v2538_v40, %v2505_v3  ;;  %v2949_v59 = vsub.f32 %v2540_v47, %v2519_v53 }
  0xb5   :  { %v968_v8 = vsel %vm966_vm15, %v967_v57, %v965_v39  ;;  %v986_v55 = vmul.f32 %v1903_v9, %v2858_v50  ;;  %v2954_v17 = vadd.f32 %v1075_v27, %v1074_v60  ;;  %v1097_v1 = vadd.f32 %v1096_v42, %v1095_v6 }
  0xb6   :  { %970 = vst [vmem:[#allocation5 + $0x138] sm:$0xff] %v968_v8  ;;  %vm1035_vm5 = vcmp.eq.f32.partialorder %v2895_v37, 0.0  ;;  %v1036_v22 = vand.u32 2147483648, %v2895_v37  ;;  %v1107_v3 = vmul.f32 %v2941_v15, %v2941_v15  ;;  %v1108_v53 = vmul.f32 %v2945_v11, %v2945_v11 }
  0xb7   :  { %v1905_v7 = vpop.eup %1904  ;;  %v988_v45 = vsel %vm987_vm0, %v2858_v50, %v986_v55  ;;  %vm1056_vm6 = vcmp.eq.f32.partialorder %v2914_v56, inf  ;;  %1910 = vrsqrt.f32 %v2954_v17  ;;  %v1110_v33 = vmul.f32 %v2949_v59, %v2949_v59 }
  0xb8   :  { %v1113_v10 = vmul.f32 %v2941_v15, %v2904_v18  ;;  %v991_v46 = vsel %vm989_vm1, %v990_v44, %v988_v45  ;;  %v1009_v49 = vmul.f32 %v1905_v7, %v2869_v52  ;;  %vm1058_vm7 = vcmp.eq.f32.partialorder %v2914_v56, 0.0 }
  0xb9   :  { %v1059_v28 = vand.u32 2147483648, %v2914_v56  ;;  %v1099_v12 = vadd.f32 %v1098_v16, %v1097_v1  ;;  %993 = vst [vmem:[#allocation5 + $0x140] sm:$0xff] %v991_v46  ;;  %v1109_v25 = vadd.f32 %v1108_v53, %v1107_v3  ;;  %v1114_v29 = vmul.f32 %v2945_v11, %v2918_v21 }
  0xba   :  { %v1116_v0 = vmul.f32 %v2949_v59, %v2922_v34  ;;  %v2982_v51 = vsub.f32 %v2553_v35, %v2521_v4  ;;  %v1011_v50 = vsel %vm1010_vm2, %v2869_v52, %v1009_v49  ;;  %v2989_v63 = vsub.f32 %v2555_v26, %v2538_v40 }
  0xbb   :  { %1912 = vrsqrt.f32 %v1099_v12  ;;  %v2993_v57 = vsub.f32 %v2557_v48, %v2540_v47  ;;  %v1014_v5 = vsel %vm1012_vm3, %v1013_v62, %v1011_v50  ;;  %v1111_v54 = vadd.f32 %v1110_v33, %v1109_v25 }
  0xbc   :  { %v1115_v41 = vadd.f32 %v1114_v29, %v1113_v10  ;;  %v1166_v4 = vmul.f32 %v2982_v51, %v2982_v51  ;;  %v1907_v35 = vpop.eup %1906  ;;  %1016 = vst [vmem:[#allocation5 + $0x148] sm:$0xff] %v1014_v5  ;;  %vm1079_vm8 = vcmp.eq.f32.partialorder %v2954_v17, inf  ;;  %v1167_v40 = vmul.f32 %v2989_v63, %v2989_v63  ;;  %v1249_v5 = vld [vmem:[#allocation2 + $0x48] sm:$0xff] }
  0xbd   :  { %v1169_v26 = vmul.f32 %v2993_v57, %v2993_v57  ;;  %v1172_v47 = vmul.f32 %v2982_v51, %v2941_v15  ;;  %v1173_v48 = vmul.f32 %v2989_v63, %v2945_v11  ;;  %v1032_v52 = vmul.f32 %v1907_v35, %v2895_v37  ;;  %v1250_v35 = vld [vmem:[#allocation2 + $0x50] sm:$0xff] }
  0xbe   :  { %v1082_v23 = vand.u32 2147483648, %v2954_v17  ;;  %1914 = vrsqrt.f32 %v1111_v54  ;;  %v1117_v36 = vadd.f32 %v1116_v0, %v1115_v41  ;;  %v1168_v24 = vadd.f32 %v1167_v40, %v1166_v4  ;;  %v3080_v54 = vld [vmem:[#allocation2 + $0x60] sm:$0xff] }
  0xbf   :  { %v1175_v61 = vmul.f32 %v2993_v57, %v2949_v59  ;;  %v1142_v32 = vmul.f32 %v2949_v59, %v2918_v21  ;;  %v1143_v13 = vmul.f32 %v2945_v11, %v2922_v34  ;;  %v1909_v43 = vpop.eup %1908  ;;  %v1034_v30 = vsel %vm1033_vm4, %v2895_v37, %v1032_v52 }
  0xc0   :  { %v1145_v19 = vmul.f32 %v2941_v15, %v2922_v34  ;;  %v1146_v14 = vmul.f32 %v2949_v59, %v2904_v18  ;;  %v1148_v58 = vmul.f32 %v2945_v11, %v2904_v18  ;;  %v1037_v20 = vsel %vm1035_vm5, %v1036_v22, %v1034_v30 }
  0xc1   :  { %v1055_v44 = vmul.f32 %v1909_v43, %v2914_v56  ;;  %v1170_v2 = vadd.f32 %v1169_v26, %v1168_v24  ;;  %v1174_v31 = vadd.f32 %v1173_v48, %v1172_v47  ;;  %1039 = vst [vmem:[#allocation5 + $0x150] sm:$0xff] %v1037_v20  ;;  %v3028_v27 = vsub.f32 %v1142_v32, %v1143_v13  ;;  %v3096_v24 = vld [vmem:[#allocation2 + $0x70] sm:$0xff] }
  0xc2   :  { %v3030_v6 = vsub.f32 %v1145_v19, %v1146_v14  ;;  %v1149_v34 = vmul.f32 %v2941_v15, %v2918_v21  ;;  %v1201_v38 = vmul.f32 %v2993_v57, %v2945_v11  ;;  %v1202_v18 = vmul.f32 %v2989_v63, %v2949_v59 }
  0xc3   :  { %v1057_v37 = vsel %vm1056_vm6, %v2914_v56, %v1055_v44  ;;  %1916 = vrsqrt.f32 %v1170_v2  ;;  %v1204_v62 = vmul.f32 %v2982_v51, %v2949_v59  ;;  %v1151_v21 = vmul.f32 %v3028_v27, %v3028_v27 }
  0xc4   :  { %v1060_v60 = vsel %vm1058_vm7, %v1059_v28, %v1057_v37  ;;  %v3045_v42 = vsub.f32 %v1148_v58, %v1149_v34  ;;  %v1152_v16 = vmul.f32 %v3030_v6, %v3030_v6  ;;  %v1911_v9 = vpop.eup %1910  ;;  %v3051_v39 = vsub.f32 %v1201_v38, %v1202_v18 }
  0xc5   :  { %1062 = vst [vmem:[#allocation5 + $0x158] sm:$0xff] %v1060_v60  ;;  %v1205_v8 = vmul.f32 %v2993_v57, %v2941_v15  ;;  %v1207_v55 = vmul.f32 %v2989_v63, %v2941_v15  ;;  %v1208_v56 = vmul.f32 %v2982_v51, %v2945_v11  ;;  %v1078_v1 = vmul.f32 %v1911_v9, %v2954_v17 }
  0xc6   :  { %vm1081_vm9 = vcmp.eq.f32.partialorder %v2954_v17, 0.0  ;;  %v1153_v22 = vadd.f32 %v1152_v16, %v1151_v21  ;;  %v1154_v3 = vmul.f32 %v3045_v42, %v3045_v42  ;;  %v1176_v53 = vadd.f32 %v1175_v61, %v1174_v31 }
  0xc7   :  { %v3063_v7 = vsub.f32 %v1204_v62, %v1205_v8  ;;  %v3065_v45 = vsub.f32 %v1207_v55, %v1208_v56  ;;  %v1210_v33 = vmul.f32 %v3051_v39, %v3051_v39  ;;  %v1080_v46 = vsel %vm1079_vm8, %v2954_v17, %v1078_v1 }
  0xc8   :  { %v1913_v10 = vpop.eup %1912  ;;  %v1155_v49 = vadd.f32 %v1154_v3, %v1153_v22  ;;  %v1229_v28 = vmul.f32 %v3051_v39, %v2949_v59  ;;  %v1231_v12 = vmul.f32 %v3051_v39, %v2945_v11  ;;  %v1083_v25 = vsel %vm1081_vm9, %v1082_v23, %v1080_v46  ;;  %v1251_v23 = vld [vmem:[#allocation2 + $0x58] sm:$0xff] }
  0xc9   :  { %v1118_v29 = vmul.f32 %v1913_v10, %v1117_v36  ;;  %v1211_v0 = vmul.f32 %v3063_v7, %v3063_v7  ;;  %v1213_v50 = vmul.f32 %v3065_v45, %v3065_v45  ;;  %1085 = vst [vmem:[#allocation5 + $0x160] sm:$0xff] %v1083_v25  ;;  %v1216_v17 = vmul.f32 %v3051_v39, %v3028_v27  ;;  %v3094_v36 = vld [vmem:[#allocation2 + $0x68] sm:$0xff] }
  0xca   :  { %1918 = vrsqrt.f32 %v1155_v49  ;;  %v1217_v41 = vmul.f32 %v3063_v7, %v3030_v6  ;;  %v1225_v4 = vmul.f32 %v3063_v7, %v2949_v59  ;;  %v1226_v47 = vmul.f32 %v3065_v45, %v2945_v11 }
  0xcb   :  { %v1915_v40 = vpop.eup %1914  ;;  %v1212_v26 = vadd.f32 %v1211_v0, %v1210_v33  ;;  %v1228_v48 = vmul.f32 %v3065_v45, %v2941_v15  ;;  %v1232_v52 = vmul.f32 %v3063_v7, %v2941_v15  ;;  %v1219_v32 = vmul.f32 %v3065_v45, %v3045_v42 }
  0xcc   :  { %v3098_v61 = vmul.f32 %v1915_v40, %v1118_v29  ;;  %v1177_v59 = vmul.f32 %v1915_v40, %v1176_v53  ;;  %v3103_v13 = vsub.f32 %v3080_v54, %v1249_v5  ;;  %v1227_v43 = vsub.f32 %v1225_v4, %v1226_v47 }
  0xcd   :  { %v1214_v11 = vadd.f32 %v1213_v50, %v1212_v26  ;;  %v1230_v30 = vsub.f32 %v1228_v48, %v1229_v28  ;;  %v1233_v19 = vsub.f32 %v1231_v12, %v1232_v52  ;;  %v1218_v14 = vadd.f32 %v1217_v41, %v1216_v17 }
  0xce   :  { %v1120_v15 = vand.u32 2147483647, %v3098_v61  ;;  %v3107_v58 = vsub.f32 %v3094_v36, %v1250_v35  ;;  %v3110_v20 = vsub.f32 %v3096_v24, %v1251_v23  ;;  %v1234_v44 = vmul.f32 %v1227_v43, %v1227_v43 }
  0xcf   :  { %1920 = vrsqrt.f32 %v1214_v11  ;;  %v1235_v2 = vmul.f32 %v1230_v30, %v1230_v30  ;;  %v1237_v31 = vmul.f32 %v1233_v19, %v1233_v19  ;;  %v1240_v18 = vmul.f32 %v1227_v43, %v3028_v27 }
  0xd0   :  { %v3112_v34 = vpop.eup %1916  ;;  %v1121_v38 = vmul.f32 -0.0187293, %v1120_v15  ;;  %v1127_v37 = vsub.f32 1.0, %v1120_v15  ;;  %v1241_v62 = vmul.f32 %v1230_v30, %v3030_v6  ;;  %v1243_v16 = vmul.f32 %v1233_v19, %v3045_v42 }
  0xd1   :  { %v3117_v60 = vmul.f32 %v3112_v34, %v1177_v59  ;;  %v1236_v21 = vadd.f32 %v1235_v2, %v1234_v44  ;;  %v1258_v9 = vmul.f32 %v3103_v13, %v3103_v13  ;;  %v1259_v1 = vmul.f32 %v3107_v58, %v3107_v58  ;;  %v3148_v59 = vld [vmem:[#allocation2 + $0x78] sm:$0xff] }
  0xd2   :  { %v1122_v8 = vadd.f32 0.074261, %v1121_v38  ;;  %v3122_v55 = vmax.f32 %v1127_v37, 0.0  ;;  %v1242_v56 = vadd.f32 %v1241_v62, %v1240_v18  ;;  %v1261_v3 = vmul.f32 %v3110_v20, %v3110_v20 }
  0xd3   :  { %v1179_v27 = vand.u32 2147483647, %v3117_v60  ;;  %v1238_v22 = vadd.f32 %v1237_v31, %v1236_v21  ;;  %v1220_v33 = vadd.f32 %v1219_v32, %v1218_v14  ;;  %v1260_v49 = vadd.f32 %v1259_v1, %v1258_v9 }
  0xd4   :  { %v1123_v6 = vmul.f32 %v1122_v8, %v1120_v15  ;;  %1922 = vrsqrt.f32 %v3122_v55  ;;  %v1244_v46 = vadd.f32 %v1243_v16, %v1242_v56  ;;  %v1264_v28 = vmul.f32 %v3103_v13, %v2982_v51 }
  0xd5   :  { %v1180_v42 = vmul.f32 -0.0187293, %v1179_v27  ;;  %v1186_v53 = vsub.f32 1.0, %v1179_v27  ;;  %1924 = vrsqrt.f32 %v1238_v22  ;;  %v1265_v0 = vmul.f32 %v3107_v58, %v2989_v63 }
  0xd6   :  { %v1124_v10 = vadd.f32 -0.2121144, %v1123_v6  ;;  %v1262_v50 = vadd.f32 %v1261_v3, %v1260_v49  ;;  %v1267_v5 = vmul.f32 %v3110_v20, %v2993_v57  ;;  %vm1131_vm10 = vcmp.eq.f32.partialorder %v3122_v55, inf }
  0xd7   :  { %v1919_v12 = vpop.eup %1918  ;;  %v1181_v25 = vadd.f32 0.074261, %v1180_v42  ;;  %v3132_v29 = vmax.f32 %v1186_v53, 0.0  ;;  %vm1133_vm11 = vcmp.eq.f32.partialorder %v3122_v55, 0.0  ;;  %v1134_v35 = vand.u32 2147483648, %v3122_v55  ;;  %v3198_v42 = vld [vmem:[#allocation2 + $0x88] sm:$0xff] }
  0xd8   :  { %v1125_v17 = vmul.f32 %v1124_v10, %v1120_v15  ;;  %v1221_v4 = vmul.f32 %v1919_v12, %v1220_v33  ;;  %v1245_v40 = vmul.f32 %v1919_v12, %v1244_v46  ;;  %v1266_v26 = vadd.f32 %v1265_v0, %v1264_v28  ;;  %v3158_v15 = vld [vmem:[#allocation2 + $0x80] sm:$0xff] }
  0xd9   :  { %v1182_v41 = vmul.f32 %v1181_v25, %v1179_v27  ;;  %1926 = vrsqrt.f32 %v3132_v29  ;;  %v1293_v48 = vmul.f32 %v3110_v20, %v2989_v63  ;;  %v1294_v52 = vmul.f32 %v3107_v58, %v2993_v57 }
  0xda   :  { %1928 = vrsqrt.f32 %v1262_v50  ;;  %v1296_v23 = vmul.f32 %v3103_v13, %v2993_v57  ;;  %v1268_v11 = vadd.f32 %v1267_v5, %v1266_v26  ;;  %v1297_v43 = vmul.f32 %v3110_v20, %v2982_v51 }
  0xdb   :  { %v1183_v47 = vadd.f32 -0.2121144, %v1182_v41  ;;  %v1299_v30 = vmul.f32 %v3107_v58, %v2982_v51  ;;  %v1300_v19 = vmul.f32 %v3103_v13, %v2989_v63  ;;  %v1126_v14 = vadd.f32 1.5707288, %v1125_v17 }
  0xdc   :  { %v3150_v32 = vpop.eup %1920  ;;  %v3161_v31 = vsub.f32 %v1293_v48, %v1294_v52  ;;  %vm1190_vm12 = vcmp.eq.f32.partialorder %v3132_v29, inf  ;;  %v1193_v38 = vand.u32 2147483648, %v3132_v29  ;;  %v3165_v37 = vsub.f32 %v1296_v23, %v1297_v43 }
  0xdd   :  { %v1184_v44 = vmul.f32 %v1183_v47, %v1179_v27  ;;  %v1222_v2 = vmul.f32 %v3150_v32, %v1221_v4  ;;  %v3167_v18 = vsub.f32 %v1299_v30, %v1300_v19  ;;  %v3171_v62 = vsub.f32 %v3148_v59, %v3080_v54 }
  0xde   :  { %vm1137_vm13 = vcmp.lt.f32.partialorder %v3098_v61, 0.0  ;;  %vm1192_vm14 = vcmp.eq.f32.partialorder %v3132_v29, 0.0  ;;  %v1269_v21 = vmul.f32 %v3112_v34, %v1268_v11  ;;  %v1302_v16 = vmul.f32 %v3161_v31, %v3161_v31 }
  0xdf   :  { %1224 = vst [vmem:[#allocation5 + $0x1a8] sm:$0xff] %v1222_v2  ;;  %v1321_v9 = vmul.f32 %v3161_v31, %v2993_v57  ;;  %v3182_v8 = vsub.f32 %v3158_v15, %v3094_v36  ;;  %v1185_v56 = vadd.f32 1.5707288, %v1184_v44  ;;  %v1303_v54 = vmul.f32 %v3165_v37, %v3165_v37 }
  0xe0   :  { %v1305_v1 = vmul.f32 %v3167_v18, %v3167_v18  ;;  %v1308_v34 = vmul.f32 %v3161_v31, %v3051_v39  ;;  %v1317_v22 = vmul.f32 %v3165_v37, %v2993_v57  ;;  %v1318_v6 = vmul.f32 %v3167_v18, %v2989_v63 }
  0xe1   :  { %v1923_v27 = vpop.eup %1922  ;;  %v1320_v36 = vmul.f32 %v3167_v18, %v2982_v51  ;;  %v1323_v3 = vmul.f32 %v3161_v31, %v2989_v63  ;;  %v1304_v10 = vadd.f32 %v1303_v54, %v1302_v16  ;;  %v1309_v46 = vmul.f32 %v3165_v37, %v3063_v7 }
  0xe2   :  { %v1925_v53 = vpop.eup %1924  ;;  %v1130_v33 = vmul.f32 %v1923_v27, %v3122_v55  ;;  %v1324_v57 = vmul.f32 %v3165_v37, %v2982_v51  ;;  %v1311_v28 = vmul.f32 %v3167_v18, %v3065_v45  ;;  %v1319_v12 = vsub.f32 %v1317_v22, %v1318_v6 }
  0xe3   :  { %v1246_v49 = vmul.f32 %v1925_v53, %v1245_v40  ;;  %v1322_v25 = vsub.f32 %v1320_v36, %v1321_v9  ;;  %v1306_v0 = vadd.f32 %v1305_v1, %v1304_v10  ;;  %v3212_v5 = vsub.f32 %v3198_v42, %v3096_v24 }
  0xe4   :  { %v1132_v63 = vsel %vm1131_vm10, %v3122_v55, %v1130_v33  ;;  %v1325_v50 = vsub.f32 %v1323_v3, %v1324_v57  ;;  %v1326_v51 = vmul.f32 %v1319_v12, %v1319_v12  ;;  %v1332_v4 = vmul.f32 %v1319_v12, %v3051_v39 }
  0xe5   :  { %v1135_v17 = vsel %vm1133_vm11, %v1134_v35, %v1132_v63  ;;  %1248 = vst [vmem:[#allocation5 + $0x1e0] sm:$0xff] %v1246_v49  ;;  %v1327_v41 = vmul.f32 %v1322_v25, %v1322_v25  ;;  %1930 = vrsqrt.f32 %v1306_v0  ;;  %v1310_v47 = vadd.f32 %v1309_v46, %v1308_v34 }
  0xe6   :  { %v1927_v40 = vpop.eup %1926  ;;  %v1136_v26 = vmul.f32 %v1135_v17, %v1126_v14  ;;  %v1329_v48 = vmul.f32 %v1325_v50, %v1325_v50  ;;  %v1333_v24 = vmul.f32 %v1322_v25, %v3063_v7  ;;  %v1335_v43 = vmul.f32 %v1325_v50, %v3065_v45  ;;  %v3259_v25 = vld [vmem:[#allocation2 + $0x90] sm:$0xff] }
  0xe7   :  { %v1929_v52 = vpop.eup %1928  ;;  %v1189_v23 = vmul.f32 %v1927_v40, %v3132_v29  ;;  %v1328_v11 = vadd.f32 %v1327_v41, %v1326_v51  ;;  %v1350_v30 = vmul.f32 %v3171_v62, %v3171_v62  ;;  %v1351_v39 = vmul.f32 %v3182_v8, %v3182_v8 }
  0xe8   :  { %v1138_v55 = vsub.f32 3.1415927, %v1136_v26  ;;  %v3220_v35 = vmul.f32 %v1929_v52, %v1269_v21  ;;  %v1334_v44 = vadd.f32 %v1333_v24, %v1332_v4  ;;  %v1353_v7 = vmul.f32 %v3212_v5, %v3212_v5 }
  0xe9   :  { %v1191_v19 = vsel %vm1190_vm12, %v3132_v29, %v1189_v23  ;;  %v1330_v14 = vadd.f32 %v1329_v48, %v1328_v11  ;;  %vm1196_vm15 = vcmp.lt.f32.partialorder %v3117_v60, 0.0  ;;  %v1312_v9 = vadd.f32 %v1311_v28, %v1310_v47 }
  0xea   :  { %v1139_v45 = vsel %vm1137_vm13, %v1138_v55, %v1136_v26  ;;  %v1194_v2 = vsel %vm1192_vm14, %v1193_v38, %v1191_v19  ;;  %v1271_v21 = vand.u32 2147483647, %v3220_v35  ;;  %v1352_v54 = vadd.f32 %v1351_v39, %v1350_v30  ;;  %v3291_v55 = vld [vmem:[#allocation2 + $0xa0] sm:$0xff] }
  0xeb   :  { %1141 = vst [vmem:[#allocation5 + $0x168] sm:$0xff] %v1139_v45  ;;  %v1195_v16 = vmul.f32 %v1194_v2, %v1185_v56  ;;  %1932 = vrsqrt.f32 %v1330_v14  ;;  %v1356_v27 = vmul.f32 %v3171_v62, %v3103_v13  ;;  %v1357_v61 = vmul.f32 %v3182_v8, %v3107_v58 }
  0xec   :  { %v1272_v1 = vmul.f32 -0.0187293, %v1271_v21  ;;  %v1278_v34 = vsub.f32 1.0, %v1271_v21  ;;  %v1336_v29 = vadd.f32 %v1335_v43, %v1334_v44  ;;  %v1354_v38 = vadd.f32 %v1353_v7, %v1352_v54  ;;  %v3289_v43 = vld [vmem:[#allocation2 + $0x98] sm:$0xff] }
  0xed   :  { %v1197_v22 = vsub.f32 3.1415927, %v1195_v16  ;;  %v1359_v6 = vmul.f32 %v3212_v5, %v3110_v20  ;;  %v1358_v56 = vadd.f32 %v1357_v61, %v1356_v27  ;;  %v1385_v53 = vmul.f32 %v3212_v5, %v3107_v58 }
  0xee   :  { %v1273_v36 = vadd.f32 0.074261, %v1272_v1  ;;  %v3243_v3 = vmax.f32 %v1278_v34, 0.0  ;;  %1934 = vrsqrt.f32 %v1354_v38  ;;  %v1386_v10 = vmul.f32 %v3182_v8, %v3110_v20 }
  0xef   :  { %v1198_v33 = vsel %vm1196_vm15, %v1197_v22, %v1195_v16  ;;  %v1388_v46 = vmul.f32 %v3171_v62, %v3110_v20  ;;  %v1313_v49 = vmul.f32 %v3150_v32, %v1312_v9  ;;  %v1360_v28 = vadd.f32 %v1359_v6, %v1358_v56 }
  0xf0   :  { %1200 = vst [vmem:[#allocation5 + $0x170] sm:$0xff] %v1198_v33  ;;  %v1274_v57 = vmul.f32 %v1273_v36, %v1271_v21  ;;  %1936 = vrsqrt.f32 %v3243_v3  ;;  %v3255_v12 = vsub.f32 %v1385_v53, %v1386_v10  ;;  %v1389_v60 = vmul.f32 %v3212_v5, %v3103_v13 }
  0xf1   :  { %v1391_v0 = vmul.f32 %v3182_v8, %v3103_v13  ;;  %v1392_v50 = vmul.f32 %v3171_v62, %v3107_v58  ;;  %v1285_v51 = vand.u32 2147483648, %v3243_v3  ;;  %v1337_v41 = vmul.f32 %v3150_v32, %v1336_v29 }
  0xf2   :  { %v1275_v63 = vadd.f32 -0.2121144, %v1274_v57  ;;  %v3265_v17 = vpop.eup %1930  ;;  %v3269_v4 = vsub.f32 %v1388_v46, %v1389_v60  ;;  %v1394_v40 = vmul.f32 %v3255_v12, %v3255_v12  ;;  %v1361_v47 = vmul.f32 %v1929_v52, %v1360_v28 }
  0xf3   :  { %v1314_v26 = vmul.f32 %v3265_v17, %v1313_v49  ;;  %v3274_v48 = vsub.f32 %v1391_v0, %v1392_v50  ;;  %v3278_v23 = vsub.f32 %v3259_v25, %v3148_v59  ;;  %vm1282_vm0 = vcmp.eq.f32.partialorder %v3243_v3, inf }
  0xf4   :  { %v1395_v11 = vmul.f32 %v3269_v4, %v3269_v4  ;;  %v1400_v32 = vmul.f32 %v3255_v12, %v3161_v31  ;;  %v1409_v24 = vmul.f32 %v3269_v4, %v3110_v20  ;;  %v1413_v52 = vmul.f32 %v3255_v12, %v3110_v20 }
  0xf5   :  { %v1276_v59 = vmul.f32 %v1275_v63, %v1271_v21  ;;  %vm1284_vm1 = vcmp.eq.f32.partialorder %v3243_v3, 0.0  ;;  %1316 = vst [vmem:[#allocation5 + $0x1b0] sm:$0xff] %v1314_v26  ;;  %v1397_v30 = vmul.f32 %v3274_v48, %v3274_v48  ;;  %v1410_v39 = vmul.f32 %v3274_v48, %v3107_v58 }
  0xf6   :  { %v1415_v19 = vmul.f32 %v3255_v12, %v3107_v58  ;;  %v1396_v14 = vadd.f32 %v1395_v11, %v1394_v40  ;;  %v1401_v20 = vmul.f32 %v3269_v4, %v3165_v37  ;;  %v1412_v44 = vmul.f32 %v3274_v48, %v3103_v13 }
  0xf7   :  { %v1416_v7 = vmul.f32 %v3269_v4, %v3103_v13  ;;  %v1411_v2 = vsub.f32 %v1409_v24, %v1410_v39  ;;  %v3308_v21 = vsub.f32 %v3289_v43, %v3158_v15  ;;  %v3312_v16 = vsub.f32 %v3291_v55, %v3198_v42 }
  0xf8   :  { %v1933_v45 = vpop.eup %1932  ;;  %v1442_v58 = vmul.f32 %v3278_v23, %v3278_v23  ;;  %v1398_v54 = vadd.f32 %v1397_v30, %v1396_v14  ;;  %v1403_v1 = vmul.f32 %v3274_v48, %v3167_v18  ;;  %v1414_v34 = vsub.f32 %v1412_v44, %v1413_v52 }
  0xf9   :  { %v1338_v9 = vmul.f32 %v1933_v45, %v1337_v41  ;;  %v1417_v13 = vsub.f32 %v1415_v19, %v1416_v7  ;;  %v1418_v27 = vmul.f32 %v1411_v2, %v1411_v2  ;;  %v1424_v61 = vmul.f32 %v1411_v2, %v3161_v31 }
  0xfa   :  { %v1443_v15 = vmul.f32 %v3308_v21, %v3308_v21  ;;  %1938 = vrsqrt.f32 %v1398_v54  ;;  %v1402_v42 = vadd.f32 %v1401_v20, %v1400_v32  ;;  %v1419_v22 = vmul.f32 %v1414_v34, %v1414_v34 }
  0xfb   :  { %1340 = vst [vmem:[#allocation5 + $0x1e8] sm:$0xff] %v1338_v9  ;;  %v1425_v29 = vmul.f32 %v1414_v34, %v3165_v37  ;;  %v1935_v38 = vpop.eup %1934  ;;  %v1421_v6 = vmul.f32 %v1417_v13, %v1417_v13  ;;  %v1427_v36 = vmul.f32 %v1417_v13, %v3167_v18  ;;  %v1445_v53 = vmul.f32 %v3312_v16, %v3312_v16 }
  0xfc   :  { %v1444_v56 = vadd.f32 %v1443_v15, %v1442_v58  ;;  %v1277_v10 = vadd.f32 1.5707288, %v1276_v59  ;;  %v3325_v31 = vmul.f32 %v1935_v38, %v1361_v47  ;;  %v1420_v46 = vadd.f32 %v1419_v22, %v1418_v27 }
  0xfd   :  { %v1937_v33 = vpop.eup %1936  ;;  %v1426_v57 = vadd.f32 %v1425_v29, %v1424_v61  ;;  %v1448_v37 = vmul.f32 %v3278_v23, %v3171_v62  ;;  %v1449_v60 = vmul.f32 %v3308_v21, %v3182_v8  ;;  %vm1288_vm2 = vcmp.lt.f32.partialorder %v3220_v35, 0.0 }
  0xfe   :  { %v1281_v49 = vmul.f32 %v1937_v33, %v3243_v3  ;;  %v1446_v28 = vadd.f32 %v1445_v53, %v1444_v56  ;;  %v1363_v18 = vand.u32 2147483647, %v3325_v31  ;;  %v1404_v63 = vadd.f32 %v1403_v1, %v1402_v42  ;;  %v3387_v56 = vld [vmem:[#allocation2 + $0xa8] sm:$0xff] }
  0xff   :  { %v1422_v0 = vadd.f32 %v1421_v6, %v1420_v46  ;;  %v1428_v41 = vadd.f32 %v1427_v36, %v1426_v57  ;;  %v1477_v40 = vmul.f32 %v3312_v16, %v3182_v8  ;;  %v1450_v24 = vadd.f32 %v1449_v60, %v1448_v37  ;;  %v3392_v46 = vld [vmem:[#allocation2 + $0xb0] sm:$0xff]  ;;  %v3400_v37 = vld [vmem:[#allocation2 + $0xb8] sm:$0xff] }
 0x100   :  { %v1283_v50 = vsel %vm1282_vm0, %v3243_v3, %v1281_v49  ;;  %1940 = vrsqrt.f32 %v1446_v28  ;;  %v1364_v47 = vmul.f32 -0.0187293, %v1363_v18  ;;  %v1370_v11 = vsub.f32 1.0, %v1363_v18 }
 0x101   :  { %v1286_v26 = vsel %vm1284_vm1, %v1285_v51, %v1283_v50  ;;  %1942 = vrsqrt.f32 %v1422_v0  ;;  %v1451_v52 = vmul.f32 %v3312_v16, %v3212_v5  ;;  %v1478_v59 = vmul.f32 %v3308_v21, %v3212_v5 }
 0x102   :  { %v1287_v32 = vmul.f32 %v1286_v26, %v1277_v10  ;;  %v1365_v30 = vadd.f32 0.074261, %v1364_v47  ;;  %v3347_v39 = vmax.f32 %v1370_v11, 0.0  ;;  %v1480_v19 = vmul.f32 %v3278_v23, %v3212_v5 }
 0x103   :  { %v1481_v3 = vmul.f32 %v3312_v16, %v3171_v62  ;;  %v3353_v14 = vsub.f32 %v1477_v40, %v1478_v59  ;;  %v1483_v20 = vmul.f32 %v3308_v21, %v3171_v62  ;;  %v1405_v7 = vmul.f32 %v3265_v17, %v1404_v63 }
 0x104   :  { %v1289_v51 = vsub.f32 3.1415927, %v1287_v32  ;;  %v1366_v44 = vmul.f32 %v1365_v30, %v1363_v18  ;;  %1944 = vrsqrt.f32 %v3347_v39  ;;  %v1429_v45 = vmul.f32 %v3265_v17, %v1428_v41 }
 0x105   :  { %v1452_v58 = vadd.f32 %v1451_v52, %v1450_v24  ;;  %v3362_v9 = vsub.f32 %v1480_v19, %v1481_v3  ;;  %v1484_v54 = vmul.f32 %v3278_v23, %v3182_v8  ;;  %v1486_v34 = vmul.f32 %v3353_v14, %v3353_v14 }
 0x106   :  { %v1290_v2 = vsel %vm1288_vm2, %v1289_v51, %v1287_v32  ;;  %v1367_v1 = vadd.f32 -0.2121144, %v1366_v44  ;;  %v1492_v13 = vmul.f32 %v3353_v14, %v3255_v12  ;;  %v1505_v17 = vmul.f32 %v3353_v14, %v3212_v5 }
 0x107   :  { %1292 = vst [vmem:[#allocation5 + $0x178] sm:$0xff] %v1290_v2  ;;  %v3372_v27 = vpop.eup %1938  ;;  %v3374_v35 = vsub.f32 %v1483_v20, %v1484_v54  ;;  %v1487_v61 = vmul.f32 %v3362_v9, %v3362_v9  ;;  %v1493_v15 = vmul.f32 %v3362_v9, %v3269_v4  ;;  %v1501_v42 = vmul.f32 %v3362_v9, %v3212_v5 }
 0x108   :  { %v1368_v22 = vmul.f32 %v1367_v1, %v1363_v18  ;;  %v1406_v29 = vmul.f32 %v3372_v27, %v1405_v7  ;;  %v1507_v6 = vmul.f32 %v3353_v14, %v3182_v8  ;;  %v1508_v36 = vmul.f32 %v3362_v9, %v3171_v62 }
 0x109   :  { %vm1374_vm3 = vcmp.eq.f32.partialorder %v3347_v39, inf  ;;  %v1453_v53 = vmul.f32 %v1935_v38, %v1452_v58  ;;  %v1488_v33 = vadd.f32 %v1487_v61, %v1486_v34  ;;  %v1489_v10 = vmul.f32 %v3374_v35, %v3374_v35 }
 0x10a   :  { %vm1376_vm4 = vcmp.eq.f32.partialorder %v3347_v39, 0.0  ;;  %v1377_v5 = vand.u32 2147483648, %v3347_v39  ;;  %1408 = vst [vmem:[#allocation5 + $0x1b8] sm:$0xff] %v1406_v29  ;;  %v1502_v57 = vmul.f32 %v3374_v35, %v3182_v8  ;;  %v1504_v49 = vmul.f32 %v3374_v35, %v3171_v62 }
 0x10b   :  { %v1509_v28 = vsub.f32 %v1507_v6, %v1508_v36  ;;  %v1490_v38 = vadd.f32 %v1489_v10, %v1488_v33  ;;  %v1494_v60 = vadd.f32 %v1493_v15, %v1492_v13  ;;  %v1495_v18 = vmul.f32 %v3374_v35, %v3274_v48 }
 0x10c   :  { %v3406_v63 = vsub.f32 %v3387_v56, %v3259_v25  ;;  %v1369_v50 = vadd.f32 1.5707288, %v1368_v22  ;;  %v1503_v41 = vsub.f32 %v1501_v42, %v1502_v57  ;;  %v1506_v8 = vsub.f32 %v1504_v49, %v1505_v17 }
 0x10d   :  { %v3408_v0 = vpop.eup %1940  ;;  %v3412_v62 = vsub.f32 %v3392_v46, %v3289_v43  ;;  %1946 = vrsqrt.f32 %v1490_v38  ;;  %v1513_v47 = vmul.f32 %v1509_v28, %v1509_v28  ;;  %v3419_v11 = vsub.f32 %v3400_v37, %v3291_v55  ;;  %v3458_v38 = vld [vmem:[#allocation2 + $0xc0] sm:$0xff] }
 0x10e   :  { %v1943_v40 = vpop.eup %1942  ;;  %v3415_v26 = vmul.f32 %v3408_v0, %v1453_v53  ;;  %v1510_v32 = vmul.f32 %v1503_v41, %v1503_v41  ;;  %v1511_v24 = vmul.f32 %v1506_v8, %v1506_v8  ;;  %v1516_v52 = vmul.f32 %v1503_v41, %v3255_v12 }
 0x10f   :  { %v1430_v25 = vmul.f32 %v1943_v40, %v1429_v45  ;;  %v1517_v43 = vmul.f32 %v1506_v8, %v3269_v4  ;;  %v1519_v30 = vmul.f32 %v1509_v28, %v3274_v48  ;;  %v1534_v19 = vmul.f32 %v3406_v63, %v3406_v63  ;;  %v3466_v8 = vld [vmem:[#allocation2 + $0xc8] sm:$0xff] }
 0x110   :  { %v1455_v59 = vand.u32 2147483647, %v3415_v26  ;;  %v1512_v3 = vadd.f32 %v1511_v24, %v1510_v32  ;;  %v1535_v55 = vmul.f32 %v3412_v62, %v3412_v62  ;;  %v1537_v51 = vmul.f32 %v3419_v11, %v3419_v11 }
 0x111   :  { %1432 = vst [vmem:[#allocation5 + $0x1f0] sm:$0xff] %v1430_v25  ;;  %v1540_v12 = vmul.f32 %v3406_v63, %v3278_v23  ;;  %v1945_v20 = vpop.eup %1944  ;;  %v1518_v4 = vadd.f32 %v1517_v43, %v1516_v52  ;;  %v1541_v48 = vmul.f32 %v3412_v62, %v3308_v21  ;;  %v1496_v2 = vadd.f32 %v1495_v18, %v1494_v60 }
 0x112   :  { %v1456_v44 = vmul.f32 -0.0187293, %v1455_v59  ;;  %v1462_v7 = vsub.f32 1.0, %v1455_v59  ;;  %v1373_v45 = vmul.f32 %v1945_v20, %v3347_v39  ;;  %v1514_v58 = vadd.f32 %v1513_v47, %v1512_v3 }
 0x113   :  { %v1536_v54 = vadd.f32 %v1535_v55, %v1534_v19  ;;  %v1542_v13 = vadd.f32 %v1541_v48, %v1540_v12  ;;  %v1543_v17 = vmul.f32 %v3419_v11, %v3312_v16  ;;  %v1520_v15 = vadd.f32 %v1519_v30, %v1518_v4  ;;  %v3492_v19 = vld [vmem:[#allocation2 + $0xd0] sm:$0xff] }
 0x114   :  { %v1457_v1 = vadd.f32 0.074261, %v1456_v44  ;;  %v3436_v34 = vmax.f32 %v1462_v7, 0.0  ;;  %v1375_v61 = vsel %vm1374_vm3, %v3347_v39, %v1373_v45  ;;  %1948 = vrsqrt.f32 %v1514_v58 }
 0x115   :  { %v1538_v42 = vadd.f32 %v1537_v51, %v1536_v54  ;;  %v1378_v22 = vsel %vm1376_vm4, %v1377_v5, %v1375_v61  ;;  %v1569_v6 = vmul.f32 %v3419_v11, %v3308_v21  ;;  %vm1380_vm5 = vcmp.lt.f32.partialorder %v3325_v31, 0.0 }
 0x116   :  { %v1458_v29 = vmul.f32 %v1457_v1, %v1455_v59  ;;  %1950 = vrsqrt.f32 %v3436_v34  ;;  %v1379_v36 = vmul.f32 %v1378_v22, %v1369_v50  ;;  %v1497_v53 = vmul.f32 %v3372_v27, %v1496_v2 }
 0x117   :  { %1952 = vrsqrt.f32 %v1538_v42  ;;  %v1544_v10 = vadd.f32 %v1543_v17, %v1542_v13  ;;  %v1570_v57 = vmul.f32 %v3412_v62, %v3312_v16  ;;  %v1572_v39 = vmul.f32 %v3406_v63, %v3312_v16 }
 0x118   :  { %v1459_v33 = vadd.f32 -0.2121144, %v1458_v29  ;;  %v1381_v49 = vsub.f32 3.1415927, %v1379_v36  ;;  %v1573_v5 = vmul.f32 %v3419_v11, %v3278_v23  ;;  %v1575_v28 = vmul.f32 %v3412_v62, %v3278_v23 }
 0x119   :  { %v1469_v60 = vand.u32 2147483648, %v3436_v34  ;;  %v1521_v18 = vmul.f32 %v3372_v27, %v1520_v15  ;;  %v3462_v50 = vsub.f32 %v1569_v6, %v1570_v57  ;;  %v1576_v41 = vmul.f32 %v3406_v63, %v3308_v21 }
 0x11a   :  { %v3468_v40 = vpop.eup %1946  ;;  %v1382_v47 = vsel %vm1380_vm5, %v1381_v49, %v1379_v36  ;;  %v1460_v25 = vmul.f32 %v1459_v33, %v1455_v59  ;;  %vm1466_vm6 = vcmp.eq.f32.partialorder %v3436_v34, inf  ;;  %v1545_v32 = vmul.f32 %v3408_v0, %v1544_v10 }
 0x11b   :  { %v3474_v24 = vsub.f32 %v1572_v39, %v1573_v5  ;;  %1384 = vst [vmem:[#allocation5 + $0x180] sm:$0xff] %v1382_v47  ;;  %vm1468_vm7 = vcmp.eq.f32.partialorder %v3436_v34, 0.0  ;;  %v1498_v27 = vmul.f32 %v3468_v40, %v1497_v53  ;;  %v3478_v52 = vsub.f32 %v1575_v28, %v1576_v41 }
 0x11c   :  { %v1578_v43 = vmul.f32 %v3462_v50, %v3462_v50  ;;  %v3484_v31 = vsub.f32 %v3458_v38, %v3387_v56  ;;  %v1584_v0 = vmul.f32 %v3462_v50, %v3353_v14  ;;  %v3496_v3 = vsub.f32 %v3466_v8, %v3392_v46 }
 0x11d   :  { %v1579_v59 = vmul.f32 %v3474_v24, %v3474_v24  ;;  %v1593_v30 = vmul.f32 %v3474_v24, %v3312_v16  ;;  %1500 = vst [vmem:[#allocation5 + $0x1c0] sm:$0xff] %v1498_v27  ;;  %v1581_v56 = vmul.f32 %v3478_v52, %v3478_v52  ;;  %v1585_v55 = vmul.f32 %v3474_v24, %v3362_v9 }
 0x11e   :  { %v1594_v51 = vmul.f32 %v3478_v52, %v3308_v21  ;;  %v1596_v12 = vmul.f32 %v3478_v52, %v3278_v23  ;;  %v1461_v20 = vadd.f32 1.5707288, %v1460_v25  ;;  %v1597_v7 = vmul.f32 %v3462_v50, %v3312_v16 }
 0x11f   :  { %v1580_v44 = vadd.f32 %v1579_v59, %v1578_v43  ;;  %v1599_v46 = vmul.f32 %v3462_v50, %v3308_v21  ;;  %v1587_v4 = vmul.f32 %v3478_v52, %v3374_v35  ;;  %v1600_v45 = vmul.f32 %v3474_v24, %v3278_v23 }
 0x120   :  { %v1595_v48 = vsub.f32 %v1593_v30, %v1594_v51  ;;  %v3516_v2 = vsub.f32 %v3492_v19, %v3400_v37  ;;  %v1598_v54 = vsub.f32 %v1596_v12, %v1597_v7  ;;  %v1626_v1 = vmul.f32 %v3484_v31, %v3484_v31 }
 0x121   :  { %v1582_v58 = vadd.f32 %v1581_v56, %v1580_v44  ;;  %v1627_v16 = vmul.f32 %v3496_v3, %v3496_v3  ;;  %v1949_v21 = vpop.eup %1948  ;;  %v1586_v13 = vadd.f32 %v1585_v55, %v1584_v0  ;;  %v1601_v17 = vsub.f32 %v1599_v46, %v1600_v45 }
 0x122   :  { %v1602_v61 = vmul.f32 %v1595_v48, %v1595_v48  ;;  %v1608_v15 = vmul.f32 %v1595_v48, %v3353_v14  ;;  %v1522_v23 = vmul.f32 %v1949_v21, %v1521_v18  ;;  %v1603_v22 = vmul.f32 %v1598_v54, %v1598_v54  ;;  %v1712_v48 = vld [vmem:[#allocation2 + $0xd8] sm:$0xff]  ;;  %v1713_v21 = vld [vmem:[#allocation2 + $0xe0] sm:$0xff] }
 0x123   :  { %v1951_v42 = vpop.eup %1950  ;;  %1954 = vrsqrt.f32 %v1582_v58  ;;  %v1629_v37 = vmul.f32 %v3516_v2, %v3516_v2  ;;  %v1605_v6 = vmul.f32 %v1601_v17, %v1601_v17  ;;  %v1609_v36 = vmul.f32 %v1598_v54, %v3362_v9 }
 0x124   :  { %v1465_v29 = vmul.f32 %v1951_v42, %v3436_v34  ;;  %v1611_v53 = vmul.f32 %v1601_v17, %v3374_v35  ;;  %v1953_v33 = vpop.eup %1952  ;;  %1524 = vst [vmem:[#allocation5 + $0x1f8] sm:$0xff] %v1522_v23  ;;  %v1604_v10 = vadd.f32 %v1603_v22, %v1602_v61  ;;  %v1628_v57 = vadd.f32 %v1627_v16, %v1626_v1 }
 0x125   :  { %v1632_v14 = vmul.f32 %v3484_v31, %v3406_v63  ;;  %v1633_v49 = vmul.f32 %v3496_v3, %v3412_v62  ;;  %v3535_v5 = vmul.f32 %v1953_v33, %v1545_v32  ;;  %v1610_v28 = vadd.f32 %v1609_v36, %v1608_v15 }
 0x126   :  { %v1467_v39 = vsel %vm1466_vm6, %v3436_v34, %v1465_v29  ;;  %v1635_v9 = vmul.f32 %v3516_v2, %v3419_v11  ;;  %v1606_v18 = vadd.f32 %v1605_v6, %v1604_v10  ;;  %v1630_v41 = vadd.f32 %v1629_v37, %v1628_v57  ;;  %v1714_v29 = vld [vmem:[#allocation2 + $0xe8] sm:$0xff] }
 0x127   :  { %v1470_v35 = vsel %vm1468_vm7, %v1469_v60, %v1467_v39  ;;  %v1634_v47 = vadd.f32 %v1633_v49, %v1632_v14  ;;  %vm1472_vm8 = vcmp.lt.f32.partialorder %v3415_v26, 0.0  ;;  %v1547_v27 = vand.u32 2147483647, %v3535_v5 }
 0x128   :  { %v1471_v25 = vmul.f32 %v1470_v35, %v1461_v20  ;;  %v1588_v43 = vadd.f32 %v1587_v4, %v1586_v13  ;;  %1956 = vrsqrt.f32 %v1606_v18  ;;  %v1661_v32 = vmul.f32 %v3516_v2, %v3412_v62 }
 0x129   :  { %v1662_v59 = vmul.f32 %v3496_v3, %v3419_v11  ;;  %v1548_v30 = vmul.f32 -0.0187293, %v1547_v27  ;;  %v1554_v34 = vsub.f32 1.0, %v1547_v27  ;;  %v1612_v60 = vadd.f32 %v1611_v53, %v1610_v28 }
 0x12a   :  { %v1473_v0 = vsub.f32 3.1415927, %v1471_v25  ;;  %1958 = vrsqrt.f32 %v1630_v41  ;;  %v1636_v56 = vadd.f32 %v1635_v9, %v1634_v47  ;;  %v1664_v26 = vmul.f32 %v3484_v31, %v3419_v11 }
 0x12b   :  { %v3549_v55 = vsub.f32 %v1661_v32, %v1662_v59  ;;  %v1549_v12 = vadd.f32 0.074261, %v1548_v30  ;;  %v3553_v20 = vmax.f32 %v1554_v34, 0.0  ;;  %v1665_v44 = vmul.f32 %v3516_v2, %v3406_v63 }
 0x12c   :  { %v1474_v51 = vsel %vm1472_vm8, %v1473_v0, %v1471_v25  ;;  %v1589_v7 = vmul.f32 %v3468_v40, %v1588_v43  ;;  %v1667_v46 = vmul.f32 %v3496_v3, %v3406_v63  ;;  %v1668_v4 = vmul.f32 %v3484_v31, %v3412_v62 }
 0x12d   :  { %1476 = vst [vmem:[#allocation5 + $0x188] sm:$0xff] %v1474_v51  ;;  %v1550_v45 = vmul.f32 %v1549_v12, %v1547_v27  ;;  %1960 = vrsqrt.f32 %v3553_v20  ;;  %v1613_v58 = vmul.f32 %v3468_v40, %v1612_v60  ;;  %v3564_v54 = vsub.f32 %v1664_v26, %v1665_v44 }
 0x12e   :  { %v3566_v1 = vsub.f32 %v1667_v46, %v1668_v4  ;;  %v1670_v16 = vmul.f32 %v3549_v55, %v3549_v55  ;;  %v1637_v61 = vmul.f32 %v1953_v33, %v1636_v56  ;;  %v1689_v15 = vmul.f32 %v3549_v55, %v3419_v11 }
 0x12f   :  { %v1551_v17 = vadd.f32 -0.2121144, %v1550_v45  ;;  %v3575_v42 = vsub.f32 %v1712_v48, %v3458_v38  ;;  %v1671_v23 = vmul.f32 %v3564_v54, %v3564_v54  ;;  %v1691_v37 = vmul.f32 %v3549_v55, %v3412_v62 }
 0x130   :  { %v3570_v13 = vpop.eup %1954  ;;  %v1673_v22 = vmul.f32 %v3566_v1, %v3566_v1  ;;  %v1676_v6 = vmul.f32 %v3549_v55, %v3462_v50  ;;  %v1685_v36 = vmul.f32 %v3564_v54, %v3419_v11  ;;  %v1686_v38 = vmul.f32 %v3566_v1, %v3412_v62 }
 0x131   :  { %v1590_v40 = vmul.f32 %v3570_v13, %v1589_v7  ;;  %v1716_v53 = vsub.f32 %v1713_v21, %v3466_v8  ;;  %v1672_v33 = vadd.f32 %v1671_v23, %v1670_v16  ;;  %v1677_v10 = vmul.f32 %v3564_v54, %v3474_v24 }
 0x132   :  { %v1688_v57 = vmul.f32 %v3566_v1, %v3406_v63  ;;  %v1692_v14 = vmul.f32 %v3564_v54, %v3406_v63  ;;  %vm1558_vm9 = vcmp.eq.f32.partialorder %v3553_v20, inf  ;;  %v1687_v49 = vsub.f32 %v1685_v36, %v1686_v38 }
 0x133   :  { %1592 = vst [vmem:[#allocation5 + $0x1c8] sm:$0xff] %v1590_v40  ;;  %v1717_v11 = vsub.f32 %v1714_v29, %v3492_v19  ;;  %v1718_v62 = vmul.f32 %v3575_v42, %v3575_v42  ;;  %v1552_v8 = vmul.f32 %v1551_v17, %v1547_v27  ;;  %v1674_v39 = vadd.f32 %v1673_v22, %v1672_v33 }
 0x134   :  { %v1690_v28 = vsub.f32 %v1688_v57, %v1689_v15  ;;  %v1693_v9 = vsub.f32 %v1691_v37, %v1692_v14  ;;  %v1679_v18 = vmul.f32 %v3566_v1, %v3478_v52  ;;  %v1694_v41 = vmul.f32 %v1687_v49, %v1687_v49 }
 0x135   :  { %v1957_v35 = vpop.eup %1956  ;;  %v1719_v47 = vmul.f32 %v1716_v53, %v1716_v53  ;;  %v1721_v25 = vmul.f32 %v1717_v11, %v1717_v11  ;;  %1962 = vrsqrt.f32 %v1674_v39  ;;  %v1678_v43 = vadd.f32 %v1677_v10, %v1676_v6 }
 0x136   :  { %v1614_v63 = vmul.f32 %v1957_v35, %v1613_v58  ;;  %v1695_v32 = vmul.f32 %v1690_v28, %v1690_v28  ;;  %vm1560_vm10 = vcmp.eq.f32.partialorder %v3553_v20, 0.0  ;;  %v1561_v19 = vand.u32 2147483648, %v3553_v20 }
 0x137   :  { %v1959_v59 = vpop.eup %1958  ;;  %v1697_v27 = vmul.f32 %v1693_v9, %v1693_v9  ;;  %v1720_v0 = vadd.f32 %v1719_v47, %v1718_v62  ;;  %v1724_v60 = vmul.f32 %v3575_v42, %v3484_v31  ;;  %v1725_v56 = vmul.f32 %v1716_v53, %v3496_v3 }
 0x138   :  { %1616 = vst [vmem:[#allocation5 + $0x200] sm:$0xff] %v1614_v63  ;;  %v3605_v30 = vmul.f32 %v1959_v59, %v1637_v61  ;;  %v1696_v34 = vadd.f32 %v1695_v32, %v1694_v41  ;;  %v1553_v26 = vadd.f32 1.5707288, %v1552_v8  ;;  %v1700_v51 = vmul.f32 %v1687_v49, %v3462_v50 }
 0x139   :  { %v1701_v12 = vmul.f32 %v1690_v28, %v3474_v24  ;;  %v1722_v44 = vadd.f32 %v1721_v25, %v1720_v0  ;;  %v1680_v4 = vadd.f32 %v1679_v18, %v1678_v43  ;;  %v1753_v45 = vmul.f32 %v1717_v11, %v3496_v3 }
 0x13a   :  { %v1961_v7 = vpop.eup %1960  ;;  %v1639_v46 = vand.u32 2147483647, %v3605_v30  ;;  %v1698_v48 = vadd.f32 %v1697_v27, %v1696_v34  ;;  %v1727_v16 = vmul.f32 %v1717_v11, %v3516_v2  ;;  %v1754_v21 = vmul.f32 %v1716_v53, %v3516_v2 }
 0x13b   :  { %v1557_v58 = vmul.f32 %v1961_v7, %v3553_v20  ;;  %1964 = vrsqrt.f32 %v1722_v44  ;;  %v1726_v50 = vadd.f32 %v1725_v56, %v1724_v60  ;;  %v1702_v15 = vadd.f32 %v1701_v12, %v1700_v51 }
 0x13c   :  { %v1640_v17 = vmul.f32 -0.0187293, %v1639_v46  ;;  %v1646_v61 = vsub.f32 1.0, %v1639_v46  ;;  %1966 = vrsqrt.f32 %v1698_v48  ;;  %v1703_v40 = vmul.f32 %v1693_v9, %v3478_v52 }
 0x13d   :  { %v1559_v24 = vsel %vm1558_vm9, %v3553_v20, %v1557_v58  ;;  %v1756_v23 = vmul.f32 %v3575_v42, %v3516_v2  ;;  %v1755_v6 = vsub.f32 %v1753_v45, %v1754_v21  ;;  %v1757_v38 = vmul.f32 %v1717_v11, %v3484_v31 }
 0x13e   :  { %v1562_v22 = vsel %vm1560_vm10, %v1561_v19, %v1559_v24  ;;  %v1641_v37 = vadd.f32 0.074261, %v1640_v17  ;;  %v3625_v29 = vmax.f32 %v1646_v61, 0.0  ;;  %v1759_v33 = vmul.f32 %v1716_v53, %v3484_v31 }
 0x13f   :  { %v1563_v36 = vmul.f32 %v1562_v22, %v1553_v26  ;;  %v1760_v10 = vmul.f32 %v3575_v42, %v3496_v3  ;;  %vm1564_vm11 = vcmp.lt.f32.partialorder %v3535_v5, 0.0  ;;  %v1681_v52 = vmul.f32 %v3570_v13, %v1680_v4 }
 0x140   :  { %1968 = vrsqrt.f32 %v3625_v29  ;;  %v1728_v20 = vadd.f32 %v1727_v16, %v1726_v50  ;;  %v1642_v14 = vmul.f32 %v1641_v37, %v1639_v46  ;;  %v1758_v49 = vsub.f32 %v1756_v23, %v1757_v38 }
 0x141   :  { %v1565_v57 = vsub.f32 3.1415927, %v1563_v36  ;;  %v1761_v62 = vsub.f32 %v1759_v33, %v1760_v10  ;;  %v1704_v8 = vadd.f32 %v1703_v40, %v1702_v15  ;;  %v1762_v39 = vmul.f32 %v1755_v6, %v1755_v6 }
 0x142   :  { %v3634_v28 = vpop.eup %1962  ;;  %v1763_v53 = vmul.f32 %v1758_v49, %v1758_v49  ;;  %v1781_v42 = vmul.f32 %v1755_v6, %v3516_v2  ;;  %v1729_v35 = vmul.f32 %v1959_v59, %v1728_v20  ;;  %v1777_v18 = vmul.f32 %v1758_v49, %v3516_v2 }
 0x143   :  { %v1566_v11 = vsel %vm1564_vm11, %v1565_v57, %v1563_v36  ;;  %v1765_v9 = vmul.f32 %v1761_v62, %v1761_v62  ;;  %v1682_v5 = vmul.f32 %v3634_v28, %v1681_v52  ;;  %v1643_v41 = vadd.f32 -0.2121144, %v1642_v14 }
 0x144   :  { %1568 = vst [vmem:[#allocation5 + $0x190] sm:$0xff] %v1566_v11  ;;  %v1764_v47 = vadd.f32 %v1763_v53, %v1762_v39  ;;  %v1778_v25 = vmul.f32 %v1761_v62, %v3496_v3  ;;  %v1780_v63 = vmul.f32 %v1761_v62, %v3484_v31  ;;  %v1705_v43 = vmul.f32 %v3570_v13, %v1704_v8 }
 0x145   :  { %1684 = vst [vmem:[#allocation5 + $0x1d0] sm:$0xff] %v1682_v5  ;;  %v1768_v32 = vmul.f32 %v1755_v6, %v3549_v55  ;;  %v1783_v19 = vmul.f32 %v1755_v6, %v3496_v3  ;;  %v1784_v27 = vmul.f32 %v1758_v49, %v3484_v31  ;;  %v1769_v59 = vmul.f32 %v1758_v49, %v3564_v54 }
 0x146   :  { %v1766_v0 = vadd.f32 %v1765_v9, %v1764_v47  ;;  %v1779_v34 = vsub.f32 %v1777_v18, %v1778_v25  ;;  %v1782_v2 = vsub.f32 %v1780_v63, %v1781_v42  ;;  %v1644_v51 = vmul.f32 %v1643_v41, %v1639_v46 }
 0x147   :  { %v1785_v56 = vsub.f32 %v1783_v19, %v1784_v27  ;;  %v1770_v48 = vadd.f32 %v1769_v59, %v1768_v32  ;;  %v1771_v31 = vmul.f32 %v1761_v62, %v3566_v1  ;;  %vm1650_vm12 = vcmp.eq.f32.partialorder %v3625_v29, inf }
 0x148   :  { %v1965_v60 = vpop.eup %1964  ;;  %1970 = vrsqrt.f32 %v1766_v0  ;;  %v1786_v44 = vmul.f32 %v1779_v34, %v1779_v34  ;;  %v1787_v7 = vmul.f32 %v1782_v2, %v1782_v2  ;;  %vm1652_vm13 = vcmp.eq.f32.partialorder %v3625_v29, 0.0 }
 0x149   :  { %v1967_v26 = vpop.eup %1966  ;;  %v3646_v12 = vmul.f32 %v1965_v60, %v1729_v35  ;;  %v1789_v4 = vmul.f32 %v1785_v56, %v1785_v56  ;;  %v1645_v46 = vadd.f32 1.5707288, %v1644_v51  ;;  %v1653_v16 = vand.u32 2147483648, %v3625_v29 }
 0x14a   :  { %v1706_v13 = vmul.f32 %v1967_v26, %v1705_v43  ;;  %v1788_v45 = vadd.f32 %v1787_v7, %v1786_v44  ;;  %v1792_v24 = vmul.f32 %v1779_v34, %v3549_v55  ;;  %v1793_v15 = vmul.f32 %v1782_v2, %v3564_v54 }
 0x14b   :  { %v1731_v3 = vand.u32 2147483647, %v3646_v12  ;;  %v1772_v22 = vadd.f32 %v1771_v31, %v1770_v48  ;;  %v1795_v33 = vmul.f32 %v1785_v56, %v3566_v1  ;;  %vm1656_vm14 = vcmp.lt.f32.partialorder %v3605_v30, 0.0 }
 0x14c   :  { %1708 = vst [vmem:[#allocation5 + $0x208] sm:$0xff] %v1706_v13  ;;  %v1790_v50 = vadd.f32 %v1789_v4, %v1788_v45  ;;  %v1794_v38 = vadd.f32 %v1793_v15, %v1792_v24  ;;  %vm1748_vm1 = vcmp.lt.f32.partialorder %v3646_v12, 0.0 }
 0x14d   :  { %v1969_v58 = vpop.eup %1968  ;;  %v1732_v21 = vmul.f32 -0.0187293, %v1731_v3  ;;  %v1738_v17 = vsub.f32 1.0, %v1731_v3  ;;  %v1773_v54 = vmul.f32 %v3634_v28, %v1772_v22 }
 0x14e   :  { %v1649_v61 = vmul.f32 %v1969_v58, %v3625_v29  ;;  %1972 = vrsqrt.f32 %v1790_v50  ;;  %v1796_v57 = vadd.f32 %v1795_v33, %v1794_v38 }
 0x14f   :  { %v1733_v40 = vadd.f32 0.074261, %v1732_v21  ;;  %v1739_v23 = vmax.f32 %v1738_v17, 0.0 }
 0x150   :  { %v1651_v37 = vsel %vm1650_vm12, %v3625_v29, %v1649_v61  ;;  %v1797_v29 = vmul.f32 %v3634_v28, %v1796_v57 }
 0x151   :  { %v1654_v6 = vsel %vm1652_vm13, %v1653_v16, %v1651_v37  ;;  %1974 = vrsqrt.f32 %v1739_v23  ;;  %v1734_v55 = vmul.f32 %v1733_v40, %v1731_v3  ;;  %vm1742_vm15 = vcmp.eq.f32.partialorder %v1739_v23, inf }
 0x152   :  { %v1655_v36 = vmul.f32 %v1654_v6, %v1645_v46  ;;  %v1745_v1 = vand.u32 2147483648, %v1739_v23  ;;  %vm1744_vm0 = vcmp.eq.f32.partialorder %v1739_v23, 0.0 }
 0x153   :  { %v1735_v14 = vadd.f32 -0.2121144, %v1734_v55 }
 0x154   :  { %v1657_v10 = vsub.f32 3.1415927, %v1655_v36 }
 0x155   :  { %v1971_v52 = vpop.eup %1970  ;;  %v1736_v62 = vmul.f32 %v1735_v14, %v1731_v3 }
 0x156   :  { %v1658_v20 = vsel %vm1656_vm14, %v1657_v10, %v1655_v36  ;;  %v1774_v49 = vmul.f32 %v1971_v52, %v1773_v54 }
 0x157   :  { %1660 = vst [vmem:[#allocation5 + $0x198] sm:$0xff] %v1658_v20  ;;  %v1737_v30 = vadd.f32 1.5707288, %v1736_v62 }
 0x158   :  { %1776 = vst [vmem:[#allocation5 + $0x1d8] sm:$0xff] %v1774_v49 }
 0x15b   :  { %v1973_v8 = vpop.eup %1972 }
 0x15c   :  { %v1798_v11 = vmul.f32 %v1973_v8, %v1797_v29 }
 0x15e   :  { %v1975_v39 = vpop.eup %1974  ;;  %1800 = vst [vmem:[#allocation5 + $0x210] sm:$0xff] %v1798_v11 }
 0x15f   :  { %v1741_v53 = vmul.f32 %v1975_v39, %v1739_v23 }
 0x161   :  { %v1743_v9 = vsel %vm1742_vm15, %v1739_v23, %v1741_v53 }
 0x162   :  { %v1746_v42 = vsel %vm1744_vm0, %v1745_v1, %v1743_v9 }
 0x163   :  { %v1747_v5 = vmul.f32 %v1746_v42, %v1737_v30 }
 0x165   :  { %v1749_v35 = vsub.f32 3.1415927, %v1747_v5 }
 0x167   :  { %v1750_v28 = vsel %vm1748_vm1, %v1749_v35, %v1747_v5 }
 0x168   :  { %1752 = vst [vmem:[#allocation5 + $0x1a0] sm:$0xff] %v1750_v28 }
 0x169   :  { %2007 = shalt.err (!%p2004_p9)
}
 0x16a   :  { %1812 = dma.vmem_to_hbm [thread:$0]  %s1807_s13, 8576, %s3673_s1, [#allocation4], %s2021_s9, %s2021_s9, %s2022_s10  }
 0x16b   :  { %2018 = dma.done.wait [#allocation4], 8576  }
 0x16c   :  { %2019 = vsyncadd [#allocation4], 4294958720 }
 0x16d   :  { %1816 = vsyncpa [#allocation3], 1 }
 0x16e   :  { %1817 = vsyncpa [#allocation4], 1 }

</bundles_post_ra>
